<compile_context>
chip_gen: v7x
topology: tpu7x:2x2x1
jax: 0.10.0
libtpu: 0.0.40
codegen_flags: <defaults>
</compile_context>

<pallas_src>
import math
import functools

import jax
import jax.numpy as jnp
from jax.experimental import pallas as pl
from jax.experimental.pallas import tpu as pltpu


def _round_up(x, m):
    return (x + m - 1) // m * m


# ------------------------------ Pallas kernels ------------------------------ #

def _convs_kernel(xf_ref, w1_ref, b1_ref, w2_ref, b2_ref, y2_ref, a1_ref, *, img_w):
    """Fused conv1+BN+ReLU and conv2+BN+ReLU.

    xf_ref : (XF_ROWS, CIN_PAD) f32   flattened-spatial input, rows=(n,h,w)
    w1_ref : (9, CIN_PAD, 128)  f32   per-tap conv1 weight (BN scale folded)
    b1_ref : (1, 128)           f32   folded conv1 bias
    w2_ref : (9, 32, 128)       f32   per-tap conv2 weight (BN scale folded)
    b2_ref : (1, 128)           f32   folded conv2 bias
    y2_ref : (N*H*W, 128)       f32   conv2 output over the full grid
    a1_ref : (A1_ROWS, 128)     f32   VMEM scratch (conv1 output, full grid)

    A 3x3 tap (kh, kw) is a row shift of kh*img_w + kw in the flattened layout;
    border rows compute garbage (finite) values that the wrapper never reads.
    """
    a1_rows = a1_ref.shape[0]
    y2_rows = y2_ref.shape[0]
    c2_in = w2_ref.shape[1]

    # ---- conv1: 9 shifted matmuls accumulated in VMEM scratch ----
    a1_ref[...] = jnp.broadcast_to(b1_ref[...], a1_ref.shape)
    for kh in range(3):
        for kw in range(3):
            t = kh * 3 + kw
            sh = kh * img_w + kw
            a1_ref[...] += jnp.dot(xf_ref[sh:sh + a1_rows, :], w1_ref[t],
                                   preferred_element_type=jnp.float32)
    a1_ref[...] = jnp.maximum(a1_ref[...], 0.0)

    # ---- conv2: 9 shifted matmuls, accumulate straight into the output ----
    y2_ref[...] = jnp.broadcast_to(b2_ref[...], y2_ref.shape)
    for kh in range(3):
        for kw in range(3):
            t = kh * 3 + kw
            sh = kh * img_w + kw
            y2_ref[...] += jnp.dot(a1_ref[sh:sh + y2_rows, 0:c2_in], w2_ref[t],
                                   preferred_element_type=jnp.float32)
    y2_ref[...] = jnp.maximum(y2_ref[...], 0.0)


def _fc_kernel(x_ref, w1_ref, b1_ref, w2_ref, b2_ref, o_ref):
    """Fused fc1 (bf16 matmul, f32 acc) + ReLU + fc2 (+bias), lane-padded out."""
    h = jnp.dot(x_ref[...], w1_ref[...], preferred_element_type=jnp.float32)
    h = jnp.maximum(h + b1_ref[...], 0.0)
    o_ref[...] = jnp.dot(h, w2_ref[...], preferred_element_type=jnp.float32) + b2_ref[...]


# --------------------------------- wrapper ---------------------------------- #

def net_forward(params, x):
    """x: (N, 3, H, W) float32 -> actions: (N, action_dim) float32."""
    eps = 1e-5
    N, Cin, H, W = x.shape
    Ho1, Wo1 = H - 2, W - 2
    Ho2, Wo2 = Ho1 - 2, Wo1 - 2
    P = H * W
    CIN_PAD = 8
    C1, C1P = 32, 128
    C2, C2P = 64, 128

    max_shift = 2 * W + 2
    Y2_ROWS = N * P
    A1_ROWS = _round_up(Y2_ROWS + max_shift, 8)
    XF_ROWS = _round_up(A1_ROWS + max_shift, 8)

    # ---- fold eval-mode BatchNorm into conv weights / bias (weight-side) ----
    s1 = params["bn32_gamma"] / jnp.sqrt(params["bn32_var"] + eps)
    b1 = (params["conv1_b"] - params["bn32_mean"]) * s1 + params["bn32_beta"]
    s2 = params["bn64_gamma"] / jnp.sqrt(params["bn64_var"] + eps)
    b2 = (params["conv2_b"] - params["bn64_mean"]) * s2 + params["bn64_beta"]

    # per-tap conv weights, (kh,kw) major -> (9, cin, cout), output lanes padded to 128
    w1 = (params["conv1_w"] * s1[:, None, None, None]).transpose(2, 3, 1, 0)  # (3,3,Cin,32)
    w1 = jnp.pad(w1.reshape(9, Cin, C1),
                 ((0, 0), (0, CIN_PAD - Cin), (0, C1P - C1))).astype(jnp.float32)
    b1p = jnp.pad(b1, (0, C1P - C1)).reshape(1, C1P).astype(jnp.float32)

    w2 = (params["conv2_w"] * s2[:, None, None, None]).transpose(2, 3, 1, 0)  # (3,3,32,64)
    w2 = jnp.pad(w2.reshape(9, C1, C2),
                 ((0, 0), (0, 0), (0, C2P - C2))).astype(jnp.float32)
    b2p = jnp.pad(b2, (0, C2P - C2)).reshape(1, C2P).astype(jnp.float32)

    # input: NCHW -> flattened-spatial channels-last rows, zero-padded
    xf = x.transpose(0, 2, 3, 1).reshape(N * P, Cin)
    xf = jnp.pad(xf, ((0, XF_ROWS - N * P), (0, CIN_PAD - Cin))).astype(jnp.float32)

    # ---- fused conv1+BN+ReLU + conv2+BN+ReLU (one pallas_call) ----
    y2 = pl.pallas_call(
        functools.partial(_convs_kernel, img_w=W),
        out_shape=jax.ShapeDtypeStruct((Y2_ROWS, C2P), jnp.float32),
        grid=(1,),
        in_specs=[
            pl.BlockSpec((XF_ROWS, CIN_PAD), lambda i: (0, 0)),
            pl.BlockSpec((9, CIN_PAD, C1P), lambda i: (0, 0, 0)),
            pl.BlockSpec((1, C1P), lambda i: (0, 0)),
            pl.BlockSpec((9, C1, C2P), lambda i: (0, 0, 0)),
            pl.BlockSpec((1, C2P), lambda i: (0, 0)),
        ],
        out_specs=pl.BlockSpec((Y2_ROWS, C2P), lambda i: (0, 0)),
        scratch_shapes=[pltpu.VMEM((A1_ROWS, C1P), jnp.float32)],
        compiler_params=pltpu.CompilerParams(
            dimension_semantics=("arbitrary",),
            vmem_limit_bytes=32 * 1024 * 1024),
    )(xf, w1, b1p, w2, b2p)

    # ---- tiny XLA glue: keep valid 12x12 region, flatten in (h, w, c) order ----
    y2v = y2[:, :C2].reshape(N, H, W, C2)[:, :Ho2, :Wo2, :]
    flat = y2v.reshape(N, Ho2 * Wo2 * C2)

    # ---- fused fc1+ReLU+fc2 (one pallas_call) ----
    hidden = params["fc1_w"].shape[0]
    adim = params["fc2_w"].shape[0]
    ADIM_PAD = _round_up(adim, 128)
    K1 = Ho2 * Wo2 * C2

    # permute fc1 feature order (c,h,w) -> (h,w,c) once (weight-side), bf16 cast
    w_fc1 = (params["fc1_w"].reshape(hidden, C2, Ho2, Wo2)
             .transpose(2, 3, 1, 0).reshape(K1, hidden)).astype(jnp.bfloat16)
    b_fc1 = params["fc1_b"].reshape(1, hidden).astype(jnp.float32)
    w_fc2 = jnp.pad(params["fc2_w"].T, ((0, 0), (0, ADIM_PAD - adim))).astype(jnp.float32)
    b_fc2 = jnp.pad(params["fc2_b"], (0, ADIM_PAD - adim)).reshape(1, ADIM_PAD).astype(jnp.float32)

    out = pl.pallas_call(
        _fc_kernel,
        out_shape=jax.ShapeDtypeStruct((N, ADIM_PAD), jnp.float32),
        grid=(1,),
        in_specs=[
            pl.BlockSpec((N, K1), lambda i: (0, 0)),
            pl.BlockSpec((K1, hidden), lambda i: (0, 0)),
            pl.BlockSpec((1, hidden), lambda i: (0, 0)),
            pl.BlockSpec((hidden, ADIM_PAD), lambda i: (0, 0)),
            pl.BlockSpec((1, ADIM_PAD), lambda i: (0, 0)),
        ],
        out_specs=pl.BlockSpec((N, ADIM_PAD), lambda i: (0, 0)),
        compiler_params=pltpu.CompilerParams(
            dimension_semantics=("arbitrary",),
            vmem_limit_bytes=32 * 1024 * 1024),
    )(flat.astype(jnp.bfloat16), w_fc1, b_fc1, w_fc2, b_fc2)

    return out[:, :adim]


# ------------------------------ parameter init ------------------------------ #

def init_params(key, hidden_dim=128, action_dim=4, hw=16):
    ks = jax.random.split(key, 8)
    n1 = 3 * 3 * 32
    n2 = 3 * 3 * 64
    fcn_in = 64 * (hw - 4) * (hw - 4)

    def unif(k, shape, fan_in):
        bound = 1.0 / math.sqrt(fan_in)
        return jax.random.uniform(k, shape, jnp.float32, -bound, bound)

    return {
        # conv weights: normal(0, sqrt(2/n)) as in the module __init__
        "conv1_w": jax.random.normal(ks[0], (32, 3, 3, 3), jnp.float32) * math.sqrt(2.0 / n1),
        "conv1_b": unif(ks[1], (32,), 3 * 3 * 3),
        "conv2_w": jax.random.normal(ks[2], (64, 32, 3, 3), jnp.float32) * math.sqrt(2.0 / n2),
        "conv2_b": unif(ks[3], (64,), 32 * 3 * 3),
        # fc weights: normal(0, 0.1) as in the module __init__
        "fc1_w": jax.random.normal(ks[4], (hidden_dim, fcn_in), jnp.float32) * 0.1,
        "fc1_b": unif(ks[5], (hidden_dim,), fcn_in),
        "fc2_w": jax.random.normal(ks[6], (action_dim, hidden_dim), jnp.float32) * 0.1,
        "fc2_b": unif(ks[7], (action_dim,), hidden_dim),
        # BatchNorm (PyTorch defaults, eval mode)
        "bn32_gamma": jnp.ones((32,), jnp.float32),
        "bn32_beta": jnp.zeros((32,), jnp.float32),
        "bn32_mean": jnp.zeros((32,), jnp.float32),
        "bn32_var": jnp.ones((32,), jnp.float32),
        "bn64_gamma": jnp.ones((64,), jnp.float32),
        "bn64_beta": jnp.zeros((64,), jnp.float32),
        "bn64_mean": jnp.zeros((64,), jnp.float32),
        "bn64_var": jnp.ones((64,), jnp.float32),
    }


if __name__ == "__main__":
    key = jax.random.PRNGKey(0)
    k_x, k_p = jax.random.split(key)

    N, C, H, W = 2, 3, 16, 16          # state_dim interpreted as (3, 16, 16)
    x = jax.random.normal(k_x, (N, C, H, W), jnp.float32)
    params = init_params(k_p, hidden_dim=128, action_dim=4, hw=H)

    fwd = jax.jit(net_forward)
    actions = jax.block_until_ready(fwd(params, x))

    assert actions.shape == (N, 4), actions.shape
    assert actions.dtype == jnp.float32
    assert bool(jnp.all(jnp.isfinite(actions)))
    print("KERNEL_OK")
</pallas_src>

<mosaic_0001>
module attributes {stable_mosaic.version = 11 : i64} {
  func.func @_convs_kernel(%arg0: i32, %arg1: memref<592x8xf32, #tpu.memory_space<vmem>>, %arg2: memref<9x8x128xf32, #tpu.memory_space<vmem>>, %arg3: memref<1x128xf32, #tpu.memory_space<vmem>>, %arg4: memref<9x32x128xf32, #tpu.memory_space<vmem>>, %arg5: memref<1x128xf32, #tpu.memory_space<vmem>>, %arg6: memref<512x128xf32, #tpu.memory_space<vmem>>, %arg7: memref<552x128xf32, #tpu.memory_space<vmem>>) attributes {dimension_semantics = [#tpu.dimension_semantics<arbitrary>], iteration_bounds = array<i64: 1>, scalar_prefetch = 0 : i64, scratch_operands = 1 : i64, tpu.core_type = #tpu.core_type<tc>, window_params = [{pipeline_mode = #tpu.pipeline_mode<synchronous>, transform_indices = @transform_0, window_bounds = array<i64: 592, 8>}, {pipeline_mode = #tpu.pipeline_mode<synchronous>, transform_indices = @transform_1, window_bounds = array<i64: 9, 8, 128>}, {pipeline_mode = #tpu.pipeline_mode<synchronous>, transform_indices = @transform_2, window_bounds = array<i64: 1, 128>}, {pipeline_mode = #tpu.pipeline_mode<synchronous>, transform_indices = @transform_3, window_bounds = array<i64: 9, 32, 128>}, {pipeline_mode = #tpu.pipeline_mode<synchronous>, transform_indices = @transform_4, window_bounds = array<i64: 1, 128>}, {pipeline_mode = #tpu.pipeline_mode<synchronous>, transform_indices = @transform_5, window_bounds = array<i64: 512, 128>}]} {
    %c0 = arith.constant 0 : index
    %c0_0 = arith.constant 0 : index
    %0 = vector.load %arg3[%c0, %c0_0] : memref<1x128xf32, #tpu.memory_space<vmem>>, vector<1x128xf32>
    %1 = vector.shape_cast %0 : vector<1x128xf32> to vector<1x128xf32>
    %2 = vector.broadcast %1 : vector<1x128xf32> to vector<552x128xf32>
    %c0_1 = arith.constant 0 : index
    %c0_2 = arith.constant 0 : index
    %3 = vector.load %arg7[%c0_1, %c0_2] : memref<552x128xf32, #tpu.memory_space<vmem>>, vector<552x128xf32>
    tpu.vector_store %arg7[%c0_1, %c0_2], %2 {strides = array<i32>} : memref<552x128xf32, #tpu.memory_space<vmem>>, vector<552x128xf32>,
    %c0_3 = arith.constant 0 : index
    %c0_4 = arith.constant 0 : index
    %4 = vector.load %arg7[%c0_3, %c0_4] : memref<552x128xf32, #tpu.memory_space<vmem>>, vector<552x128xf32>
    %c0_5 = arith.constant 0 : index
    %c0_6 = arith.constant 0 : index
    %5 = vector.load %arg1[%c0_5, %c0_6] : memref<592x8xf32, #tpu.memory_space<vmem>>, vector<552x8xf32>
    %c0_7 = arith.constant 0 : index
    %c0_8 = arith.constant 0 : index
    %c0_9 = arith.constant 0 : index
    %6 = vector.load %arg2[%c0_7, %c0_8, %c0_9] : memref<9x8x128xf32, #tpu.memory_space<vmem>>, vector<1x8x128xf32>
    %7 = vector.shape_cast %6 : vector<1x8x128xf32> to vector<8x128xf32>
    %cst = arith.constant dense<0.000000e+00> : vector<552x128xf32>
    %8 = tpu.matmul %5, %7, %cst {dimension_numbers = #tpu.dot_dimension_numbers<[1], [0], [0], [1], [0, 0, 1, 1], [], []>} : vector<552x8xf32>, vector<8x128xf32>, vector<552x128xf32> -> vector<552x128xf32>
    %9 = arith.addf %4, %8 : vector<552x128xf32>
    %c0_10 = arith.constant 0 : index
    %c0_11 = arith.constant 0 : index
    %10 = vector.load %arg7[%c0_10, %c0_11] : memref<552x128xf32, #tpu.memory_space<vmem>>, vector<552x128xf32>
    tpu.vector_store %arg7[%c0_10, %c0_11], %9 {strides = array<i32>} : memref<552x128xf32, #tpu.memory_space<vmem>>, vector<552x128xf32>,
    %c0_12 = arith.constant 0 : index
    %c0_13 = arith.constant 0 : index
    %11 = vector.load %arg7[%c0_12, %c0_13] : memref<552x128xf32, #tpu.memory_space<vmem>>, vector<552x128xf32>
    %c1 = arith.constant 1 : index
    %c0_14 = arith.constant 0 : index
    %12 = vector.load %arg1[%c1, %c0_14] : memref<592x8xf32, #tpu.memory_space<vmem>>, vector<552x8xf32>
    %c1_15 = arith.constant 1 : index
    %c0_16 = arith.constant 0 : index
    %c0_17 = arith.constant 0 : index
    %13 = vector.load %arg2[%c1_15, %c0_16, %c0_17] : memref<9x8x128xf32, #tpu.memory_space<vmem>>, vector<1x8x128xf32>
    %14 = vector.shape_cast %13 : vector<1x8x128xf32> to vector<8x128xf32>
    %cst_18 = arith.constant dense<0.000000e+00> : vector<552x128xf32>
    %15 = tpu.matmul %12, %14, %cst_18 {dimension_numbers = #tpu.dot_dimension_numbers<[1], [0], [0], [1], [0, 0, 1, 1], [], []>} : vector<552x8xf32>, vector<8x128xf32>, vector<552x128xf32> -> vector<552x128xf32>
    %16 = arith.addf %11, %15 : vector<552x128xf32>
    %c0_19 = arith.constant 0 : index
    %c0_20 = arith.constant 0 : index
    %17 = vector.load %arg7[%c0_19, %c0_20] : memref<552x128xf32, #tpu.memory_space<vmem>>, vector<552x128xf32>
    tpu.vector_store %arg7[%c0_19, %c0_20], %16 {strides = array<i32>} : memref<552x128xf32, #tpu.memory_space<vmem>>, vector<552x128xf32>,
    %c0_21 = arith.constant 0 : index
    %c0_22 = arith.constant 0 : index
    %18 = vector.load %arg7[%c0_21, %c0_22] : memref<552x128xf32, #tpu.memory_space<vmem>>, vector<552x128xf32>
    %c2 = arith.constant 2 : index
    %c0_23 = arith.constant 0 : index
    %19 = vector.load %arg1[%c2, %c0_23] : memref<592x8xf32, #tpu.memory_space<vmem>>, vector<552x8xf32>
    %c2_24 = arith.constant 2 : index
    %c0_25 = arith.constant 0 : index
    %c0_26 = arith.constant 0 : index
    %20 = vector.load %arg2[%c2_24, %c0_25, %c0_26] : memref<9x8x128xf32, #tpu.memory_space<vmem>>, vector<1x8x128xf32>
    %21 = vector.shape_cast %20 : vector<1x8x128xf32> to vector<8x128xf32>
    %cst_27 = arith.constant dense<0.000000e+00> : vector<552x128xf32>
    %22 = tpu.matmul %19, %21, %cst_27 {dimension_numbers = #tpu.dot_dimension_numbers<[1], [0], [0], [1], [0, 0, 1, 1], [], []>} : vector<552x8xf32>, vector<8x128xf32>, vector<552x128xf32> -> vector<552x128xf32>
    %23 = arith.addf %18, %22 : vector<552x128xf32>
    %c0_28 = arith.constant 0 : index
    %c0_29 = arith.constant 0 : index
    %24 = vector.load %arg7[%c0_28, %c0_29] : memref<552x128xf32, #tpu.memory_space<vmem>>, vector<552x128xf32>
    tpu.vector_store %arg7[%c0_28, %c0_29], %23 {strides = array<i32>} : memref<552x128xf32, #tpu.memory_space<vmem>>, vector<552x128xf32>,
    %c0_30 = arith.constant 0 : index
    %c0_31 = arith.constant 0 : index
    %25 = vector.load %arg7[%c0_30, %c0_31] : memref<552x128xf32, #tpu.memory_space<vmem>>, vector<552x128xf32>
    %c16 = arith.constant 16 : index
    %c0_32 = arith.constant 0 : index
    %26 = vector.load %arg1[%c16, %c0_32] : memref<592x8xf32, #tpu.memory_space<vmem>>, vector<552x8xf32>
    %c3 = arith.constant 3 : index
    %c0_33 = arith.constant 0 : index
    %c0_34 = arith.constant 0 : index
    %27 = vector.load %arg2[%c3, %c0_33, %c0_34] : memref<9x8x128xf32, #tpu.memory_space<vmem>>, vector<1x8x128xf32>
    %28 = vector.shape_cast %27 : vector<1x8x128xf32> to vector<8x128xf32>
    %cst_35 = arith.constant dense<0.000000e+00> : vector<552x128xf32>
    %29 = tpu.matmul %26, %28, %cst_35 {dimension_numbers = #tpu.dot_dimension_numbers<[1], [0], [0], [1], [0, 0, 1, 1], [], []>} : vector<552x8xf32>, vector<8x128xf32>, vector<552x128xf32> -> vector<552x128xf32>
    %30 = arith.addf %25, %29 : vector<552x128xf32>
    %c0_36 = arith.constant 0 : index
    %c0_37 = arith.constant 0 : index
    %31 = vector.load %arg7[%c0_36, %c0_37] : memref<552x128xf32, #tpu.memory_space<vmem>>, vector<552x128xf32>
    tpu.vector_store %arg7[%c0_36, %c0_37], %30 {strides = array<i32>} : memref<552x128xf32, #tpu.memory_space<vmem>>, vector<552x128xf32>,
    %c0_38 = arith.constant 0 : index
    %c0_39 = arith.constant 0 : index
    %32 = vector.load %arg7[%c0_38, %c0_39] : memref<552x128xf32, #tpu.memory_space<vmem>>, vector<552x128xf32>
    %c17 = arith.constant 17 : index
    %c0_40 = arith.constant 0 : index
    %33 = vector.load %arg1[%c17, %c0_40] : memref<592x8xf32, #tpu.memory_space<vmem>>, vector<552x8xf32>
    %c4 = arith.constant 4 : index
    %c0_41 = arith.constant 0 : index
    %c0_42 = arith.constant 0 : index
    %34 = vector.load %arg2[%c4, %c0_41, %c0_42] : memref<9x8x128xf32, #tpu.memory_space<vmem>>, vector<1x8x128xf32>
    %35 = vector.shape_cast %34 : vector<1x8x128xf32> to vector<8x128xf32>
    %cst_43 = arith.constant dense<0.000000e+00> : vector<552x128xf32>
    %36 = tpu.matmul %33, %35, %cst_43 {dimension_numbers = #tpu.dot_dimension_numbers<[1], [0], [0], [1], [0, 0, 1, 1], [], []>} : vector<552x8xf32>, vector<8x128xf32>, vector<552x128xf32> -> vector<552x128xf32>
    %37 = arith.addf %32, %36 : vector<552x128xf32>
    %c0_44 = arith.constant 0 : index
    %c0_45 = arith.constant 0 : index
    %38 = vector.load %arg7[%c0_44, %c0_45] : memref<552x128xf32, #tpu.memory_space<vmem>>, vector<552x128xf32>
    tpu.vector_store %arg7[%c0_44, %c0_45], %37 {strides = array<i32>} : memref<552x128xf32, #tpu.memory_space<vmem>>, vector<552x128xf32>,
    %c0_46 = arith.constant 0 : index
    %c0_47 = arith.constant 0 : index
    %39 = vector.load %arg7[%c0_46, %c0_47] : memref<552x128xf32, #tpu.memory_space<vmem>>, vector<552x128xf32>
    %c18 = arith.constant 18 : index
    %c0_48 = arith.constant 0 : index
    %40 = vector.load %arg1[%c18, %c0_48] : memref<592x8xf32, #tpu.memory_space<vmem>>, vector<552x8xf32>
    %c5 = arith.constant 5 : index
    %c0_49 = arith.constant 0 : index
    %c0_50 = arith.constant 0 : index
    %41 = vector.load %arg2[%c5, %c0_49, %c0_50] : memref<9x8x128xf32, #tpu.memory_space<vmem>>, vector<1x8x128xf32>
    %42 = vector.shape_cast %41 : vector<1x8x128xf32> to vector<8x128xf32>
    %cst_51 = arith.constant dense<0.000000e+00> : vector<552x128xf32>
    %43 = tpu.matmul %40, %42, %cst_51 {dimension_numbers = #tpu.dot_dimension_numbers<[1], [0], [0], [1], [0, 0, 1, 1], [], []>} : vector<552x8xf32>, vector<8x128xf32>, vector<552x128xf32> -> vector<552x128xf32>
    %44 = arith.addf %39, %43 : vector<552x128xf32>
    %c0_52 = arith.constant 0 : index
    %c0_53 = arith.constant 0 : index
    %45 = vector.load %arg7[%c0_52, %c0_53] : memref<552x128xf32, #tpu.memory_space<vmem>>, vector<552x128xf32>
    tpu.vector_store %arg7[%c0_52, %c0_53], %44 {strides = array<i32>} : memref<552x128xf32, #tpu.memory_space<vmem>>, vector<552x128xf32>,
    %c0_54 = arith.constant 0 : index
    %c0_55 = arith.constant 0 : index
    %46 = vector.load %arg7[%c0_54, %c0_55] : memref<552x128xf32, #tpu.memory_space<vmem>>, vector<552x128xf32>
    %c32 = arith.constant 32 : index
    %c0_56 = arith.constant 0 : index
    %47 = vector.load %arg1[%c32, %c0_56] : memref<592x8xf32, #tpu.memory_space<vmem>>, vector<552x8xf32>
    %c6 = arith.constant 6 : index
    %c0_57 = arith.constant 0 : index
    %c0_58 = arith.constant 0 : index
    %48 = vector.load %arg2[%c6, %c0_57, %c0_58] : memref<9x8x128xf32, #tpu.memory_space<vmem>>, vector<1x8x128xf32>
    %49 = vector.shape_cast %48 : vector<1x8x128xf32> to vector<8x128xf32>
    %cst_59 = arith.constant dense<0.000000e+00> : vector<552x128xf32>
    %50 = tpu.matmul %47, %49, %cst_59 {dimension_numbers = #tpu.dot_dimension_numbers<[1], [0], [0], [1], [0, 0, 1, 1], [], []>} : vector<552x8xf32>, vector<8x128xf32>, vector<552x128xf32> -> vector<552x128xf32>
    %51 = arith.addf %46, %50 : vector<552x128xf32>
    %c0_60 = arith.constant 0 : index
    %c0_61 = arith.constant 0 : index
    %52 = vector.load %arg7[%c0_60, %c0_61] : memref<552x128xf32, #tpu.memory_space<vmem>>, vector<552x128xf32>
    tpu.vector_store %arg7[%c0_60, %c0_61], %51 {strides = array<i32>} : memref<552x128xf32, #tpu.memory_space<vmem>>, vector<552x128xf32>,
    %c0_62 = arith.constant 0 : index
    %c0_63 = arith.constant 0 : index
    %53 = vector.load %arg7[%c0_62, %c0_63] : memref<552x128xf32, #tpu.memory_space<vmem>>, vector<552x128xf32>
    %c33 = arith.constant 33 : index
    %c0_64 = arith.constant 0 : index
    %54 = vector.load %arg1[%c33, %c0_64] : memref<592x8xf32, #tpu.memory_space<vmem>>, vector<552x8xf32>
    %c7 = arith.constant 7 : index
    %c0_65 = arith.constant 0 : index
    %c0_66 = arith.constant 0 : index
    %55 = vector.load %arg2[%c7, %c0_65, %c0_66] : memref<9x8x128xf32, #tpu.memory_space<vmem>>, vector<1x8x128xf32>
    %56 = vector.shape_cast %55 : vector<1x8x128xf32> to vector<8x128xf32>
    %cst_67 = arith.constant dense<0.000000e+00> : vector<552x128xf32>
    %57 = tpu.matmul %54, %56, %cst_67 {dimension_numbers = #tpu.dot_dimension_numbers<[1], [0], [0], [1], [0, 0, 1, 1], [], []>} : vector<552x8xf32>, vector<8x128xf32>, vector<552x128xf32> -> vector<552x128xf32>
    %58 = arith.addf %53, %57 : vector<552x128xf32>
    %c0_68 = arith.constant 0 : index
    %c0_69 = arith.constant 0 : index
    %59 = vector.load %arg7[%c0_68, %c0_69] : memref<552x128xf32, #tpu.memory_space<vmem>>, vector<552x128xf32>
    tpu.vector_store %arg7[%c0_68, %c0_69], %58 {strides = array<i32>} : memref<552x128xf32, #tpu.memory_space<vmem>>, vector<552x128xf32>,
    %c0_70 = arith.constant 0 : index
    %c0_71 = arith.constant 0 : index
    %60 = vector.load %arg7[%c0_70, %c0_71] : memref<552x128xf32, #tpu.memory_space<vmem>>, vector<552x128xf32>
    %c34 = arith.constant 34 : index
    %c0_72 = arith.constant 0 : index
    %61 = vector.load %arg1[%c34, %c0_72] : memref<592x8xf32, #tpu.memory_space<vmem>>, vector<552x8xf32>
    %c8 = arith.constant 8 : index
    %c0_73 = arith.constant 0 : index
    %c0_74 = arith.constant 0 : index
    %62 = vector.load %arg2[%c8, %c0_73, %c0_74] : memref<9x8x128xf32, #tpu.memory_space<vmem>>, vector<1x8x128xf32>
    %63 = vector.shape_cast %62 : vector<1x8x128xf32> to vector<8x128xf32>
    %cst_75 = arith.constant dense<0.000000e+00> : vector<552x128xf32>
    %64 = tpu.matmul %61, %63, %cst_75 {dimension_numbers = #tpu.dot_dimension_numbers<[1], [0], [0], [1], [0, 0, 1, 1], [], []>} : vector<552x8xf32>, vector<8x128xf32>, vector<552x128xf32> -> vector<552x128xf32>
    %65 = arith.addf %60, %64 : vector<552x128xf32>
    %c0_76 = arith.constant 0 : index
    %c0_77 = arith.constant 0 : index
    %66 = vector.load %arg7[%c0_76, %c0_77] : memref<552x128xf32, #tpu.memory_space<vmem>>, vector<552x128xf32>
    tpu.vector_store %arg7[%c0_76, %c0_77], %65 {strides = array<i32>} : memref<552x128xf32, #tpu.memory_space<vmem>>, vector<552x128xf32>,
    %c0_78 = arith.constant 0 : index
    %c0_79 = arith.constant 0 : index
    %67 = vector.load %arg7[%c0_78, %c0_79] : memref<552x128xf32, #tpu.memory_space<vmem>>, vector<552x128xf32>
    %cst_80 = arith.constant 0.000000e+00 : f32
    %68 = vector.broadcast %cst_80 : f32 to vector<552x128xf32>
    %69 = arith.maximumf %67, %68 : vector<552x128xf32>
    %c0_81 = arith.constant 0 : index
    %c0_82 = arith.constant 0 : index
    %70 = vector.load %arg7[%c0_81, %c0_82] : memref<552x128xf32, #tpu.memory_space<vmem>>, vector<552x128xf32>
    tpu.vector_store %arg7[%c0_81, %c0_82], %69 {strides = array<i32>} : memref<552x128xf32, #tpu.memory_space<vmem>>, vector<552x128xf32>,
    %c0_83 = arith.constant 0 : index
    %c0_84 = arith.constant 0 : index
    %71 = vector.load %arg5[%c0_83, %c0_84] : memref<1x128xf32, #tpu.memory_space<vmem>>, vector<1x128xf32>
    %72 = vector.shape_cast %71 : vector<1x128xf32> to vector<1x128xf32>
    %73 = vector.broadcast %72 : vector<1x128xf32> to vector<512x128xf32>
    %c0_85 = arith.constant 0 : index
    %c0_86 = arith.constant 0 : index
    %74 = vector.load %arg6[%c0_85, %c0_86] : memref<512x128xf32, #tpu.memory_space<vmem>>, vector<512x128xf32>
    tpu.vector_store %arg6[%c0_85, %c0_86], %73 {strides = array<i32>} : memref<512x128xf32, #tpu.memory_space<vmem>>, vector<512x128xf32>,
    %c0_87 = arith.constant 0 : index
    %c0_88 = arith.constant 0 : index
    %75 = vector.load %arg6[%c0_87, %c0_88] : memref<512x128xf32, #tpu.memory_space<vmem>>, vector<512x128xf32>
    %c0_89 = arith.constant 0 : index
    %c0_90 = arith.constant 0 : index
    %76 = vector.load %arg7[%c0_89, %c0_90] : memref<552x128xf32, #tpu.memory_space<vmem>>, vector<512x32xf32>
    %c0_91 = arith.constant 0 : index
    %c0_92 = arith.constant 0 : index
    %c0_93 = arith.constant 0 : index
    %77 = vector.load %arg4[%c0_91, %c0_92, %c0_93] : memref<9x32x128xf32, #tpu.memory_space<vmem>>, vector<1x32x128xf32>
    %78 = vector.shape_cast %77 : vector<1x32x128xf32> to vector<32x128xf32>
    %cst_94 = arith.constant dense<0.000000e+00> : vector<512x128xf32>
    %79 = tpu.matmul %76, %78, %cst_94 {dimension_numbers = #tpu.dot_dimension_numbers<[1], [0], [0], [1], [0, 0, 1, 1], [], []>} : vector<512x32xf32>, vector<32x128xf32>, vector<512x128xf32> -> vector<512x128xf32>
    %80 = arith.addf %75, %79 : vector<512x128xf32>
    %c0_95 = arith.constant 0 : index
    %c0_96 = arith.constant 0 : index
    %81 = vector.load %arg6[%c0_95, %c0_96] : memref<512x128xf32, #tpu.memory_space<vmem>>, vector<512x128xf32>
    tpu.vector_store %arg6[%c0_95, %c0_96], %80 {strides = array<i32>} : memref<512x128xf32, #tpu.memory_space<vmem>>, vector<512x128xf32>,
    %c0_97 = arith.constant 0 : index
    %c0_98 = arith.constant 0 : index
    %82 = vector.load %arg6[%c0_97, %c0_98] : memref<512x128xf32, #tpu.memory_space<vmem>>, vector<512x128xf32>
    %c1_99 = arith.constant 1 : index
    %c0_100 = arith.constant 0 : index
    %83 = vector.load %arg7[%c1_99, %c0_100] : memref<552x128xf32, #tpu.memory_space<vmem>>, vector<512x32xf32>
    %c1_101 = arith.constant 1 : index
    %c0_102 = arith.constant 0 : index
    %c0_103 = arith.constant 0 : index
    %84 = vector.load %arg4[%c1_101, %c0_102, %c0_103] : memref<9x32x128xf32, #tpu.memory_space<vmem>>, vector<1x32x128xf32>
    %85 = vector.shape_cast %84 : vector<1x32x128xf32> to vector<32x128xf32>
    %cst_104 = arith.constant dense<0.000000e+00> : vector<512x128xf32>
    %86 = tpu.matmul %83, %85, %cst_104 {dimension_numbers = #tpu.dot_dimension_numbers<[1], [0], [0], [1], [0, 0, 1, 1], [], []>} : vector<512x32xf32>, vector<32x128xf32>, vector<512x128xf32> -> vector<512x128xf32>
    %87 = arith.addf %82, %86 : vector<512x128xf32>
    %c0_105 = arith.constant 0 : index
    %c0_106 = arith.constant 0 : index
    %88 = vector.load %arg6[%c0_105, %c0_106] : memref<512x128xf32, #tpu.memory_space<vmem>>, vector<512x128xf32>
    tpu.vector_store %arg6[%c0_105, %c0_106], %87 {strides = array<i32>} : memref<512x128xf32, #tpu.memory_space<vmem>>, vector<512x128xf32>,
    %c0_107 = arith.constant 0 : index
    %c0_108 = arith.constant 0 : index
    %89 = vector.load %arg6[%c0_107, %c0_108] : memref<512x128xf32, #tpu.memory_space<vmem>>, vector<512x128xf32>
    %c2_109 = arith.constant 2 : index
    %c0_110 = arith.constant 0 : index
    %90 = vector.load %arg7[%c2_109, %c0_110] : memref<552x128xf32, #tpu.memory_space<vmem>>, vector<512x32xf32>
    %c2_111 = arith.constant 2 : index
    %c0_112 = arith.constant 0 : index
    %c0_113 = arith.constant 0 : index
    %91 = vector.load %arg4[%c2_111, %c0_112, %c0_113] : memref<9x32x128xf32, #tpu.memory_space<vmem>>, vector<1x32x128xf32>
    %92 = vector.shape_cast %91 : vector<1x32x128xf32> to vector<32x128xf32>
    %cst_114 = arith.constant dense<0.000000e+00> : vector<512x128xf32>
    %93 = tpu.matmul %90, %92, %cst_114 {dimension_numbers = #tpu.dot_dimension_numbers<[1], [0], [0], [1], [0, 0, 1, 1], [], []>} : vector<512x32xf32>, vector<32x128xf32>, vector<512x128xf32> -> vector<512x128xf32>
    %94 = arith.addf %89, %93 : vector<512x128xf32>
    %c0_115 = arith.constant 0 : index
    %c0_116 = arith.constant 0 : index
    %95 = vector.load %arg6[%c0_115, %c0_116] : memref<512x128xf32, #tpu.memory_space<vmem>>, vector<512x128xf32>
    tpu.vector_store %arg6[%c0_115, %c0_116], %94 {strides = array<i32>} : memref<512x128xf32, #tpu.memory_space<vmem>>, vector<512x128xf32>,
    %c0_117 = arith.constant 0 : index
    %c0_118 = arith.constant 0 : index
    %96 = vector.load %arg6[%c0_117, %c0_118] : memref<512x128xf32, #tpu.memory_space<vmem>>, vector<512x128xf32>
    %c16_119 = arith.constant 16 : index
    %c0_120 = arith.constant 0 : index
    %97 = vector.load %arg7[%c16_119, %c0_120] : memref<552x128xf32, #tpu.memory_space<vmem>>, vector<512x32xf32>
    %c3_121 = arith.constant 3 : index
    %c0_122 = arith.constant 0 : index
    %c0_123 = arith.constant 0 : index
    %98 = vector.load %arg4[%c3_121, %c0_122, %c0_123] : memref<9x32x128xf32, #tpu.memory_space<vmem>>, vector<1x32x128xf32>
    %99 = vector.shape_cast %98 : vector<1x32x128xf32> to vector<32x128xf32>
    %cst_124 = arith.constant dense<0.000000e+00> : vector<512x128xf32>
    %100 = tpu.matmul %97, %99, %cst_124 {dimension_numbers = #tpu.dot_dimension_numbers<[1], [0], [0], [1], [0, 0, 1, 1], [], []>} : vector<512x32xf32>, vector<32x128xf32>, vector<512x128xf32> -> vector<512x128xf32>
    %101 = arith.addf %96, %100 : vector<512x128xf32>
    %c0_125 = arith.constant 0 : index
    %c0_126 = arith.constant 0 : index
    %102 = vector.load %arg6[%c0_125, %c0_126] : memref<512x128xf32, #tpu.memory_space<vmem>>, vector<512x128xf32>
    tpu.vector_store %arg6[%c0_125, %c0_126], %101 {strides = array<i32>} : memref<512x128xf32, #tpu.memory_space<vmem>>, vector<512x128xf32>,
    %c0_127 = arith.constant 0 : index
    %c0_128 = arith.constant 0 : index
    %103 = vector.load %arg6[%c0_127, %c0_128] : memref<512x128xf32, #tpu.memory_space<vmem>>, vector<512x128xf32>
    %c17_129 = arith.constant 17 : index
    %c0_130 = arith.constant 0 : index
    %104 = vector.load %arg7[%c17_129, %c0_130] : memref<552x128xf32, #tpu.memory_space<vmem>>, vector<512x32xf32>
    %c4_131 = arith.constant 4 : index
    %c0_132 = arith.constant 0 : index
    %c0_133 = arith.constant 0 : index
    %105 = vector.load %arg4[%c4_131, %c0_132, %c0_133] : memref<9x32x128xf32, #tpu.memory_space<vmem>>, vector<1x32x128xf32>
    %106 = vector.shape_cast %105 : vector<1x32x128xf32> to vector<32x128xf32>
    %cst_134 = arith.constant dense<0.000000e+00> : vector<512x128xf32>
    %107 = tpu.matmul %104, %106, %cst_134 {dimension_numbers = #tpu.dot_dimension_numbers<[1], [0], [0], [1], [0, 0, 1, 1], [], []>} : vector<512x32xf32>, vector<32x128xf32>, vector<512x128xf32> -> vector<512x128xf32>
    %108 = arith.addf %103, %107 : vector<512x128xf32>
    %c0_135 = arith.constant 0 : index
    %c0_136 = arith.constant 0 : index
    %109 = vector.load %arg6[%c0_135, %c0_136] : memref<512x128xf32, #tpu.memory_space<vmem>>, vector<512x128xf32>
    tpu.vector_store %arg6[%c0_135, %c0_136], %108 {strides = array<i32>} : memref<512x128xf32, #tpu.memory_space<vmem>>, vector<512x128xf32>,
    %c0_137 = arith.constant 0 : index
    %c0_138 = arith.constant 0 : index
    %110 = vector.load %arg6[%c0_137, %c0_138] : memref<512x128xf32, #tpu.memory_space<vmem>>, vector<512x128xf32>
    %c18_139 = arith.constant 18 : index
    %c0_140 = arith.constant 0 : index
    %111 = vector.load %arg7[%c18_139, %c0_140] : memref<552x128xf32, #tpu.memory_space<vmem>>, vector<512x32xf32>
    %c5_141 = arith.constant 5 : index
    %c0_142 = arith.constant 0 : index
    %c0_143 = arith.constant 0 : index
    %112 = vector.load %arg4[%c5_141, %c0_142, %c0_143] : memref<9x32x128xf32, #tpu.memory_space<vmem>>, vector<1x32x128xf32>
    %113 = vector.shape_cast %112 : vector<1x32x128xf32> to vector<32x128xf32>
    %cst_144 = arith.constant dense<0.000000e+00> : vector<512x128xf32>
    %114 = tpu.matmul %111, %113, %cst_144 {dimension_numbers = #tpu.dot_dimension_numbers<[1], [0], [0], [1], [0, 0, 1, 1], [], []>} : vector<512x32xf32>, vector<32x128xf32>, vector<512x128xf32> -> vector<512x128xf32>
    %115 = arith.addf %110, %114 : vector<512x128xf32>
    %c0_145 = arith.constant 0 : index
    %c0_146 = arith.constant 0 : index
    %116 = vector.load %arg6[%c0_145, %c0_146] : memref<512x128xf32, #tpu.memory_space<vmem>>, vector<512x128xf32>
    tpu.vector_store %arg6[%c0_145, %c0_146], %115 {strides = array<i32>} : memref<512x128xf32, #tpu.memory_space<vmem>>, vector<512x128xf32>,
    %c0_147 = arith.constant 0 : index
    %c0_148 = arith.constant 0 : index
    %117 = vector.load %arg6[%c0_147, %c0_148] : memref<512x128xf32, #tpu.memory_space<vmem>>, vector<512x128xf32>
    %c32_149 = arith.constant 32 : index
    %c0_150 = arith.constant 0 : index
    %118 = vector.load %arg7[%c32_149, %c0_150] : memref<552x128xf32, #tpu.memory_space<vmem>>, vector<512x32xf32>
    %c6_151 = arith.constant 6 : index
    %c0_152 = arith.constant 0 : index
    %c0_153 = arith.constant 0 : index
    %119 = vector.load %arg4[%c6_151, %c0_152, %c0_153] : memref<9x32x128xf32, #tpu.memory_space<vmem>>, vector<1x32x128xf32>
    %120 = vector.shape_cast %119 : vector<1x32x128xf32> to vector<32x128xf32>
    %cst_154 = arith.constant dense<0.000000e+00> : vector<512x128xf32>
    %121 = tpu.matmul %118, %120, %cst_154 {dimension_numbers = #tpu.dot_dimension_numbers<[1], [0], [0], [1], [0, 0, 1, 1], [], []>} : vector<512x32xf32>, vector<32x128xf32>, vector<512x128xf32> -> vector<512x128xf32>
    %122 = arith.addf %117, %121 : vector<512x128xf32>
    %c0_155 = arith.constant 0 : index
    %c0_156 = arith.constant 0 : index
    %123 = vector.load %arg6[%c0_155, %c0_156] : memref<512x128xf32, #tpu.memory_space<vmem>>, vector<512x128xf32>
    tpu.vector_store %arg6[%c0_155, %c0_156], %122 {strides = array<i32>} : memref<512x128xf32, #tpu.memory_space<vmem>>, vector<512x128xf32>,
    %c0_157 = arith.constant 0 : index
    %c0_158 = arith.constant 0 : index
    %124 = vector.load %arg6[%c0_157, %c0_158] : memref<512x128xf32, #tpu.memory_space<vmem>>, vector<512x128xf32>
    %c33_159 = arith.constant 33 : index
    %c0_160 = arith.constant 0 : index
    %125 = vector.load %arg7[%c33_159, %c0_160] : memref<552x128xf32, #tpu.memory_space<vmem>>, vector<512x32xf32>
    %c7_161 = arith.constant 7 : index
    %c0_162 = arith.constant 0 : index
    %c0_163 = arith.constant 0 : index
    %126 = vector.load %arg4[%c7_161, %c0_162, %c0_163] : memref<9x32x128xf32, #tpu.memory_space<vmem>>, vector<1x32x128xf32>
    %127 = vector.shape_cast %126 : vector<1x32x128xf32> to vector<32x128xf32>
    %cst_164 = arith.constant dense<0.000000e+00> : vector<512x128xf32>
    %128 = tpu.matmul %125, %127, %cst_164 {dimension_numbers = #tpu.dot_dimension_numbers<[1], [0], [0], [1], [0, 0, 1, 1], [], []>} : vector<512x32xf32>, vector<32x128xf32>, vector<512x128xf32> -> vector<512x128xf32>
    %129 = arith.addf %124, %128 : vector<512x128xf32>
    %c0_165 = arith.constant 0 : index
    %c0_166 = arith.constant 0 : index
    %130 = vector.load %arg6[%c0_165, %c0_166] : memref<512x128xf32, #tpu.memory_space<vmem>>, vector<512x128xf32>
    tpu.vector_store %arg6[%c0_165, %c0_166], %129 {strides = array<i32>} : memref<512x128xf32, #tpu.memory_space<vmem>>, vector<512x128xf32>,
    %c0_167 = arith.constant 0 : index
    %c0_168 = arith.constant 0 : index
    %131 = vector.load %arg6[%c0_167, %c0_168] : memref<512x128xf32, #tpu.memory_space<vmem>>, vector<512x128xf32>
    %c34_169 = arith.constant 34 : index
    %c0_170 = arith.constant 0 : index
    %132 = vector.load %arg7[%c34_169, %c0_170] : memref<552x128xf32, #tpu.memory_space<vmem>>, vector<512x32xf32>
    %c8_171 = arith.constant 8 : index
    %c0_172 = arith.constant 0 : index
    %c0_173 = arith.constant 0 : index
    %133 = vector.load %arg4[%c8_171, %c0_172, %c0_173] : memref<9x32x128xf32, #tpu.memory_space<vmem>>, vector<1x32x128xf32>
    %134 = vector.shape_cast %133 : vector<1x32x128xf32> to vector<32x128xf32>
    %cst_174 = arith.constant dense<0.000000e+00> : vector<512x128xf32>
    %135 = tpu.matmul %132, %134, %cst_174 {dimension_numbers = #tpu.dot_dimension_numbers<[1], [0], [0], [1], [0, 0, 1, 1], [], []>} : vector<512x32xf32>, vector<32x128xf32>, vector<512x128xf32> -> vector<512x128xf32>
    %136 = arith.addf %131, %135 : vector<512x128xf32>
    %c0_175 = arith.constant 0 : index
    %c0_176 = arith.constant 0 : index
    %137 = vector.load %arg6[%c0_175, %c0_176] : memref<512x128xf32, #tpu.memory_space<vmem>>, vector<512x128xf32>
    tpu.vector_store %arg6[%c0_175, %c0_176], %136 {strides = array<i32>} : memref<512x128xf32, #tpu.memory_space<vmem>>, vector<512x128xf32>,
    %c0_177 = arith.constant 0 : index
    %c0_178 = arith.constant 0 : index
    %138 = vector.load %arg6[%c0_177, %c0_178] : memref<512x128xf32, #tpu.memory_space<vmem>>, vector<512x128xf32>
    %cst_179 = arith.constant 0.000000e+00 : f32
    %139 = vector.broadcast %cst_179 : f32 to vector<512x128xf32>
    %140 = arith.maximumf %138, %139 : vector<512x128xf32>
    %c0_180 = arith.constant 0 : index
    %c0_181 = arith.constant 0 : index
    %141 = vector.load %arg6[%c0_180, %c0_181] : memref<512x128xf32, #tpu.memory_space<vmem>>, vector<512x128xf32>
    tpu.vector_store %arg6[%c0_180, %c0_181], %140 {strides = array<i32>} : memref<512x128xf32, #tpu.memory_space<vmem>>, vector<512x128xf32>,
    return
  }
  func.func @transform_0(%arg0: i32) -> (i32, i32) {
    %c0_i32 = arith.constant 0 : i32
    %c0_i32_0 = arith.constant 0 : i32
    %c0_i32_1 = arith.constant 0 : i32
    return %c0_i32, %c0_i32_0 : i32, i32
  }
  func.func @transform_1(%arg0: i32) -> (i32, i32, i32) {
    %c0_i32 = arith.constant 0 : i32
    %c0_i32_0 = arith.constant 0 : i32
    %c0_i32_1 = arith.constant 0 : i32
    %c0_i32_2 = arith.constant 0 : i32
    return %c0_i32, %c0_i32_0, %c0_i32_1 : i32, i32, i32
  }
  func.func @transform_2(%arg0: i32) -> (i32, i32) {
    %c0_i32 = arith.constant 0 : i32
    %c0_i32_0 = arith.constant 0 : i32
    %c0_i32_1 = arith.constant 0 : i32
    return %c0_i32, %c0_i32_0 : i32, i32
  }
  func.func @transform_3(%arg0: i32) -> (i32, i32, i32) {
    %c0_i32 = arith.constant 0 : i32
    %c0_i32_0 = arith.constant 0 : i32
    %c0_i32_1 = arith.constant 0 : i32
    %c0_i32_2 = arith.constant 0 : i32
    return %c0_i32, %c0_i32_0, %c0_i32_1 : i32, i32, i32
  }
  func.func @transform_4(%arg0: i32) -> (i32, i32) {
    %c0_i32 = arith.constant 0 : i32
    %c0_i32_0 = arith.constant 0 : i32
    %c0_i32_1 = arith.constant 0 : i32
    return %c0_i32, %c0_i32_0 : i32, i32
  }
  func.func @transform_5(%arg0: i32) -> (i32, i32) {
    %c0_i32 = arith.constant 0 : i32
    %c0_i32_0 = arith.constant 0 : i32
    %c0_i32_1 = arith.constant 0 : i32
    return %c0_i32, %c0_i32_0 : i32, i32
  }
}

module attributes {stable_mosaic.version = 11 : i64} {
  func.func @_fc_kernel(%arg0: i32, %arg1: memref<2x9216xbf16, #tpu.memory_space<vmem>>, %arg2: memref<9216x128xbf16, #tpu.memory_space<vmem>>, %arg3: memref<1x128xf32, #tpu.memory_space<vmem>>, %arg4: memref<128x128xf32, #tpu.memory_space<vmem>>, %arg5: memref<1x128xf32, #tpu.memory_space<vmem>>, %arg6: memref<2x128xf32, #tpu.memory_space<vmem>>) attributes {dimension_semantics = [#tpu.dimension_semantics<arbitrary>], iteration_bounds = array<i64: 1>, scalar_prefetch = 0 : i64, scratch_operands = 0 : i64, tpu.core_type = #tpu.core_type<tc>, window_params = [{pipeline_mode = #tpu.pipeline_mode<synchronous>, transform_indices = @transform_0, window_bounds = array<i64: 2, 9216>}, {pipeline_mode = #tpu.pipeline_mode<synchronous>, transform_indices = @transform_1, window_bounds = array<i64: 9216, 128>}, {pipeline_mode = #tpu.pipeline_mode<synchronous>, transform_indices = @transform_2, window_bounds = array<i64: 1, 128>}, {pipeline_mode = #tpu.pipeline_mode<synchronous>, transform_indices = @transform_3, window_bounds = array<i64: 128, 128>}, {pipeline_mode = #tpu.pipeline_mode<synchronous>, transform_indices = @transform_4, window_bounds = array<i64: 1, 128>}, {pipeline_mode = #tpu.pipeline_mode<synchronous>, transform_indices = @transform_5, window_bounds = array<i64: 2, 128>}]} {
    %c0 = arith.constant 0 : index
    %c0_0 = arith.constant 0 : index
    %0 = vector.load %arg1[%c0, %c0_0] : memref<2x9216xbf16, #tpu.memory_space<vmem>>, vector<2x9216xbf16>
    %c0_1 = arith.constant 0 : index
    %c0_2 = arith.constant 0 : index
    %1 = vector.load %arg2[%c0_1, %c0_2] : memref<9216x128xbf16, #tpu.memory_space<vmem>>, vector<9216x128xbf16>
    %cst = arith.constant dense<0.000000e+00> : vector<2x128xf32>
    %2 = tpu.matmul %0, %1, %cst {dimension_numbers = #tpu.dot_dimension_numbers<[1], [0], [0], [1], [0, 0, 1, 1], [], []>} : vector<2x9216xbf16>, vector<9216x128xbf16>, vector<2x128xf32> -> vector<2x128xf32>
    %c0_3 = arith.constant 0 : index
    %c0_4 = arith.constant 0 : index
    %3 = vector.load %arg3[%c0_3, %c0_4] : memref<1x128xf32, #tpu.memory_space<vmem>>, vector<1x128xf32>
    %4 = vector.broadcast %3 : vector<1x128xf32> to vector<2x128xf32>
    %5 = arith.addf %2, %4 : vector<2x128xf32>
    %cst_5 = arith.constant 0.000000e+00 : f32
    %6 = vector.broadcast %cst_5 : f32 to vector<2x128xf32>
    %7 = arith.maximumf %5, %6 : vector<2x128xf32>
    %c0_6 = arith.constant 0 : index
    %c0_7 = arith.constant 0 : index
    %8 = vector.load %arg4[%c0_6, %c0_7] : memref<128x128xf32, #tpu.memory_space<vmem>>, vector<128x128xf32>
    %cst_8 = arith.constant dense<0.000000e+00> : vector<2x128xf32>
    %9 = tpu.matmul %7, %8, %cst_8 {dimension_numbers = #tpu.dot_dimension_numbers<[1], [0], [0], [1], [0, 0, 1, 1], [], []>} : vector<2x128xf32>, vector<128x128xf32>, vector<2x128xf32> -> vector<2x128xf32>
    %c0_9 = arith.constant 0 : index
    %c0_10 = arith.constant 0 : index
    %10 = vector.load %arg5[%c0_9, %c0_10] : memref<1x128xf32, #tpu.memory_space<vmem>>, vector<1x128xf32>
    %11 = vector.broadcast %10 : vector<1x128xf32> to vector<2x128xf32>
    %12 = arith.addf %9, %11 : vector<2x128xf32>
    %c0_11 = arith.constant 0 : index
    %c0_12 = arith.constant 0 : index
    %13 = vector.load %arg6[%c0_11, %c0_12] : memref<2x128xf32, #tpu.memory_space<vmem>>, vector<2x128xf32>
    tpu.vector_store %arg6[%c0_11, %c0_12], %12 {strides = array<i32>} : memref<2x128xf32, #tpu.memory_space<vmem>>, vector<2x128xf32>,
    return
  }
  func.func @transform_0(%arg0: i32) -> (i32, i32) {
    %c0_i32 = arith.constant 0 : i32
    %c0_i32_0 = arith.constant 0 : i32
    %c0_i32_1 = arith.constant 0 : i32
    return %c0_i32, %c0_i32_0 : i32, i32
  }
  func.func @transform_1(%arg0: i32) -> (i32, i32) {
    %c0_i32 = arith.constant 0 : i32
    %c0_i32_0 = arith.constant 0 : i32
    %c0_i32_1 = arith.constant 0 : i32
    return %c0_i32, %c0_i32_0 : i32, i32
  }
  func.func @transform_2(%arg0: i32) -> (i32, i32) {
    %c0_i32 = arith.constant 0 : i32
    %c0_i32_0 = arith.constant 0 : i32
    %c0_i32_1 = arith.constant 0 : i32
    return %c0_i32, %c0_i32_0 : i32, i32
  }
  func.func @transform_3(%arg0: i32) -> (i32, i32) {
    %c0_i32 = arith.constant 0 : i32
    %c0_i32_0 = arith.constant 0 : i32
    %c0_i32_1 = arith.constant 0 : i32
    return %c0_i32, %c0_i32_0 : i32, i32
  }
  func.func @transform_4(%arg0: i32) -> (i32, i32) {
    %c0_i32 = arith.constant 0 : i32
    %c0_i32_0 = arith.constant 0 : i32
    %c0_i32_1 = arith.constant 0 : i32
    return %c0_i32, %c0_i32_0 : i32, i32
  }
  func.func @transform_5(%arg0: i32) -> (i32, i32) {
    %c0_i32 = arith.constant 0 : i32
    %c0_i32_0 = arith.constant 0 : i32
    %c0_i32_1 = arith.constant 0 : i32
    return %c0_i32, %c0_i32_0 : i32, i32
  }
}

</mosaic_0001>

<bundles_post_ra>
// kernel: net_forward.3
= control target key start
LH: loop header
LB: loop body
LE: loop exit
PB: predicated region body
PF: predicated region fallthrough
CT: control target
= control target key end

     0   :  { %v1203_v28 = vlaneseq  ;;  %v8777_v36 = vmov 1966171168   ;;  %s10764_s0 = inlined_call_operand.vmem [shape: bf16[2,9216], index: 0, kind: input, shape index: {}]   ;;  %s10765_s1 = inlined_call_operand.vmem [shape: bf16[9216,128], index: 1, kind: input, shape index: {}]   ;;  %s10766_s2 = inlined_call_operand.vmem [shape: f32[1,128], index: 2, kind: input, shape index: {}]   ;;  %s10767_s3 = inlined_call_operand.vmem [shape: f32[128,128], index: 3, kind: input, shape index: {}]   ;;  %s10768_s4 = inlined_call_operand.vmem [shape: f32[1,128], index: 4, kind: input, shape index: {}]   ;;  %s10769_s5 = inlined_call_operand.hbm [shape: f32[2,128], index: 5, kind: output, shape index: {}]  }
   0x1   :  { %v8168_v0 = vld [vmem:[%s10765_s1 + $0x40] sm:$0xff]   ;;  %v8172_v4 = vld [vmem:[%s10765_s1 + $0x48] sm:$0xff]   ;;  %v8176_v8 = vld [vmem:[%s10765_s1 + $0x50] sm:$0xff]   ;;  %v1201_v37 = vunpack.c.l.s4 %v8777_v36 }
   0x2   :  { %v8169_v1 = vld [vmem:[%s10765_s1 + $0xc0] sm:$0xff]   ;;  %7295 = vmatprep.subr.bf16.mxu0 %v8168_v0  ;;  %v8173_v5 = vld [vmem:[%s10765_s1 + $0xc8] sm:$0xff]   ;;  %v8177_v9 = vld [vmem:[%s10765_s1 + $0xd0] sm:$0xff]   ;;  %v1204_v33 = vshrl.u32 %v1203_v28, 7 }
   0x3   :  { %v8170_v2 = vld [vmem:[%s10765_s1] sm:$0xff]   ;;  %7317 = vmatprep.subr.bf16.mxu1 %v8169_v1  ;;  %v8174_v6 = vld [vmem:[%s10765_s1 + $0x8] sm:$0xff]   ;;  %v8178_v10 = vld [vmem:[%s10765_s1 + $0x10] sm:$0xff]   ;;  %v1202_v40 = vunpack.c.0.s8 %v1201_v37 }
   0x4   :  { %v8171_v3 = vld [vmem:[%s10765_s1 + $0x80] sm:$0xff]   ;;  %7296 = vmatpush3.bf16.msra.mxu0 %v8170_v2  ;;  %v8175_v7 = vld [vmem:[%s10765_s1 + $0x88] sm:$0xff]   ;;  %v8179_v11 = vld [vmem:[%s10765_s1 + $0x90] sm:$0xff]  }
   0x5   :  { %7318 = vmatpush3.bf16.msra.mxu1 %v8171_v3  ;;  %7297 = vmatprep.subr.bf16.mxu0 %v8172_v4  ;;  %v8180_v12 = vld [vmem:[%s10765_s1 + $0x58] sm:$0xff]   ;;  %v8184_v16 = vld [vmem:[%s10765_s1 + $0x60] sm:$0xff]   ;;  %v8188_v20 = vld [vmem:[%s10765_s1 + $0x68] sm:$0xff]   ;;  %v8917_v41 = vsub.s32 %v1202_v40, %v1204_v33 }
   0x6   :  { %7319 = vmatprep.subr.bf16.mxu1 %v8173_v5  ;;  %v8181_v13 = vld [vmem:[%s10765_s1 + $0xd8] sm:$0xff]   ;;  %v8185_v17 = vld [vmem:[%s10765_s1 + $0xe0] sm:$0xff]   ;;  %v8189_v21 = vld [vmem:[%s10765_s1 + $0xe8] sm:$0xff]  }
   0x7   :  { %v8182_v14 = vld [vmem:[%s10765_s1 + $0x18] sm:$0xff]   ;;  %v8186_v18 = vld [vmem:[%s10765_s1 + $0x20] sm:$0xff]   ;;  %v8190_v22 = vld [vmem:[%s10765_s1 + $0x28] sm:$0xff]  }
   0x8   :  { %7298 = vmatpush3.bf16.msra.mxu0 %v8174_v6  ;;  %v8183_v15 = vld [vmem:[%s10765_s1 + $0x98] sm:$0xff]   ;;  %v8187_v19 = vld [vmem:[%s10765_s1 + $0xa0] sm:$0xff]   ;;  %v8191_v23 = vld [vmem:[%s10765_s1 + $0xa8] sm:$0xff]  }
   0x9   :  { %7320 = vmatpush3.bf16.msra.mxu1 %v8175_v7  ;;  %7299 = vmatprep.subr.bf16.mxu0 %v8176_v8  ;;  %v8192_v24 = vld [vmem:[%s10765_s1 + $0x70] sm:$0xff]   ;;  %v8196_v29 = vld [vmem:[%s10765_s1 + $0x78] sm:$0xff]   ;;  %v22_v34 = vld [vmem:[%s10764_s0] sm:$0xff] }
   0xa   :  { %7321 = vmatprep.subr.bf16.mxu1 %v8177_v9  ;;  %v8193_v25 = vld [vmem:[%s10765_s1 + $0xf0] sm:$0xff]   ;;  %v8197_v30 = vld [vmem:[%s10765_s1 + $0xf8] sm:$0xff]   ;;  %v8201_v35 = vld [vmem:[%s10765_s1 + $0x140] sm:$0xff]   ;;  %v1199_v39 = vcombine.high %v22_v34, %v22_v34  ;;  %v1206_v42 = vrot.slane %v22_v34, %v8917_v41 }
   0xb   :  { %v8194_v26 = vld [vmem:[%s10765_s1 + $0x30] sm:$0xff]   ;;  %v8198_v31 = vld [vmem:[%s10765_s1 + $0x38] sm:$0xff]   ;;  %v8202_v38 = vld [vmem:[%s10765_s1 + $0x1c0] sm:$0xff]  }
   0xc   :  { %7300 = vmatpush3.bf16.msra.mxu0 %v8178_v10  ;;  %v8195_v27 = vld [vmem:[%s10765_s1 + $0xb0] sm:$0xff]   ;;  %v8199_v32 = vld [vmem:[%s10765_s1 + $0xb8] sm:$0xff]   ;;  %v8921_v43 = vrot.slane %v1199_v39, %v8917_v41  ;;  %v1214_v44 = vcombine.high %v1206_v42, %v1206_v42  ;;  %v1222_v45 = vrot.slane %v1206_v42, %v8917_v41  ;;  %v8203_v47 = vld [vmem:[%s10765_s1 + $0x100] sm:$0xff]  }
   0xd   :  { %7322 = vmatpush3.bf16.msra.mxu1 %v8179_v11  ;;  %7301 = vmatprep.subr.bf16.mxu0 %v8180_v12  ;;  %v8204_v49 = vld [vmem:[%s10765_s1 + $0x180] sm:$0xff]   ;;  %v8205_v52 = vld [vmem:[%s10765_s1 + $0x148] sm:$0xff]   ;;  %v8209_v58 = vld [vmem:[%s10765_s1 + $0x150] sm:$0xff]  }
   0xe   :  { %7323 = vmatprep.subr.bf16.mxu1 %v8181_v13  ;;  %v1215_v46 = vcombine.high %v8921_v43, %v8921_v43  ;;  %v1236_v48 = vrot.slane %v1214_v44, %v8917_v41  ;;  %v1244_v51 = vcombine.high %v1222_v45, %v1222_v45  ;;  %v8206_v54 = vld [vmem:[%s10765_s1 + $0x1c8] sm:$0xff]   ;;  %v8210_v59 = vld [vmem:[%s10765_s1 + $0x1d0] sm:$0xff]   ;;  %v8213_v62 = vld [vmem:[%s10765_s1 + $0x158] sm:$0xff]  }
   0xf   :  { %v8207_v55 = vld [vmem:[%s10765_s1 + $0x108] sm:$0xff]   ;;  %v8211_v60 = vld [vmem:[%s10765_s1 + $0x110] sm:$0xff]   ;;  %v8214_v63 = vld [vmem:[%s10765_s1 + $0x1d8] sm:$0xff]  }
  0x10   :  { %7302 = vmatpush3.bf16.msra.mxu0 %v8182_v14  ;;  %v1243_v50 = vrot.slane %v1215_v46, %v8917_v41  ;;  %5200 = vmatprep.mubr.bf16.mxu0 %v1236_v48  ;;  %v1246_v53 = vcombine.high %v1236_v48, %v1236_v48  ;;  %v8208_v57 = vld [vmem:[%s10765_s1 + $0x188] sm:$0xff]   ;;  %v8212_v61 = vld [vmem:[%s10765_s1 + $0x190] sm:$0xff]   ;;  %v8215_v0 = vld [vmem:[%s10765_s1 + $0x118] sm:$0xff]  }
  0x11   :  { %7324 = vmatpush3.bf16.msra.mxu1 %v8183_v15  ;;  %7303 = vmatprep.subr.bf16.mxu0 %v8184_v16  ;;  %v8216_v1 = vld [vmem:[%s10765_s1 + $0x198] sm:$0xff]   ;;  %v8217_v2 = vld [vmem:[%s10765_s1 + $0x160] sm:$0xff]   ;;  %v8221_v6 = vld [vmem:[%s10765_s1 + $0x168] sm:$0xff]  }
  0x12   :  { %7325 = vmatprep.subr.bf16.mxu1 %v8185_v17  ;;  %v1247_v56 = vcombine.high %v1243_v50, %v1243_v50  ;;  %5240 = vmatprep.mubr.bf16.mxu1 %v1246_v53  ;;  %v8218_v3 = vld [vmem:[%s10765_s1 + $0x1e0] sm:$0xff]   ;;  %v8222_v7 = vld [vmem:[%s10765_s1 + $0x1e8] sm:$0xff]   ;;  %v8225_v10 = vld [vmem:[%s10765_s1 + $0x170] sm:$0xff]  }
  0x13   :  { %v8219_v4 = vld [vmem:[%s10765_s1 + $0x120] sm:$0xff]   ;;  %v8223_v8 = vld [vmem:[%s10765_s1 + $0x128] sm:$0xff]   ;;  %v8226_v11 = vld [vmem:[%s10765_s1 + $0x1f0] sm:$0xff]  }
  0x14   :  { %7304 = vmatpush3.bf16.msra.mxu0 %v8186_v18  ;;  %v8220_v5 = vld [vmem:[%s10765_s1 + $0x1a0] sm:$0xff]   ;;  %v8224_v9 = vld [vmem:[%s10765_s1 + $0x1a8] sm:$0xff]   ;;  %v8227_v12 = vld [vmem:[%s10765_s1 + $0x130] sm:$0xff]   ;;  %v1229_v18 = vrot.slane %v8921_v43, %v8917_v41 }
  0x15   :  { %7326 = vmatpush3.bf16.msra.mxu1 %v8187_v19  ;;  %7305 = vmatprep.subr.bf16.mxu0 %v8188_v20  ;;  %v8228_v13 = vld [vmem:[%s10765_s1 + $0x1b0] sm:$0xff]   ;;  %v8229_v14 = vld [vmem:[%s10765_s1 + $0x178] sm:$0xff]   ;;  %v8233_v19 = vld [vmem:[%s10765_s1 + $0x240] sm:$0xff]  }
  0x16   :  { %7327 = vmatprep.subr.bf16.mxu1 %v8189_v21  ;;  %v8230_v15 = vld [vmem:[%s10765_s1 + $0x1f8] sm:$0xff]   ;;  %v8234_v20 = vld [vmem:[%s10765_s1 + $0x2c0] sm:$0xff]   ;;  %v8241_v28 = vld [vmem:[%s10765_s1 + $0x250] sm:$0xff]  }
  0x17   :  { %v8231_v16 = vld [vmem:[%s10765_s1 + $0x138] sm:$0xff]   ;;  %v8235_v21 = vld [vmem:[%s10765_s1 + $0x200] sm:$0xff]   ;;  %v8253_v40 = vld [vmem:[%s10765_s1 + $0x268] sm:$0xff]  }
  0x18   :  { %7306 = vmatpush3.bf16.msra.mxu0 %v8190_v22  ;;  %v8232_v17 = vld [vmem:[%s10765_s1 + $0x1b8] sm:$0xff]   ;;  %v8236_v22 = vld [vmem:[%s10765_s1 + $0x280] sm:$0xff]   ;;  %v8254_v42 = vld [vmem:[%s10765_s1 + $0x2e8] sm:$0xff]  }
  0x19   :  { %7328 = vmatpush3.bf16.msra.mxu1 %v8191_v23  ;;  %7307 = vmatprep.subr.bf16.mxu0 %v8192_v24  ;;  %v1245_v23 = vcombine.high %v1229_v18, %v1229_v18  ;;  %v8237_v24 = vld [vmem:[%s10765_s1 + $0x248] sm:$0xff]   ;;  %v8246_v33 = vld [vmem:[%s10765_s1 + $0x2d8] sm:$0xff]   ;;  %v8249_v36 = vld [vmem:[%s10765_s1 + $0x260] sm:$0xff]  }
  0x1a   :  { %7329 = vmatprep.subr.bf16.mxu1 %v8193_v25  ;;  %v8238_v25 = vld [vmem:[%s10765_s1 + $0x2c8] sm:$0xff]   ;;  %v8247_v34 = vld [vmem:[%s10765_s1 + $0x218] sm:$0xff]   ;;  %v8250_v37 = vld [vmem:[%s10765_s1 + $0x2e0] sm:$0xff]  }
  0x1b   :  { %v8252_v39 = vld [vmem:[%s10765_s1 + $0x2a0] sm:$0xff]   ;;  %v8255_v43 = vld [vmem:[%s10765_s1 + $0x228] sm:$0xff]  }
  0x1c   :  { %7308 = vmatpush3.bf16.msra.mxu0 %v8194_v26  ;;  %v8239_v26 = vld [vmem:[%s10765_s1 + $0x208] sm:$0xff]  }
  0x1d   :  { %7330 = vmatpush3.bf16.msra.mxu1 %v8195_v27  ;;  %7309 = vmatprep.subr.bf16.mxu0 %v8196_v29  ;;  %v8240_v27 = vld [vmem:[%s10765_s1 + $0x288] sm:$0xff]   ;;  %v8242_v29 = vld [vmem:[%s10765_s1 + $0x2d0] sm:$0xff]  }
  0x1e   :  { %7331 = vmatprep.subr.bf16.mxu1 %v8197_v30  ;;  %v8243_v30 = vld [vmem:[%s10765_s1 + $0x210] sm:$0xff]   ;;  %v8256_v44 = vld [vmem:[%s10765_s1 + $0x2a8] sm:$0xff]  }
  0x1f   :  { %v23_v46 = vld [vmem:[%s10764_s0 + $0x8] sm:$0xff] }
  0x20   :  { %7310 = vmatpush3.bf16.msra.mxu0 %v8198_v31  ;;  %v8244_v31 = vld [vmem:[%s10765_s1 + $0x290] sm:$0xff]   ;;  %v1255_v48 = vrot.slane %v23_v46, %v8917_v41 }
  0x21   :  { %7332 = vmatpush3.bf16.msra.mxu1 %v8199_v32  ;;  %7339 = vmatprep.subr.bf16.mxu0 %v8201_v35  ;;  %v8245_v32 = vld [vmem:[%s10765_s1 + $0x258] sm:$0xff]  }
  0x22   :  { %7361 = vmatprep.subr.bf16.mxu1 %v8202_v38  ;;  %v8248_v35 = vld [vmem:[%s10765_s1 + $0x298] sm:$0xff]   ;;  %v8251_v38 = vld [vmem:[%s10765_s1 + $0x220] sm:$0xff]  }
  0x23   :  { %5201 = vmatmul.mubr.bf16.vlgmr.msra.gmra.mrb[0].mxu0 %v1222_v45  ;;  %v8257_v45 = vld [vmem:[%s10765_s1 + $0x270] sm:$0xff]  }
  0x24   :  { %7340 = vmatpush3.bf16.msra.mxu0 %v8203_v47  ;;  %5241 = vmatmul.mubr.bf16.vlgmr.msra.gmra.mrb[0].mxu1 %v1244_v51  ;;  %v8258_v47 = vld [vmem:[%s10765_s1 + $0x2f0] sm:$0xff]  }
  0x25   :  { %7341 = vmatprep.subr.bf16.mxu0 %v8205_v52  ;;  %7362 = vmatpush3.bf16.msra.mxu1 %v8204_v49  ;;  %v1248_v49 = vcombine.high %v23_v46, %v23_v46  ;;  %v8260_v51 = vld [vmem:[%s10765_s1 + $0x2b0] sm:$0xff]   ;;  %v1263_v52 = vcombine.high %v1255_v48, %v1255_v48 }
  0x26   :  { %5280 = vmatprep.mubr.bf16.mxu0 %v1243_v50  ;;  %7363 = vmatprep.subr.bf16.mxu1 %v8206_v54  ;;  %v8259_v50 = vld [vmem:[%s10765_s1 + $0x230] sm:$0xff]   ;;  %v8261_v54 = vld [vmem:[%s10765_s1 + $0x278] sm:$0xff]  }
  0x27   :  { %5320 = vmatprep.mubr.bf16.mxu1 %v1247_v56  ;;  %v9109_v53 = vrot.slane %v1248_v49, %v8917_v41  ;;  %v1285_v56 = vrot.slane %v1263_v52, %v8917_v41  ;;  %v8308_v46 = vld [vmem:[%s10765_s1 + $0x410] sm:$0xff]   ;;  %v8311_v49 = vld [vmem:[%s10765_s1 + $0x4d8] sm:$0xff]   ;;  %v8314_v52 = vld [vmem:[%s10765_s1 + $0x460] sm:$0xff]  }
  0x28   :  { %7342 = vmatpush3.bf16.msra.mxu0 %v8207_v55  ;;  %v8262_v55 = vld [vmem:[%s10765_s1 + $0x2f8] sm:$0xff]  }
  0x29   :  { %7343 = vmatprep.subr.bf16.mxu0 %v8209_v58  ;;  %7364 = vmatpush3.bf16.msra.mxu1 %v8208_v57  ;;  %v1264_v57 = vcombine.high %v9109_v53, %v9109_v53  ;;  %v8263_v58 = vld [vmem:[%s10765_s1 + $0x238] sm:$0xff]  }
  0x2a   :  { %7365 = vmatprep.subr.bf16.mxu1 %v8210_v59  ;;  %v8264_v59 = vld [vmem:[%s10765_s1 + $0x2b8] sm:$0xff]  }
  0x2c   :  { %7344 = vmatpush3.bf16.msra.mxu0 %v8211_v60  ;;  %v1295_v60 = vcombine.high %v1285_v56, %v1285_v56 }
  0x2d   :  { %7345 = vmatprep.subr.bf16.mxu0 %v8213_v62  ;;  %7366 = vmatpush3.bf16.msra.mxu1 %v8212_v61  ;;  %v1271_v61 = vrot.slane %v1255_v48, %v8917_v41  ;;  %v8265_v62 = vld [vmem:[%s10765_s1 + $0x340] sm:$0xff]   ;;  %v8310_v48 = vld [vmem:[%s10765_s1 + $0x458] sm:$0xff]  }
  0x2e   :  { %7367 = vmatprep.subr.bf16.mxu1 %v8214_v63  ;;  %v8266_v63 = vld [vmem:[%s10765_s1 + $0x3c0] sm:$0xff]  }
  0x30   :  { %7346 = vmatpush3.bf16.msra.mxu0 %v8215_v0  ;;  %v1292_v0 = vrot.slane %v1264_v57, %v8917_v41  ;;  %v8319_v57 = vld [vmem:[%s10765_s1 + $0x4e8] sm:$0xff]  }
  0x31   :  { %7347 = vmatprep.subr.bf16.mxu0 %v8217_v2  ;;  %7368 = vmatpush3.bf16.msra.mxu1 %v8216_v1  ;;  %v8267_v1 = vld [vmem:[%s10765_s1 + $0x300] sm:$0xff]  }
  0x32   :  { %7369 = vmatprep.subr.bf16.mxu1 %v8218_v3  ;;  %v8268_v2 = vld [vmem:[%s10765_s1 + $0x380] sm:$0xff]   ;;  %v1293_v3 = vcombine.high %v1271_v61, %v1271_v61 }
  0x34   :  { %7348 = vmatpush3.bf16.msra.mxu0 %v8219_v4  ;;  %v8269_v4 = vld [vmem:[%s10765_s1 + $0x348] sm:$0xff]  }
  0x35   :  { %7349 = vmatprep.subr.bf16.mxu0 %v8221_v6  ;;  %7370 = vmatpush3.bf16.msra.mxu1 %v8220_v5  ;;  %v8270_v5 = vld [vmem:[%s10765_s1 + $0x3c8] sm:$0xff]   ;;  %v1296_v6 = vcombine.high %v1292_v0, %v1292_v0 }
  0x36   :  { %7371 = vmatprep.subr.bf16.mxu1 %v8222_v7  ;;  %v8271_v7 = vld [vmem:[%s10765_s1 + $0x308] sm:$0xff]  }
  0x38   :  { %7350 = vmatpush3.bf16.msra.mxu0 %v8223_v8  ;;  %v8272_v8 = vld [vmem:[%s10765_s1 + $0x388] sm:$0xff]  }
  0x39   :  { %7351 = vmatprep.subr.bf16.mxu0 %v8225_v10  ;;  %7372 = vmatpush3.bf16.msra.mxu1 %v8224_v9  ;;  %v8273_v9 = vld [vmem:[%s10765_s1 + $0x350] sm:$0xff]  }
  0x3a   :  { %7373 = vmatprep.subr.bf16.mxu1 %v8226_v11  ;;  %v8274_v10 = vld [vmem:[%s10765_s1 + $0x3d0] sm:$0xff]  }
  0x3b   :  { %v8275_v11 = vld [vmem:[%s10765_s1 + $0x310] sm:$0xff]  }
  0x3c   :  { %7352 = vmatpush3.bf16.msra.mxu0 %v8227_v12  ;;  %v8276_v12 = vld [vmem:[%s10765_s1 + $0x390] sm:$0xff]  }
  0x3d   :  { %7353 = vmatprep.subr.bf16.mxu0 %v8229_v14  ;;  %7374 = vmatpush3.bf16.msra.mxu1 %v8228_v13  ;;  %v8277_v13 = vld [vmem:[%s10765_s1 + $0x358] sm:$0xff]  }
  0x3e   :  { %7375 = vmatprep.subr.bf16.mxu1 %v8230_v15  ;;  %v8278_v14 = vld [vmem:[%s10765_s1 + $0x3d8] sm:$0xff]  }
  0x3f   :  { %v8279_v15 = vld [vmem:[%s10765_s1 + $0x318] sm:$0xff]  }
  0x40   :  { %7354 = vmatpush3.bf16.msra.mxu0 %v8231_v16  ;;  %v8280_v16 = vld [vmem:[%s10765_s1 + $0x398] sm:$0xff]  }
  0x41   :  { %7383 = vmatprep.subr.bf16.mxu0 %v8233_v19  ;;  %7376 = vmatpush3.bf16.msra.mxu1 %v8232_v17  ;;  %v8281_v17 = vld [vmem:[%s10765_s1 + $0x360] sm:$0xff]  }
  0x42   :  { %7405 = vmatprep.subr.bf16.mxu1 %v8234_v20  ;;  %v8283_v19 = vld [vmem:[%s10765_s1 + $0x320] sm:$0xff]  }
  0x43   :  { %5281 = vmatmul.mubr.bf16.vlgmr.msra.gmra.mrb[4].mxu0 %v1229_v18  ;;  %v8282_v18 = vld [vmem:[%s10765_s1 + $0x3e0] sm:$0xff]  }
  0x44   :  { %7384 = vmatpush3.bf16.msra.mxu0 %v8235_v21  ;;  %5321 = vmatmul.mubr.bf16.vlgmr.msra.gmra.mrb[4].mxu1 %v1245_v23  ;;  %v8284_v20 = vld [vmem:[%s10765_s1 + $0x3a0] sm:$0xff]   ;;  %v8285_v21 = vld [vmem:[%s10765_s1 + $0x368] sm:$0xff]  }
  0x45   :  { %7385 = vmatprep.subr.bf16.mxu0 %v8237_v24  ;;  %7406 = vmatpush3.bf16.msra.mxu1 %v8236_v22  ;;  %v8286_v22 = vld [vmem:[%s10765_s1 + $0x3e8] sm:$0xff]  }
  0x46   :  { %7407 = vmatprep.subr.bf16.mxu1 %v8238_v25  ;;  %5360 = vmatprep.mubr.bf16.mxu0 %v1285_v56  ;;  %v8287_v23 = vld [vmem:[%s10765_s1 + $0x328] sm:$0xff]   ;;  %v8289_v25 = vld [vmem:[%s10765_s1 + $0x370] sm:$0xff]  }
  0x47   :  { %5400 = vmatprep.mubr.bf16.mxu1 %v1295_v60  ;;  %v8288_v24 = vld [vmem:[%s10765_s1 + $0x3a8] sm:$0xff]   ;;  %v8322_v60 = vld [vmem:[%s10765_s1 + $0x470] sm:$0xff]  }
  0x48   :  { %7386 = vmatpush3.bf16.msra.mxu0 %v8239_v26  ;;  %v8290_v26 = vld [vmem:[%s10765_s1 + $0x3f0] sm:$0xff]   ;;  %v8318_v56 = vld [vmem:[%s10765_s1 + $0x468] sm:$0xff]  }
  0x49   :  { %7387 = vmatprep.subr.bf16.mxu0 %v8241_v28  ;;  %7408 = vmatpush3.bf16.msra.mxu1 %v8240_v27  ;;  %v8291_v27 = vld [vmem:[%s10765_s1 + $0x330] sm:$0xff]  }
  0x4a   :  { %7409 = vmatprep.subr.bf16.mxu1 %v8242_v29  ;;  %v8292_v28 = vld [vmem:[%s10765_s1 + $0x3b0] sm:$0xff]   ;;  %v8293_v29 = vld [vmem:[%s10765_s1 + $0x378] sm:$0xff]  }
  0x4c   :  { %7388 = vmatpush3.bf16.msra.mxu0 %v8243_v30  ;;  %v8294_v30 = vld [vmem:[%s10765_s1 + $0x3f8] sm:$0xff]  }
  0x4d   :  { %7389 = vmatprep.subr.bf16.mxu0 %v8245_v32  ;;  %7410 = vmatpush3.bf16.msra.mxu1 %v8244_v31  ;;  %v8295_v31 = vld [vmem:[%s10765_s1 + $0x338] sm:$0xff]  }
  0x4e   :  { %7411 = vmatprep.subr.bf16.mxu1 %v8246_v33  ;;  %v8296_v32 = vld [vmem:[%s10765_s1 + $0x3b8] sm:$0xff]   ;;  %v1278_v33 = vrot.slane %v9109_v53, %v8917_v41  ;;  %v8315_v53 = vld [vmem:[%s10765_s1 + $0x4e0] sm:$0xff]  }
  0x50   :  { %7390 = vmatpush3.bf16.msra.mxu0 %v8247_v34  ;;  %v8298_v34 = vld [vmem:[%s10765_s1 + $0x440] sm:$0xff]  }
  0x51   :  { %7391 = vmatprep.subr.bf16.mxu0 %v8249_v36  ;;  %7412 = vmatpush3.bf16.msra.mxu1 %v8248_v35  ;;  %v8299_v35 = vld [vmem:[%s10765_s1 + $0x4c0] sm:$0xff]  }
  0x52   :  { %7413 = vmatprep.subr.bf16.mxu1 %v8250_v37  ;;  %v8300_v36 = vld [vmem:[%s10765_s1 + $0x400] sm:$0xff]  }
  0x53   :  { %v8301_v37 = vld [vmem:[%s10765_s1 + $0x480] sm:$0xff]  }
  0x54   :  { %7392 = vmatpush3.bf16.msra.mxu0 %v8251_v38  ;;  %v1294_v38 = vcombine.high %v1278_v33, %v1278_v33 }
  0x55   :  { %7393 = vmatprep.subr.bf16.mxu0 %v8253_v40  ;;  %7414 = vmatpush3.bf16.msra.mxu1 %v8252_v39  ;;  %v8302_v39 = vld [vmem:[%s10765_s1 + $0x448] sm:$0xff]  }
  0x56   :  { %7415 = vmatprep.subr.bf16.mxu1 %v8254_v42  ;;  %v8303_v40 = vld [vmem:[%s10765_s1 + $0x4c8] sm:$0xff]  }
  0x57   :  { %v8304_v42 = vld [vmem:[%s10765_s1 + $0x408] sm:$0xff]  }
  0x58   :  { %7394 = vmatpush3.bf16.msra.mxu0 %v8255_v43  ;;  %v8305_v43 = vld [vmem:[%s10765_s1 + $0x488] sm:$0xff]  }
  0x59   :  { %7395 = vmatprep.subr.bf16.mxu0 %v8257_v45  ;;  %7416 = vmatpush3.bf16.msra.mxu1 %v8256_v44  ;;  %v8306_v44 = vld [vmem:[%s10765_s1 + $0x450] sm:$0xff]  }
  0x5a   :  { %7417 = vmatprep.subr.bf16.mxu1 %v8258_v47  ;;  %v8307_v45 = vld [vmem:[%s10765_s1 + $0x4d0] sm:$0xff]  }
  0x5b   :  { %v8309_v47 = vld [vmem:[%s10765_s1 + $0x490] sm:$0xff]  }
  0x5c   :  { %7396 = vmatpush3.bf16.msra.mxu0 %v8259_v50  ;;  %v8312_v50 = vld [vmem:[%s10765_s1 + $0x418] sm:$0xff]  }
  0x5d   :  { %7397 = vmatprep.subr.bf16.mxu0 %v8261_v54  ;;  %7418 = vmatpush3.bf16.msra.mxu1 %v8260_v51  ;;  %v8313_v51 = vld [vmem:[%s10765_s1 + $0x498] sm:$0xff]   ;;  %v8316_v54 = vld [vmem:[%s10765_s1 + $0x420] sm:$0xff]  }
  0x5e   :  { %7419 = vmatprep.subr.bf16.mxu1 %v8262_v55  ;;  %v8317_v55 = vld [vmem:[%s10765_s1 + $0x4a0] sm:$0xff]  }
  0x60   :  { %7398 = vmatpush3.bf16.msra.mxu0 %v8263_v58  ;;  %v8320_v58 = vld [vmem:[%s10765_s1 + $0x428] sm:$0xff]  }
  0x61   :  { %7427 = vmatprep.subr.bf16.mxu0 %v8265_v62  ;;  %7420 = vmatpush3.bf16.msra.mxu1 %v8264_v59  ;;  %v8321_v59 = vld [vmem:[%s10765_s1 + $0x4a8] sm:$0xff]   ;;  %v8323_v62 = vld [vmem:[%s10765_s1 + $0x4f0] sm:$0xff]  }
  0x62   :  { %7449 = vmatprep.subr.bf16.mxu1 %v8266_v63 }
  0x63   :  { %5361 = vmatmul.mubr.bf16.vlgmr.msra.gmra.mrb[8].mxu0 %v1271_v61  ;;  %v24_v61 = vld [vmem:[%s10764_s0 + $0x10] sm:$0xff] }
  0x64   :  { %7428 = vmatpush3.bf16.msra.mxu0 %v8267_v1  ;;  %5440 = vmatprep.mubr.bf16.mxu0 %v1292_v0  ;;  %v1304_v63 = vrot.slane %v24_v61, %v8917_v41  ;;  %v1297_v0 = vcombine.high %v24_v61, %v24_v61  ;;  %v8324_v1 = vld [vmem:[%s10765_s1 + $0x430] sm:$0xff]  }
  0x65   :  { %5401 = vmatmul.mubr.bf16.vlgmr.msra.gmra.mrb[8].mxu1 %v1293_v3  ;;  %7429 = vmatprep.subr.bf16.mxu0 %v8269_v4  ;;  %v8373_v61 = vld [vmem:[%s10765_s1 + $0x610] sm:$0xff]  }
  0x66   :  { %7450 = vmatpush3.bf16.msra.mxu1 %v8268_v2  ;;  %5480 = vmatprep.mubr.bf16.mxu1 %v1296_v6  ;;  %v8325_v2 = vld [vmem:[%s10765_s1 + $0x4b0] sm:$0xff]   ;;  %v1312_v3 = vcombine.high %v1304_v63, %v1304_v63  ;;  %v9315_v4 = vrot.slane %v1297_v0, %v8917_v41  ;;  %v8327_v6 = vld [vmem:[%s10765_s1 + $0x4f8] sm:$0xff]  }
  0x67   :  { %7451 = vmatprep.subr.bf16.mxu1 %v8270_v5  ;;  %v8326_v5 = vld [vmem:[%s10765_s1 + $0x478] sm:$0xff]  }
  0x68   :  { %7430 = vmatpush3.bf16.msra.mxu0 %v8271_v7  ;;  %v1334_v7 = vrot.slane %v1312_v3, %v8917_v41  ;;  %v8376_v0 = vld [vmem:[%s10765_s1 + $0x6d8] sm:$0xff]   ;;  %v8379_v3 = vld [vmem:[%s10765_s1 + $0x660] sm:$0xff]  }
  0x69   :  { %7431 = vmatprep.subr.bf16.mxu0 %v8273_v9  ;;  %v8328_v9 = vld [vmem:[%s10765_s1 + $0x438] sm:$0xff]  }
  0x6a   :  { %7452 = vmatpush3.bf16.msra.mxu1 %v8272_v8  ;;  %v1313_v8 = vcombine.high %v9315_v4, %v9315_v4 }
  0x6b   :  { %7453 = vmatprep.subr.bf16.mxu1 %v8274_v10  ;;  %v8329_v10 = vld [vmem:[%s10765_s1 + $0x4b8] sm:$0xff]  }
  0x6c   :  { %7432 = vmatpush3.bf16.msra.mxu0 %v8275_v11  ;;  %v1344_v11 = vcombine.high %v1334_v7, %v1334_v7 }
  0x6d   :  { %7433 = vmatprep.subr.bf16.mxu0 %v8277_v13  ;;  %v8330_v13 = vld [vmem:[%s10765_s1 + $0x540] sm:$0xff]  }
  0x6e   :  { %7454 = vmatpush3.bf16.msra.mxu1 %v8276_v12  ;;  %v1320_v12 = vrot.slane %v1304_v63, %v8917_v41  ;;  %v8375_v63 = vld [vmem:[%s10765_s1 + $0x658] sm:$0xff]  }
  0x6f   :  { %7455 = vmatprep.subr.bf16.mxu1 %v8278_v14  ;;  %v8331_v14 = vld [vmem:[%s10765_s1 + $0x5c0] sm:$0xff]  }
  0x70   :  { %7434 = vmatpush3.bf16.msra.mxu0 %v8279_v15  ;;  %v1341_v15 = vrot.slane %v1313_v8, %v8917_v41  ;;  %v8384_v8 = vld [vmem:[%s10765_s1 + $0x6e8] sm:$0xff]  }
  0x71   :  { %7435 = vmatprep.subr.bf16.mxu0 %v8281_v17  ;;  %v8333_v17 = vld [vmem:[%s10765_s1 + $0x580] sm:$0xff]  }
  0x72   :  { %7456 = vmatpush3.bf16.msra.mxu1 %v8280_v16  ;;  %v8332_v16 = vld [vmem:[%s10765_s1 + $0x500] sm:$0xff]  }
  0x73   :  { %7457 = vmatprep.subr.bf16.mxu1 %v8282_v18  ;;  %v1342_v18 = vcombine.high %v1320_v12, %v1320_v12 }
  0x74   :  { %7436 = vmatpush3.bf16.msra.mxu0 %v8283_v19  ;;  %v8334_v19 = vld [vmem:[%s10765_s1 + $0x548] sm:$0xff]  }
  0x75   :  { %7437 = vmatprep.subr.bf16.mxu0 %v8285_v21  ;;  %v1345_v21 = vcombine.high %v1341_v15, %v1341_v15 }
  0x76   :  { %7458 = vmatpush3.bf16.msra.mxu1 %v8284_v20  ;;  %v8335_v20 = vld [vmem:[%s10765_s1 + $0x5c8] sm:$0xff]  }
  0x77   :  { %7459 = vmatprep.subr.bf16.mxu1 %v8286_v22  ;;  %v8336_v22 = vld [vmem:[%s10765_s1 + $0x508] sm:$0xff]  }
  0x78   :  { %7438 = vmatpush3.bf16.msra.mxu0 %v8287_v23  ;;  %v8337_v23 = vld [vmem:[%s10765_s1 + $0x588] sm:$0xff]  }
  0x79   :  { %7439 = vmatprep.subr.bf16.mxu0 %v8289_v25  ;;  %v8339_v25 = vld [vmem:[%s10765_s1 + $0x5d0] sm:$0xff]  }
  0x7a   :  { %7460 = vmatpush3.bf16.msra.mxu1 %v8288_v24  ;;  %v8338_v24 = vld [vmem:[%s10765_s1 + $0x550] sm:$0xff]  }
  0x7b   :  { %7461 = vmatprep.subr.bf16.mxu1 %v8290_v26  ;;  %v8340_v26 = vld [vmem:[%s10765_s1 + $0x510] sm:$0xff]  }
  0x7c   :  { %7440 = vmatpush3.bf16.msra.mxu0 %v8291_v27  ;;  %v8341_v27 = vld [vmem:[%s10765_s1 + $0x590] sm:$0xff]  }
  0x7d   :  { %7441 = vmatprep.subr.bf16.mxu0 %v8293_v29  ;;  %v8343_v29 = vld [vmem:[%s10765_s1 + $0x5d8] sm:$0xff]  }
  0x7e   :  { %7462 = vmatpush3.bf16.msra.mxu1 %v8292_v28  ;;  %v8342_v28 = vld [vmem:[%s10765_s1 + $0x558] sm:$0xff]  }
  0x7f   :  { %7463 = vmatprep.subr.bf16.mxu1 %v8294_v30  ;;  %v8344_v30 = vld [vmem:[%s10765_s1 + $0x518] sm:$0xff]  }
  0x80   :  { %7442 = vmatpush3.bf16.msra.mxu0 %v8295_v31  ;;  %v8345_v31 = vld [vmem:[%s10765_s1 + $0x598] sm:$0xff]  }
  0x81   :  { %7471 = vmatprep.subr.bf16.mxu0 %v8298_v34  ;;  %v8348_v34 = vld [vmem:[%s10765_s1 + $0x520] sm:$0xff]  }
  0x82   :  { %7464 = vmatpush3.bf16.msra.mxu1 %v8296_v32  ;;  %v8346_v32 = vld [vmem:[%s10765_s1 + $0x560] sm:$0xff]  }
  0x83   :  { %5441 = vmatmul.mubr.bf16.vlgmr.msra.gmra.mrb[12].mxu0 %v1278_v33  ;;  %7493 = vmatprep.subr.bf16.mxu1 %v8299_v35  ;;  %v8347_v33 = vld [vmem:[%s10765_s1 + $0x5e0] sm:$0xff]  }
  0x84   :  { %7472 = vmatpush3.bf16.msra.mxu0 %v8300_v36  ;;  %5520 = vmatprep.mubr.bf16.mxu0 %v1334_v7  ;;  %v8349_v35 = vld [vmem:[%s10765_s1 + $0x5a0] sm:$0xff]   ;;  %v8350_v36 = vld [vmem:[%s10765_s1 + $0x568] sm:$0xff]  }
  0x85   :  { %5481 = vmatmul.mubr.bf16.vlgmr.msra.gmra.mrb[12].mxu1 %v1294_v38  ;;  %7473 = vmatprep.subr.bf16.mxu0 %v8302_v39  ;;  %v8352_v38 = vld [vmem:[%s10765_s1 + $0x528] sm:$0xff]  }
  0x86   :  { %7494 = vmatpush3.bf16.msra.mxu1 %v8301_v37  ;;  %5560 = vmatprep.mubr.bf16.mxu1 %v1344_v11  ;;  %v8351_v37 = vld [vmem:[%s10765_s1 + $0x5e8] sm:$0xff]   ;;  %v8387_v11 = vld [vmem:[%s10765_s1 + $0x670] sm:$0xff]  }
  0x87   :  { %7495 = vmatprep.subr.bf16.mxu1 %v8303_v40  ;;  %v8353_v39 = vld [vmem:[%s10765_s1 + $0x5a8] sm:$0xff]   ;;  %v8354_v40 = vld [vmem:[%s10765_s1 + $0x570] sm:$0xff]  }
  0x88   :  { %7474 = vmatpush3.bf16.msra.mxu0 %v8304_v42  ;;  %v8355_v42 = vld [vmem:[%s10765_s1 + $0x5f0] sm:$0xff]   ;;  %v8383_v7 = vld [vmem:[%s10765_s1 + $0x668] sm:$0xff]  }
  0x89   :  { %7475 = vmatprep.subr.bf16.mxu0 %v8306_v44  ;;  %v8357_v44 = vld [vmem:[%s10765_s1 + $0x5b0] sm:$0xff]  }
  0x8a   :  { %7496 = vmatpush3.bf16.msra.mxu1 %v8305_v43  ;;  %v8356_v43 = vld [vmem:[%s10765_s1 + $0x530] sm:$0xff]  }
  0x8b   :  { %7497 = vmatprep.subr.bf16.mxu1 %v8307_v45  ;;  %v8358_v45 = vld [vmem:[%s10765_s1 + $0x578] sm:$0xff]  }
  0x8c   :  { %7476 = vmatpush3.bf16.msra.mxu0 %v8308_v46  ;;  %v8359_v46 = vld [vmem:[%s10765_s1 + $0x5f8] sm:$0xff]  }
  0x8d   :  { %7477 = vmatprep.subr.bf16.mxu0 %v8310_v48  ;;  %v8361_v48 = vld [vmem:[%s10765_s1 + $0x5b8] sm:$0xff]  }
  0x8e   :  { %7498 = vmatpush3.bf16.msra.mxu1 %v8309_v47  ;;  %v8360_v47 = vld [vmem:[%s10765_s1 + $0x538] sm:$0xff]  }
  0x8f   :  { %7499 = vmatprep.subr.bf16.mxu1 %v8311_v49  ;;  %v1327_v49 = vrot.slane %v9315_v4, %v8917_v41  ;;  %v8380_v4 = vld [vmem:[%s10765_s1 + $0x6e0] sm:$0xff]  }
  0x90   :  { %7478 = vmatpush3.bf16.msra.mxu0 %v8312_v50  ;;  %v8363_v50 = vld [vmem:[%s10765_s1 + $0x640] sm:$0xff]  }
  0x91   :  { %7479 = vmatprep.subr.bf16.mxu0 %v8314_v52  ;;  %v8365_v52 = vld [vmem:[%s10765_s1 + $0x600] sm:$0xff]  }
  0x92   :  { %7500 = vmatpush3.bf16.msra.mxu1 %v8313_v51  ;;  %v8364_v51 = vld [vmem:[%s10765_s1 + $0x6c0] sm:$0xff]  }
  0x93   :  { %7501 = vmatprep.subr.bf16.mxu1 %v8315_v53  ;;  %v8366_v53 = vld [vmem:[%s10765_s1 + $0x680] sm:$0xff]  }
  0x94   :  { %7480 = vmatpush3.bf16.msra.mxu0 %v8316_v54  ;;  %v1343_v54 = vcombine.high %v1327_v49, %v1327_v49 }
  0x95   :  { %7481 = vmatprep.subr.bf16.mxu0 %v8318_v56  ;;  %v8368_v56 = vld [vmem:[%s10765_s1 + $0x6c8] sm:$0xff]  }
  0x96   :  { %7502 = vmatpush3.bf16.msra.mxu1 %v8317_v55  ;;  %v8367_v55 = vld [vmem:[%s10765_s1 + $0x648] sm:$0xff]  }
  0x97   :  { %7503 = vmatprep.subr.bf16.mxu1 %v8319_v57  ;;  %v8369_v57 = vld [vmem:[%s10765_s1 + $0x608] sm:$0xff]  }
  0x98   :  { %7482 = vmatpush3.bf16.msra.mxu0 %v8320_v58  ;;  %v8370_v58 = vld [vmem:[%s10765_s1 + $0x688] sm:$0xff]  }
  0x99   :  { %7483 = vmatprep.subr.bf16.mxu0 %v8322_v60  ;;  %v8372_v60 = vld [vmem:[%s10765_s1 + $0x6d0] sm:$0xff]  }
  0x9a   :  { %7504 = vmatpush3.bf16.msra.mxu1 %v8321_v59  ;;  %v8371_v59 = vld [vmem:[%s10765_s1 + $0x650] sm:$0xff]  }
  0x9b   :  { %7505 = vmatprep.subr.bf16.mxu1 %v8323_v62  ;;  %v8374_v62 = vld [vmem:[%s10765_s1 + $0x690] sm:$0xff]  }
  0x9c   :  { %7484 = vmatpush3.bf16.msra.mxu0 %v8324_v1  ;;  %v8377_v1 = vld [vmem:[%s10765_s1 + $0x618] sm:$0xff]  }
  0x9d   :  { %7485 = vmatprep.subr.bf16.mxu0 %v8326_v5  ;;  %v8381_v5 = vld [vmem:[%s10765_s1 + $0x620] sm:$0xff]  }
  0x9e   :  { %7506 = vmatpush3.bf16.msra.mxu1 %v8325_v2  ;;  %v8378_v2 = vld [vmem:[%s10765_s1 + $0x698] sm:$0xff]  }
  0x9f   :  { %7507 = vmatprep.subr.bf16.mxu1 %v8327_v6  ;;  %v8382_v6 = vld [vmem:[%s10765_s1 + $0x6a0] sm:$0xff]  }
  0xa0   :  { %7486 = vmatpush3.bf16.msra.mxu0 %v8328_v9  ;;  %v8385_v9 = vld [vmem:[%s10765_s1 + $0x628] sm:$0xff]  }
  0xa1   :  { %7515 = vmatprep.subr.bf16.mxu0 %v8330_v13  ;;  %v8388_v13 = vld [vmem:[%s10765_s1 + $0x6f0] sm:$0xff]  }
  0xa2   :  { %7508 = vmatpush3.bf16.msra.mxu1 %v8329_v10  ;;  %v8386_v10 = vld [vmem:[%s10765_s1 + $0x6a8] sm:$0xff]  }
  0xa3   :  { %5521 = vmatmul.mubr.bf16.vlgmr.msra.gmra.mrb[16].mxu0 %v1320_v12  ;;  %7537 = vmatprep.subr.bf16.mxu1 %v8331_v14  ;;  %v25_v12 = vld [vmem:[%s10764_s0 + $0x18] sm:$0xff] }
  0xa4   :  { %7516 = vmatpush3.bf16.msra.mxu0 %v8332_v16  ;;  %5600 = vmatprep.mubr.bf16.mxu0 %v1341_v15  ;;  %v1353_v14 = vrot.slane %v25_v12, %v8917_v41  ;;  %v1346_v15 = vcombine.high %v25_v12, %v25_v12  ;;  %v8389_v16 = vld [vmem:[%s10765_s1 + $0x630] sm:$0xff]   ;;  %v8426_v12 = vld [vmem:[%s10765_s1 + $0x7b8] sm:$0xff]  }
  0xa5   :  { %5561 = vmatmul.mubr.bf16.vlgmr.msra.gmra.mrb[16].mxu1 %v1342_v18  ;;  %7517 = vmatprep.subr.bf16.mxu0 %v8334_v19 }
  0xa6   :  { %7538 = vmatpush3.bf16.msra.mxu1 %v8333_v17  ;;  %5640 = vmatprep.mubr.bf16.mxu1 %v1345_v21  ;;  %v8391_v17 = vld [vmem:[%s10765_s1 + $0x678] sm:$0xff]   ;;  %v1361_v18 = vcombine.high %v1353_v14, %v1353_v14  ;;  %v9521_v19 = vrot.slane %v1346_v15, %v8917_v41  ;;  %v8429_v15 = vld [vmem:[%s10765_s1 + $0x8c0] sm:$0xff]  }
  0xa7   :  { %7539 = vmatprep.subr.bf16.mxu1 %v8335_v20  ;;  %v8390_v20 = vld [vmem:[%s10765_s1 + $0x6b0] sm:$0xff]   ;;  %v8392_v21 = vld [vmem:[%s10765_s1 + $0x6f8] sm:$0xff]  }
  0xa8   :  { %7518 = vmatpush3.bf16.msra.mxu0 %v8336_v22  ;;  %v1383_v22 = vrot.slane %v1361_v18, %v8917_v41 }
  0xa9   :  { %7519 = vmatprep.subr.bf16.mxu0 %v8338_v24  ;;  %v8393_v24 = vld [vmem:[%s10765_s1 + $0x638] sm:$0xff]  }
  0xaa   :  { %7540 = vmatpush3.bf16.msra.mxu1 %v8337_v23  ;;  %v1362_v23 = vcombine.high %v9521_v19, %v9521_v19 }
  0xab   :  { %7541 = vmatprep.subr.bf16.mxu1 %v8339_v25  ;;  %v1393_v25 = vcombine.high %v1383_v22, %v1383_v22 }
  0xac   :  { %7520 = vmatpush3.bf16.msra.mxu0 %v8340_v26  ;;  %v1369_v26 = vrot.slane %v1353_v14, %v8917_v41  ;;  %v8428_v14 = vld [vmem:[%s10765_s1 + $0x840] sm:$0xff]  }
  0xad   :  { %7521 = vmatprep.subr.bf16.mxu0 %v8342_v28  ;;  %v8394_v28 = vld [vmem:[%s10765_s1 + $0x6b8] sm:$0xff]  }
  0xae   :  { %7542 = vmatpush3.bf16.msra.mxu1 %v8341_v27  ;;  %v8395_v27 = vld [vmem:[%s10765_s1 + $0x740] sm:$0xff]  }
  0xaf   :  { %7543 = vmatprep.subr.bf16.mxu1 %v8343_v29  ;;  %v1390_v29 = vrot.slane %v1362_v23, %v8917_v41  ;;  %v8436_v23 = vld [vmem:[%s10765_s1 + $0x850] sm:$0xff]  }
  0xb0   :  { %7522 = vmatpush3.bf16.msra.mxu0 %v8344_v30  ;;  %v8396_v30 = vld [vmem:[%s10765_s1 + $0x7c0] sm:$0xff]  }
  0xb1   :  { %7523 = vmatprep.subr.bf16.mxu0 %v8346_v32  ;;  %v1391_v32 = vcombine.high %v1369_v26, %v1369_v26 }
  0xb2   :  { %7544 = vmatpush3.bf16.msra.mxu1 %v8345_v31  ;;  %v8397_v31 = vld [vmem:[%s10765_s1 + $0x700] sm:$0xff]  }
  0xb3   :  { %7545 = vmatprep.subr.bf16.mxu1 %v8347_v33  ;;  %v8399_v33 = vld [vmem:[%s10765_s1 + $0x748] sm:$0xff]  }
  0xb4   :  { %7524 = vmatpush3.bf16.msra.mxu0 %v8348_v34  ;;  %v8398_v34 = vld [vmem:[%s10765_s1 + $0x780] sm:$0xff]  }
  0xb5   :  { %7525 = vmatprep.subr.bf16.mxu0 %v8350_v36  ;;  %v8400_v36 = vld [vmem:[%s10765_s1 + $0x7c8] sm:$0xff]  }
  0xb6   :  { %7546 = vmatpush3.bf16.msra.mxu1 %v8349_v35  ;;  %v1394_v35 = vcombine.high %v1390_v29, %v1390_v29 }
  0xb7   :  { %7547 = vmatprep.subr.bf16.mxu1 %v8351_v37  ;;  %v8401_v37 = vld [vmem:[%s10765_s1 + $0x708] sm:$0xff]  }
  0xb8   :  { %7526 = vmatpush3.bf16.msra.mxu0 %v8352_v38  ;;  %v8403_v38 = vld [vmem:[%s10765_s1 + $0x750] sm:$0xff]  }
  0xb9   :  { %7527 = vmatprep.subr.bf16.mxu0 %v8354_v40  ;;  %v8404_v40 = vld [vmem:[%s10765_s1 + $0x7d0] sm:$0xff]  }
  0xba   :  { %7548 = vmatpush3.bf16.msra.mxu1 %v8353_v39  ;;  %v8402_v39 = vld [vmem:[%s10765_s1 + $0x788] sm:$0xff]  }
  0xbb   :  { %7549 = vmatprep.subr.bf16.mxu1 %v8355_v42  ;;  %v8405_v42 = vld [vmem:[%s10765_s1 + $0x710] sm:$0xff]  }
  0xbc   :  { %7528 = vmatpush3.bf16.msra.mxu0 %v8356_v43  ;;  %v8407_v43 = vld [vmem:[%s10765_s1 + $0x758] sm:$0xff]  }
  0xbd   :  { %7529 = vmatprep.subr.bf16.mxu0 %v8358_v45  ;;  %v8408_v45 = vld [vmem:[%s10765_s1 + $0x7d8] sm:$0xff]  }
  0xbe   :  { %7550 = vmatpush3.bf16.msra.mxu1 %v8357_v44  ;;  %v8406_v44 = vld [vmem:[%s10765_s1 + $0x790] sm:$0xff]  }
  0xbf   :  { %7551 = vmatprep.subr.bf16.mxu1 %v8359_v46  ;;  %v8409_v46 = vld [vmem:[%s10765_s1 + $0x718] sm:$0xff]  }
  0xc0   :  { %7530 = vmatpush3.bf16.msra.mxu0 %v8360_v47  ;;  %v8410_v47 = vld [vmem:[%s10765_s1 + $0x798] sm:$0xff]  }
  0xc1   :  { %7559 = vmatprep.subr.bf16.mxu0 %v8363_v50  ;;  %v8413_v50 = vld [vmem:[%s10765_s1 + $0x720] sm:$0xff]  }
  0xc2   :  { %7552 = vmatpush3.bf16.msra.mxu1 %v8361_v48  ;;  %v8411_v48 = vld [vmem:[%s10765_s1 + $0x760] sm:$0xff]  }
  0xc3   :  { %5601 = vmatmul.mubr.bf16.vlgmr.msra.gmra.mrb[20].mxu0 %v1327_v49  ;;  %7581 = vmatprep.subr.bf16.mxu1 %v8364_v51  ;;  %v8412_v49 = vld [vmem:[%s10765_s1 + $0x7e0] sm:$0xff]  }
  0xc4   :  { %7560 = vmatpush3.bf16.msra.mxu0 %v8365_v52  ;;  %5680 = vmatprep.mubr.bf16.mxu0 %v1383_v22  ;;  %v8414_v51 = vld [vmem:[%s10765_s1 + $0x7a0] sm:$0xff]   ;;  %v8415_v52 = vld [vmem:[%s10765_s1 + $0x768] sm:$0xff]  }
  0xc5   :  { %5641 = vmatmul.mubr.bf16.vlgmr.msra.gmra.mrb[20].mxu1 %v1343_v54  ;;  %7561 = vmatprep.subr.bf16.mxu0 %v8367_v55  ;;  %v8417_v54 = vld [vmem:[%s10765_s1 + $0x728] sm:$0xff]  }
  0xc6   :  { %7582 = vmatpush3.bf16.msra.mxu1 %v8366_v53  ;;  %5720 = vmatprep.mubr.bf16.mxu1 %v1393_v25  ;;  %v8416_v53 = vld [vmem:[%s10765_s1 + $0x7e8] sm:$0xff]   ;;  %v8438_v25 = vld [vmem:[%s10765_s1 + $0x810] sm:$0xff]  }
  0xc7   :  { %7583 = vmatprep.subr.bf16.mxu1 %v8368_v56  ;;  %v8418_v55 = vld [vmem:[%s10765_s1 + $0x7a8] sm:$0xff]   ;;  %v6717_v56 = vld [vmem:[%s10766_s2] ss:$0 sm:$0xff] }
  0xc8   :  { %7562 = vmatpush3.bf16.msra.mxu0 %v8369_v57  ;;  %v8419_v57 = vld [vmem:[%s10765_s1 + $0x770] sm:$0xff]   ;;  %v8435_v22 = vld [vmem:[%s10765_s1 + $0x888] sm:$0xff]  }
  0xc9   :  { %7563 = vmatprep.subr.bf16.mxu0 %v8371_v59  ;;  %v8420_v59 = vld [vmem:[%s10765_s1 + $0x7f0] sm:$0xff]  }
  0xca   :  { %7584 = vmatpush3.bf16.msra.mxu1 %v8370_v58 }
  0xcb   :  { %7585 = vmatprep.subr.bf16.mxu1 %v8372_v60 }
  0xcc   :  { %7564 = vmatpush3.bf16.msra.mxu0 %v8373_v61  ;;  %v8421_v61 = vld [vmem:[%s10765_s1 + $0x730] sm:$0xff]  }
  0xcd   :  { %7565 = vmatprep.subr.bf16.mxu0 %v8375_v63 }
  0xce   :  { %7586 = vmatpush3.bf16.msra.mxu1 %v8374_v62 }
  0xcf   :  { %7587 = vmatprep.subr.bf16.mxu1 %v8376_v0 }
  0xd0   :  { %7566 = vmatpush3.bf16.msra.mxu0 %v8377_v1  ;;  %v8422_v1 = vld [vmem:[%s10765_s1 + $0x7b0] sm:$0xff]  }
  0xd1   :  { %7567 = vmatprep.subr.bf16.mxu0 %v8379_v3 }
  0xd2   :  { %7588 = vmatpush3.bf16.msra.mxu1 %v8378_v2  ;;  %v8423_v2 = vld [vmem:[%s10765_s1 + $0x778] sm:$0xff]  }
  0xd3   :  { %7589 = vmatprep.subr.bf16.mxu1 %v8380_v4 }
  0xd4   :  { %7568 = vmatpush3.bf16.msra.mxu0 %v8381_v5 }
  0xd5   :  { %7569 = vmatprep.subr.bf16.mxu0 %v8383_v7 }
  0xd6   :  { %7590 = vmatpush3.bf16.msra.mxu1 %v8382_v6 }
  0xd7   :  { %7591 = vmatprep.subr.bf16.mxu1 %v8384_v8  ;;  %v8424_v8 = vld [vmem:[%s10765_s1 + $0x7f8] sm:$0xff]  }
  0xd8   :  { %7570 = vmatpush3.bf16.msra.mxu0 %v8385_v9 }
  0xd9   :  { %7571 = vmatprep.subr.bf16.mxu0 %v8387_v11 }
  0xda   :  { %7592 = vmatpush3.bf16.msra.mxu1 %v8386_v10  ;;  %v8425_v10 = vld [vmem:[%s10765_s1 + $0x738] sm:$0xff]  }
  0xdb   :  { %7593 = vmatprep.subr.bf16.mxu1 %v8388_v13  ;;  %v1376_v13 = vrot.slane %v9521_v19, %v8917_v41  ;;  %v8432_v19 = vld [vmem:[%s10765_s1 + $0x848] sm:$0xff]  }
  0xdc   :  { %7572 = vmatpush3.bf16.msra.mxu0 %v8389_v16  ;;  %v8430_v16 = vld [vmem:[%s10765_s1 + $0x800] sm:$0xff]  }
  0xdd   :  { %7573 = vmatprep.subr.bf16.mxu0 %v8391_v17  ;;  %v8431_v17 = vld [vmem:[%s10765_s1 + $0x880] sm:$0xff]   ;;  %v1392_v18 = vcombine.high %v1376_v13, %v1376_v13 }
  0xde   :  { %7594 = vmatpush3.bf16.msra.mxu1 %v8390_v20  ;;  %v8433_v20 = vld [vmem:[%s10765_s1 + $0x8c8] sm:$0xff]  }
  0xdf   :  { %7595 = vmatprep.subr.bf16.mxu1 %v8392_v21  ;;  %v8434_v21 = vld [vmem:[%s10765_s1 + $0x808] sm:$0xff]  }
  0xe0   :  { %7574 = vmatpush3.bf16.msra.mxu0 %v8393_v24  ;;  %v8437_v24 = vld [vmem:[%s10765_s1 + $0x8d0] sm:$0xff]  }
  0xe1   :  { %7603 = vmatprep.subr.bf16.mxu0 %v8395_v27  ;;  %v8440_v27 = vld [vmem:[%s10765_s1 + $0x858] sm:$0xff]  }
  0xe2   :  { %7596 = vmatpush3.bf16.msra.mxu1 %v8394_v28  ;;  %v8441_v28 = vld [vmem:[%s10765_s1 + $0x8d8] sm:$0xff]  }
  0xe3   :  { %5681 = vmatmul.mubr.bf16.vlgmr.msra.gmra.mrb[24].mxu0 %v1369_v26  ;;  %7625 = vmatprep.subr.bf16.mxu1 %v8396_v30  ;;  %v8439_v26 = vld [vmem:[%s10765_s1 + $0x890] sm:$0xff]   ;;  %v8443_v30 = vld [vmem:[%s10765_s1 + $0x898] sm:$0xff]  }
  0xe4   :  { %7604 = vmatpush3.bf16.msra.mxu0 %v8397_v31  ;;  %5760 = vmatprep.mubr.bf16.mxu0 %v1390_v29  ;;  %v8442_v29 = vld [vmem:[%s10765_s1 + $0x818] sm:$0xff]   ;;  %v8444_v31 = vld [vmem:[%s10765_s1 + $0x860] sm:$0xff]  }
  0xe5   :  { %5721 = vmatmul.mubr.bf16.vlgmr.msra.gmra.mrb[24].mxu1 %v1391_v32  ;;  %7605 = vmatprep.subr.bf16.mxu0 %v8399_v33  ;;  %v8445_v32 = vld [vmem:[%s10765_s1 + $0x8e0] sm:$0xff]  }
  0xe6   :  { %7626 = vmatpush3.bf16.msra.mxu1 %v8398_v34  ;;  %5800 = vmatprep.mubr.bf16.mxu1 %v1394_v35  ;;  %v8446_v33 = vld [vmem:[%s10765_s1 + $0x820] sm:$0xff]   ;;  %v8448_v35 = vld [vmem:[%s10765_s1 + $0x868] sm:$0xff]  }
  0xe7   :  { %7627 = vmatprep.subr.bf16.mxu1 %v8400_v36  ;;  %v8447_v34 = vld [vmem:[%s10765_s1 + $0x8a0] sm:$0xff]   ;;  %v8449_v36 = vld [vmem:[%s10765_s1 + $0x8e8] sm:$0xff]  }
  0xe8   :  { %7606 = vmatpush3.bf16.msra.mxu0 %v8401_v37  ;;  %v8450_v37 = vld [vmem:[%s10765_s1 + $0x828] sm:$0xff]  }
  0xe9   :  { %7607 = vmatprep.subr.bf16.mxu0 %v8403_v38  ;;  %v8451_v38 = vld [vmem:[%s10765_s1 + $0x8a8] sm:$0xff]  }
  0xea   :  { %7628 = vmatpush3.bf16.msra.mxu1 %v8402_v39  ;;  %v8452_v39 = vld [vmem:[%s10765_s1 + $0x870] sm:$0xff]  }
  0xeb   :  { %7629 = vmatprep.subr.bf16.mxu1 %v8404_v40  ;;  %v8453_v40 = vld [vmem:[%s10765_s1 + $0x8f0] sm:$0xff]  }
  0xec   :  { %7608 = vmatpush3.bf16.msra.mxu0 %v8405_v42 }
  0xed   :  { %7609 = vmatprep.subr.bf16.mxu0 %v8407_v43  ;;  %v8454_v43 = vld [vmem:[%s10765_s1 + $0x830] sm:$0xff]  }
  0xee   :  { %7630 = vmatpush3.bf16.msra.mxu1 %v8406_v44 }
  0xef   :  { %7631 = vmatprep.subr.bf16.mxu1 %v8408_v45  ;;  %v26_v45 = vld [vmem:[%s10764_s0 + $0x20] sm:$0xff] }
  0xf0   :  { %7610 = vmatpush3.bf16.msra.mxu0 %v8409_v46 }
  0xf1   :  { %7611 = vmatprep.subr.bf16.mxu0 %v8411_v48 }
  0xf2   :  { %7632 = vmatpush3.bf16.msra.mxu1 %v8410_v47 }
  0xf3   :  { %7633 = vmatprep.subr.bf16.mxu1 %v8412_v49  ;;  %v8455_v49 = vld [vmem:[%s10765_s1 + $0x8b0] sm:$0xff]  }
  0xf4   :  { %7612 = vmatpush3.bf16.msra.mxu0 %v8413_v50  ;;  %v8456_v50 = vld [vmem:[%s10765_s1 + $0x878] sm:$0xff]  }
  0xf5   :  { %7613 = vmatprep.subr.bf16.mxu0 %v8415_v52  ;;  %v1395_v52 = vcombine.high %v26_v45, %v26_v45 }
  0xf6   :  { %7634 = vmatpush3.bf16.msra.mxu1 %v8414_v51  ;;  %v7311_v58 = vpop.f32.mrb[0].mxu0  ;;  %v1402_v51 = vrot.slane %v26_v45, %v8917_v41 }
  0xf7   :  { %v7312_v60 = vpop.f32.mrb[1].mxu0  ;;  %7635 = vmatprep.subr.bf16.mxu1 %v8416_v53  ;;  %v7333_v62 = vpop.f32.mrb[0].mxu1 }
  0xf8   :  { %v7313_v63 = vadd.f32 %v7312_v60, %v7311_v58  ;;  %v7314_v0 = vpop.f32.mrb[2].mxu0  ;;  %7614 = vmatpush3.bf16.msra.mxu0 %v8417_v54  ;;  %v7334_v3 = vpop.f32.mrb[1].mxu1  ;;  %v8457_v58 = vld [vmem:[%s10765_s1 + $0x8f8] sm:$0xff]  }
  0xf9   :  { %v7315_v4 = vpop.f32.mrb[3].mxu0  ;;  %7615 = vmatprep.subr.bf16.mxu0 %v8419_v57  ;;  %v7335_v6 = vadd.f32 %v7334_v3, %v7333_v62  ;;  %v7336_v7 = vpop.f32.mrb[2].mxu1  ;;  %v9742_v62 = vrot.slane %v1395_v52, %v8917_v41  ;;  %v8459_v0 = vld [vmem:[%s10765_s1 + $0x8b8] sm:$0xff]   ;;  %v8460_v3 = vld [vmem:[%s10765_s1 + $0x940] sm:$0xff]  }
  0xfa   :  { %v5203_v5 = vadd.f32 %v7313_v63, %v6717_v56  ;;  %7636 = vmatpush3.bf16.msra.mxu1 %v8418_v55  ;;  %v7337_v9 = vpop.f32.mrb[3].mxu1  ;;  %v8462_v7 = vld [vmem:[%s10765_s1 + $0x900] sm:$0xff]   ;;  %v8491_v52 = vld [vmem:[%s10765_s1 + $0x9b8] sm:$0xff]  }
  0xfb   :  { %7637 = vmatprep.subr.bf16.mxu1 %v8420_v59  ;;  %v1410_v59 = vcombine.high %v1402_v51, %v1402_v51  ;;  %v1411_v4 = vcombine.high %v9742_v62, %v9742_v62  ;;  %v8463_v9 = vld [vmem:[%s10765_s1 + $0x980] sm:$0xff]  }
  0xfc   :  { %v9636_v11 = vadd.f32 %v7335_v6, %v5203_v5  ;;  %7616 = vmatpush3.bf16.msra.mxu0 %v8421_v61  ;;  %v8458_v61 = vld [vmem:[%s10765_s1 + $0x838] sm:$0xff]   ;;  %v8461_v6 = vld [vmem:[%s10765_s1 + $0x9c0] sm:$0xff]  }
  0xfd   :  { %7617 = vmatprep.subr.bf16.mxu0 %v8423_v2  ;;  %v1418_v2 = vrot.slane %v1402_v51, %v8917_v41 }
  0xfe   :  { %7638 = vmatpush3.bf16.msra.mxu1 %v8422_v1  ;;  %v1432_v1 = vrot.slane %v1410_v59, %v8917_v41  ;;  %v8497_v59 = vld [vmem:[%s10765_s1 + $0xa48] sm:$0xff]  }
  0xff   :  { %7639 = vmatprep.subr.bf16.mxu1 %v8424_v8  ;;  %v1439_v8 = vrot.slane %v1411_v4, %v8917_v41  ;;  %v8506_v4 = vld [vmem:[%s10765_s1 + $0xad8] sm:$0xff]  }
 0x100   :  { %7618 = vmatpush3.bf16.msra.mxu0 %v8425_v10  ;;  %v1442_v5 = vcombine.high %v1432_v1, %v1432_v1  ;;  %v1440_v10 = vcombine.high %v1418_v2, %v1418_v2 }
 0x101   :  { %7647 = vmatprep.subr.bf16.mxu0 %v8428_v14  ;;  %v8466_v14 = vld [vmem:[%s10765_s1 + $0x908] sm:$0xff]  }
 0x102   :  { %7640 = vmatpush3.bf16.msra.mxu1 %v8426_v12  ;;  %v8465_v12 = vld [vmem:[%s10765_s1 + $0x9c8] sm:$0xff]  }
 0x103   :  { %5761 = vmatmul.mubr.bf16.vlgmr.msra.gmra.mrb[28].mxu0 %v1376_v13  ;;  %7669 = vmatprep.subr.bf16.mxu1 %v8429_v15  ;;  %v1443_v13 = vcombine.high %v1439_v8, %v1439_v8  ;;  %v8467_v15 = vld [vmem:[%s10765_s1 + $0x988] sm:$0xff]  }
 0x104   :  { %7648 = vmatpush3.bf16.msra.mxu0 %v8430_v16  ;;  %5840 = vmatprep.mubr.bf16.mxu0 %v1432_v1  ;;  %v8468_v16 = vld [vmem:[%s10765_s1 + $0x950] sm:$0xff]  }
 0x105   :  { %5801 = vmatmul.mubr.bf16.vlgmr.msra.gmra.mrb[28].mxu1 %v1392_v18  ;;  %7649 = vmatprep.subr.bf16.mxu0 %v8432_v19  ;;  %v8470_v18 = vld [vmem:[%s10765_s1 + $0x910] sm:$0xff]  }
 0x106   :  { %7670 = vmatpush3.bf16.msra.mxu1 %v8431_v17  ;;  %5880 = vmatprep.mubr.bf16.mxu1 %v1442_v5  ;;  %v8469_v17 = vld [vmem:[%s10765_s1 + $0x9d0] sm:$0xff]   ;;  %v8507_v5 = vld [vmem:[%s10765_s1 + $0xa18] sm:$0xff]  }
 0x107   :  { %7671 = vmatprep.subr.bf16.mxu1 %v8433_v20  ;;  %v8471_v19 = vld [vmem:[%s10765_s1 + $0x990] sm:$0xff]   ;;  %v8472_v20 = vld [vmem:[%s10765_s1 + $0x958] sm:$0xff]  }
 0x108   :  { %7650 = vmatpush3.bf16.msra.mxu0 %v8434_v21  ;;  %v8473_v21 = vld [vmem:[%s10765_s1 + $0x9d8] sm:$0xff]   ;;  %v8503_v1 = vld [vmem:[%s10765_s1 + $0xa10] sm:$0xff]  }
 0x109   :  { %7651 = vmatprep.subr.bf16.mxu0 %v8436_v23  ;;  %v8475_v23 = vld [vmem:[%s10765_s1 + $0x998] sm:$0xff]  }
 0x10a   :  { %7672 = vmatpush3.bf16.msra.mxu1 %v8435_v22  ;;  %v8474_v22 = vld [vmem:[%s10765_s1 + $0x918] sm:$0xff]  }
 0x10b   :  { %7673 = vmatprep.subr.bf16.mxu1 %v8437_v24  ;;  %v8476_v24 = vld [vmem:[%s10765_s1 + $0x960] sm:$0xff]  }
 0x10c   :  { %7652 = vmatpush3.bf16.msra.mxu0 %v8438_v25  ;;  %v8477_v25 = vld [vmem:[%s10765_s1 + $0x9e0] sm:$0xff]  }
 0x10d   :  { %7653 = vmatprep.subr.bf16.mxu0 %v8440_v27  ;;  %v8479_v27 = vld [vmem:[%s10765_s1 + $0x9a0] sm:$0xff]  }
 0x10e   :  { %7674 = vmatpush3.bf16.msra.mxu1 %v8439_v26  ;;  %v8478_v26 = vld [vmem:[%s10765_s1 + $0x920] sm:$0xff]  }
 0x10f   :  { %7675 = vmatprep.subr.bf16.mxu1 %v8441_v28  ;;  %v8480_v28 = vld [vmem:[%s10765_s1 + $0x968] sm:$0xff]  }
 0x110   :  { %7654 = vmatpush3.bf16.msra.mxu0 %v8442_v29  ;;  %v8481_v29 = vld [vmem:[%s10765_s1 + $0x9e8] sm:$0xff]  }
 0x111   :  { %7655 = vmatprep.subr.bf16.mxu0 %v8444_v31  ;;  %v8483_v31 = vld [vmem:[%s10765_s1 + $0x9a8] sm:$0xff]  }
 0x112   :  { %7676 = vmatpush3.bf16.msra.mxu1 %v8443_v30  ;;  %v8482_v30 = vld [vmem:[%s10765_s1 + $0x928] sm:$0xff]  }
 0x113   :  { %7677 = vmatprep.subr.bf16.mxu1 %v8445_v32  ;;  %v8484_v32 = vld [vmem:[%s10765_s1 + $0x970] sm:$0xff]  }
 0x114   :  { %7656 = vmatpush3.bf16.msra.mxu0 %v8446_v33 }
 0x115   :  { %7657 = vmatprep.subr.bf16.mxu0 %v8448_v35 }
 0x116   :  { %7678 = vmatpush3.bf16.msra.mxu1 %v8447_v34  ;;  %v7355_v42 = vpop.f32.mrb[4].mxu0  ;;  %v8485_v34 = vld [vmem:[%s10765_s1 + $0x9f0] sm:$0xff]  }
 0x117   :  { %v7356_v44 = vpop.f32.mrb[5].mxu0  ;;  %7679 = vmatprep.subr.bf16.mxu1 %v8449_v36  ;;  %v7377_v46 = vpop.f32.mrb[4].mxu1  ;;  %v8486_v36 = vld [vmem:[%s10765_s1 + $0x930] sm:$0xff]  }
 0x118   :  { %v7357_v47 = vadd.f32 %v7356_v44, %v7355_v42  ;;  %v7358_v48 = vpop.f32.mrb[6].mxu0  ;;  %7658 = vmatpush3.bf16.msra.mxu0 %v8450_v37  ;;  %v7378_v53 = vpop.f32.mrb[5].mxu1  ;;  %v8488_v42 = vld [vmem:[%s10765_s1 + $0x978] sm:$0xff]  }
 0x119   :  { %v7359_v54 = vpop.f32.mrb[7].mxu0  ;;  %7659 = vmatprep.subr.bf16.mxu0 %v8452_v39  ;;  %v7379_v56 = vadd.f32 %v7378_v53, %v7377_v46  ;;  %v7380_v57 = vpop.f32.mrb[6].mxu1  ;;  %v8489_v48 = vld [vmem:[%s10765_s1 + $0x9f8] sm:$0xff]   ;;  %v1425_v53 = vrot.slane %v9742_v62, %v8917_v41  ;;  %v8500_v62 = vld [vmem:[%s10765_s1 + $0xa88] sm:$0xff]  }
 0x11a   :  { %v5283_v55 = vadd.f32 %v7357_v47, %v9636_v11  ;;  %7680 = vmatpush3.bf16.msra.mxu1 %v8451_v38  ;;  %v7381_v60 = vpop.f32.mrb[7].mxu1  ;;  %v8464_v11 = vld [vmem:[%s10765_s1 + $0x948] sm:$0xff]   ;;  %v8493_v54 = vld [vmem:[%s10765_s1 + $0xa40] sm:$0xff]  }
 0x11b   :  { %7681 = vmatprep.subr.bf16.mxu1 %v8453_v40  ;;  %v8487_v40 = vld [vmem:[%s10765_s1 + $0x9b0] sm:$0xff]   ;;  %v8496_v57 = vld [vmem:[%s10765_s1 + $0xa80] sm:$0xff]   ;;  %v8498_v60 = vld [vmem:[%s10765_s1 + $0xac8] sm:$0xff]  }
 0x11c   :  { %v9744_v63 = vadd.f32 %v7379_v56, %v5283_v55  ;;  %7660 = vmatpush3.bf16.msra.mxu0 %v8454_v43  ;;  %v8494_v55 = vld [vmem:[%s10765_s1 + $0xac0] sm:$0xff]  }
 0x11d   :  { %7661 = vmatprep.subr.bf16.mxu0 %v8456_v50  ;;  %v8490_v50 = vld [vmem:[%s10765_s1 + $0x938] sm:$0xff]   ;;  %v8495_v56 = vld [vmem:[%s10765_s1 + $0xa00] sm:$0xff]  }
 0x11e   :  { %7682 = vmatpush3.bf16.msra.mxu1 %v8455_v49 }
 0x11f   :  { %7683 = vmatprep.subr.bf16.mxu1 %v8457_v58  ;;  %v1441_v58 = vcombine.high %v1425_v53, %v1425_v53 }
 0x120   :  { %7662 = vmatpush3.bf16.msra.mxu0 %v8458_v61  ;;  %v8499_v61 = vld [vmem:[%s10765_s1 + $0xa08] sm:$0xff]  }
 0x121   :  { %7691 = vmatprep.subr.bf16.mxu0 %v8460_v3  ;;  %v8505_v3 = vld [vmem:[%s10765_s1 + $0xa58] sm:$0xff]  }
 0x122   :  { %7684 = vmatpush3.bf16.msra.mxu1 %v8459_v0  ;;  %v8502_v0 = vld [vmem:[%s10765_s1 + $0xad0] sm:$0xff]  }
 0x123   :  { %5841 = vmatmul.mubr.bf16.vlgmr.msra.gmra.mrb[32].mxu0 %v1418_v2  ;;  %7713 = vmatprep.subr.bf16.mxu1 %v8461_v6  ;;  %v8504_v2 = vld [vmem:[%s10765_s1 + $0xa90] sm:$0xff]   ;;  %v8508_v6 = vld [vmem:[%s10765_s1 + $0xa98] sm:$0xff]  }
 0x124   :  { %7692 = vmatpush3.bf16.msra.mxu0 %v8462_v7  ;;  %5920 = vmatprep.mubr.bf16.mxu0 %v1439_v8  ;;  %v8509_v7 = vld [vmem:[%s10765_s1 + $0xa60] sm:$0xff]  }
 0x125   :  { %5881 = vmatmul.mubr.bf16.vlgmr.msra.gmra.mrb[32].mxu1 %v1440_v10  ;;  %7693 = vmatprep.subr.bf16.mxu0 %v8464_v11  ;;  %v8510_v8 = vld [vmem:[%s10765_s1 + $0xae0] sm:$0xff]   ;;  %v8513_v11 = vld [vmem:[%s10765_s1 + $0xa68] sm:$0xff]  }
 0x126   :  { %7714 = vmatpush3.bf16.msra.mxu1 %v8463_v9  ;;  %5960 = vmatprep.mubr.bf16.mxu1 %v1443_v13  ;;  %v8511_v9 = vld [vmem:[%s10765_s1 + $0xa20] sm:$0xff]   ;;  %v8515_v13 = vld [vmem:[%s10765_s1 + $0xa28] sm:$0xff]  }
 0x127   :  { %7715 = vmatprep.subr.bf16.mxu1 %v8465_v12  ;;  %v8512_v10 = vld [vmem:[%s10765_s1 + $0xaa0] sm:$0xff]   ;;  %v8514_v12 = vld [vmem:[%s10765_s1 + $0xae8] sm:$0xff]  }
 0x128   :  { %7694 = vmatpush3.bf16.msra.mxu0 %v8466_v14  ;;  %v8516_v14 = vld [vmem:[%s10765_s1 + $0xaa8] sm:$0xff]  }
 0x129   :  { %7695 = vmatprep.subr.bf16.mxu0 %v8468_v16 }
 0x12a   :  { %7716 = vmatpush3.bf16.msra.mxu1 %v8467_v15  ;;  %v8517_v15 = vld [vmem:[%s10765_s1 + $0xa70] sm:$0xff]  }
 0x12b   :  { %7717 = vmatprep.subr.bf16.mxu1 %v8469_v17  ;;  %v8518_v17 = vld [vmem:[%s10765_s1 + $0xaf0] sm:$0xff]  }
 0x12c   :  { %7696 = vmatpush3.bf16.msra.mxu0 %v8470_v18 }
 0x12d   :  { %7697 = vmatprep.subr.bf16.mxu0 %v8472_v20 }
 0x12e   :  { %7718 = vmatpush3.bf16.msra.mxu1 %v8471_v19  ;;  %v8519_v19 = vld [vmem:[%s10765_s1 + $0xa30] sm:$0xff]  }
 0x12f   :  { %7719 = vmatprep.subr.bf16.mxu1 %v8473_v21 }
 0x130   :  { %7698 = vmatpush3.bf16.msra.mxu0 %v8474_v22 }
 0x131   :  { %7699 = vmatprep.subr.bf16.mxu0 %v8476_v24  ;;  %v8521_v24 = vld [vmem:[%s10765_s1 + $0xa78] sm:$0xff]  }
 0x132   :  { %7720 = vmatpush3.bf16.msra.mxu1 %v8475_v23  ;;  %v8520_v23 = vld [vmem:[%s10765_s1 + $0xab0] sm:$0xff]  }
 0x133   :  { %7721 = vmatprep.subr.bf16.mxu1 %v8477_v25  ;;  %v27_v25 = vld [vmem:[%s10764_s0 + $0x28] sm:$0xff] }
 0x134   :  { %7700 = vmatpush3.bf16.msra.mxu0 %v8478_v26 }
 0x135   :  { %7701 = vmatprep.subr.bf16.mxu0 %v8480_v28  ;;  %v1451_v28 = vrot.slane %v27_v25, %v8917_v41 }
 0x136   :  { %7722 = vmatpush3.bf16.msra.mxu1 %v8479_v27  ;;  %v7399_v33 = vpop.f32.mrb[8].mxu0 }
 0x137   :  { %v7400_v35 = vpop.f32.mrb[9].mxu0  ;;  %7723 = vmatprep.subr.bf16.mxu1 %v8481_v29  ;;  %v1444_v29 = vcombine.high %v27_v25, %v27_v25  ;;  %v8555_v25 = vld [vmem:[%s10765_s1 + $0xb38] sm:$0xff]  }
 0x138   :  { %v7421_v37 = vpop.f32.mrb[8].mxu1  ;;  %v7401_v38 = vadd.f32 %v7400_v35, %v7399_v33  ;;  %v7402_v39 = vpop.f32.mrb[10].mxu0  ;;  %7702 = vmatpush3.bf16.msra.mxu0 %v8482_v30  ;;  %v8522_v33 = vld [vmem:[%s10765_s1 + $0xaf8] sm:$0xff]  }
 0x139   :  { %v7422_v43 = vpop.f32.mrb[9].mxu1  ;;  %v7403_v44 = vpop.f32.mrb[11].mxu0  ;;  %7703 = vmatprep.subr.bf16.mxu0 %v8484_v32  ;;  %v8523_v35 = vld [vmem:[%s10765_s1 + $0xa38] sm:$0xff]  }
 0x13a   :  { %v5363_v45 = vadd.f32 %v7401_v38, %v9744_v63  ;;  %v7423_v46 = vadd.f32 %v7422_v43, %v7421_v37  ;;  %v7424_v47 = vpop.f32.mrb[10].mxu1  ;;  %7724 = vmatpush3.bf16.msra.mxu1 %v8483_v31  ;;  %v8501_v63 = vld [vmem:[%s10765_s1 + $0xa50] sm:$0xff]   ;;  %v9954_v37 = vrot.slane %v1444_v29, %v8917_v41  ;;  %v8524_v39 = vld [vmem:[%s10765_s1 + $0xab8] sm:$0xff]   ;;  %v8525_v43 = vld [vmem:[%s10765_s1 + $0xb40] sm:$0xff]  }
 0x13b   :  { %v7425_v49 = vpop.f32.mrb[11].mxu1  ;;  %7725 = vmatprep.subr.bf16.mxu1 %v8485_v34  ;;  %v8527_v47 = vld [vmem:[%s10765_s1 + $0xb00] sm:$0xff]  }
 0x13c   :  { %v9848_v51 = vadd.f32 %v7423_v46, %v5363_v45  ;;  %7704 = vmatpush3.bf16.msra.mxu0 %v8486_v36  ;;  %v1459_v36 = vcombine.high %v1451_v28, %v1451_v28  ;;  %v1460_v44 = vcombine.high %v9954_v37, %v9954_v37  ;;  %v8526_v45 = vld [vmem:[%s10765_s1 + $0xbc0] sm:$0xff]  }
 0x13d   :  { %7705 = vmatprep.subr.bf16.mxu0 %v8488_v42  ;;  %v1467_v42 = vrot.slane %v1451_v28, %v8917_v41  ;;  %v8528_v49 = vld [vmem:[%s10765_s1 + $0xb80] sm:$0xff]   ;;  %v1474_v28 = vrot.slane %v9954_v37, %v8917_v41  ;;  %v8565_v37 = vld [vmem:[%s10765_s1 + $0xc88] sm:$0xff]  }
 0x13e   :  { %7726 = vmatpush3.bf16.msra.mxu1 %v8487_v40  ;;  %v1481_v40 = vrot.slane %v1459_v36, %v8917_v41  ;;  %v8558_v29 = vld [vmem:[%s10765_s1 + $0xc40] sm:$0xff]   ;;  %v8564_v36 = vld [vmem:[%s10765_s1 + $0xc08] sm:$0xff]  }
 0x13f   :  { %7727 = vmatprep.subr.bf16.mxu1 %v8489_v48  ;;  %v1488_v48 = vrot.slane %v1460_v44, %v8917_v41  ;;  %v8571_v44 = vld [vmem:[%s10765_s1 + $0xcd8] sm:$0xff]  }
 0x140   :  { %7706 = vmatpush3.bf16.msra.mxu0 %v8490_v50  ;;  %v1491_v46 = vcombine.high %v1481_v40, %v1481_v40  ;;  %v1489_v50 = vcombine.high %v1467_v42, %v1467_v42 }
 0x141   :  { %7735 = vmatprep.subr.bf16.mxu0 %v8493_v54  ;;  %v8531_v54 = vld [vmem:[%s10765_s1 + $0xb08] sm:$0xff]  }
 0x142   :  { %7728 = vmatpush3.bf16.msra.mxu1 %v8491_v52  ;;  %v8530_v52 = vld [vmem:[%s10765_s1 + $0xbc8] sm:$0xff]  }
 0x143   :  { %5921 = vmatmul.mubr.bf16.vlgmr.msra.gmra.mrb[36].mxu0 %v1425_v53  ;;  %7757 = vmatprep.subr.bf16.mxu1 %v8494_v55  ;;  %v1492_v53 = vcombine.high %v1488_v48, %v1488_v48  ;;  %v8532_v55 = vld [vmem:[%s10765_s1 + $0xb88] sm:$0xff]  }
 0x144   :  { %7736 = vmatpush3.bf16.msra.mxu0 %v8495_v56  ;;  %6000 = vmatprep.mubr.bf16.mxu0 %v1481_v40  ;;  %v8533_v56 = vld [vmem:[%s10765_s1 + $0xb50] sm:$0xff]  }
 0x145   :  { %5961 = vmatmul.mubr.bf16.vlgmr.msra.gmra.mrb[36].mxu1 %v1441_v58  ;;  %7737 = vmatprep.subr.bf16.mxu0 %v8497_v59  ;;  %v8535_v58 = vld [vmem:[%s10765_s1 + $0xb10] sm:$0xff]  }
 0x146   :  { %7758 = vmatpush3.bf16.msra.mxu1 %v8496_v57  ;;  %6040 = vmatprep.mubr.bf16.mxu1 %v1491_v46  ;;  %v8534_v57 = vld [vmem:[%s10765_s1 + $0xbd0] sm:$0xff]   ;;  %v8573_v46 = vld [vmem:[%s10765_s1 + $0xc98] sm:$0xff]  }
 0x147   :  { %7759 = vmatprep.subr.bf16.mxu1 %v8498_v60  ;;  %v8536_v59 = vld [vmem:[%s10765_s1 + $0xb90] sm:$0xff]   ;;  %v8537_v60 = vld [vmem:[%s10765_s1 + $0xb58] sm:$0xff]  }
 0x148   :  { %7738 = vmatpush3.bf16.msra.mxu0 %v8499_v61  ;;  %v8538_v61 = vld [vmem:[%s10765_s1 + $0xbd8] sm:$0xff]   ;;  %v8568_v40 = vld [vmem:[%s10765_s1 + $0xc10] sm:$0xff]  }
 0x149   :  { %7739 = vmatprep.subr.bf16.mxu0 %v8501_v63  ;;  %v8540_v63 = vld [vmem:[%s10765_s1 + $0xb98] sm:$0xff]  }
 0x14a   :  { %7760 = vmatpush3.bf16.msra.mxu1 %v8500_v62  ;;  %v8539_v62 = vld [vmem:[%s10765_s1 + $0xb18] sm:$0xff]  }
 0x14b   :  { %7761 = vmatprep.subr.bf16.mxu1 %v8502_v0  ;;  %v8541_v0 = vld [vmem:[%s10765_s1 + $0xb60] sm:$0xff]  }
 0x14c   :  { %7740 = vmatpush3.bf16.msra.mxu0 %v8503_v1  ;;  %v8542_v1 = vld [vmem:[%s10765_s1 + $0xbe0] sm:$0xff]  }
 0x14d   :  { %7741 = vmatprep.subr.bf16.mxu0 %v8505_v3  ;;  %v8544_v3 = vld [vmem:[%s10765_s1 + $0xba0] sm:$0xff]  }
 0x14e   :  { %7762 = vmatpush3.bf16.msra.mxu1 %v8504_v2  ;;  %v8543_v2 = vld [vmem:[%s10765_s1 + $0xb20] sm:$0xff]  }
 0x14f   :  { %7763 = vmatprep.subr.bf16.mxu1 %v8506_v4  ;;  %v8545_v4 = vld [vmem:[%s10765_s1 + $0xb68] sm:$0xff]  }
 0x150   :  { %7742 = vmatpush3.bf16.msra.mxu0 %v8507_v5  ;;  %v8546_v5 = vld [vmem:[%s10765_s1 + $0xbe8] sm:$0xff]  }
 0x151   :  { %7743 = vmatprep.subr.bf16.mxu0 %v8509_v7  ;;  %v8548_v7 = vld [vmem:[%s10765_s1 + $0xba8] sm:$0xff]  }
 0x152   :  { %7764 = vmatpush3.bf16.msra.mxu1 %v8508_v6  ;;  %v8547_v6 = vld [vmem:[%s10765_s1 + $0xb28] sm:$0xff]  }
 0x153   :  { %7765 = vmatprep.subr.bf16.mxu1 %v8510_v8  ;;  %v8549_v8 = vld [vmem:[%s10765_s1 + $0xb70] sm:$0xff]  }
 0x154   :  { %7744 = vmatpush3.bf16.msra.mxu0 %v8511_v9 }
 0x155   :  { %7745 = vmatprep.subr.bf16.mxu0 %v8513_v11 }
 0x156   :  { %7766 = vmatpush3.bf16.msra.mxu1 %v8512_v10  ;;  %v7443_v16 = vpop.f32.mrb[12].mxu0  ;;  %v8550_v10 = vld [vmem:[%s10765_s1 + $0xbf0] sm:$0xff]  }
 0x157   :  { %v7444_v18 = vpop.f32.mrb[13].mxu0  ;;  %7767 = vmatprep.subr.bf16.mxu1 %v8514_v12  ;;  %v8551_v12 = vld [vmem:[%s10765_s1 + $0xb30] sm:$0xff]  }
 0x158   :  { %v7465_v20 = vpop.f32.mrb[12].mxu1  ;;  %v7445_v21 = vadd.f32 %v7444_v18, %v7443_v16  ;;  %v7446_v22 = vpop.f32.mrb[14].mxu0  ;;  %7746 = vmatpush3.bf16.msra.mxu0 %v8515_v13  ;;  %v8552_v16 = vld [vmem:[%s10765_s1 + $0xbb0] sm:$0xff]  }
 0x159   :  { %v7466_v26 = vpop.f32.mrb[13].mxu1  ;;  %v7447_v27 = vpop.f32.mrb[15].mxu0  ;;  %7747 = vmatprep.subr.bf16.mxu0 %v8517_v15 }
 0x15a   :  { %v5443_v30 = vadd.f32 %v7445_v21, %v9848_v51  ;;  %v7467_v31 = vadd.f32 %v7466_v26, %v7465_v20  ;;  %v7468_v32 = vpop.f32.mrb[14].mxu1  ;;  %7768 = vmatpush3.bf16.msra.mxu1 %v8516_v14  ;;  %v8529_v51 = vld [vmem:[%s10765_s1 + $0xb48] sm:$0xff]   ;;  %v8556_v27 = vld [vmem:[%s10765_s1 + $0xbb8] sm:$0xff]  }
 0x15b   :  { %v7469_v34 = vpop.f32.mrb[15].mxu1  ;;  %7769 = vmatprep.subr.bf16.mxu1 %v8518_v17  ;;  %v8553_v17 = vld [vmem:[%s10765_s1 + $0xb78] sm:$0xff]   ;;  %v8561_v32 = vld [vmem:[%s10765_s1 + $0xc80] sm:$0xff]  }
 0x15c   :  { %v9956_v38 = vadd.f32 %v7467_v31, %v5443_v30  ;;  %7748 = vmatpush3.bf16.msra.mxu0 %v8519_v19  ;;  %v8559_v30 = vld [vmem:[%s10765_s1 + $0xcc0] sm:$0xff]   ;;  %v8562_v34 = vld [vmem:[%s10765_s1 + $0xc48] sm:$0xff]  }
 0x15d   :  { %7749 = vmatprep.subr.bf16.mxu0 %v8521_v24  ;;  %v8560_v31 = vld [vmem:[%s10765_s1 + $0xc00] sm:$0xff]  }
 0x15e   :  { %7770 = vmatpush3.bf16.msra.mxu1 %v8520_v23  ;;  %v8554_v23 = vld [vmem:[%s10765_s1 + $0xbf8] sm:$0xff]  }
 0x15f   :  { %7771 = vmatprep.subr.bf16.mxu1 %v8522_v33  ;;  %v1490_v33 = vcombine.high %v1474_v28, %v1474_v28 }
 0x160   :  { %7750 = vmatpush3.bf16.msra.mxu0 %v8523_v35  ;;  %v8563_v35 = vld [vmem:[%s10765_s1 + $0xcc8] sm:$0xff]  }
 0x161   :  { %7779 = vmatprep.subr.bf16.mxu0 %v8525_v43  ;;  %v8570_v43 = vld [vmem:[%s10765_s1 + $0xc58] sm:$0xff]  }
 0x162   :  { %7772 = vmatpush3.bf16.msra.mxu1 %v8524_v39  ;;  %v8567_v39 = vld [vmem:[%s10765_s1 + $0xcd0] sm:$0xff]  }
 0x163   :  { %6001 = vmatmul.mubr.bf16.vlgmr.msra.gmra.mrb[40].mxu0 %v1467_v42  ;;  %7801 = vmatprep.subr.bf16.mxu1 %v8526_v45  ;;  %v8569_v42 = vld [vmem:[%s10765_s1 + $0xc90] sm:$0xff]   ;;  %v8572_v45 = vld [vmem:[%s10765_s1 + $0xc18] sm:$0xff]  }
 0x164   :  { %7780 = vmatpush3.bf16.msra.mxu0 %v8527_v47  ;;  %6080 = vmatprep.mubr.bf16.mxu0 %v1488_v48  ;;  %v8574_v47 = vld [vmem:[%s10765_s1 + $0xc60] sm:$0xff]  }
 0x165   :  { %6041 = vmatmul.mubr.bf16.vlgmr.msra.gmra.mrb[40].mxu1 %v1489_v50  ;;  %7781 = vmatprep.subr.bf16.mxu0 %v8529_v51  ;;  %v8575_v48 = vld [vmem:[%s10765_s1 + $0xce0] sm:$0xff]   ;;  %v8578_v51 = vld [vmem:[%s10765_s1 + $0xc68] sm:$0xff]  }
 0x166   :  { %7802 = vmatpush3.bf16.msra.mxu1 %v8528_v49  ;;  %6120 = vmatprep.mubr.bf16.mxu1 %v1492_v53  ;;  %v8576_v49 = vld [vmem:[%s10765_s1 + $0xc20] sm:$0xff]   ;;  %v8580_v53 = vld [vmem:[%s10765_s1 + $0xc28] sm:$0xff]  }
 0x167   :  { %7803 = vmatprep.subr.bf16.mxu1 %v8530_v52  ;;  %v8577_v50 = vld [vmem:[%s10765_s1 + $0xca0] sm:$0xff]   ;;  %v8579_v52 = vld [vmem:[%s10765_s1 + $0xce8] sm:$0xff]  }
 0x168   :  { %7782 = vmatpush3.bf16.msra.mxu0 %v8531_v54  ;;  %v8581_v54 = vld [vmem:[%s10765_s1 + $0xca8] sm:$0xff]  }
 0x169   :  { %7783 = vmatprep.subr.bf16.mxu0 %v8533_v56 }
 0x16a   :  { %7804 = vmatpush3.bf16.msra.mxu1 %v8532_v55  ;;  %v8582_v55 = vld [vmem:[%s10765_s1 + $0xc70] sm:$0xff]  }
 0x16b   :  { %7805 = vmatprep.subr.bf16.mxu1 %v8534_v57  ;;  %v8583_v57 = vld [vmem:[%s10765_s1 + $0xcf0] sm:$0xff]  }
 0x16c   :  { %7784 = vmatpush3.bf16.msra.mxu0 %v8535_v58 }
 0x16d   :  { %7785 = vmatprep.subr.bf16.mxu0 %v8537_v60 }
 0x16e   :  { %7806 = vmatpush3.bf16.msra.mxu1 %v8536_v59  ;;  %v8584_v59 = vld [vmem:[%s10765_s1 + $0xc30] sm:$0xff]  }
 0x16f   :  { %7807 = vmatprep.subr.bf16.mxu1 %v8538_v61 }
 0x170   :  { %7786 = vmatpush3.bf16.msra.mxu0 %v8539_v62 }
 0x171   :  { %7787 = vmatprep.subr.bf16.mxu0 %v8541_v0 }
 0x172   :  { %7808 = vmatpush3.bf16.msra.mxu1 %v8540_v63  ;;  %v8585_v63 = vld [vmem:[%s10765_s1 + $0xcb0] sm:$0xff]  }
 0x173   :  { %7809 = vmatprep.subr.bf16.mxu1 %v8542_v1 }
 0x174   :  { %7788 = vmatpush3.bf16.msra.mxu0 %v8543_v2  ;;  %v8586_v2 = vld [vmem:[%s10765_s1 + $0xc78] sm:$0xff]  }
 0x175   :  { %7789 = vmatprep.subr.bf16.mxu0 %v8545_v4 }
 0x176   :  { %7810 = vmatpush3.bf16.msra.mxu1 %v8544_v3  ;;  %v7487_v9 = vpop.f32.mrb[16].mxu0  ;;  %v28_v3 = vld [vmem:[%s10764_s0 + $0x30] sm:$0xff] }
 0x177   :  { %v7488_v11 = vpop.f32.mrb[17].mxu0  ;;  %7811 = vmatprep.subr.bf16.mxu1 %v8546_v5 }
 0x178   :  { %v7509_v13 = vpop.f32.mrb[16].mxu1  ;;  %v7489_v14 = vadd.f32 %v7488_v11, %v7487_v9  ;;  %v7490_v15 = vpop.f32.mrb[18].mxu0  ;;  %7790 = vmatpush3.bf16.msra.mxu0 %v8547_v6  ;;  %v1493_v9 = vcombine.high %v28_v3, %v28_v3  ;;  %v8588_v11 = vld [vmem:[%s10765_s1 + $0xc38] sm:$0xff]  }
 0x179   :  { %v7510_v18 = vpop.f32.mrb[17].mxu1  ;;  %v7491_v19 = vpop.f32.mrb[19].mxu0  ;;  %7791 = vmatprep.subr.bf16.mxu0 %v8549_v8  ;;  %v1500_v8 = vrot.slane %v28_v3, %v8917_v41  ;;  %v8621_v3 = vld [vmem:[%s10765_s1 + $0xdb8] sm:$0xff]  }
 0x17a   :  { %v5523_v20 = vadd.f32 %v7489_v14, %v9956_v38  ;;  %v7511_v21 = vadd.f32 %v7510_v18, %v7509_v13  ;;  %v7512_v22 = vpop.f32.mrb[18].mxu1  ;;  %7812 = vmatpush3.bf16.msra.mxu1 %v8548_v7  ;;  %v8566_v38 = vld [vmem:[%s10765_s1 + $0xc50] sm:$0xff]   ;;  %v8587_v7 = vld [vmem:[%s10765_s1 + $0xcf8] sm:$0xff]   ;;  %v10171_v15 = vrot.slane %v1493_v9, %v8917_v41  ;;  %v8591_v19 = vld [vmem:[%s10765_s1 + $0xdc0] sm:$0xff]  }
 0x17b   :  { %v7513_v24 = vpop.f32.mrb[19].mxu1  ;;  %7813 = vmatprep.subr.bf16.mxu1 %v8550_v10  ;;  %v8589_v13 = vld [vmem:[%s10765_s1 + $0xcb8] sm:$0xff]   ;;  %v1508_v14 = vcombine.high %v1500_v8, %v1500_v8 }
 0x17c   :  { %v10060_v26 = vadd.f32 %v7511_v21, %v5523_v20  ;;  %7792 = vmatpush3.bf16.msra.mxu0 %v8551_v12  ;;  %v1509_v20 = vcombine.high %v10171_v15, %v10171_v15  ;;  %v8592_v21 = vld [vmem:[%s10765_s1 + $0xd00] sm:$0xff]  }
 0x17d   :  { %7793 = vmatprep.subr.bf16.mxu0 %v8553_v17  ;;  %v8590_v17 = vld [vmem:[%s10765_s1 + $0xd40] sm:$0xff]   ;;  %v1530_v18 = vrot.slane %v1508_v14, %v8917_v41  ;;  %v8631_v14 = vld [vmem:[%s10765_s1 + $0xe50] sm:$0xff]  }
 0x17e   :  { %7814 = vmatpush3.bf16.msra.mxu1 %v8552_v16  ;;  %v1516_v16 = vrot.slane %v1500_v8, %v8917_v41  ;;  %v1537_v24 = vrot.slane %v1509_v20, %v8917_v41  ;;  %v8626_v8 = vld [vmem:[%s10765_s1 + $0xe80] sm:$0xff]   ;;  %v8637_v20 = vld [vmem:[%s10765_s1 + $0xe18] sm:$0xff]  }
 0x17f   :  { %7815 = vmatprep.subr.bf16.mxu1 %v8554_v23  ;;  %v1540_v22 = vcombine.high %v1530_v18, %v1530_v18  ;;  %v8593_v23 = vld [vmem:[%s10765_s1 + $0xd80] sm:$0xff]  }
 0x180   :  { %7794 = vmatpush3.bf16.msra.mxu0 %v8555_v25  ;;  %v1538_v25 = vcombine.high %v1516_v16, %v1516_v16 }
 0x181   :  { %7823 = vmatprep.subr.bf16.mxu0 %v8558_v29  ;;  %v8596_v29 = vld [vmem:[%s10765_s1 + $0xd08] sm:$0xff]  }
 0x182   :  { %7816 = vmatpush3.bf16.msra.mxu1 %v8556_v27  ;;  %v8595_v27 = vld [vmem:[%s10765_s1 + $0xdc8] sm:$0xff]  }
 0x183   :  { %6081 = vmatmul.mubr.bf16.vlgmr.msra.gmra.mrb[44].mxu0 %v1474_v28  ;;  %7845 = vmatprep.subr.bf16.mxu1 %v8559_v30  ;;  %v1541_v28 = vcombine.high %v1537_v24, %v1537_v24  ;;  %v8597_v30 = vld [vmem:[%s10765_s1 + $0xd88] sm:$0xff]  }
 0x184   :  { %7824 = vmatpush3.bf16.msra.mxu0 %v8560_v31  ;;  %6160 = vmatprep.mubr.bf16.mxu0 %v1530_v18  ;;  %v8598_v31 = vld [vmem:[%s10765_s1 + $0xd50] sm:$0xff]   ;;  %v8635_v18 = vld [vmem:[%s10765_s1 + $0xe58] sm:$0xff]  }
 0x185   :  { %6121 = vmatmul.mubr.bf16.vlgmr.msra.gmra.mrb[44].mxu1 %v1490_v33  ;;  %7825 = vmatprep.subr.bf16.mxu0 %v8562_v34  ;;  %v8600_v33 = vld [vmem:[%s10765_s1 + $0xd10] sm:$0xff]  }
 0x186   :  { %7846 = vmatpush3.bf16.msra.mxu1 %v8561_v32  ;;  %6200 = vmatprep.mubr.bf16.mxu1 %v1540_v22  ;;  %v8599_v32 = vld [vmem:[%s10765_s1 + $0xdd0] sm:$0xff]   ;;  %v8639_v22 = vld [vmem:[%s10765_s1 + $0xe60] sm:$0xff]  }
 0x187   :  { %7847 = vmatprep.subr.bf16.mxu1 %v8563_v35  ;;  %v8601_v34 = vld [vmem:[%s10765_s1 + $0xd90] sm:$0xff]   ;;  %v8602_v35 = vld [vmem:[%s10765_s1 + $0xd58] sm:$0xff]  }
 0x188   :  { %7826 = vmatpush3.bf16.msra.mxu0 %v8564_v36  ;;  %v8603_v36 = vld [vmem:[%s10765_s1 + $0xdd8] sm:$0xff]  }
 0x189   :  { %7827 = vmatprep.subr.bf16.mxu0 %v8566_v38  ;;  %v8605_v38 = vld [vmem:[%s10765_s1 + $0xd98] sm:$0xff]  }
 0x18a   :  { %7848 = vmatpush3.bf16.msra.mxu1 %v8565_v37  ;;  %v8604_v37 = vld [vmem:[%s10765_s1 + $0xd18] sm:$0xff]  }
 0x18b   :  { %7849 = vmatprep.subr.bf16.mxu1 %v8567_v39  ;;  %v8606_v39 = vld [vmem:[%s10765_s1 + $0xd60] sm:$0xff]  }
 0x18c   :  { %7828 = vmatpush3.bf16.msra.mxu0 %v8568_v40  ;;  %v8607_v40 = vld [vmem:[%s10765_s1 + $0xde0] sm:$0xff]  }
 0x18d   :  { %7829 = vmatprep.subr.bf16.mxu0 %v8570_v43  ;;  %v8609_v43 = vld [vmem:[%s10765_s1 + $0xda0] sm:$0xff]  }
 0x18e   :  { %7850 = vmatpush3.bf16.msra.mxu1 %v8569_v42  ;;  %v8608_v42 = vld [vmem:[%s10765_s1 + $0xd20] sm:$0xff]  }
 0x18f   :  { %7851 = vmatprep.subr.bf16.mxu1 %v8571_v44  ;;  %v8610_v44 = vld [vmem:[%s10765_s1 + $0xd68] sm:$0xff]  }
 0x190   :  { %7830 = vmatpush3.bf16.msra.mxu0 %v8572_v45  ;;  %v8611_v45 = vld [vmem:[%s10765_s1 + $0xde8] sm:$0xff]  }
 0x191   :  { %7831 = vmatprep.subr.bf16.mxu0 %v8574_v47  ;;  %v8613_v47 = vld [vmem:[%s10765_s1 + $0xda8] sm:$0xff]  }
 0x192   :  { %7852 = vmatpush3.bf16.msra.mxu1 %v8573_v46  ;;  %v8612_v46 = vld [vmem:[%s10765_s1 + $0xd28] sm:$0xff]  }
 0x193   :  { %7853 = vmatprep.subr.bf16.mxu1 %v8575_v48  ;;  %v8614_v48 = vld [vmem:[%s10765_s1 + $0xd70] sm:$0xff]  }
 0x194   :  { %7832 = vmatpush3.bf16.msra.mxu0 %v8576_v49 }
 0x195   :  { %7833 = vmatprep.subr.bf16.mxu0 %v8578_v51 }
 0x196   :  { %7854 = vmatpush3.bf16.msra.mxu1 %v8577_v50  ;;  %v7531_v56 = vpop.f32.mrb[20].mxu0  ;;  %v8615_v50 = vld [vmem:[%s10765_s1 + $0xdf0] sm:$0xff]  }
 0x197   :  { %v7532_v58 = vpop.f32.mrb[21].mxu0  ;;  %7855 = vmatprep.subr.bf16.mxu1 %v8579_v52  ;;  %v8616_v52 = vld [vmem:[%s10765_s1 + $0xd30] sm:$0xff]  }
 0x198   :  { %v7553_v60 = vpop.f32.mrb[20].mxu1  ;;  %v7533_v61 = vadd.f32 %v7532_v58, %v7531_v56  ;;  %v7534_v62 = vpop.f32.mrb[22].mxu0  ;;  %7834 = vmatpush3.bf16.msra.mxu0 %v8580_v53  ;;  %v8617_v56 = vld [vmem:[%s10765_s1 + $0xdb0] sm:$0xff]  }
 0x199   :  { %v7554_v0 = vpop.f32.mrb[21].mxu1  ;;  %v7535_v1 = vpop.f32.mrb[23].mxu0  ;;  %7835 = vmatprep.subr.bf16.mxu0 %v8582_v55 }
 0x19a   :  { %v5603_v4 = vadd.f32 %v7533_v61, %v10060_v26  ;;  %v7555_v5 = vadd.f32 %v7554_v0, %v7553_v60  ;;  %v7556_v6 = vpop.f32.mrb[22].mxu1  ;;  %7856 = vmatpush3.bf16.msra.mxu1 %v8581_v54  ;;  %v8594_v26 = vld [vmem:[%s10765_s1 + $0xd48] sm:$0xff]   ;;  %v8620_v1 = vld [vmem:[%s10765_s1 + $0xd38] sm:$0xff]  }
 0x19b   :  { %v7557_v10 = vpop.f32.mrb[23].mxu1  ;;  %7857 = vmatprep.subr.bf16.mxu1 %v8583_v57  ;;  %v8618_v57 = vld [vmem:[%s10765_s1 + $0xd78] sm:$0xff]   ;;  %v8624_v6 = vld [vmem:[%s10765_s1 + $0xec0] sm:$0xff]  }
 0x19c   :  { %v10165_v12 = vadd.f32 %v7555_v5, %v5603_v4  ;;  %7836 = vmatpush3.bf16.msra.mxu0 %v8584_v59  ;;  %v1523_v4 = vrot.slane %v10171_v15, %v8917_v41  ;;  %v8623_v5 = vld [vmem:[%s10765_s1 + $0xe40] sm:$0xff]   ;;  %v8627_v10 = vld [vmem:[%s10765_s1 + $0xe48] sm:$0xff]   ;;  %v8632_v15 = vld [vmem:[%s10765_s1 + $0xed0] sm:$0xff]  }
 0x19d   :  { %7837 = vmatprep.subr.bf16.mxu0 %v8586_v2 }
 0x19e   :  { %7858 = vmatpush3.bf16.msra.mxu1 %v8585_v63  ;;  %v8619_v63 = vld [vmem:[%s10765_s1 + $0xdf8] sm:$0xff]   ;;  %v1539_v9 = vcombine.high %v1523_v4, %v1523_v4 }
 0x19f   :  { %7859 = vmatprep.subr.bf16.mxu1 %v8587_v7  ;;  %v8625_v7 = vld [vmem:[%s10765_s1 + $0xe00] sm:$0xff]  }
 0x1a0   :  { %7838 = vmatpush3.bf16.msra.mxu0 %v8588_v11  ;;  %v8628_v11 = vld [vmem:[%s10765_s1 + $0xec8] sm:$0xff]  }
 0x1a1   :  { %7867 = vmatprep.subr.bf16.mxu0 %v8590_v17  ;;  %v8634_v17 = vld [vmem:[%s10765_s1 + $0xe90] sm:$0xff]  }
 0x1a2   :  { %7860 = vmatpush3.bf16.msra.mxu1 %v8589_v13  ;;  %v8630_v13 = vld [vmem:[%s10765_s1 + $0xe88] sm:$0xff]  }
 0x1a3   :  { %6161 = vmatmul.mubr.bf16.vlgmr.msra.gmra.mrb[48].mxu0 %v1516_v16  ;;  %7889 = vmatprep.subr.bf16.mxu1 %v8591_v19  ;;  %v8633_v16 = vld [vmem:[%s10765_s1 + $0xe10] sm:$0xff]   ;;  %v8636_v19 = vld [vmem:[%s10765_s1 + $0xed8] sm:$0xff]  }
 0x1a4   :  { %7868 = vmatpush3.bf16.msra.mxu0 %v8592_v21  ;;  %6240 = vmatprep.mubr.bf16.mxu0 %v1537_v24  ;;  %v8638_v21 = vld [vmem:[%s10765_s1 + $0xe98] sm:$0xff]   ;;  %v8641_v24 = vld [vmem:[%s10765_s1 + $0xe20] sm:$0xff]  }
 0x1a5   :  { %6201 = vmatmul.mubr.bf16.vlgmr.msra.gmra.mrb[48].mxu1 %v1538_v25  ;;  %7869 = vmatprep.subr.bf16.mxu0 %v8594_v26  ;;  %v8642_v25 = vld [vmem:[%s10765_s1 + $0xea0] sm:$0xff]   ;;  %v8643_v26 = vld [vmem:[%s10765_s1 + $0xe68] sm:$0xff]  }
 0x1a6   :  { %7890 = vmatpush3.bf16.msra.mxu1 %v8593_v23  ;;  %6280 = vmatprep.mubr.bf16.mxu1 %v1541_v28  ;;  %v8640_v23 = vld [vmem:[%s10765_s1 + $0xee0] sm:$0xff]   ;;  %v8645_v28 = vld [vmem:[%s10765_s1 + $0xe28] sm:$0xff]  }
 0x1a7   :  { %7891 = vmatprep.subr.bf16.mxu1 %v8595_v27  ;;  %v8644_v27 = vld [vmem:[%s10765_s1 + $0xee8] sm:$0xff]  }
 0x1a8   :  { %7870 = vmatpush3.bf16.msra.mxu0 %v8596_v29  ;;  %v8646_v29 = vld [vmem:[%s10765_s1 + $0xea8] sm:$0xff]  }
 0x1a9   :  { %7871 = vmatprep.subr.bf16.mxu0 %v8598_v31 }
 0x1aa   :  { %7892 = vmatpush3.bf16.msra.mxu1 %v8597_v30  ;;  %v8647_v30 = vld [vmem:[%s10765_s1 + $0xe70] sm:$0xff]  }
 0x1ab   :  { %7893 = vmatprep.subr.bf16.mxu1 %v8599_v32  ;;  %v8648_v32 = vld [vmem:[%s10765_s1 + $0xef0] sm:$0xff]  }
 0x1ac   :  { %7872 = vmatpush3.bf16.msra.mxu0 %v8600_v33 }
 0x1ad   :  { %7873 = vmatprep.subr.bf16.mxu0 %v8602_v35 }
 0x1ae   :  { %7894 = vmatpush3.bf16.msra.mxu1 %v8601_v34  ;;  %v8649_v34 = vld [vmem:[%s10765_s1 + $0xe30] sm:$0xff]  }
 0x1af   :  { %7895 = vmatprep.subr.bf16.mxu1 %v8603_v36 }
 0x1b0   :  { %7874 = vmatpush3.bf16.msra.mxu0 %v8604_v37 }
 0x1b1   :  { %7875 = vmatprep.subr.bf16.mxu0 %v8606_v39 }
 0x1b2   :  { %7896 = vmatpush3.bf16.msra.mxu1 %v8605_v38  ;;  %v8650_v38 = vld [vmem:[%s10765_s1 + $0xeb0] sm:$0xff]  }
 0x1b3   :  { %7897 = vmatprep.subr.bf16.mxu1 %v8607_v40 }
 0x1b4   :  { %7876 = vmatpush3.bf16.msra.mxu0 %v8608_v42  ;;  %v8651_v42 = vld [vmem:[%s10765_s1 + $0xe78] sm:$0xff]  }
 0x1b5   :  { %7877 = vmatprep.subr.bf16.mxu0 %v8610_v44 }
 0x1b6   :  { %7898 = vmatpush3.bf16.msra.mxu1 %v8609_v43  ;;  %v7575_v49 = vpop.f32.mrb[24].mxu0  ;;  %v8652_v43 = vld [vmem:[%s10765_s1 + $0xef8] sm:$0xff]  }
 0x1b7   :  { %v7576_v51 = vpop.f32.mrb[25].mxu0  ;;  %7899 = vmatprep.subr.bf16.mxu1 %v8611_v45 }
 0x1b8   :  { %v7597_v53 = vpop.f32.mrb[24].mxu1  ;;  %v7577_v54 = vadd.f32 %v7576_v51, %v7575_v49  ;;  %v7578_v55 = vpop.f32.mrb[26].mxu0  ;;  %7878 = vmatpush3.bf16.msra.mxu0 %v8612_v46  ;;  %v8653_v49 = vld [vmem:[%s10765_s1 + $0xe38] sm:$0xff]  }
 0x1b9   :  { %v7598_v58 = vpop.f32.mrb[25].mxu1  ;;  %v7579_v59 = vpop.f32.mrb[27].mxu0  ;;  %7879 = vmatprep.subr.bf16.mxu0 %v8614_v48 }
 0x1ba   :  { %v5683_v60 = vadd.f32 %v7577_v54, %v10165_v12  ;;  %v7599_v61 = vadd.f32 %v7598_v58, %v7597_v53  ;;  %v7600_v62 = vpop.f32.mrb[26].mxu1  ;;  %7900 = vmatpush3.bf16.msra.mxu1 %v8613_v47  ;;  %v8629_v12 = vld [vmem:[%s10765_s1 + $0xe08] sm:$0xff]   ;;  %v29_v47 = vld [vmem:[%s10764_s0 + $0x38] sm:$0xff]  ;;  %v8656_v58 = vld [vmem:[%s10765_s1 + $0xfc0] sm:$0xff]  }
 0x1bb   :  { %v7601_v0 = vpop.f32.mrb[27].mxu1  ;;  %7901 = vmatprep.subr.bf16.mxu1 %v8615_v50  ;;  %v1549_v50 = vrot.slane %v29_v47, %v8917_v41  ;;  %v1542_v51 = vcombine.high %v29_v47, %v29_v47  ;;  %v8654_v53 = vld [vmem:[%s10765_s1 + $0xeb8] sm:$0xff]   ;;  %v8658_v62 = vld [vmem:[%s10765_s1 + $0xf80] sm:$0xff]  }
 0x1bc   :  { %v10272_v2 = vadd.f32 %v7599_v61, %v5683_v60  ;;  %7880 = vmatpush3.bf16.msra.mxu0 %v8616_v52  ;;  %v8657_v60 = vld [vmem:[%s10765_s1 + $0xf00] sm:$0xff]  }
 0x1bd   :  { %7881 = vmatprep.subr.bf16.mxu0 %v8618_v57  ;;  %v1557_v54 = vcombine.high %v1549_v50, %v1549_v50  ;;  %v1565_v55 = vrot.slane %v1549_v50, %v8917_v41  ;;  %v10387_v57 = vrot.slane %v1542_v51, %v8917_v41  ;;  %v8690_v47 = vld [vmem:[%s10765_s1 + $0x1000] sm:$0xff]   ;;  %v8692_v50 = vld [vmem:[%s10765_s1 + $0x1048] sm:$0xff]  }
 0x1be   :  { %7902 = vmatpush3.bf16.msra.mxu1 %v8617_v56  ;;  %v8655_v56 = vld [vmem:[%s10765_s1 + $0xf40] sm:$0xff]   ;;  %v8693_v51 = vld [vmem:[%s10765_s1 + $0x10c8] sm:$0xff]  }
 0x1bf   :  { %7903 = vmatprep.subr.bf16.mxu1 %v8619_v63  ;;  %v1579_v59 = vrot.slane %v1557_v54, %v8917_v41  ;;  %v1558_v61 = vcombine.high %v10387_v57, %v10387_v57  ;;  %v1587_v0 = vcombine.high %v1565_v55, %v1565_v55  ;;  %v8696_v54 = vld [vmem:[%s10765_s1 + $0x1050] sm:$0xff]  }
 0x1c0   :  { %7882 = vmatpush3.bf16.msra.mxu0 %v8620_v1  ;;  %v8659_v1 = vld [vmem:[%s10765_s1 + $0xf48] sm:$0xff]  }
 0x1c1   :  { %7911 = vmatprep.subr.bf16.mxu0 %v8623_v5  ;;  %v1589_v63 = vcombine.high %v1579_v59, %v1579_v59 }
 0x1c2   :  { %7904 = vmatpush3.bf16.msra.mxu1 %v8621_v3  ;;  %v8660_v3 = vld [vmem:[%s10765_s1 + $0xfc8] sm:$0xff]  }
 0x1c3   :  { %6241 = vmatmul.mubr.bf16.vlgmr.msra.gmra.mrb[52].mxu0 %v1523_v4  ;;  %7933 = vmatprep.subr.bf16.mxu1 %v8624_v6  ;;  %v8661_v4 = vld [vmem:[%s10765_s1 + $0xf08] sm:$0xff]  }
 0x1c4   :  { %7912 = vmatpush3.bf16.msra.mxu0 %v8625_v7  ;;  %6320 = vmatprep.mubr.bf16.mxu0 %v1579_v59  ;;  %v8662_v6 = vld [vmem:[%s10765_s1 + $0xf88] sm:$0xff]   ;;  %v8663_v7 = vld [vmem:[%s10765_s1 + $0xf50] sm:$0xff]   ;;  %v8701_v59 = vld [vmem:[%s10765_s1 + $0x10d8] sm:$0xff]  }
 0x1c5   :  { %6281 = vmatmul.mubr.bf16.vlgmr.msra.gmra.mrb[52].mxu1 %v1539_v9  ;;  %7913 = vmatprep.subr.bf16.mxu0 %v8627_v10  ;;  %v8665_v9 = vld [vmem:[%s10765_s1 + $0xf10] sm:$0xff]  }
 0x1c6   :  { %7934 = vmatpush3.bf16.msra.mxu1 %v8626_v8  ;;  %6360 = vmatprep.mubr.bf16.mxu1 %v1589_v63  ;;  %v8664_v8 = vld [vmem:[%s10765_s1 + $0xfd0] sm:$0xff]   ;;  %v8705_v63 = vld [vmem:[%s10765_s1 + $0x10e0] sm:$0xff]  }
 0x1c7   :  { %7935 = vmatprep.subr.bf16.mxu1 %v8628_v11  ;;  %v8666_v10 = vld [vmem:[%s10765_s1 + $0xf90] sm:$0xff]   ;;  %v8667_v11 = vld [vmem:[%s10765_s1 + $0xf58] sm:$0xff]  }
 0x1c8   :  { %7914 = vmatpush3.bf16.msra.mxu0 %v8629_v12  ;;  %v8668_v12 = vld [vmem:[%s10765_s1 + $0xfd8] sm:$0xff]  }
 0x1c9   :  { %7915 = vmatprep.subr.bf16.mxu0 %v8631_v14  ;;  %v8670_v14 = vld [vmem:[%s10765_s1 + $0xf98] sm:$0xff]  }
 0x1ca   :  { %7936 = vmatpush3.bf16.msra.mxu1 %v8630_v13  ;;  %v8669_v13 = vld [vmem:[%s10765_s1 + $0xf18] sm:$0xff]  }
 0x1cb   :  { %7937 = vmatprep.subr.bf16.mxu1 %v8632_v15  ;;  %v8671_v15 = vld [vmem:[%s10765_s1 + $0xf60] sm:$0xff]  }
 0x1cc   :  { %7916 = vmatpush3.bf16.msra.mxu0 %v8633_v16  ;;  %v8672_v16 = vld [vmem:[%s10765_s1 + $0xfe0] sm:$0xff]  }
 0x1cd   :  { %7917 = vmatprep.subr.bf16.mxu0 %v8635_v18  ;;  %v8674_v18 = vld [vmem:[%s10765_s1 + $0xfa0] sm:$0xff]  }
 0x1ce   :  { %7938 = vmatpush3.bf16.msra.mxu1 %v8634_v17  ;;  %v8673_v17 = vld [vmem:[%s10765_s1 + $0xf20] sm:$0xff]  }
 0x1cf   :  { %7939 = vmatprep.subr.bf16.mxu1 %v8636_v19  ;;  %v8675_v19 = vld [vmem:[%s10765_s1 + $0xf68] sm:$0xff]  }
 0x1d0   :  { %7918 = vmatpush3.bf16.msra.mxu0 %v8637_v20  ;;  %v8676_v20 = vld [vmem:[%s10765_s1 + $0xfe8] sm:$0xff]  }
 0x1d1   :  { %7919 = vmatprep.subr.bf16.mxu0 %v8639_v22  ;;  %v8678_v22 = vld [vmem:[%s10765_s1 + $0xfa8] sm:$0xff]  }
 0x1d2   :  { %7940 = vmatpush3.bf16.msra.mxu1 %v8638_v21  ;;  %v8677_v21 = vld [vmem:[%s10765_s1 + $0xf28] sm:$0xff]  }
 0x1d3   :  { %7941 = vmatprep.subr.bf16.mxu1 %v8640_v23  ;;  %v8679_v23 = vld [vmem:[%s10765_s1 + $0xf70] sm:$0xff]  }
 0x1d4   :  { %7920 = vmatpush3.bf16.msra.mxu0 %v8641_v24 }
 0x1d5   :  { %7921 = vmatprep.subr.bf16.mxu0 %v8643_v26 }
 0x1d6   :  { %7942 = vmatpush3.bf16.msra.mxu1 %v8642_v25  ;;  %v7619_v31 = vpop.f32.mrb[28].mxu0  ;;  %v8680_v25 = vld [vmem:[%s10765_s1 + $0xff0] sm:$0xff]  }
 0x1d7   :  { %v7620_v33 = vpop.f32.mrb[29].mxu0  ;;  %7943 = vmatprep.subr.bf16.mxu1 %v8644_v27  ;;  %v8681_v27 = vld [vmem:[%s10765_s1 + $0xf30] sm:$0xff]  }
 0x1d8   :  { %v7641_v35 = vpop.f32.mrb[28].mxu1  ;;  %v7621_v36 = vadd.f32 %v7620_v33, %v7619_v31  ;;  %v7622_v37 = vpop.f32.mrb[30].mxu0  ;;  %7922 = vmatpush3.bf16.msra.mxu0 %v8645_v28  ;;  %v8682_v31 = vld [vmem:[%s10765_s1 + $0xfb0] sm:$0xff]  }
 0x1d9   :  { %v7642_v39 = vpop.f32.mrb[29].mxu1  ;;  %v7623_v40 = vpop.f32.mrb[31].mxu0  ;;  %7923 = vmatprep.subr.bf16.mxu0 %v8647_v30 }
 0x1da   :  { %v5763_v44 = vadd.f32 %v7621_v36, %v10272_v2  ;;  %v7643_v45 = vadd.f32 %v7642_v39, %v7641_v35  ;;  %v7644_v46 = vpop.f32.mrb[30].mxu1  ;;  %7944 = vmatpush3.bf16.msra.mxu1 %v8646_v29  ;;  %v1586_v2 = vrot.slane %v1558_v61, %v8917_v41  ;;  %v8685_v40 = vld [vmem:[%s10765_s1 + $0xf38] sm:$0xff]  }
 0x1db   :  { %v7645_v48 = vpop.f32.mrb[31].mxu1  ;;  %7945 = vmatprep.subr.bf16.mxu1 %v8648_v32  ;;  %v8683_v32 = vld [vmem:[%s10765_s1 + $0xf78] sm:$0xff]   ;;  %v8689_v46 = vld [vmem:[%s10765_s1 + $0x10c0] sm:$0xff]  }
 0x1dc   :  { %v10377_v52 = vadd.f32 %v7643_v45, %v5763_v44  ;;  %7924 = vmatpush3.bf16.msra.mxu0 %v8649_v34  ;;  %v1590_v5 = vcombine.high %v1586_v2, %v1586_v2  ;;  %v1572_v44 = vrot.slane %v10387_v57, %v8917_v41  ;;  %v8688_v45 = vld [vmem:[%s10765_s1 + $0x1040] sm:$0xff]   ;;  %v8699_v57 = vld [vmem:[%s10765_s1 + $0x1090] sm:$0xff]   ;;  %v8703_v61 = vld [vmem:[%s10765_s1 + $0x1098] sm:$0xff]  }
 0x1dd   :  { %7925 = vmatprep.subr.bf16.mxu0 %v8651_v42  ;;  %v8691_v48 = vld [vmem:[%s10765_s1 + $0x1080] sm:$0xff]  }
 0x1de   :  { %7946 = vmatpush3.bf16.msra.mxu1 %v8650_v38  ;;  %v8684_v38 = vld [vmem:[%s10765_s1 + $0xff8] sm:$0xff]  }
 0x1df   :  { %7947 = vmatprep.subr.bf16.mxu1 %v8652_v43  ;;  %v8686_v43 = vld [vmem:[%s10765_s1 + $0xfb8] sm:$0xff]  }
 0x1e0   :  { %7926 = vmatpush3.bf16.msra.mxu0 %v8653_v49  ;;  %v1588_v49 = vcombine.high %v1572_v44, %v1572_v44 }
 0x1e1   :  { %7955 = vmatprep.subr.bf16.mxu0 %v8655_v56  ;;  %v8698_v56 = vld [vmem:[%s10765_s1 + $0x1010] sm:$0xff]  }
 0x1e2   :  { %7948 = vmatpush3.bf16.msra.mxu1 %v8654_v53  ;;  %v8695_v53 = vld [vmem:[%s10765_s1 + $0x1088] sm:$0xff]  }
 0x1e3   :  { %6321 = vmatmul.mubr.bf16.vlgmr.msra.gmra.mrb[56].mxu0 %v1565_v55  ;;  %7977 = vmatprep.subr.bf16.mxu1 %v8656_v58  ;;  %v8697_v55 = vld [vmem:[%s10765_s1 + $0x10d0] sm:$0xff]   ;;  %v8700_v58 = vld [vmem:[%s10765_s1 + $0x1058] sm:$0xff]  }
 0x1e4   :  { %7956 = vmatpush3.bf16.msra.mxu0 %v8657_v60  ;;  %6400 = vmatprep.mubr.bf16.mxu0 %v1586_v2  ;;  %v8702_v60 = vld [vmem:[%s10765_s1 + $0x1018] sm:$0xff]   ;;  %v8708_v2 = vld [vmem:[%s10765_s1 + $0x1068] sm:$0xff]  }
 0x1e5   :  { %6361 = vmatmul.mubr.bf16.vlgmr.msra.gmra.mrb[56].mxu1 %v1587_v0  ;;  %7957 = vmatprep.subr.bf16.mxu0 %v8659_v1  ;;  %v8706_v0 = vld [vmem:[%s10765_s1 + $0x1020] sm:$0xff]  }
 0x1e6   :  { %7978 = vmatpush3.bf16.msra.mxu1 %v8658_v62  ;;  %6440 = vmatprep.mubr.bf16.mxu1 %v1590_v5  ;;  %v8704_v62 = vld [vmem:[%s10765_s1 + $0x1060] sm:$0xff]   ;;  %v8711_v5 = vld [vmem:[%s10765_s1 + $0x10a8] sm:$0xff]  }
 0x1e7   :  { %7979 = vmatprep.subr.bf16.mxu1 %v8660_v3  ;;  %v8707_v1 = vld [vmem:[%s10765_s1 + $0x10a0] sm:$0xff]   ;;  %v8709_v3 = vld [vmem:[%s10765_s1 + $0x10e8] sm:$0xff]  }
 0x1e8   :  { %7958 = vmatpush3.bf16.msra.mxu0 %v8661_v4  ;;  %v8710_v4 = vld [vmem:[%s10765_s1 + $0x1028] sm:$0xff]  }
 0x1e9   :  { %7959 = vmatprep.subr.bf16.mxu0 %v8663_v7 }
 0x1ea   :  { %7980 = vmatpush3.bf16.msra.mxu1 %v8662_v6  ;;  %v8712_v6 = vld [vmem:[%s10765_s1 + $0x1070] sm:$0xff]  }
 0x1eb   :  { %7981 = vmatprep.subr.bf16.mxu1 %v8664_v8  ;;  %v8713_v8 = vld [vmem:[%s10765_s1 + $0x10f0] sm:$0xff]  }
 0x1ec   :  { %7960 = vmatpush3.bf16.msra.mxu0 %v8665_v9 }
 0x1ed   :  { %7961 = vmatprep.subr.bf16.mxu0 %v8667_v11 }
 0x1ee   :  { %7982 = vmatpush3.bf16.msra.mxu1 %v8666_v10  ;;  %v8714_v10 = vld [vmem:[%s10765_s1 + $0x1030] sm:$0xff]  }
 0x1ef   :  { %7983 = vmatprep.subr.bf16.mxu1 %v8668_v12 }
 0x1f0   :  { %7962 = vmatpush3.bf16.msra.mxu0 %v8669_v13 }
 0x1f1   :  { %7963 = vmatprep.subr.bf16.mxu0 %v8671_v15 }
 0x1f2   :  { %7984 = vmatpush3.bf16.msra.mxu1 %v8670_v14 }
 0x1f3   :  { %7985 = vmatprep.subr.bf16.mxu1 %v8672_v16  ;;  %v8715_v16 = vld [vmem:[%s10765_s1 + $0x10b0] sm:$0xff]  }
 0x1f4   :  { %7964 = vmatpush3.bf16.msra.mxu0 %v8673_v17  ;;  %v8716_v17 = vld [vmem:[%s10765_s1 + $0x1078] sm:$0xff]  }
 0x1f5   :  { %7965 = vmatprep.subr.bf16.mxu0 %v8675_v19 }
 0x1f6   :  { %7986 = vmatpush3.bf16.msra.mxu1 %v8674_v18  ;;  %v7663_v24 = vpop.f32.mrb[32].mxu0 }
 0x1f7   :  { %v7664_v26 = vpop.f32.mrb[33].mxu0  ;;  %7987 = vmatprep.subr.bf16.mxu1 %v8676_v20 }
 0x1f8   :  { %v7685_v28 = vpop.f32.mrb[32].mxu1  ;;  %v7665_v29 = vadd.f32 %v7664_v26, %v7663_v24  ;;  %v7666_v30 = vpop.f32.mrb[34].mxu0  ;;  %7966 = vmatpush3.bf16.msra.mxu0 %v8677_v21  ;;  %v8717_v21 = vld [vmem:[%s10765_s1 + $0x10f8] sm:$0xff]  }
 0x1f9   :  { %v7686_v33 = vpop.f32.mrb[33].mxu1  ;;  %v7667_v34 = vpop.f32.mrb[35].mxu0  ;;  %7967 = vmatprep.subr.bf16.mxu0 %v8679_v23  ;;  %v30_v23 = vld [vmem:[%s10764_s0 + $0x40] sm:$0xff] }
 0x1fa   :  { %v5843_v35 = vadd.f32 %v7665_v29, %v10377_v52  ;;  %v7687_v36 = vadd.f32 %v7686_v33, %v7685_v28  ;;  %v7688_v37 = vpop.f32.mrb[34].mxu1  ;;  %7988 = vmatpush3.bf16.msra.mxu1 %v8678_v22  ;;  %v8694_v52 = vld [vmem:[%s10765_s1 + $0x1008] sm:$0xff]   ;;  %v1598_v26 = vrot.slane %v30_v23, %v8917_v41  ;;  %v8720_v28 = vld [vmem:[%s10765_s1 + $0x1140] sm:$0xff]   ;;  %v8719_v29 = vld [vmem:[%s10765_s1 + $0x10b8] sm:$0xff]  }
 0x1fb   :  { %v7689_v39 = vpop.f32.mrb[35].mxu1  ;;  %7989 = vmatprep.subr.bf16.mxu1 %v8680_v25  ;;  %v8718_v25 = vld [vmem:[%s10765_s1 + $0x1038] sm:$0xff]   ;;  %v8721_v33 = vld [vmem:[%s10765_s1 + $0x11c0] sm:$0xff]  }
 0x1fc   :  { %v10484_v42 = vadd.f32 %v7687_v36, %v5843_v35  ;;  %7968 = vmatpush3.bf16.msra.mxu0 %v8681_v27  ;;  %v1591_v27 = vcombine.high %v30_v23, %v30_v23  ;;  %v1606_v30 = vcombine.high %v1598_v26, %v1598_v26  ;;  %v8722_v35 = vld [vmem:[%s10765_s1 + $0x1100] sm:$0xff]  }
 0x1fd   :  { %7969 = vmatprep.subr.bf16.mxu0 %v8683_v32 }
 0x1fe   :  { %7990 = vmatpush3.bf16.msra.mxu1 %v8682_v31  ;;  %v1614_v31 = vrot.slane %v1598_v26, %v8917_v41  ;;  %v10599_v32 = vrot.slane %v1591_v27, %v8917_v41  ;;  %v1628_v34 = vrot.slane %v1606_v30, %v8917_v41 }
 0x1ff   :  { %7991 = vmatprep.subr.bf16.mxu1 %v8684_v38  ;;  %v8724_v38 = vld [vmem:[%s10765_s1 + $0x1148] sm:$0xff]  }
 0x200   :  { %7970 = vmatpush3.bf16.msra.mxu0 %v8685_v40  ;;  %v1607_v36 = vcombine.high %v10599_v32, %v10599_v32  ;;  %v1636_v37 = vcombine.high %v1614_v31, %v1614_v31  ;;  %v1638_v39 = vcombine.high %v1628_v34, %v1628_v34  ;;  %v8723_v40 = vld [vmem:[%s10765_s1 + $0x1180] sm:$0xff]  }
 0x201   :  { %7999 = vmatprep.subr.bf16.mxu0 %v8688_v45 }
 0x202   :  { %7992 = vmatpush3.bf16.msra.mxu1 %v8686_v43  ;;  %v8725_v43 = vld [vmem:[%s10765_s1 + $0x11c8] sm:$0xff]  }
 0x203   :  { %6401 = vmatmul.mubr.bf16.vlgmr.msra.gmra.mrb[60].mxu0 %v1572_v44  ;;  %8021 = vmatprep.subr.bf16.mxu1 %v8689_v46  ;;  %v8726_v44 = vld [vmem:[%s10765_s1 + $0x1108] sm:$0xff]   ;;  %v8728_v46 = vld [vmem:[%s10765_s1 + $0x1150] sm:$0xff]  }
 0x204   :  { %8000 = vmatpush3.bf16.msra.mxu0 %v8690_v47  ;;  %6480 = vmatprep.mubr.bf16.mxu0 %v1628_v34  ;;  %v8727_v47 = vld [vmem:[%s10765_s1 + $0x1188] sm:$0xff]  }
 0x205   :  { %6441 = vmatmul.mubr.bf16.vlgmr.msra.gmra.mrb[60].mxu1 %v1588_v49  ;;  %8001 = vmatprep.subr.bf16.mxu0 %v8692_v50  ;;  %v8730_v49 = vld [vmem:[%s10765_s1 + $0x1110] sm:$0xff]   ;;  %v8732_v50 = vld [vmem:[%s10765_s1 + $0x1158] sm:$0xff]  }
 0x206   :  { %8022 = vmatpush3.bf16.msra.mxu1 %v8691_v48  ;;  %6520 = vmatprep.mubr.bf16.mxu1 %v1638_v39  ;;  %v8729_v48 = vld [vmem:[%s10765_s1 + $0x11d0] sm:$0xff]  }
 0x207   :  { %8023 = vmatprep.subr.bf16.mxu1 %v8693_v51  ;;  %v8731_v51 = vld [vmem:[%s10765_s1 + $0x1190] sm:$0xff]  }
 0x208   :  { %8002 = vmatpush3.bf16.msra.mxu0 %v8694_v52  ;;  %v8733_v52 = vld [vmem:[%s10765_s1 + $0x11d8] sm:$0xff]  }
 0x209   :  { %8003 = vmatprep.subr.bf16.mxu0 %v8696_v54  ;;  %v8736_v54 = vld [vmem:[%s10765_s1 + $0x1160] sm:$0xff]  }
 0x20a   :  { %8024 = vmatpush3.bf16.msra.mxu1 %v8695_v53  ;;  %v8734_v53 = vld [vmem:[%s10765_s1 + $0x1118] sm:$0xff]  }
 0x20b   :  { %8025 = vmatprep.subr.bf16.mxu1 %v8697_v55  ;;  %v8735_v55 = vld [vmem:[%s10765_s1 + $0x1198] sm:$0xff]  }
 0x20c   :  { %8004 = vmatpush3.bf16.msra.mxu0 %v8698_v56  ;;  %v8737_v56 = vld [vmem:[%s10765_s1 + $0x11e0] sm:$0xff]  }
 0x20d   :  { %8005 = vmatprep.subr.bf16.mxu0 %v8700_v58  ;;  %v8740_v58 = vld [vmem:[%s10765_s1 + $0x1168] sm:$0xff]  }
 0x20e   :  { %8026 = vmatpush3.bf16.msra.mxu1 %v8699_v57  ;;  %v8738_v57 = vld [vmem:[%s10765_s1 + $0x1120] sm:$0xff]  }
 0x20f   :  { %8027 = vmatprep.subr.bf16.mxu1 %v8701_v59  ;;  %v8739_v59 = vld [vmem:[%s10765_s1 + $0x11a0] sm:$0xff]  }
 0x210   :  { %8006 = vmatpush3.bf16.msra.mxu0 %v8702_v60  ;;  %v8741_v60 = vld [vmem:[%s10765_s1 + $0x11e8] sm:$0xff]  }
 0x211   :  { %8007 = vmatprep.subr.bf16.mxu0 %v8704_v62  ;;  %v8744_v62 = vld [vmem:[%s10765_s1 + $0x1170] sm:$0xff]  }
 0x212   :  { %8028 = vmatpush3.bf16.msra.mxu1 %v8703_v61  ;;  %v8742_v61 = vld [vmem:[%s10765_s1 + $0x1128] sm:$0xff]  }
 0x213   :  { %8029 = vmatprep.subr.bf16.mxu1 %v8705_v63 }
 0x214   :  { %8008 = vmatpush3.bf16.msra.mxu0 %v8706_v0  ;;  %v8743_v0 = vld [vmem:[%s10765_s1 + $0x11a8] sm:$0xff]  }
 0x215   :  { %8009 = vmatprep.subr.bf16.mxu0 %v8708_v2  ;;  %v8745_v2 = vld [vmem:[%s10765_s1 + $0x11f0] sm:$0xff]  }
 0x216   :  { %8030 = vmatpush3.bf16.msra.mxu1 %v8707_v1  ;;  %v7707_v7 = vpop.f32.mrb[36].mxu0 }
 0x217   :  { %v7708_v9 = vpop.f32.mrb[37].mxu0  ;;  %8031 = vmatprep.subr.bf16.mxu1 %v8709_v3 }
 0x218   :  { %v7729_v11 = vpop.f32.mrb[36].mxu1  ;;  %v7709_v12 = vadd.f32 %v7708_v9, %v7707_v7  ;;  %v7710_v13 = vpop.f32.mrb[38].mxu0  ;;  %8010 = vmatpush3.bf16.msra.mxu0 %v8710_v4  ;;  %v8748_v7 = vld [vmem:[%s10765_s1 + $0x1178] sm:$0xff]  }
 0x219   :  { %v7730_v14 = vpop.f32.mrb[37].mxu1  ;;  %v7711_v15 = vpop.f32.mrb[39].mxu0  ;;  %8011 = vmatprep.subr.bf16.mxu0 %v8712_v6  ;;  %v8746_v6 = vld [vmem:[%s10765_s1 + $0x1130] sm:$0xff]  }
 0x21a   :  { %v5923_v18 = vadd.f32 %v7709_v12, %v10484_v42  ;;  %v7731_v19 = vadd.f32 %v7730_v14, %v7729_v11  ;;  %v7732_v20 = vpop.f32.mrb[38].mxu1  ;;  %8032 = vmatpush3.bf16.msra.mxu1 %v8711_v5  ;;  %v1635_v42 = vrot.slane %v1607_v36, %v8917_v41  ;;  %v8747_v13 = vld [vmem:[%s10765_s1 + $0x11b0] sm:$0xff]   ;;  %v8749_v15 = vld [vmem:[%s10765_s1 + $0x11f8] sm:$0xff]  }
 0x21b   :  { %v7733_v22 = vpop.f32.mrb[39].mxu1  ;;  %8033 = vmatprep.subr.bf16.mxu1 %v8713_v8 }
 0x21c   :  { %v10585_v24 = vadd.f32 %v7731_v19, %v5923_v18  ;;  %8012 = vmatpush3.bf16.msra.mxu0 %v8714_v10  ;;  %v1639_v45 = vcombine.high %v1635_v42, %v1635_v42 }
 0x21d   :  { %8013 = vmatprep.subr.bf16.mxu0 %v8716_v17  ;;  %v8750_v17 = vld [vmem:[%s10765_s1 + $0x1138] sm:$0xff]  }
 0x21e   :  { %8034 = vmatpush3.bf16.msra.mxu1 %v8715_v16 }
 0x21f   :  { %8035 = vmatprep.subr.bf16.mxu1 %v8717_v21 }
 0x220   :  { %8014 = vmatpush3.bf16.msra.mxu0 %v8718_v25 }
 0x221   :  { %8043 = vmatprep.subr.bf16.mxu0 %v8720_v28 }
 0x222   :  { %8036 = vmatpush3.bf16.msra.mxu1 %v8719_v29 }
 0x223   :  { %6481 = vmatmul.mubr.bf16.vlgmr.msra.gmra.mrb[64].mxu0 %v1614_v31  ;;  %8065 = vmatprep.subr.bf16.mxu1 %v8721_v33 }
 0x224   :  { %8044 = vmatpush3.bf16.msra.mxu0 %v8722_v35  ;;  %6560 = vmatprep.mubr.bf16.mxu0 %v1635_v42 }
 0x225   :  { %6521 = vmatmul.mubr.bf16.vlgmr.msra.gmra.mrb[64].mxu1 %v1636_v37  ;;  %8045 = vmatprep.subr.bf16.mxu0 %v8724_v38 }
 0x226   :  { %8066 = vmatpush3.bf16.msra.mxu1 %v8723_v40  ;;  %6600 = vmatprep.mubr.bf16.mxu1 %v1639_v45 }
 0x227   :  { %8067 = vmatprep.subr.bf16.mxu1 %v8725_v43 }
 0x228   :  { %8046 = vmatpush3.bf16.msra.mxu0 %v8726_v44 }
 0x229   :  { %8047 = vmatprep.subr.bf16.mxu0 %v8728_v46 }
 0x22a   :  { %8068 = vmatpush3.bf16.msra.mxu1 %v8727_v47 }
 0x22b   :  { %8069 = vmatprep.subr.bf16.mxu1 %v8729_v48 }
 0x22c   :  { %8048 = vmatpush3.bf16.msra.mxu0 %v8730_v49 }
 0x22d   :  { %8049 = vmatprep.subr.bf16.mxu0 %v8732_v50 }
 0x22e   :  { %8070 = vmatpush3.bf16.msra.mxu1 %v8731_v51 }
 0x22f   :  { %8071 = vmatprep.subr.bf16.mxu1 %v8733_v52 }
 0x230   :  { %8050 = vmatpush3.bf16.msra.mxu0 %v8734_v53 }
 0x231   :  { %8051 = vmatprep.subr.bf16.mxu0 %v8736_v54 }
 0x232   :  { %8072 = vmatpush3.bf16.msra.mxu1 %v8735_v55 }
 0x233   :  { %8073 = vmatprep.subr.bf16.mxu1 %v8737_v56 }
 0x234   :  { %8052 = vmatpush3.bf16.msra.mxu0 %v8738_v57 }
 0x235   :  { %8053 = vmatprep.subr.bf16.mxu0 %v8740_v58 }
 0x236   :  { %8074 = vmatpush3.bf16.msra.mxu1 %v8739_v59  ;;  %v7751_v63 = vpop.f32.mrb[40].mxu0 }
 0x237   :  { %v7752_v1 = vpop.f32.mrb[41].mxu0  ;;  %8075 = vmatprep.subr.bf16.mxu1 %v8741_v60 }
 0x238   :  { %v7773_v3 = vpop.f32.mrb[40].mxu1  ;;  %v7753_v4 = vadd.f32 %v7752_v1, %v7751_v63  ;;  %v7754_v5 = vpop.f32.mrb[42].mxu0  ;;  %8054 = vmatpush3.bf16.msra.mxu0 %v8742_v61 }
 0x239   :  { %v7774_v8 = vpop.f32.mrb[41].mxu1  ;;  %v7755_v9 = vpop.f32.mrb[43].mxu0  ;;  %8055 = vmatprep.subr.bf16.mxu0 %v8744_v62 }
 0x23a   :  { %v6003_v10 = vadd.f32 %v7753_v4, %v10585_v24  ;;  %v7775_v11 = vadd.f32 %v7774_v8, %v7773_v3  ;;  %v7776_v12 = vpop.f32.mrb[42].mxu1  ;;  %8076 = vmatpush3.bf16.msra.mxu1 %v8743_v0 }
 0x23b   :  { %v7777_v14 = vpop.f32.mrb[43].mxu1  ;;  %8077 = vmatprep.subr.bf16.mxu1 %v8745_v2 }
 0x23c   :  { %v6043_v16 = vadd.f32 %v7775_v11, %v6003_v10  ;;  %8056 = vmatpush3.bf16.msra.mxu0 %v8746_v6 }
 0x23d   :  { %10 = vsyncpa [#allocation3], 0  ;;  %8057 = vmatprep.subr.bf16.mxu0 %v8748_v7  ;;  %v1621_v18 = vrot.slane %v10599_v32, %v8917_v41  ;;  %v8751_v19 = vld [vmem:[%s10765_s1 + $0x11b8] sm:$0xff]   ;;  %v6609_v45 = vld [vmem:[%s10767_s3] sm:$0xff]  ;;  %v8778_v48 = vmov 0.0|0.0   ;;  %vm8779_vm0 = vmmov 0  }
 0x23e   :  { %8078 = vmatpush3.bf16.msra.mxu1 %v8747_v13  ;;  %v6610_v46 = vld [vmem:[%s10767_s3 + $0x8] sm:$0xff]  ;;  %v6611_v47 = vld [vmem:[%s10767_s3 + $0x10] sm:$0xff]  ;;  %v6612_v50 = vld [vmem:[%s10767_s3 + $0x18] sm:$0xff]  ;;  %s8781_s15 = smov [#allocation2]  }
 0x23f   :  { %8079 = vmatprep.subr.bf16.mxu1 %v8749_v15  ;;  %v1637_v20 = vcombine.high %v1621_v18, %v1621_v18  ;;  %v8140_v49 = vpack.c.bf16 %v6610_v46, %v6609_v45  ;;  %v8143_v51 = vpack.c.bf16 %v6612_v50, %v6611_v47  ;;  %v6613_v52 = vld [vmem:[%s10767_s3 + $0x20] sm:$0xff]  ;;  %v6614_v53 = vld [vmem:[%s10767_s3 + $0x28] sm:$0xff]  ;;  %v6615_v55 = vld [vmem:[%s10767_s3 + $0x30] sm:$0xff]  ;;  %s6709_s16 = sshll.u32 %s8781_s15, 4  ;;  %s6710_s16 = int_to_ptr.vmem [resolvable:$true] %s6709_s16 }
 0x240   :  { %8058 = vmatpush3.bf16.msra.mxu0 %v8750_v17  ;;  %v8146_v54 = vpack.c.bf16 %v6614_v53, %v6613_v52  ;;  %v6616_v56 = vld [vmem:[%s10767_s3 + $0x38] sm:$0xff]  ;;  %v6617_v58 = vld [vmem:[%s10767_s3 + $0x40] sm:$0xff]  ;;  %v6618_v59 = vld [vmem:[%s10767_s3 + $0x48] sm:$0xff]  ;;  %s8753_s17 = scalar_lea.vmem %s6710_s16, 32  ;;  %p8758_p1 = scmp.lt.s32.totalorder %s6710_s16, %s6710_s16 }
 0x241   :  { %8139 = vmatprep.subr.bf16.mxu0 %v8778_v48  ;;  %v8149_v57 = vpack.c.bf16 %v6616_v56, %v6615_v55  ;;  %v8152_v60 = vpack.c.bf16 %v6618_v59, %v6617_v58  ;;  %v6619_v61 = vld [vmem:[%s10767_s3 + $0x50] sm:$0xff]  ;;  %v6620_v62 = vld [vmem:[%s10767_s3 + $0x58] sm:$0xff]  ;;  %v6621_v5 = vld [vmem:[%s10767_s3 + $0x60] sm:$0xff]  ;;  %p8754_p0 = scmp.ne.s32.totalorder %s6710_s16, %s8753_s17  ;;  %p8759_p2 = scmp.lt.s32.totalorder %s8753_s17, %s8753_s17 }
 0x242   :  { %8080 = vmatpush3.bf16.msra.mxu1 %v8751_v19  ;;  %v8155_v63 = vpack.c.bf16 %v6620_v62, %v6619_v61  ;;  %v6622_v6 = vld [vmem:[%s10767_s3 + $0x68] sm:$0xff]  ;;  %v6623_v15 = vld [vmem:[%s10767_s3 + $0x70] sm:$0xff] }
 0x243   :  { %6561 = vmatmul.mubr.bf16.vlgmr.msra.gmra.mrb[68].mxu0 %v1621_v18  ;;  %v8158_v9 = vpack.c.bf16 %v6622_v6, %v6621_v5  ;;  %v8780_v18 = vmov 0.0   ;;  %p8760_p3 = por %p8759_p2, %p8758_p1 }
 0x244   :  { %8141 = vmatpush3.bf16.msra.mxu0 %v8140_v49  ;;  %8136 = vmatprep.mubr.msk.f32.mxu0 %vm8779_vm0, %v8780_v18 }
 0x245   :  { %6601 = vmatmul.mubr.bf16.vlgmr.msra.gmra.mrb[68].mxu1 %v1637_v20  ;;  %8142 = vmatprep.subr.bf16.mxu0 %v8778_v48  ;;  %p8761_p4 = pnand %p8760_p3, %p8754_p0 }
 0x248   :  { %8144 = vmatpush3.bf16.msra.mxu0 %v8143_v51 }
 0x249   :  { %8145 = vmatprep.subr.bf16.mxu0 %v8778_v48 }
 0x24c   :  { %8147 = vmatpush3.bf16.msra.mxu0 %v8146_v54 }
 0x24d   :  { %8148 = vmatprep.subr.bf16.mxu0 %v8778_v48 }
 0x250   :  { %8150 = vmatpush3.bf16.msra.mxu0 %v8149_v57 }
 0x251   :  { %8151 = vmatprep.subr.bf16.mxu0 %v8778_v48 }
 0x254   :  { %8153 = vmatpush3.bf16.msra.mxu0 %v8152_v60 }
 0x255   :  { %8154 = vmatprep.subr.bf16.mxu0 %v8778_v48 }
 0x256   :  { %v7795_v21 = vpop.f32.mrb[44].mxu0 }
 0x257   :  { %v7796_v22 = vpop.f32.mrb[45].mxu0 }
 0x258   :  { %v7817_v23 = vpop.f32.mrb[44].mxu1  ;;  %v7797_v24 = vadd.f32 %v7796_v22, %v7795_v21  ;;  %v7798_v25 = vpop.f32.mrb[46].mxu0  ;;  %8156 = vmatpush3.bf16.msra.mxu0 %v8155_v63 }
 0x259   :  { %v7818_v26 = vpop.f32.mrb[45].mxu1  ;;  %v7799_v27 = vpop.f32.mrb[47].mxu0  ;;  %8157 = vmatprep.subr.bf16.mxu0 %v8778_v48 }
 0x25a   :  { %v6083_v28 = vadd.f32 %v7797_v24, %v6043_v16  ;;  %v7819_v41 = vadd.f32 %v7818_v26, %v7817_v23  ;;  %v7820_v29 = vpop.f32.mrb[46].mxu1  ;;  %v6624_v16 = vld [vmem:[%s10767_s3 + $0x78] sm:$0xff] }
 0x25b   :  { %v7821_v30 = vpop.f32.mrb[47].mxu1  ;;  %v8161_v17 = vpack.c.bf16 %v6624_v16, %v6623_v15 }
 0x25c   :  { %v6123_v31 = vadd.f32 %v7819_v41, %v6083_v28  ;;  %8159 = vmatpush3.bf16.msra.mxu0 %v8158_v9 }
 0x25d   :  { %8160 = vmatprep.subr.bf16.mxu0 %v8778_v48 }
 0x260   :  { %8162 = vmatpush3.bf16.msra.mxu0 %v8161_v17 }
 0x276   :  { %v7839_v32 = vpop.f32.mrb[48].mxu0 }
 0x277   :  { %v7840_v33 = vpop.f32.mrb[49].mxu0 }
 0x278   :  { %v7861_v34 = vpop.f32.mrb[48].mxu1  ;;  %v7841_v35 = vadd.f32 %v7840_v33, %v7839_v32  ;;  %v7842_v36 = vpop.f32.mrb[50].mxu0 }
 0x279   :  { %v7862_v37 = vpop.f32.mrb[49].mxu1  ;;  %v7843_v38 = vpop.f32.mrb[51].mxu0 }
 0x27a   :  { %v6163_v39 = vadd.f32 %v7841_v35, %v6123_v31  ;;  %v7863_v40 = vadd.f32 %v7862_v37, %v7861_v34  ;;  %v7864_v42 = vpop.f32.mrb[50].mxu1 }
 0x27b   :  { %v7865_v43 = vpop.f32.mrb[51].mxu1 }
 0x27c   :  { %v6203_v44 = vadd.f32 %v7863_v40, %v6163_v39 }
 0x296   :  { %v7883_v0 = vpop.f32.mrb[52].mxu0 }
 0x297   :  { %v7884_v1 = vpop.f32.mrb[53].mxu0 }
 0x298   :  { %v7905_v2 = vpop.f32.mrb[52].mxu1  ;;  %v7885_v3 = vadd.f32 %v7884_v1, %v7883_v0  ;;  %v7886_v4 = vpop.f32.mrb[54].mxu0 }
 0x299   :  { %v7906_v7 = vpop.f32.mrb[53].mxu1  ;;  %v7887_v8 = vpop.f32.mrb[55].mxu0  ;;  %v7294_v4 = vld [vmem:[%s10768_s4] ss:$0 sm:$0xff] }
 0x29a   :  { %v6243_v10 = vadd.f32 %v7885_v3, %v6203_v44  ;;  %v7907_v11 = vadd.f32 %v7906_v7, %v7905_v2  ;;  %v7908_v12 = vpop.f32.mrb[54].mxu1 }
 0x29b   :  { %v7909_v13 = vpop.f32.mrb[55].mxu1 }
 0x29c   :  { %v6283_v14 = vadd.f32 %v7907_v11, %v6243_v10 }
 0x2b6   :  { %v7927_v19 = vpop.f32.mrb[56].mxu0 }
 0x2b7   :  { %v7928_v20 = vpop.f32.mrb[57].mxu0 }
 0x2b8   :  { %v7949_v21 = vpop.f32.mrb[56].mxu1  ;;  %v7929_v22 = vadd.f32 %v7928_v20, %v7927_v19  ;;  %v7930_v23 = vpop.f32.mrb[58].mxu0 }
 0x2b9   :  { %v7950_v24 = vpop.f32.mrb[57].mxu1  ;;  %v7931_v25 = vpop.f32.mrb[59].mxu0 }
 0x2ba   :  { %v6323_v26 = vadd.f32 %v7929_v22, %v6283_v14  ;;  %v7951_v27 = vadd.f32 %v7950_v24, %v7949_v21  ;;  %v7952_v28 = vpop.f32.mrb[58].mxu1 }
 0x2bb   :  { %v7953_v41 = vpop.f32.mrb[59].mxu1 }
 0x2bc   :  { %v6363_v29 = vadd.f32 %v7951_v27, %v6323_v26 }
 0x2d6   :  { %v7971_v30 = vpop.f32.mrb[60].mxu0 }
 0x2d7   :  { %v7972_v31 = vpop.f32.mrb[61].mxu0 }
 0x2d8   :  { %v7993_v32 = vpop.f32.mrb[60].mxu1  ;;  %v7973_v33 = vadd.f32 %v7972_v31, %v7971_v30  ;;  %v7974_v34 = vpop.f32.mrb[62].mxu0 }
 0x2d9   :  { %v7994_v35 = vpop.f32.mrb[61].mxu1  ;;  %v7975_v36 = vpop.f32.mrb[63].mxu0 }
 0x2da   :  { %v6403_v37 = vadd.f32 %v7973_v33, %v6363_v29  ;;  %v7995_v38 = vadd.f32 %v7994_v35, %v7993_v32  ;;  %v7996_v39 = vpop.f32.mrb[62].mxu1 }
 0x2db   :  { %v7997_v40 = vpop.f32.mrb[63].mxu1 }
 0x2dc   :  { %v6443_v42 = vadd.f32 %v7995_v38, %v6403_v37 }
 0x2f6   :  { %v8015_v43 = vpop.f32.mrb[64].mxu0 }
 0x2f7   :  { %v8016_v44 = vpop.f32.mrb[65].mxu0 }
 0x2f8   :  { %v8037_v45 = vpop.f32.mrb[64].mxu1  ;;  %v8017_v46 = vadd.f32 %v8016_v44, %v8015_v43  ;;  %v8018_v47 = vpop.f32.mrb[66].mxu0 }
 0x2f9   :  { %v8038_v48 = vpop.f32.mrb[65].mxu1  ;;  %v8019_v49 = vpop.f32.mrb[67].mxu0 }
 0x2fa   :  { %v6483_v50 = vadd.f32 %v8017_v46, %v6443_v42  ;;  %v8039_v51 = vadd.f32 %v8038_v48, %v8037_v45  ;;  %v8040_v52 = vpop.f32.mrb[66].mxu1 }
 0x2fb   :  { %v8041_v53 = vpop.f32.mrb[67].mxu1 }
 0x2fc   :  { %v6523_v54 = vadd.f32 %v8039_v51, %v6483_v50 }
 0x316   :  { %v8059_v55 = vpop.f32.mrb[68].mxu0 }
 0x317   :  { %v8060_v56 = vpop.f32.mrb[69].mxu0 }
 0x318   :  { %v8081_v57 = vpop.f32.mrb[68].mxu1  ;;  %v8061_v58 = vadd.f32 %v8060_v56, %v8059_v55  ;;  %v8062_v59 = vpop.f32.mrb[70].mxu0 }
 0x319   :  { %v8082_v60 = vpop.f32.mrb[69].mxu1  ;;  %v8063_v61 = vpop.f32.mrb[71].mxu0 }
 0x31a   :  { %v6563_v62 = vadd.f32 %v8061_v58, %v6523_v54  ;;  %v8083_v63 = vadd.f32 %v8082_v60, %v8081_v57  ;;  %v8084_v0 = vpop.f32.mrb[70].mxu1 }
 0x31b   :  { %v8085_v1 = vpop.f32.mrb[71].mxu1 }
 0x31c   :  { %v6603_v2 = vadd.f32 %v8083_v63, %v6563_v62 }
 0x31e   :  { %v6608_v3 = vmax.f32 %v6603_v2, 0.0 }
 0x320   :  { %8137 = vmatmul.mubr.f32.vlgmr.msra.gmra.mrb[72].mxu0 %v6608_v3 }
 0x3f3   :  { %v6698_v5 = vpop.f32.mrb[72].mxu0 }
 0x3f4   :  { %v6699_v6 = vadd.f32 %v7294_v4, %v6698_v5  ;;  %v8138_v7 = vpop.f32.mrb[73].mxu0 }
 0x3f6   :  { %6702 = vst [vmem:[#allocation2] sm:$0x3] %v6699_v6 }
 0x3f7   :  { %8764 = shalt.err (!%p8761_p4)
}
 0x3f8   :  { %s8765_s20 = scalar_lea.hbm %s10769_s5, 32 }
 0x3f9   :  { %p8766_p5 = scmp.ne.s32.totalorder %s10769_s5, %s8765_s20  ;;  %p8769_p6 = scmp.lt.u32.totalorder %s8765_s20, %s10769_s5 }
 0x3fb   :  { %p8771_p7 = pnand %p8769_p6, %p8766_p5 }
 0x3fd   :  { %8774 = shalt.err (!%p8771_p7)
}
 0x3fe   :  { %6712 = dma.vmem_to_hbm [thread:$0]  %s6710_s16, 32, %s10769_s5, [#allocation3]  }
 0x3ff   :  { %8775 = dma.done.wait [#allocation3], 32  }
 0x400   :  { %8776 = vsyncadd [#allocation3], 4294967264 }
 0x401   :  { %6716 = vsyncpa [#allocation3], 1 }

// kernel: net_forward.2
= control target key start
LH: loop header
LB: loop body
LE: loop exit
PB: predicated region body
PF: predicated region fallthrough
CT: control target
= control target key end

     0   :  { %vm235_vm0 = vcmask 64512   ;;  %v23684_v0 = vmov 0.0   ;;  %vm23685_vm1 = vmmov 0   ;;  %vm8561_vm2 = vcmask 261120   ;;  %s29385_s1 = inlined_call_operand.vmem [shape: f32[9,8,128], index: 1, kind: input, shape index: {}]   ;;  %s29386_s0 = inlined_call_operand.vmem [shape: f32[592,8], index: 0, kind: input, shape index: {}]   ;;  %s29387_s2 = inlined_call_operand.vmem [shape: f32[1,128], index: 2, kind: input, shape index: {}]   ;;  %s29388_s3 = inlined_call_operand.vmem [shape: f32[9,32,128], index: 3, kind: input, shape index: {}]   ;;  %s29389_s4 = inlined_call_operand.vmem [shape: f32[1,128], index: 4, kind: input, shape index: {}]   ;;  %s29390_s5 = inlined_call_operand.vmem [shape: f32[512,128], index: 5, kind: output, shape index: {}]  }
   0x1   :  { %19066 = vmatprep.subr.mxu0 %v23684_v0  ;;  %v16307_v1 = vld [vmem:[%s29385_s1 + $0x10] sm:$0xff]  ;;  %19068 = vmatprep.mubr.msk.f32.mxu0 %vm23685_vm1, %v23684_v0  ;;  %v1955_v2 = vld [vmem:[%s29386_s0 + $0x2] sm:$0xff]  ;;  %v16377_v3 = vld [vmem:[%s29385_s1 + $0x18] sm:$0xff] }
   0x2   :  { %19067 = vmatpush3.msra.mxu0 %v16307_v1  ;;  %18648 = vmatprep.subr.mxu1 %v23684_v0  ;;  %v1956_v4 = vld [vmem:[%s29386_s0 + $0xa] sm:$0xff]  ;;  %v1957_v5 = vld [vmem:[%s29386_s0 + $0x12] sm:$0xff]  ;;  %v1958_v6 = vld [vmem:[%s29386_s0 + $0x1a] sm:$0xff] }
   0x3   :  { %19069 = vmatmul.mubr.msk.f32.vlgmr.msra.gmra.mrb[0].mxu0 %vm235_vm0, %v1955_v2  ;;  %19275 = vmatprep.subr.mxu0 %v23684_v0  ;;  %v1959_v7 = vld [vmem:[%s29386_s0 + $0x22] sm:$0xff]  ;;  %v1960_v8 = vld [vmem:[%s29386_s0 + $0x2a] sm:$0xff]  ;;  %v1961_v9 = vld [vmem:[%s29386_s0 + $0x32] sm:$0xff] }
   0x4   :  { %19276 = vmatpush3.msra.mxu0 %v16377_v3  ;;  %19071 = vmatprep.mubr.msk.f32.mxu0 %vm23685_vm1, %v23684_v0  ;;  %v1962_v10 = vld [vmem:[%s29386_s0 + $0x3a] sm:$0xff]  ;;  %v1963_v11 = vld [vmem:[%s29386_s0 + $0x42] sm:$0xff]  ;;  %v1964_v12 = vld [vmem:[%s29386_s0 + $0x4a] sm:$0xff] }
   0x5   :  { %19484 = vmatprep.subr.mxu0 %v23684_v0  ;;  %18650 = vmatprep.mubr.msk.f32.mxu1 %vm23685_vm1, %v23684_v0  ;;  %v1965_v13 = vld [vmem:[%s29386_s0 + $0x52] sm:$0xff]  ;;  %v1966_v14 = vld [vmem:[%s29386_s0 + $0x5a] sm:$0xff]  ;;  %v1967_v15 = vld [vmem:[%s29386_s0 + $0x62] sm:$0xff] }
   0x6   :  { %v1968_v16 = vld [vmem:[%s29386_s0 + $0x6a] sm:$0xff]  ;;  %v1969_v17 = vld [vmem:[%s29386_s0 + $0x72] sm:$0xff]  ;;  %v1970_v18 = vld [vmem:[%s29386_s0 + $0x7a] sm:$0xff] }
   0x7   :  { %19072 = vmatmul.mubr.msk.f32.gmra.mrb[2].mxu0 %vm235_vm0, %v1956_v4  ;;  %v1971_v19 = vld [vmem:[%s29386_s0 + $0x82] sm:$0xff]  ;;  %v1972_v20 = vld [vmem:[%s29386_s0 + $0x8a] sm:$0xff]  ;;  %v1973_v21 = vld [vmem:[%s29386_s0 + $0x92] sm:$0xff] }
   0x8   :  { %19074 = vmatprep.mubr.msk.f32.mxu0 %vm23685_vm1, %v23684_v0  ;;  %v1974_v22 = vld [vmem:[%s29386_s0 + $0x9a] sm:$0xff]  ;;  %v1975_v23 = vld [vmem:[%s29386_s0 + $0xa2] sm:$0xff]  ;;  %v1976_v24 = vld [vmem:[%s29386_s0 + $0xaa] sm:$0xff] }
   0x9   :  { %v1977_v25 = vld [vmem:[%s29386_s0 + $0xb2] sm:$0xff]  ;;  %v1978_v26 = vld [vmem:[%s29386_s0 + $0xba] sm:$0xff]  ;;  %v1979_v27 = vld [vmem:[%s29386_s0 + $0xc2] sm:$0xff] }
   0xa   :  { %v1980_v28 = vld [vmem:[%s29386_s0 + $0xca] sm:$0xff]  ;;  %v1981_v29 = vld [vmem:[%s29386_s0 + $0xd2] sm:$0xff]  ;;  %v1982_v30 = vld [vmem:[%s29386_s0 + $0xda] sm:$0xff] }
   0xb   :  { %19075 = vmatmul.mubr.msk.f32.gmra.mrb[4].mxu0 %vm235_vm0, %v1957_v5  ;;  %v1983_v31 = vld [vmem:[%s29386_s0 + $0xe2] sm:$0xff]  ;;  %v1984_v32 = vld [vmem:[%s29386_s0 + $0xea] sm:$0xff]  ;;  %v1985_v33 = vld [vmem:[%s29386_s0 + $0xf2] sm:$0xff] }
   0xc   :  { %19077 = vmatprep.mubr.msk.f32.mxu0 %vm23685_vm1, %v23684_v0  ;;  %v1986_v34 = vld [vmem:[%s29386_s0 + $0xfa] sm:$0xff]  ;;  %v1987_v35 = vld [vmem:[%s29386_s0 + $0x102] sm:$0xff]  ;;  %v1988_v36 = vld [vmem:[%s29386_s0 + $0x10a] sm:$0xff] }
   0xd   :  { %v1989_v37 = vld [vmem:[%s29386_s0 + $0x112] sm:$0xff]  ;;  %v1990_v38 = vld [vmem:[%s29386_s0 + $0x11a] sm:$0xff]  ;;  %v1991_v39 = vld [vmem:[%s29386_s0 + $0x122] sm:$0xff] }
   0xe   :  { %v1992_v40 = vld [vmem:[%s29386_s0 + $0x12a] sm:$0xff]  ;;  %v1993_v41 = vld [vmem:[%s29386_s0 + $0x132] sm:$0xff]  ;;  %v1994_v42 = vld [vmem:[%s29386_s0 + $0x13a] sm:$0xff] }
   0xf   :  { %19078 = vmatmul.mubr.msk.f32.gmra.mrb[6].mxu0 %vm235_vm0, %v1958_v6  ;;  %v1995_v43 = vld [vmem:[%s29386_s0 + $0x142] sm:$0xff]  ;;  %v23979_v44 = vld [vmem:[%s29386_s0 + $0x10] sm:$0xff]  ;;  %v23991_v46 = vld [vmem:[%s29386_s0 + $0x18] sm:$0xff] }
  0x10   :  { %19080 = vmatprep.mubr.msk.f32.mxu0 %vm23685_vm1, %v23684_v0  ;;  %v16447_v45 = vld [vmem:[%s29385_s1 + $0x20] sm:$0xff]  ;;  %v24010_v48 = vld [vmem:[%s29386_s0 + $0x28] sm:$0xff]  ;;  %v24019_v49 = vld [vmem:[%s29386_s0 + $0x30] sm:$0xff] }
  0x11   :  { %v24001_v47 = vld [vmem:[%s29386_s0 + $0x20] sm:$0xff]  ;;  %v24028_v50 = vld [vmem:[%s29386_s0 + $0x38] sm:$0xff]  ;;  %v24046_v52 = vld [vmem:[%s29386_s0 + $0x48] sm:$0xff] }
  0x12   :  { %v24037_v51 = vld [vmem:[%s29386_s0 + $0x40] sm:$0xff]  ;;  %v24055_v53 = vld [vmem:[%s29386_s0 + $0x50] sm:$0xff]  ;;  %v24064_v54 = vld [vmem:[%s29386_s0 + $0x58] sm:$0xff] }
  0x13   :  { %19081 = vmatmul.mubr.msk.f32.gmra.mrb[8].mxu0 %vm235_vm0, %v1959_v7  ;;  %v24073_v55 = vld [vmem:[%s29386_s0 + $0x60] sm:$0xff]  ;;  %v24082_v56 = vld [vmem:[%s29386_s0 + $0x68] sm:$0xff]  ;;  %v24091_v57 = vld [vmem:[%s29386_s0 + $0x70] sm:$0xff] }
  0x14   :  { %19083 = vmatprep.mubr.msk.f32.mxu0 %vm23685_vm1, %v23684_v0  ;;  %v24100_v58 = vld [vmem:[%s29386_s0 + $0x78] sm:$0xff]  ;;  %v24109_v59 = vld [vmem:[%s29386_s0 + $0x80] sm:$0xff]  ;;  %v2865_v60 = vld [vmem:[%s29386_s0 + $0x88] sm:$0xff] }
  0x15   :  { %v2866_v61 = vld [vmem:[%s29386_s0 + $0x90] sm:$0xff]  ;;  %v2867_v62 = vld [vmem:[%s29386_s0 + $0x98] sm:$0xff]  ;;  %v2868_v63 = vld [vmem:[%s29386_s0 + $0xa0] sm:$0xff] }
  0x16   :  { %v2869_v1 = vld [vmem:[%s29386_s0 + $0xa8] sm:$0xff]  ;;  %v2870_v2 = vld [vmem:[%s29386_s0 + $0xb0] sm:$0xff]  ;;  %v2871_v3 = vld [vmem:[%s29386_s0 + $0xb8] sm:$0xff] }
  0x17   :  { %19084 = vmatmul.mubr.msk.f32.gmra.mrb[10].mxu0 %vm235_vm0, %v1960_v8  ;;  %v2872_v4 = vld [vmem:[%s29386_s0 + $0xc0] sm:$0xff]  ;;  %v2873_v5 = vld [vmem:[%s29386_s0 + $0xc8] sm:$0xff]  ;;  %v2874_v6 = vld [vmem:[%s29386_s0 + $0xd0] sm:$0xff] }
  0x18   :  { %19086 = vmatprep.mubr.msk.f32.mxu0 %vm23685_vm1, %v23684_v0  ;;  %v2875_v7 = vld [vmem:[%s29386_s0 + $0xd8] sm:$0xff]  ;;  %v2876_v8 = vld [vmem:[%s29386_s0 + $0xe0] sm:$0xff] }
  0x1b   :  { %19087 = vmatmul.mubr.msk.f32.gmra.mrb[12].mxu0 %vm235_vm0, %v1961_v9  ;;  %v2877_v9 = vld [vmem:[%s29386_s0 + $0xe8] sm:$0xff] }
  0x1c   :  { %19089 = vmatprep.mubr.msk.f32.mxu0 %vm23685_vm1, %v23684_v0 }
  0x1f   :  { %19090 = vmatmul.mubr.msk.f32.gmra.mrb[14].mxu0 %vm235_vm0, %v1962_v10  ;;  %v2878_v10 = vld [vmem:[%s29386_s0 + $0xf0] sm:$0xff] }
  0x20   :  { %19092 = vmatprep.mubr.msk.f32.mxu0 %vm23685_vm1, %v23684_v0 }
  0x23   :  { %19093 = vmatmul.mubr.msk.f32.gmra.mrb[16].mxu0 %vm235_vm0, %v1963_v11  ;;  %v2879_v11 = vld [vmem:[%s29386_s0 + $0xf8] sm:$0xff] }
  0x24   :  { %19095 = vmatprep.mubr.msk.f32.mxu0 %vm23685_vm1, %v23684_v0 }
  0x27   :  { %19096 = vmatmul.mubr.msk.f32.gmra.mrb[18].mxu0 %vm235_vm0, %v1964_v12  ;;  %v2880_v12 = vld [vmem:[%s29386_s0 + $0x100] sm:$0xff] }
  0x28   :  { %19098 = vmatprep.mubr.msk.f32.mxu0 %vm23685_vm1, %v23684_v0 }
  0x2b   :  { %19099 = vmatmul.mubr.msk.f32.gmra.mrb[20].mxu0 %vm235_vm0, %v1965_v13  ;;  %v2881_v13 = vld [vmem:[%s29386_s0 + $0x108] sm:$0xff] }
  0x2c   :  { %19101 = vmatprep.mubr.msk.f32.mxu0 %vm23685_vm1, %v23684_v0 }
  0x2f   :  { %19102 = vmatmul.mubr.msk.f32.gmra.mrb[22].mxu0 %vm235_vm0, %v1966_v14  ;;  %v2882_v14 = vld [vmem:[%s29386_s0 + $0x110] sm:$0xff] }
  0x30   :  { %19104 = vmatprep.mubr.msk.f32.mxu0 %vm23685_vm1, %v23684_v0 }
  0x33   :  { %19105 = vmatmul.mubr.msk.f32.gmra.mrb[24].mxu0 %vm235_vm0, %v1967_v15  ;;  %v2883_v15 = vld [vmem:[%s29386_s0 + $0x118] sm:$0xff] }
  0x34   :  { %19107 = vmatprep.mubr.msk.f32.mxu0 %vm23685_vm1, %v23684_v0 }
  0x37   :  { %19108 = vmatmul.mubr.msk.f32.gmra.mrb[26].mxu0 %vm235_vm0, %v1968_v16  ;;  %v2884_v16 = vld [vmem:[%s29386_s0 + $0x120] sm:$0xff] }
  0x38   :  { %19110 = vmatprep.mubr.msk.f32.mxu0 %vm23685_vm1, %v23684_v0 }
  0x3b   :  { %19111 = vmatmul.mubr.msk.f32.gmra.mrb[28].mxu0 %vm235_vm0, %v1969_v17  ;;  %v2885_v17 = vld [vmem:[%s29386_s0 + $0x128] sm:$0xff] }
  0x3c   :  { %19113 = vmatprep.mubr.msk.f32.mxu0 %vm23685_vm1, %v23684_v0 }
  0x3f   :  { %19114 = vmatmul.mubr.msk.f32.gmra.mrb[30].mxu0 %vm235_vm0, %v1970_v18  ;;  %v2886_v18 = vld [vmem:[%s29386_s0 + $0x130] sm:$0xff] }
  0x40   :  { %19116 = vmatprep.mubr.msk.f32.mxu0 %vm23685_vm1, %v23684_v0 }
  0x43   :  { %19117 = vmatmul.mubr.msk.f32.gmra.mrb[32].mxu0 %vm235_vm0, %v1971_v19  ;;  %v2887_v19 = vld [vmem:[%s29386_s0 + $0x138] sm:$0xff] }
  0x44   :  { %19119 = vmatprep.mubr.msk.f32.mxu0 %vm23685_vm1, %v23684_v0 }
  0x47   :  { %19120 = vmatmul.mubr.msk.f32.gmra.mrb[34].mxu0 %vm235_vm0, %v1972_v20  ;;  %v2888_v20 = vld [vmem:[%s29386_s0 + $0x140] sm:$0xff] }
  0x48   :  { %19122 = vmatprep.mubr.msk.f32.mxu0 %vm23685_vm1, %v23684_v0 }
  0x4b   :  { %19123 = vmatmul.mubr.msk.f32.gmra.mrb[36].mxu0 %vm235_vm0, %v1973_v21  ;;  %v2889_v21 = vld [vmem:[%s29386_s0 + $0x148] sm:$0xff] }
  0x4c   :  { %19125 = vmatprep.mubr.msk.f32.mxu0 %vm23685_vm1, %v23684_v0 }
  0x4f   :  { %19126 = vmatmul.mubr.msk.f32.gmra.mrb[38].mxu0 %vm235_vm0, %v1974_v22  ;;  %v2890_v22 = vld [vmem:[%s29386_s0 + $0x150] sm:$0xff] }
  0x50   :  { %19128 = vmatprep.mubr.msk.f32.mxu0 %vm23685_vm1, %v23684_v0 }
  0x53   :  { %19129 = vmatmul.mubr.msk.f32.gmra.mrb[40].mxu0 %vm235_vm0, %v1975_v23  ;;  %v2891_v23 = vld [vmem:[%s29386_s0 + $0x158] sm:$0xff] }
  0x54   :  { %19131 = vmatprep.mubr.msk.f32.mxu0 %vm23685_vm1, %v23684_v0 }
  0x57   :  { %19132 = vmatmul.mubr.msk.f32.gmra.mrb[42].mxu0 %vm235_vm0, %v1976_v24  ;;  %v2892_v24 = vld [vmem:[%s29386_s0 + $0x160] sm:$0xff] }
  0x58   :  { %19134 = vmatprep.mubr.msk.f32.mxu0 %vm23685_vm1, %v23684_v0 }
  0x5b   :  { %19135 = vmatmul.mubr.msk.f32.gmra.mrb[44].mxu0 %vm235_vm0, %v1977_v25  ;;  %v2893_v25 = vld [vmem:[%s29386_s0 + $0x168] sm:$0xff] }
  0x5c   :  { %19137 = vmatprep.mubr.msk.f32.mxu0 %vm23685_vm1, %v23684_v0 }
  0x5f   :  { %19138 = vmatmul.mubr.msk.f32.gmra.mrb[46].mxu0 %vm235_vm0, %v1978_v26  ;;  %v2894_v26 = vld [vmem:[%s29386_s0 + $0x170] sm:$0xff] }
  0x60   :  { %19140 = vmatprep.mubr.msk.f32.mxu0 %vm23685_vm1, %v23684_v0 }
  0x63   :  { %19141 = vmatmul.mubr.msk.f32.gmra.mrb[48].mxu0 %vm235_vm0, %v1979_v27  ;;  %v2895_v27 = vld [vmem:[%s29386_s0 + $0x178] sm:$0xff] }
  0x64   :  { %19143 = vmatprep.mubr.msk.f32.mxu0 %vm23685_vm1, %v23684_v0 }
  0x67   :  { %19144 = vmatmul.mubr.msk.f32.gmra.mrb[50].mxu0 %vm235_vm0, %v1980_v28  ;;  %v2896_v28 = vld [vmem:[%s29386_s0 + $0x180] sm:$0xff] }
  0x68   :  { %19146 = vmatprep.mubr.msk.f32.mxu0 %vm23685_vm1, %v23684_v0 }
  0x6b   :  { %19147 = vmatmul.mubr.msk.f32.gmra.mrb[52].mxu0 %vm235_vm0, %v1981_v29  ;;  %v2897_v29 = vld [vmem:[%s29386_s0 + $0x188] sm:$0xff] }
  0x6c   :  { %19149 = vmatprep.mubr.msk.f32.mxu0 %vm23685_vm1, %v23684_v0 }
  0x6f   :  { %19150 = vmatmul.mubr.msk.f32.gmra.mrb[54].mxu0 %vm235_vm0, %v1982_v30  ;;  %v2898_v30 = vld [vmem:[%s29386_s0 + $0x190] sm:$0xff] }
  0x70   :  { %19152 = vmatprep.mubr.msk.f32.mxu0 %vm23685_vm1, %v23684_v0 }
  0x73   :  { %19153 = vmatmul.mubr.msk.f32.gmra.mrb[56].mxu0 %vm235_vm0, %v1983_v31  ;;  %v2899_v31 = vld [vmem:[%s29386_s0 + $0x198] sm:$0xff] }
  0x74   :  { %19155 = vmatprep.mubr.msk.f32.mxu0 %vm23685_vm1, %v23684_v0 }
  0x77   :  { %19156 = vmatmul.mubr.msk.f32.gmra.mrb[58].mxu0 %vm235_vm0, %v1984_v32  ;;  %v2900_v32 = vld [vmem:[%s29386_s0 + $0x1a0] sm:$0xff] }
  0x78   :  { %19158 = vmatprep.mubr.msk.f32.mxu0 %vm23685_vm1, %v23684_v0 }
  0x7b   :  { %19159 = vmatmul.mubr.msk.f32.gmra.mrb[60].mxu0 %vm235_vm0, %v1985_v33  ;;  %v2901_v33 = vld [vmem:[%s29386_s0 + $0x1a8] sm:$0xff] }
  0x7c   :  { %19161 = vmatprep.mubr.msk.f32.mxu0 %vm23685_vm1, %v23684_v0 }
  0x7f   :  { %19162 = vmatmul.mubr.msk.f32.gmra.mrb[62].mxu0 %vm235_vm0, %v1986_v34  ;;  %v2902_v34 = vld [vmem:[%s29386_s0 + $0x1b0] sm:$0xff] }
  0x80   :  { %19164 = vmatprep.mubr.msk.f32.mxu0 %vm23685_vm1, %v23684_v0 }
  0x83   :  { %19165 = vmatmul.mubr.msk.f32.gmra.mrb[64].mxu0 %vm235_vm0, %v1987_v35  ;;  %v2903_v35 = vld [vmem:[%s29386_s0 + $0x1b8] sm:$0xff] }
  0x84   :  { %19167 = vmatprep.mubr.msk.f32.mxu0 %vm23685_vm1, %v23684_v0 }
  0x87   :  { %19168 = vmatmul.mubr.msk.f32.gmra.mrb[66].mxu0 %vm235_vm0, %v1988_v36  ;;  %v2904_v36 = vld [vmem:[%s29386_s0 + $0x1c0] sm:$0xff] }
  0x88   :  { %19170 = vmatprep.mubr.msk.f32.mxu0 %vm23685_vm1, %v23684_v0 }
  0x8b   :  { %19171 = vmatmul.mubr.msk.f32.gmra.mrb[68].mxu0 %vm235_vm0, %v1989_v37  ;;  %v2905_v37 = vld [vmem:[%s29386_s0 + $0x1c8] sm:$0xff] }
  0x8c   :  { %19173 = vmatprep.mubr.msk.f32.mxu0 %vm23685_vm1, %v23684_v0 }
  0x8f   :  { %19174 = vmatmul.mubr.msk.f32.gmra.mrb[70].mxu0 %vm235_vm0, %v1990_v38  ;;  %v2906_v38 = vld [vmem:[%s29386_s0 + $0x1d0] sm:$0xff] }
  0x90   :  { %19176 = vmatprep.mubr.msk.f32.mxu0 %vm23685_vm1, %v23684_v0 }
  0x93   :  { %19177 = vmatmul.mubr.msk.f32.gmra.mrb[72].mxu0 %vm235_vm0, %v1991_v39  ;;  %v2907_v39 = vld [vmem:[%s29386_s0 + $0x1d8] sm:$0xff] }
  0x94   :  { %19179 = vmatprep.mubr.msk.f32.mxu0 %vm23685_vm1, %v23684_v0 }
  0x97   :  { %19180 = vmatmul.mubr.msk.f32.gmra.mrb[74].mxu0 %vm235_vm0, %v1992_v40  ;;  %v2908_v40 = vld [vmem:[%s29386_s0 + $0x1e0] sm:$0xff] }
  0x98   :  { %19182 = vmatprep.mubr.msk.f32.mxu0 %vm23685_vm1, %v23684_v0 }
  0x9b   :  { %19183 = vmatmul.mubr.msk.f32.gmra.mrb[76].mxu0 %vm235_vm0, %v1993_v41  ;;  %v2909_v41 = vld [vmem:[%s29386_s0 + $0x1e8] sm:$0xff] }
  0x9c   :  { %19185 = vmatprep.mubr.msk.f32.mxu0 %vm23685_vm1, %v23684_v0 }
  0x9f   :  { %19186 = vmatmul.mubr.msk.f32.gmra.mrb[78].mxu0 %vm235_vm0, %v1994_v42  ;;  %v2910_v42 = vld [vmem:[%s29386_s0 + $0x1f0] sm:$0xff] }
  0xa0   :  { %19188 = vmatprep.mubr.msk.f32.mxu0 %vm23685_vm1, %v23684_v0 }
  0xa3   :  { %19189 = vmatmul.mubr.msk.f32.gmra.mrb[80].mxu0 %vm235_vm0, %v1995_v43  ;;  %v2911_v43 = vld [vmem:[%s29386_s0 + $0x1f8] sm:$0xff] }
  0xa4   :  { %19277 = vmatprep.mubr.msk.f32.mxu0 %vm23685_vm1, %v23684_v0 }
  0xa7   :  { %19278 = vmatmul.mubr.msk.f32.vlgmr.msra.gmra.mrb[0].mxu0 %vm235_vm0, %v23979_v44 }
  0xa8   :  { %19485 = vmatpush3.msra.mxu0 %v16447_v45  ;;  %19280 = vmatprep.mubr.msk.f32.mxu0 %vm23685_vm1, %v23684_v0  ;;  %v2912_v45 = vld [vmem:[%s29386_s0 + $0x200] sm:$0xff] }
  0xa9   :  { %19693 = vmatprep.subr.mxu0 %v23684_v0 }
  0xab   :  { %19281 = vmatmul.mubr.msk.f32.gmra.mrb[2].mxu0 %vm235_vm0, %v23991_v46 }
  0xac   :  { %19283 = vmatprep.mubr.msk.f32.mxu0 %vm23685_vm1, %v23684_v0 }
  0xaf   :  { %19284 = vmatmul.mubr.msk.f32.gmra.mrb[4].mxu0 %vm235_vm0, %v24001_v47 }
  0xb0   :  { %19286 = vmatprep.mubr.msk.f32.mxu0 %vm23685_vm1, %v23684_v0 }
  0xb3   :  { %19287 = vmatmul.mubr.msk.f32.gmra.mrb[6].mxu0 %vm235_vm0, %v24010_v48 }
  0xb4   :  { %19289 = vmatprep.mubr.msk.f32.mxu0 %vm23685_vm1, %v23684_v0 }
  0xb7   :  { %19290 = vmatmul.mubr.msk.f32.gmra.mrb[8].mxu0 %vm235_vm0, %v24019_v49 }
  0xb8   :  { %19292 = vmatprep.mubr.msk.f32.mxu0 %vm23685_vm1, %v23684_v0 }
  0xbb   :  { %19293 = vmatmul.mubr.msk.f32.gmra.mrb[10].mxu0 %vm235_vm0, %v24028_v50 }
  0xbc   :  { %19295 = vmatprep.mubr.msk.f32.mxu0 %vm23685_vm1, %v23684_v0 }
  0xbf   :  { %19296 = vmatmul.mubr.msk.f32.gmra.mrb[12].mxu0 %vm235_vm0, %v24037_v51 }
  0xc0   :  { %19298 = vmatprep.mubr.msk.f32.mxu0 %vm23685_vm1, %v23684_v0 }
  0xc3   :  { %19299 = vmatmul.mubr.msk.f32.gmra.mrb[14].mxu0 %vm235_vm0, %v24046_v52 }
  0xc4   :  { %19301 = vmatprep.mubr.msk.f32.mxu0 %vm23685_vm1, %v23684_v0 }
  0xc7   :  { %19302 = vmatmul.mubr.msk.f32.gmra.mrb[16].mxu0 %vm235_vm0, %v24055_v53 }
  0xc8   :  { %19304 = vmatprep.mubr.msk.f32.mxu0 %vm23685_vm1, %v23684_v0 }
  0xcb   :  { %19305 = vmatmul.mubr.msk.f32.gmra.mrb[18].mxu0 %vm235_vm0, %v24064_v54 }
  0xcc   :  { %19307 = vmatprep.mubr.msk.f32.mxu0 %vm23685_vm1, %v23684_v0 }
  0xcf   :  { %19308 = vmatmul.mubr.msk.f32.gmra.mrb[20].mxu0 %vm235_vm0, %v24073_v55 }
  0xd0   :  { %19310 = vmatprep.mubr.msk.f32.mxu0 %vm23685_vm1, %v23684_v0 }
  0xd3   :  { %19311 = vmatmul.mubr.msk.f32.gmra.mrb[22].mxu0 %vm235_vm0, %v24082_v56 }
  0xd4   :  { %19313 = vmatprep.mubr.msk.f32.mxu0 %vm23685_vm1, %v23684_v0 }
  0xd7   :  { %19314 = vmatmul.mubr.msk.f32.gmra.mrb[24].mxu0 %vm235_vm0, %v24091_v57 }
  0xd8   :  { %19316 = vmatprep.mubr.msk.f32.mxu0 %vm23685_vm1, %v23684_v0 }
  0xdb   :  { %19317 = vmatmul.mubr.msk.f32.gmra.mrb[26].mxu0 %vm235_vm0, %v24100_v58 }
  0xdc   :  { %19319 = vmatprep.mubr.msk.f32.mxu0 %vm23685_vm1, %v23684_v0 }
  0xdf   :  { %19320 = vmatmul.mubr.msk.f32.gmra.mrb[28].mxu0 %vm235_vm0, %v24109_v59 }
  0xe0   :  { %19322 = vmatprep.mubr.msk.f32.mxu0 %vm23685_vm1, %v23684_v0 }
  0xe3   :  { %19323 = vmatmul.mubr.msk.f32.gmra.mrb[30].mxu0 %vm235_vm0, %v2865_v60  ;;  %v2913_v60 = vld [vmem:[%s29386_s0 + $0x208] sm:$0xff] }
  0xe4   :  { %19325 = vmatprep.mubr.msk.f32.mxu0 %vm23685_vm1, %v23684_v0 }
  0xe7   :  { %19326 = vmatmul.mubr.msk.f32.gmra.mrb[32].mxu0 %vm235_vm0, %v2866_v61  ;;  %v2914_v61 = vld [vmem:[%s29386_s0 + $0x210] sm:$0xff] }
  0xe8   :  { %19328 = vmatprep.mubr.msk.f32.mxu0 %vm23685_vm1, %v23684_v0 }
  0xeb   :  { %19329 = vmatmul.mubr.msk.f32.gmra.mrb[34].mxu0 %vm235_vm0, %v2867_v62  ;;  %v2915_v62 = vld [vmem:[%s29386_s0 + $0x218] sm:$0xff] }
  0xec   :  { %19331 = vmatprep.mubr.msk.f32.mxu0 %vm23685_vm1, %v23684_v0 }
  0xef   :  { %19332 = vmatmul.mubr.msk.f32.gmra.mrb[36].mxu0 %vm235_vm0, %v2868_v63  ;;  %v2916_v63 = vld [vmem:[%s29386_s0 + $0x220] sm:$0xff] }
  0xf0   :  { %19334 = vmatprep.mubr.msk.f32.mxu0 %vm23685_vm1, %v23684_v0 }
  0xf3   :  { %19335 = vmatmul.mubr.msk.f32.gmra.mrb[38].mxu0 %vm235_vm0, %v2869_v1  ;;  %v2917_v1 = vld [vmem:[%s29386_s0 + $0x228] sm:$0xff] }
  0xf4   :  { %19337 = vmatprep.mubr.msk.f32.mxu0 %vm23685_vm1, %v23684_v0 }
  0xf7   :  { %19338 = vmatmul.mubr.msk.f32.gmra.mrb[40].mxu0 %vm235_vm0, %v2870_v2  ;;  %v2918_v2 = vld [vmem:[%s29386_s0 + $0x230] sm:$0xff] }
  0xf8   :  { %19340 = vmatprep.mubr.msk.f32.mxu0 %vm23685_vm1, %v23684_v0 }
  0xfb   :  { %19341 = vmatmul.mubr.msk.f32.gmra.mrb[42].mxu0 %vm235_vm0, %v2871_v3  ;;  %v3745_v3 = vld [vmem:[%s29386_s0 + $0x11] sm:$0xff] }
  0xfc   :  { %19343 = vmatprep.mubr.msk.f32.mxu0 %vm23685_vm1, %v23684_v0 }
  0xff   :  { %19344 = vmatmul.mubr.msk.f32.gmra.mrb[44].mxu0 %vm235_vm0, %v2872_v4  ;;  %v16517_v4 = vld [vmem:[%s29385_s1 + $0x28] sm:$0xff] }
 0x100   :  { %19346 = vmatprep.mubr.msk.f32.mxu0 %vm23685_vm1, %v23684_v0 }
 0x103   :  { %19347 = vmatmul.mubr.msk.f32.gmra.mrb[46].mxu0 %vm235_vm0, %v2873_v5  ;;  %v3746_v5 = vld [vmem:[%s29386_s0 + $0x19] sm:$0xff] }
 0x104   :  { %19349 = vmatprep.mubr.msk.f32.mxu0 %vm23685_vm1, %v23684_v0 }
 0x107   :  { %19350 = vmatmul.mubr.msk.f32.gmra.mrb[48].mxu0 %vm235_vm0, %v2874_v6  ;;  %v3747_v6 = vld [vmem:[%s29386_s0 + $0x21] sm:$0xff] }
 0x108   :  { %19352 = vmatprep.mubr.msk.f32.mxu0 %vm23685_vm1, %v23684_v0 }
 0x10b   :  { %19353 = vmatmul.mubr.msk.f32.gmra.mrb[50].mxu0 %vm235_vm0, %v2875_v7  ;;  %v3748_v7 = vld [vmem:[%s29386_s0 + $0x29] sm:$0xff] }
 0x10c   :  { %19355 = vmatprep.mubr.msk.f32.mxu0 %vm23685_vm1, %v23684_v0 }
 0x10f   :  { %19356 = vmatmul.mubr.msk.f32.gmra.mrb[52].mxu0 %vm235_vm0, %v2876_v8  ;;  %v3749_v8 = vld [vmem:[%s29386_s0 + $0x31] sm:$0xff] }
 0x110   :  { %19358 = vmatprep.mubr.msk.f32.mxu0 %vm23685_vm1, %v23684_v0 }
 0x113   :  { %19359 = vmatmul.mubr.msk.f32.gmra.mrb[54].mxu0 %vm235_vm0, %v2877_v9  ;;  %v3750_v9 = vld [vmem:[%s29386_s0 + $0x39] sm:$0xff] }
 0x114   :  { %19361 = vmatprep.mubr.msk.f32.mxu0 %vm23685_vm1, %v23684_v0 }
 0x117   :  { %19362 = vmatmul.mubr.msk.f32.gmra.mrb[56].mxu0 %vm235_vm0, %v2878_v10  ;;  %v3751_v10 = vld [vmem:[%s29386_s0 + $0x41] sm:$0xff] }
 0x118   :  { %19364 = vmatprep.mubr.msk.f32.mxu0 %vm23685_vm1, %v23684_v0 }
 0x11b   :  { %19365 = vmatmul.mubr.msk.f32.gmra.mrb[58].mxu0 %vm235_vm0, %v2879_v11  ;;  %v3752_v11 = vld [vmem:[%s29386_s0 + $0x49] sm:$0xff] }
 0x11c   :  { %19367 = vmatprep.mubr.msk.f32.mxu0 %vm23685_vm1, %v23684_v0 }
 0x11f   :  { %19368 = vmatmul.mubr.msk.f32.gmra.mrb[60].mxu0 %vm235_vm0, %v2880_v12  ;;  %v3753_v12 = vld [vmem:[%s29386_s0 + $0x51] sm:$0xff] }
 0x120   :  { %19370 = vmatprep.mubr.msk.f32.mxu0 %vm23685_vm1, %v23684_v0 }
 0x123   :  { %19371 = vmatmul.mubr.msk.f32.gmra.mrb[62].mxu0 %vm235_vm0, %v2881_v13  ;;  %v3754_v13 = vld [vmem:[%s29386_s0 + $0x59] sm:$0xff] }
 0x124   :  { %19373 = vmatprep.mubr.msk.f32.mxu0 %vm23685_vm1, %v23684_v0 }
 0x127   :  { %19374 = vmatmul.mubr.msk.f32.gmra.mrb[64].mxu0 %vm235_vm0, %v2882_v14  ;;  %v3755_v14 = vld [vmem:[%s29386_s0 + $0x61] sm:$0xff] }
 0x128   :  { %19376 = vmatprep.mubr.msk.f32.mxu0 %vm23685_vm1, %v23684_v0 }
 0x12b   :  { %19377 = vmatmul.mubr.msk.f32.gmra.mrb[66].mxu0 %vm235_vm0, %v2883_v15  ;;  %v3756_v15 = vld [vmem:[%s29386_s0 + $0x69] sm:$0xff] }
 0x12c   :  { %19379 = vmatprep.mubr.msk.f32.mxu0 %vm23685_vm1, %v23684_v0 }
 0x12f   :  { %19380 = vmatmul.mubr.msk.f32.gmra.mrb[68].mxu0 %vm235_vm0, %v2884_v16  ;;  %v3757_v16 = vld [vmem:[%s29386_s0 + $0x71] sm:$0xff] }
 0x130   :  { %19382 = vmatprep.mubr.msk.f32.mxu0 %vm23685_vm1, %v23684_v0 }
 0x133   :  { %19383 = vmatmul.mubr.msk.f32.gmra.mrb[70].mxu0 %vm235_vm0, %v2885_v17  ;;  %v3758_v17 = vld [vmem:[%s29386_s0 + $0x79] sm:$0xff] }
 0x134   :  { %19385 = vmatprep.mubr.msk.f32.mxu0 %vm23685_vm1, %v23684_v0 }
 0x137   :  { %19386 = vmatmul.mubr.msk.f32.gmra.mrb[72].mxu0 %vm235_vm0, %v2886_v18  ;;  %v3759_v18 = vld [vmem:[%s29386_s0 + $0x81] sm:$0xff] }
 0x138   :  { %19388 = vmatprep.mubr.msk.f32.mxu0 %vm23685_vm1, %v23684_v0 }
 0x13b   :  { %19389 = vmatmul.mubr.msk.f32.gmra.mrb[74].mxu0 %vm235_vm0, %v2887_v19  ;;  %v3760_v19 = vld [vmem:[%s29386_s0 + $0x89] sm:$0xff] }
 0x13c   :  { %19391 = vmatprep.mubr.msk.f32.mxu0 %vm23685_vm1, %v23684_v0 }
 0x13f   :  { %19392 = vmatmul.mubr.msk.f32.gmra.mrb[76].mxu0 %vm235_vm0, %v2888_v20  ;;  %v3761_v20 = vld [vmem:[%s29386_s0 + $0x91] sm:$0xff] }
 0x140   :  { %19394 = vmatprep.mubr.msk.f32.mxu0 %vm23685_vm1, %v23684_v0 }
 0x143   :  { %19395 = vmatmul.mubr.msk.f32.gmra.mrb[78].mxu0 %vm235_vm0, %v2889_v21  ;;  %v3762_v21 = vld [vmem:[%s29386_s0 + $0x99] sm:$0xff] }
 0x144   :  { %19397 = vmatprep.mubr.msk.f32.mxu0 %vm23685_vm1, %v23684_v0 }
 0x147   :  { %19398 = vmatmul.mubr.msk.f32.gmra.mrb[80].mxu0 %vm235_vm0, %v2890_v22  ;;  %v3763_v22 = vld [vmem:[%s29386_s0 + $0xa1] sm:$0xff] }
 0x148   :  { %19400 = vmatprep.mubr.msk.f32.mxu0 %vm23685_vm1, %v23684_v0 }
 0x14b   :  { %19401 = vmatmul.mubr.msk.f32.gmra.mrb[82].mxu0 %vm235_vm0, %v2891_v23  ;;  %v3764_v23 = vld [vmem:[%s29386_s0 + $0xa9] sm:$0xff] }
 0x14c   :  { %19403 = vmatprep.mubr.msk.f32.mxu0 %vm23685_vm1, %v23684_v0 }
 0x14f   :  { %19404 = vmatmul.mubr.msk.f32.gmra.mrb[84].mxu0 %vm235_vm0, %v2892_v24  ;;  %v3765_v24 = vld [vmem:[%s29386_s0 + $0xb1] sm:$0xff] }
 0x150   :  { %19406 = vmatprep.mubr.msk.f32.mxu0 %vm23685_vm1, %v23684_v0 }
 0x153   :  { %19407 = vmatmul.mubr.msk.f32.gmra.mrb[86].mxu0 %vm235_vm0, %v2893_v25  ;;  %v3766_v25 = vld [vmem:[%s29386_s0 + $0xb9] sm:$0xff] }
 0x154   :  { %19409 = vmatprep.mubr.msk.f32.mxu0 %vm23685_vm1, %v23684_v0 }
 0x157   :  { %19410 = vmatmul.mubr.msk.f32.gmra.mrb[88].mxu0 %vm235_vm0, %v2894_v26  ;;  %v3767_v26 = vld [vmem:[%s29386_s0 + $0xc1] sm:$0xff] }
 0x158   :  { %19412 = vmatprep.mubr.msk.f32.mxu0 %vm23685_vm1, %v23684_v0 }
 0x15b   :  { %19413 = vmatmul.mubr.msk.f32.gmra.mrb[90].mxu0 %vm235_vm0, %v2895_v27  ;;  %v3768_v27 = vld [vmem:[%s29386_s0 + $0xc9] sm:$0xff] }
 0x15c   :  { %19415 = vmatprep.mubr.msk.f32.mxu0 %vm23685_vm1, %v23684_v0 }
 0x15f   :  { %19416 = vmatmul.mubr.msk.f32.gmra.mrb[92].mxu0 %vm235_vm0, %v2896_v28  ;;  %v3769_v28 = vld [vmem:[%s29386_s0 + $0xd1] sm:$0xff] }
 0x160   :  { %19418 = vmatprep.mubr.msk.f32.mxu0 %vm23685_vm1, %v23684_v0 }
 0x163   :  { %19419 = vmatmul.mubr.msk.f32.gmra.mrb[94].mxu0 %vm235_vm0, %v2897_v29  ;;  %v3770_v29 = vld [vmem:[%s29386_s0 + $0xd9] sm:$0xff] }
 0x164   :  { %19421 = vmatprep.mubr.msk.f32.mxu0 %vm23685_vm1, %v23684_v0 }
 0x167   :  { %19422 = vmatmul.mubr.msk.f32.gmra.mrb[96].mxu0 %vm235_vm0, %v2898_v30  ;;  %v3771_v30 = vld [vmem:[%s29386_s0 + $0xe1] sm:$0xff] }
 0x168   :  { %19424 = vmatprep.mubr.msk.f32.mxu0 %vm23685_vm1, %v23684_v0 }
 0x16b   :  { %19425 = vmatmul.mubr.msk.f32.gmra.mrb[98].mxu0 %vm235_vm0, %v2899_v31  ;;  %v3772_v31 = vld [vmem:[%s29386_s0 + $0xe9] sm:$0xff] }
 0x16c   :  { %19427 = vmatprep.mubr.msk.f32.mxu0 %vm23685_vm1, %v23684_v0 }
 0x16f   :  { %19428 = vmatmul.mubr.msk.f32.gmra.mrb[100].mxu0 %vm235_vm0, %v2900_v32  ;;  %v3773_v32 = vld [vmem:[%s29386_s0 + $0xf1] sm:$0xff] }
 0x170   :  { %19430 = vmatprep.mubr.msk.f32.mxu0 %vm23685_vm1, %v23684_v0 }
 0x173   :  { %19431 = vmatmul.mubr.msk.f32.gmra.mrb[102].mxu0 %vm235_vm0, %v2901_v33  ;;  %v3774_v33 = vld [vmem:[%s29386_s0 + $0xf9] sm:$0xff] }
 0x174   :  { %19433 = vmatprep.mubr.msk.f32.mxu0 %vm23685_vm1, %v23684_v0 }
 0x177   :  { %19434 = vmatmul.mubr.msk.f32.gmra.mrb[104].mxu0 %vm235_vm0, %v2902_v34  ;;  %v3775_v34 = vld [vmem:[%s29386_s0 + $0x101] sm:$0xff] }
 0x178   :  { %19436 = vmatprep.mubr.msk.f32.mxu0 %vm23685_vm1, %v23684_v0 }
 0x17b   :  { %19437 = vmatmul.mubr.msk.f32.gmra.mrb[106].mxu0 %vm235_vm0, %v2903_v35  ;;  %v3776_v35 = vld [vmem:[%s29386_s0 + $0x109] sm:$0xff] }
 0x17c   :  { %19439 = vmatprep.mubr.msk.f32.mxu0 %vm23685_vm1, %v23684_v0 }
 0x17f   :  { %19440 = vmatmul.mubr.msk.f32.gmra.mrb[108].mxu0 %vm235_vm0, %v2904_v36  ;;  %v3777_v36 = vld [vmem:[%s29386_s0 + $0x111] sm:$0xff] }
 0x180   :  { %19442 = vmatprep.mubr.msk.f32.mxu0 %vm23685_vm1, %v23684_v0 }
 0x183   :  { %19443 = vmatmul.mubr.msk.f32.gmra.mrb[110].mxu0 %vm235_vm0, %v2905_v37  ;;  %v3778_v37 = vld [vmem:[%s29386_s0 + $0x119] sm:$0xff] }
 0x184   :  { %19445 = vmatprep.mubr.msk.f32.mxu0 %vm23685_vm1, %v23684_v0 }
 0x187   :  { %19446 = vmatmul.mubr.msk.f32.gmra.mrb[112].mxu0 %vm235_vm0, %v2906_v38  ;;  %v3779_v38 = vld [vmem:[%s29386_s0 + $0x121] sm:$0xff] }
 0x188   :  { %19448 = vmatprep.mubr.msk.f32.mxu0 %vm23685_vm1, %v23684_v0 }
 0x18b   :  { %19449 = vmatmul.mubr.msk.f32.gmra.mrb[114].mxu0 %vm235_vm0, %v2907_v39  ;;  %v3780_v39 = vld [vmem:[%s29386_s0 + $0x129] sm:$0xff] }
 0x18c   :  { %19451 = vmatprep.mubr.msk.f32.mxu0 %vm23685_vm1, %v23684_v0 }
 0x18f   :  { %19452 = vmatmul.mubr.msk.f32.gmra.mrb[116].mxu0 %vm235_vm0, %v2908_v40  ;;  %v3781_v40 = vld [vmem:[%s29386_s0 + $0x131] sm:$0xff] }
 0x190   :  { %19454 = vmatprep.mubr.msk.f32.mxu0 %vm23685_vm1, %v23684_v0 }
 0x193   :  { %19455 = vmatmul.mubr.msk.f32.gmra.mrb[118].mxu0 %vm235_vm0, %v2909_v41  ;;  %v3782_v41 = vld [vmem:[%s29386_s0 + $0x139] sm:$0xff] }
 0x194   :  { %19457 = vmatprep.mubr.msk.f32.mxu0 %vm23685_vm1, %v23684_v0 }
 0x197   :  { %19458 = vmatmul.mubr.msk.f32.gmra.mrb[120].mxu0 %vm235_vm0, %v2910_v42  ;;  %v3783_v42 = vld [vmem:[%s29386_s0 + $0x141] sm:$0xff] }
 0x198   :  { %19460 = vmatprep.mubr.msk.f32.mxu0 %vm23685_vm1, %v23684_v0 }
 0x19b   :  { %19461 = vmatmul.mubr.msk.f32.gmra.mrb[122].mxu0 %vm235_vm0, %v2911_v43  ;;  %v3784_v43 = vld [vmem:[%s29386_s0 + $0x149] sm:$0xff] }
 0x19c   :  { %19463 = vmatprep.mubr.msk.f32.mxu0 %vm23685_vm1, %v23684_v0 }
 0x19f   :  { %19464 = vmatmul.mubr.msk.f32.gmra.mrb[124].mxu0 %vm235_vm0, %v2912_v45  ;;  %v3785_v45 = vld [vmem:[%s29386_s0 + $0x151] sm:$0xff] }
 0x1a0   :  { %19466 = vmatprep.mubr.msk.f32.mxu0 %vm23685_vm1, %v23684_v0 }
 0x1a3   :  { %19467 = vmatmul.mubr.msk.f32.gmra.mrb[126].mxu0 %vm235_vm0, %v2913_v60  ;;  %v3786_v60 = vld [vmem:[%s29386_s0 + $0x159] sm:$0xff] }
 0x1a4   :  { %19469 = vmatprep.mubr.msk.f32.mxu0 %vm23685_vm1, %v23684_v0 }
 0x1a7   :  { %19470 = vmatmul.mubr.msk.f32.gmra.mrb[128].mxu0 %vm235_vm0, %v2914_v61  ;;  %v3787_v61 = vld [vmem:[%s29386_s0 + $0x161] sm:$0xff] }
 0x1a8   :  { %19472 = vmatprep.mubr.msk.f32.mxu0 %vm23685_vm1, %v23684_v0 }
 0x1ab   :  { %19473 = vmatmul.mubr.msk.f32.gmra.mrb[130].mxu0 %vm235_vm0, %v2915_v62  ;;  %v3788_v62 = vld [vmem:[%s29386_s0 + $0x169] sm:$0xff] }
 0x1ac   :  { %19475 = vmatprep.mubr.msk.f32.mxu0 %vm23685_vm1, %v23684_v0 }
 0x1af   :  { %19476 = vmatmul.mubr.msk.f32.gmra.mrb[132].mxu0 %vm235_vm0, %v2916_v63  ;;  %v3789_v63 = vld [vmem:[%s29386_s0 + $0x171] sm:$0xff] }
 0x1b0   :  { %19478 = vmatprep.mubr.msk.f32.mxu0 %vm23685_vm1, %v23684_v0 }
 0x1b3   :  { %19479 = vmatmul.mubr.msk.f32.gmra.mrb[134].mxu0 %vm235_vm0, %v2917_v1  ;;  %v3790_v1 = vld [vmem:[%s29386_s0 + $0x179] sm:$0xff] }
 0x1b4   :  { %19481 = vmatprep.mubr.msk.f32.mxu0 %vm23685_vm1, %v23684_v0 }
 0x1b7   :  { %19482 = vmatmul.mubr.msk.f32.gmra.mrb[136].mxu0 %vm235_vm0, %v2918_v2  ;;  %v3791_v2 = vld [vmem:[%s29386_s0 + $0x181] sm:$0xff] }
 0x1b8   :  { %19486 = vmatprep.mubr.msk.f32.mxu0 %vm23685_vm1, %v23684_v0 }
 0x1bb   :  { %19487 = vmatmul.mubr.msk.f32.vlgmr.msra.gmra.mrb[0].mxu0 %vm235_vm0, %v3745_v3  ;;  %v3792_v3 = vld [vmem:[%s29386_s0 + $0x189] sm:$0xff] }
 0x1bc   :  { %19694 = vmatpush3.msra.mxu0 %v16517_v4  ;;  %19489 = vmatprep.mubr.msk.f32.mxu0 %vm23685_vm1, %v23684_v0  ;;  %v234_v4 = vld [vmem:[%s29385_s1] sm:$0xff] }
 0x1bd   :  { %19902 = vmatprep.subr.mxu0 %v23684_v0  ;;  %18649 = vmatpush3.msra.mxu1 %v234_v4  ;;  %v25181_v4 = vld [vmem:[%s29386_s0 + $0x130] sm:$0xff] }
 0x1be   :  { %18857 = vmatprep.subr.mxu1 %v23684_v0 }
 0x1bf   :  { %19490 = vmatmul.mubr.msk.f32.gmra.mrb[2].mxu0 %vm235_vm0, %v3746_v5  ;;  %v165_v5 = vld [vmem:[%s29386_s0] sm:$0xff] }
 0x1c0   :  { %19492 = vmatprep.mubr.msk.f32.mxu0 %vm23685_vm1, %v23684_v0  ;;  %18651 = vmatmul.mubr.msk.f32.vlgmr.msra.gmra.mrb[0].mxu1 %vm235_vm0, %v165_v5  ;;  %v4657_v5 = vld [vmem:[%s29386_s0 + $0x9a] sm:$0xff] }
 0x1c1   :  { %18653 = vmatprep.mubr.msk.f32.mxu1 %vm23685_vm1, %v23684_v0 }
 0x1c3   :  { %19493 = vmatmul.mubr.msk.f32.gmra.mrb[4].mxu0 %vm235_vm0, %v3747_v6  ;;  %v3793_v6 = vld [vmem:[%s29386_s0 + $0x191] sm:$0xff] }
 0x1c4   :  { %19495 = vmatprep.mubr.msk.f32.mxu0 %vm23685_vm1, %v23684_v0 }
 0x1c7   :  { %19496 = vmatmul.mubr.msk.f32.gmra.mrb[6].mxu0 %vm235_vm0, %v3748_v7  ;;  %v166_v7 = vld [vmem:[%s29386_s0 + $0x8] sm:$0xff] }
 0x1c8   :  { %19498 = vmatprep.mubr.msk.f32.mxu0 %vm23685_vm1, %v23684_v0  ;;  %18654 = vmatmul.mubr.msk.f32.gmra.mrb[2].mxu1 %vm235_vm0, %v166_v7  ;;  %v4658_v7 = vld [vmem:[%s29386_s0 + $0xa2] sm:$0xff] }
 0x1c9   :  { %18656 = vmatprep.mubr.msk.f32.mxu1 %vm23685_vm1, %v23684_v0 }
 0x1cb   :  { %19499 = vmatmul.mubr.msk.f32.gmra.mrb[8].mxu0 %vm235_vm0, %v3749_v8  ;;  %v3794_v8 = vld [vmem:[%s29386_s0 + $0x199] sm:$0xff] }
 0x1cc   :  { %19501 = vmatprep.mubr.msk.f32.mxu0 %vm23685_vm1, %v23684_v0  ;;  %18657 = vmatmul.mubr.msk.f32.gmra.mrb[4].mxu1 %vm235_vm0, %v23979_v44  ;;  %v3797_v44 = vld [vmem:[%s29386_s0 + $0x1b1] sm:$0xff] }
 0x1cd   :  { %18659 = vmatprep.mubr.msk.f32.mxu1 %vm23685_vm1, %v23684_v0 }
 0x1cf   :  { %19502 = vmatmul.mubr.msk.f32.gmra.mrb[10].mxu0 %vm235_vm0, %v3750_v9  ;;  %v3795_v9 = vld [vmem:[%s29386_s0 + $0x1a1] sm:$0xff] }
 0x1d0   :  { %19504 = vmatprep.mubr.msk.f32.mxu0 %vm23685_vm1, %v23684_v0  ;;  %18660 = vmatmul.mubr.msk.f32.gmra.mrb[6].mxu1 %vm235_vm0, %v23991_v46  ;;  %v3798_v46 = vld [vmem:[%s29386_s0 + $0x1b9] sm:$0xff] }
 0x1d1   :  { %18662 = vmatprep.mubr.msk.f32.mxu1 %vm23685_vm1, %v23684_v0 }
 0x1d3   :  { %19505 = vmatmul.mubr.msk.f32.gmra.mrb[12].mxu0 %vm235_vm0, %v3751_v10  ;;  %v3796_v10 = vld [vmem:[%s29386_s0 + $0x1a9] sm:$0xff] }
 0x1d4   :  { %19507 = vmatprep.mubr.msk.f32.mxu0 %vm23685_vm1, %v23684_v0  ;;  %18663 = vmatmul.mubr.msk.f32.gmra.mrb[8].mxu1 %vm235_vm0, %v24001_v47  ;;  %v3799_v47 = vld [vmem:[%s29386_s0 + $0x1c1] sm:$0xff] }
 0x1d5   :  { %18665 = vmatprep.mubr.msk.f32.mxu1 %vm23685_vm1, %v23684_v0 }
 0x1d7   :  { %19508 = vmatmul.mubr.msk.f32.gmra.mrb[14].mxu0 %vm235_vm0, %v3752_v11  ;;  %v3810_v11 = vld [vmem:[%s29386_s0 + $0x219] sm:$0xff] }
 0x1d8   :  { %19510 = vmatprep.mubr.msk.f32.mxu0 %vm23685_vm1, %v23684_v0  ;;  %18666 = vmatmul.mubr.msk.f32.gmra.mrb[10].mxu1 %vm235_vm0, %v24010_v48  ;;  %v3800_v48 = vld [vmem:[%s29386_s0 + $0x1c9] sm:$0xff] }
 0x1d9   :  { %18668 = vmatprep.mubr.msk.f32.mxu1 %vm23685_vm1, %v23684_v0 }
 0x1db   :  { %19511 = vmatmul.mubr.msk.f32.gmra.mrb[16].mxu0 %vm235_vm0, %v3753_v12  ;;  %v3811_v12 = vld [vmem:[%s29386_s0 + $0x221] sm:$0xff] }
 0x1dc   :  { %19513 = vmatprep.mubr.msk.f32.mxu0 %vm23685_vm1, %v23684_v0  ;;  %18669 = vmatmul.mubr.msk.f32.gmra.mrb[12].mxu1 %vm235_vm0, %v24019_v49  ;;  %v3801_v49 = vld [vmem:[%s29386_s0 + $0x1d1] sm:$0xff] }
 0x1dd   :  { %18671 = vmatprep.mubr.msk.f32.mxu1 %vm23685_vm1, %v23684_v0 }
 0x1df   :  { %19514 = vmatmul.mubr.msk.f32.gmra.mrb[18].mxu0 %vm235_vm0, %v3754_v13  ;;  %v184_v13 = vld [vmem:[%s29386_s0 + $0x98] sm:$0xff] }
 0x1e0   :  { %19516 = vmatprep.mubr.msk.f32.mxu0 %vm23685_vm1, %v23684_v0  ;;  %18672 = vmatmul.mubr.msk.f32.gmra.mrb[14].mxu1 %vm235_vm0, %v24028_v50  ;;  %v3802_v50 = vld [vmem:[%s29386_s0 + $0x1d9] sm:$0xff] }
 0x1e1   :  { %18674 = vmatprep.mubr.msk.f32.mxu1 %vm23685_vm1, %v23684_v0 }
 0x1e3   :  { %19517 = vmatmul.mubr.msk.f32.gmra.mrb[20].mxu0 %vm235_vm0, %v3755_v14  ;;  %v3812_v14 = vld [vmem:[%s29386_s0 + $0x229] sm:$0xff] }
 0x1e4   :  { %19519 = vmatprep.mubr.msk.f32.mxu0 %vm23685_vm1, %v23684_v0  ;;  %18675 = vmatmul.mubr.msk.f32.gmra.mrb[16].mxu1 %vm235_vm0, %v24037_v51  ;;  %v3803_v51 = vld [vmem:[%s29386_s0 + $0x1e1] sm:$0xff] }
 0x1e5   :  { %18677 = vmatprep.mubr.msk.f32.mxu1 %vm23685_vm1, %v23684_v0 }
 0x1e7   :  { %19520 = vmatmul.mubr.msk.f32.gmra.mrb[22].mxu0 %vm235_vm0, %v3756_v15  ;;  %v185_v15 = vld [vmem:[%s29386_s0 + $0xa0] sm:$0xff] }
 0x1e8   :  { %19522 = vmatprep.mubr.msk.f32.mxu0 %vm23685_vm1, %v23684_v0  ;;  %18678 = vmatmul.mubr.msk.f32.gmra.mrb[18].mxu1 %vm235_vm0, %v24046_v52  ;;  %v3804_v52 = vld [vmem:[%s29386_s0 + $0x1e9] sm:$0xff] }
 0x1e9   :  { %18680 = vmatprep.mubr.msk.f32.mxu1 %vm23685_vm1, %v23684_v0 }
 0x1eb   :  { %19523 = vmatmul.mubr.msk.f32.gmra.mrb[24].mxu0 %vm235_vm0, %v3757_v16  ;;  %v3813_v16 = vld [vmem:[%s29386_s0 + $0x231] sm:$0xff] }
 0x1ec   :  { %19525 = vmatprep.mubr.msk.f32.mxu0 %vm23685_vm1, %v23684_v0  ;;  %18681 = vmatmul.mubr.msk.f32.gmra.mrb[20].mxu1 %vm235_vm0, %v24055_v53  ;;  %v3805_v53 = vld [vmem:[%s29386_s0 + $0x1f1] sm:$0xff] }
 0x1ed   :  { %18683 = vmatprep.mubr.msk.f32.mxu1 %vm23685_vm1, %v23684_v0 }
 0x1ef   :  { %19526 = vmatmul.mubr.msk.f32.gmra.mrb[26].mxu0 %vm235_vm0, %v3758_v17  ;;  %v186_v17 = vld [vmem:[%s29386_s0 + $0xa8] sm:$0xff] }
 0x1f0   :  { %19528 = vmatprep.mubr.msk.f32.mxu0 %vm23685_vm1, %v23684_v0  ;;  %18684 = vmatmul.mubr.msk.f32.gmra.mrb[22].mxu1 %vm235_vm0, %v24064_v54  ;;  %v3806_v54 = vld [vmem:[%s29386_s0 + $0x1f9] sm:$0xff] }
 0x1f1   :  { %18686 = vmatprep.mubr.msk.f32.mxu1 %vm23685_vm1, %v23684_v0 }
 0x1f3   :  { %19529 = vmatmul.mubr.msk.f32.gmra.mrb[28].mxu0 %vm235_vm0, %v3759_v18  ;;  %v4640_v18 = vld [vmem:[%s29386_s0 + $0x12] sm:$0xff] }
 0x1f4   :  { %19531 = vmatprep.mubr.msk.f32.mxu0 %vm23685_vm1, %v23684_v0  ;;  %18687 = vmatmul.mubr.msk.f32.gmra.mrb[24].mxu1 %vm235_vm0, %v24073_v55  ;;  %v3807_v55 = vld [vmem:[%s29386_s0 + $0x201] sm:$0xff] }
 0x1f5   :  { %18689 = vmatprep.mubr.msk.f32.mxu1 %vm23685_vm1, %v23684_v0 }
 0x1f7   :  { %19532 = vmatmul.mubr.msk.f32.gmra.mrb[30].mxu0 %vm235_vm0, %v3760_v19  ;;  %v16587_v19 = vld [vmem:[%s29385_s1 + $0x30] sm:$0xff] }
 0x1f8   :  { %19534 = vmatprep.mubr.msk.f32.mxu0 %vm23685_vm1, %v23684_v0  ;;  %18690 = vmatmul.mubr.msk.f32.gmra.mrb[26].mxu1 %vm235_vm0, %v24082_v56  ;;  %v3808_v56 = vld [vmem:[%s29386_s0 + $0x209] sm:$0xff] }
 0x1f9   :  { %18692 = vmatprep.mubr.msk.f32.mxu1 %vm23685_vm1, %v23684_v0 }
 0x1fb   :  { %19535 = vmatmul.mubr.msk.f32.gmra.mrb[32].mxu0 %vm235_vm0, %v3761_v20  ;;  %v187_v20 = vld [vmem:[%s29386_s0 + $0xb0] sm:$0xff] }
 0x1fc   :  { %19537 = vmatprep.mubr.msk.f32.mxu0 %vm23685_vm1, %v23684_v0  ;;  %18693 = vmatmul.mubr.msk.f32.gmra.mrb[28].mxu1 %vm235_vm0, %v24091_v57  ;;  %v3809_v57 = vld [vmem:[%s29386_s0 + $0x211] sm:$0xff] }
 0x1fd   :  { %18695 = vmatprep.mubr.msk.f32.mxu1 %vm23685_vm1, %v23684_v0 }
 0x1ff   :  { %19538 = vmatmul.mubr.msk.f32.gmra.mrb[34].mxu0 %vm235_vm0, %v3762_v21  ;;  %v4641_v21 = vld [vmem:[%s29386_s0 + $0x1a] sm:$0xff] }
 0x200   :  { %19540 = vmatprep.mubr.msk.f32.mxu0 %vm23685_vm1, %v23684_v0  ;;  %18696 = vmatmul.mubr.msk.f32.gmra.mrb[30].mxu1 %vm235_vm0, %v24100_v58  ;;  %v182_v58 = vld [vmem:[%s29386_s0 + $0x88] sm:$0xff] }
 0x201   :  { %18698 = vmatprep.mubr.msk.f32.mxu1 %vm23685_vm1, %v23684_v0 }
 0x203   :  { %19541 = vmatmul.mubr.msk.f32.gmra.mrb[36].mxu0 %vm235_vm0, %v3763_v22  ;;  %v188_v22 = vld [vmem:[%s29386_s0 + $0xb8] sm:$0xff] }
 0x204   :  { %19543 = vmatprep.mubr.msk.f32.mxu0 %vm23685_vm1, %v23684_v0  ;;  %18699 = vmatmul.mubr.msk.f32.gmra.mrb[32].mxu1 %vm235_vm0, %v24109_v59  ;;  %v183_v59 = vld [vmem:[%s29386_s0 + $0x90] sm:$0xff] }
 0x205   :  { %18701 = vmatprep.mubr.msk.f32.mxu1 %vm23685_vm1, %v23684_v0 }
 0x207   :  { %19544 = vmatmul.mubr.msk.f32.gmra.mrb[38].mxu0 %vm235_vm0, %v3764_v23  ;;  %v4642_v23 = vld [vmem:[%s29386_s0 + $0x22] sm:$0xff] }
 0x208   :  { %19546 = vmatprep.mubr.msk.f32.mxu0 %vm23685_vm1, %v23684_v0  ;;  %18702 = vmatmul.mubr.msk.f32.gmra.mrb[34].mxu1 %vm235_vm0, %v182_v58  ;;  %v25331_v58 = vld [vmem:[%s29386_s0 + $0x180] sm:$0xff] }
 0x209   :  { %18704 = vmatprep.mubr.msk.f32.mxu1 %vm23685_vm1, %v23684_v0 }
 0x20b   :  { %19547 = vmatmul.mubr.msk.f32.gmra.mrb[40].mxu0 %vm235_vm0, %v3765_v24  ;;  %v189_v24 = vld [vmem:[%s29386_s0 + $0xc0] sm:$0xff] }
 0x20c   :  { %19549 = vmatprep.mubr.msk.f32.mxu0 %vm23685_vm1, %v23684_v0  ;;  %18705 = vmatmul.mubr.msk.f32.gmra.mrb[36].mxu1 %vm235_vm0, %v183_v59  ;;  %v25346_v59 = vld [vmem:[%s29386_s0 + $0x188] sm:$0xff] }
 0x20d   :  { %18707 = vmatprep.mubr.msk.f32.mxu1 %vm23685_vm1, %v23684_v0 }
 0x20f   :  { %19550 = vmatmul.mubr.msk.f32.gmra.mrb[42].mxu0 %vm235_vm0, %v3766_v25  ;;  %v4643_v25 = vld [vmem:[%s29386_s0 + $0x2a] sm:$0xff] }
 0x210   :  { %19552 = vmatprep.mubr.msk.f32.mxu0 %vm23685_vm1, %v23684_v0  ;;  %18708 = vmatmul.mubr.msk.f32.gmra.mrb[38].mxu1 %vm235_vm0, %v184_v13  ;;  %v25361_v13 = vld [vmem:[%s29386_s0 + $0x190] sm:$0xff] }
 0x211   :  { %18710 = vmatprep.mubr.msk.f32.mxu1 %vm23685_vm1, %v23684_v0 }
 0x213   :  { %19553 = vmatmul.mubr.msk.f32.gmra.mrb[44].mxu0 %vm235_vm0, %v3767_v26  ;;  %v190_v26 = vld [vmem:[%s29386_s0 + $0xc8] sm:$0xff] }
 0x214   :  { %19555 = vmatprep.mubr.msk.f32.mxu0 %vm23685_vm1, %v23684_v0  ;;  %18711 = vmatmul.mubr.msk.f32.gmra.mrb[40].mxu1 %vm235_vm0, %v185_v15  ;;  %v25376_v15 = vld [vmem:[%s29386_s0 + $0x198] sm:$0xff] }
 0x215   :  { %18713 = vmatprep.mubr.msk.f32.mxu1 %vm23685_vm1, %v23684_v0 }
 0x217   :  { %19556 = vmatmul.mubr.msk.f32.gmra.mrb[46].mxu0 %vm235_vm0, %v3768_v27  ;;  %v4644_v27 = vld [vmem:[%s29386_s0 + $0x32] sm:$0xff] }
 0x218   :  { %19558 = vmatprep.mubr.msk.f32.mxu0 %vm23685_vm1, %v23684_v0  ;;  %18714 = vmatmul.mubr.msk.f32.gmra.mrb[42].mxu1 %vm235_vm0, %v186_v17  ;;  %v25391_v17 = vld [vmem:[%s29386_s0 + $0x1a0] sm:$0xff] }
 0x219   :  { %18716 = vmatprep.mubr.msk.f32.mxu1 %vm23685_vm1, %v23684_v0 }
 0x21b   :  { %19559 = vmatmul.mubr.msk.f32.gmra.mrb[48].mxu0 %vm235_vm0, %v3769_v28  ;;  %v191_v28 = vld [vmem:[%s29386_s0 + $0xd0] sm:$0xff] }
 0x21c   :  { %19561 = vmatprep.mubr.msk.f32.mxu0 %vm23685_vm1, %v23684_v0  ;;  %18717 = vmatmul.mubr.msk.f32.gmra.mrb[44].mxu1 %vm235_vm0, %v187_v20  ;;  %v4672_v20 = vld [vmem:[%s29386_s0 + $0x112] sm:$0xff] }
 0x21d   :  { %18719 = vmatprep.mubr.msk.f32.mxu1 %vm23685_vm1, %v23684_v0 }
 0x21f   :  { %19562 = vmatmul.mubr.msk.f32.gmra.mrb[50].mxu0 %vm235_vm0, %v3770_v29  ;;  %v4645_v29 = vld [vmem:[%s29386_s0 + $0x3a] sm:$0xff] }
 0x220   :  { %19564 = vmatprep.mubr.msk.f32.mxu0 %vm23685_vm1, %v23684_v0  ;;  %18720 = vmatmul.mubr.msk.f32.gmra.mrb[46].mxu1 %vm235_vm0, %v188_v22  ;;  %v4673_v22 = vld [vmem:[%s29386_s0 + $0x11a] sm:$0xff] }
 0x221   :  { %18722 = vmatprep.mubr.msk.f32.mxu1 %vm23685_vm1, %v23684_v0 }
 0x223   :  { %19565 = vmatmul.mubr.msk.f32.gmra.mrb[52].mxu0 %vm235_vm0, %v3771_v30  ;;  %v192_v30 = vld [vmem:[%s29386_s0 + $0xd8] sm:$0xff] }
 0x224   :  { %19567 = vmatprep.mubr.msk.f32.mxu0 %vm23685_vm1, %v23684_v0  ;;  %18723 = vmatmul.mubr.msk.f32.gmra.mrb[48].mxu1 %vm235_vm0, %v189_v24  ;;  %v4674_v24 = vld [vmem:[%s29386_s0 + $0x122] sm:$0xff] }
 0x225   :  { %18725 = vmatprep.mubr.msk.f32.mxu1 %vm23685_vm1, %v23684_v0 }
 0x227   :  { %19568 = vmatmul.mubr.msk.f32.gmra.mrb[54].mxu0 %vm235_vm0, %v3772_v31  ;;  %v4646_v31 = vld [vmem:[%s29386_s0 + $0x42] sm:$0xff] }
 0x228   :  { %19570 = vmatprep.mubr.msk.f32.mxu0 %vm23685_vm1, %v23684_v0  ;;  %18726 = vmatmul.mubr.msk.f32.gmra.mrb[50].mxu1 %vm235_vm0, %v190_v26  ;;  %v4675_v26 = vld [vmem:[%s29386_s0 + $0x12a] sm:$0xff] }
 0x229   :  { %18728 = vmatprep.mubr.msk.f32.mxu1 %vm23685_vm1, %v23684_v0 }
 0x22b   :  { %19571 = vmatmul.mubr.msk.f32.gmra.mrb[56].mxu0 %vm235_vm0, %v3773_v32  ;;  %v193_v32 = vld [vmem:[%s29386_s0 + $0xe0] sm:$0xff] }
 0x22c   :  { %19573 = vmatprep.mubr.msk.f32.mxu0 %vm23685_vm1, %v23684_v0  ;;  %18729 = vmatmul.mubr.msk.f32.gmra.mrb[52].mxu1 %vm235_vm0, %v191_v28  ;;  %v4676_v28 = vld [vmem:[%s29386_s0 + $0x132] sm:$0xff] }
 0x22d   :  { %18731 = vmatprep.mubr.msk.f32.mxu1 %vm23685_vm1, %v23684_v0 }
 0x22f   :  { %19574 = vmatmul.mubr.msk.f32.gmra.mrb[58].mxu0 %vm235_vm0, %v3774_v33  ;;  %v4647_v33 = vld [vmem:[%s29386_s0 + $0x4a] sm:$0xff] }
 0x230   :  { %19576 = vmatprep.mubr.msk.f32.mxu0 %vm23685_vm1, %v23684_v0  ;;  %18732 = vmatmul.mubr.msk.f32.gmra.mrb[54].mxu1 %vm235_vm0, %v192_v30  ;;  %v4677_v30 = vld [vmem:[%s29386_s0 + $0x13a] sm:$0xff] }
 0x231   :  { %18734 = vmatprep.mubr.msk.f32.mxu1 %vm23685_vm1, %v23684_v0 }
 0x233   :  { %19577 = vmatmul.mubr.msk.f32.gmra.mrb[60].mxu0 %vm235_vm0, %v3775_v34  ;;  %v194_v34 = vld [vmem:[%s29386_s0 + $0xe8] sm:$0xff] }
 0x234   :  { %19579 = vmatprep.mubr.msk.f32.mxu0 %vm23685_vm1, %v23684_v0  ;;  %18735 = vmatmul.mubr.msk.f32.gmra.mrb[56].mxu1 %vm235_vm0, %v193_v32  ;;  %v4678_v32 = vld [vmem:[%s29386_s0 + $0x142] sm:$0xff] }
 0x235   :  { %18737 = vmatprep.mubr.msk.f32.mxu1 %vm23685_vm1, %v23684_v0 }
 0x237   :  { %19580 = vmatmul.mubr.msk.f32.gmra.mrb[62].mxu0 %vm235_vm0, %v3776_v35  ;;  %v4648_v35 = vld [vmem:[%s29386_s0 + $0x52] sm:$0xff] }
 0x238   :  { %19582 = vmatprep.mubr.msk.f32.mxu0 %vm23685_vm1, %v23684_v0  ;;  %18738 = vmatmul.mubr.msk.f32.gmra.mrb[58].mxu1 %vm235_vm0, %v194_v34  ;;  %v4679_v34 = vld [vmem:[%s29386_s0 + $0x14a] sm:$0xff] }
 0x239   :  { %18740 = vmatprep.mubr.msk.f32.mxu1 %vm23685_vm1, %v23684_v0 }
 0x23b   :  { %19583 = vmatmul.mubr.msk.f32.gmra.mrb[64].mxu0 %vm235_vm0, %v3777_v36  ;;  %v195_v36 = vld [vmem:[%s29386_s0 + $0xf0] sm:$0xff] }
 0x23c   :  { %19585 = vmatprep.mubr.msk.f32.mxu0 %vm23685_vm1, %v23684_v0  ;;  %18741 = vmatmul.mubr.msk.f32.gmra.mrb[60].mxu1 %vm235_vm0, %v195_v36  ;;  %v4680_v36 = vld [vmem:[%s29386_s0 + $0x152] sm:$0xff] }
 0x23d   :  { %18743 = vmatprep.mubr.msk.f32.mxu1 %vm23685_vm1, %v23684_v0 }
 0x23f   :  { %19586 = vmatmul.mubr.msk.f32.gmra.mrb[66].mxu0 %vm235_vm0, %v3778_v37  ;;  %v4649_v37 = vld [vmem:[%s29386_s0 + $0x5a] sm:$0xff] }
 0x240   :  { %19588 = vmatprep.mubr.msk.f32.mxu0 %vm23685_vm1, %v23684_v0 }
 0x243   :  { %19589 = vmatmul.mubr.msk.f32.gmra.mrb[68].mxu0 %vm235_vm0, %v3779_v38  ;;  %v196_v38 = vld [vmem:[%s29386_s0 + $0xf8] sm:$0xff] }
 0x244   :  { %19591 = vmatprep.mubr.msk.f32.mxu0 %vm23685_vm1, %v23684_v0  ;;  %18744 = vmatmul.mubr.msk.f32.gmra.mrb[62].mxu1 %vm235_vm0, %v196_v38  ;;  %v4681_v38 = vld [vmem:[%s29386_s0 + $0x15a] sm:$0xff] }
 0x245   :  { %18746 = vmatprep.mubr.msk.f32.mxu1 %vm23685_vm1, %v23684_v0 }
 0x247   :  { %19592 = vmatmul.mubr.msk.f32.gmra.mrb[70].mxu0 %vm235_vm0, %v3780_v39  ;;  %v4650_v39 = vld [vmem:[%s29386_s0 + $0x62] sm:$0xff] }
 0x248   :  { %19594 = vmatprep.mubr.msk.f32.mxu0 %vm23685_vm1, %v23684_v0 }
 0x24b   :  { %19595 = vmatmul.mubr.msk.f32.gmra.mrb[72].mxu0 %vm235_vm0, %v3781_v40  ;;  %v197_v40 = vld [vmem:[%s29386_s0 + $0x100] sm:$0xff] }
 0x24c   :  { %19597 = vmatprep.mubr.msk.f32.mxu0 %vm23685_vm1, %v23684_v0  ;;  %18747 = vmatmul.mubr.msk.f32.gmra.mrb[64].mxu1 %vm235_vm0, %v197_v40  ;;  %v4682_v40 = vld [vmem:[%s29386_s0 + $0x162] sm:$0xff] }
 0x24d   :  { %18749 = vmatprep.mubr.msk.f32.mxu1 %vm23685_vm1, %v23684_v0 }
 0x24f   :  { %19598 = vmatmul.mubr.msk.f32.gmra.mrb[74].mxu0 %vm235_vm0, %v3782_v41  ;;  %v4651_v41 = vld [vmem:[%s29386_s0 + $0x6a] sm:$0xff] }
 0x250   :  { %19600 = vmatprep.mubr.msk.f32.mxu0 %vm23685_vm1, %v23684_v0 }
 0x253   :  { %19601 = vmatmul.mubr.msk.f32.gmra.mrb[76].mxu0 %vm235_vm0, %v3783_v42  ;;  %v25106_v42 = vld [vmem:[%s29386_s0 + $0x108] sm:$0xff] }
 0x254   :  { %19603 = vmatprep.mubr.msk.f32.mxu0 %vm23685_vm1, %v23684_v0  ;;  %18750 = vmatmul.mubr.msk.f32.gmra.mrb[66].mxu1 %vm235_vm0, %v25106_v42 }
 0x255   :  { %18752 = vmatprep.mubr.msk.f32.mxu1 %vm23685_vm1, %v23684_v0 }
 0x257   :  { %19604 = vmatmul.mubr.msk.f32.gmra.mrb[78].mxu0 %vm235_vm0, %v3784_v43  ;;  %v4652_v43 = vld [vmem:[%s29386_s0 + $0x72] sm:$0xff] }
 0x258   :  { %19606 = vmatprep.mubr.msk.f32.mxu0 %vm23685_vm1, %v23684_v0 }
 0x25b   :  { %19607 = vmatmul.mubr.msk.f32.gmra.mrb[80].mxu0 %vm235_vm0, %v3785_v45  ;;  %v25121_v45 = vld [vmem:[%s29386_s0 + $0x110] sm:$0xff] }
 0x25c   :  { %19609 = vmatprep.mubr.msk.f32.mxu0 %vm23685_vm1, %v23684_v0  ;;  %18753 = vmatmul.mubr.msk.f32.gmra.mrb[68].mxu1 %vm235_vm0, %v25121_v45 }
 0x25d   :  { %18755 = vmatprep.mubr.msk.f32.mxu1 %vm23685_vm1, %v23684_v0 }
 0x25f   :  { %19610 = vmatmul.mubr.msk.f32.gmra.mrb[82].mxu0 %vm235_vm0, %v3786_v60  ;;  %v4653_v60 = vld [vmem:[%s29386_s0 + $0x7a] sm:$0xff] }
 0x260   :  { %19612 = vmatprep.mubr.msk.f32.mxu0 %vm23685_vm1, %v23684_v0 }
 0x263   :  { %19613 = vmatmul.mubr.msk.f32.gmra.mrb[84].mxu0 %vm235_vm0, %v3787_v61  ;;  %v25136_v61 = vld [vmem:[%s29386_s0 + $0x118] sm:$0xff] }
 0x264   :  { %19615 = vmatprep.mubr.msk.f32.mxu0 %vm23685_vm1, %v23684_v0  ;;  %18756 = vmatmul.mubr.msk.f32.gmra.mrb[70].mxu1 %vm235_vm0, %v25136_v61 }
 0x265   :  { %18758 = vmatprep.mubr.msk.f32.mxu1 %vm23685_vm1, %v23684_v0 }
 0x267   :  { %19616 = vmatmul.mubr.msk.f32.gmra.mrb[86].mxu0 %vm235_vm0, %v3788_v62  ;;  %v4654_v62 = vld [vmem:[%s29386_s0 + $0x82] sm:$0xff] }
 0x268   :  { %19618 = vmatprep.mubr.msk.f32.mxu0 %vm23685_vm1, %v23684_v0 }
 0x26b   :  { %19619 = vmatmul.mubr.msk.f32.gmra.mrb[88].mxu0 %vm235_vm0, %v3789_v63  ;;  %v25151_v63 = vld [vmem:[%s29386_s0 + $0x120] sm:$0xff] }
 0x26c   :  { %19621 = vmatprep.mubr.msk.f32.mxu0 %vm23685_vm1, %v23684_v0  ;;  %18759 = vmatmul.mubr.msk.f32.gmra.mrb[72].mxu1 %vm235_vm0, %v25151_v63 }
 0x26d   :  { %18761 = vmatprep.mubr.msk.f32.mxu1 %vm23685_vm1, %v23684_v0 }
 0x26f   :  { %19622 = vmatmul.mubr.msk.f32.gmra.mrb[90].mxu0 %vm235_vm0, %v3790_v1  ;;  %v4655_v1 = vld [vmem:[%s29386_s0 + $0x8a] sm:$0xff] }
 0x270   :  { %19624 = vmatprep.mubr.msk.f32.mxu0 %vm23685_vm1, %v23684_v0 }
 0x273   :  { %19625 = vmatmul.mubr.msk.f32.gmra.mrb[92].mxu0 %vm235_vm0, %v3791_v2  ;;  %v25166_v2 = vld [vmem:[%s29386_s0 + $0x128] sm:$0xff] }
 0x274   :  { %19627 = vmatprep.mubr.msk.f32.mxu0 %vm23685_vm1, %v23684_v0  ;;  %18762 = vmatmul.mubr.msk.f32.gmra.mrb[74].mxu1 %vm235_vm0, %v25166_v2 }
 0x275   :  { %18764 = vmatprep.mubr.msk.f32.mxu1 %vm23685_vm1, %v23684_v0 }
 0x277   :  { %19628 = vmatmul.mubr.msk.f32.gmra.mrb[94].mxu0 %vm235_vm0, %v3792_v3  ;;  %v4656_v3 = vld [vmem:[%s29386_s0 + $0x92] sm:$0xff] }
 0x278   :  { %19630 = vmatprep.mubr.msk.f32.mxu0 %vm23685_vm1, %v23684_v0  ;;  %18765 = vmatmul.mubr.msk.f32.gmra.mrb[76].mxu1 %vm235_vm0, %v25181_v4 }
 0x279   :  { %18767 = vmatprep.mubr.msk.f32.mxu1 %vm23685_vm1, %v23684_v0 }
 0x27b   :  { %19631 = vmatmul.mubr.msk.f32.gmra.mrb[96].mxu0 %vm235_vm0, %v3793_v6  ;;  %v25196_v6 = vld [vmem:[%s29386_s0 + $0x138] sm:$0xff] }
 0x27c   :  { %19633 = vmatprep.mubr.msk.f32.mxu0 %vm23685_vm1, %v23684_v0  ;;  %18768 = vmatmul.mubr.msk.f32.gmra.mrb[78].mxu1 %vm235_vm0, %v25196_v6 }
 0x27d   :  { %18770 = vmatprep.mubr.msk.f32.mxu1 %vm23685_vm1, %v23684_v0 }
 0x27f   :  { %19634 = vmatmul.mubr.msk.f32.gmra.mrb[98].mxu0 %vm235_vm0, %v3794_v8  ;;  %v25211_v8 = vld [vmem:[%s29386_s0 + $0x140] sm:$0xff] }
 0x280   :  { %19636 = vmatprep.mubr.msk.f32.mxu0 %vm23685_vm1, %v23684_v0  ;;  %18771 = vmatmul.mubr.msk.f32.gmra.mrb[80].mxu1 %vm235_vm0, %v25211_v8 }
 0x281   :  { %18773 = vmatprep.mubr.msk.f32.mxu1 %vm23685_vm1, %v23684_v0 }
 0x283   :  { %19637 = vmatmul.mubr.msk.f32.gmra.mrb[100].mxu0 %vm235_vm0, %v3795_v9  ;;  %v4659_v9 = vld [vmem:[%s29386_s0 + $0xaa] sm:$0xff] }
 0x284   :  { %19639 = vmatprep.mubr.msk.f32.mxu0 %vm23685_vm1, %v23684_v0 }
 0x287   :  { %19640 = vmatmul.mubr.msk.f32.gmra.mrb[102].mxu0 %vm235_vm0, %v3796_v10  ;;  %v25226_v10 = vld [vmem:[%s29386_s0 + $0x148] sm:$0xff] }
 0x288   :  { %19642 = vmatprep.mubr.msk.f32.mxu0 %vm23685_vm1, %v23684_v0  ;;  %18774 = vmatmul.mubr.msk.f32.gmra.mrb[82].mxu1 %vm235_vm0, %v25226_v10 }
 0x289   :  { %18776 = vmatprep.mubr.msk.f32.mxu1 %vm23685_vm1, %v23684_v0 }
 0x28b   :  { %19643 = vmatmul.mubr.msk.f32.gmra.mrb[104].mxu0 %vm235_vm0, %v3797_v44  ;;  %v4660_v44 = vld [vmem:[%s29386_s0 + $0xb2] sm:$0xff] }
 0x28c   :  { %19645 = vmatprep.mubr.msk.f32.mxu0 %vm23685_vm1, %v23684_v0 }
 0x28f   :  { %19646 = vmatmul.mubr.msk.f32.gmra.mrb[106].mxu0 %vm235_vm0, %v3798_v46  ;;  %v25241_v46 = vld [vmem:[%s29386_s0 + $0x150] sm:$0xff] }
 0x290   :  { %19648 = vmatprep.mubr.msk.f32.mxu0 %vm23685_vm1, %v23684_v0  ;;  %18777 = vmatmul.mubr.msk.f32.gmra.mrb[84].mxu1 %vm235_vm0, %v25241_v46 }
 0x291   :  { %18779 = vmatprep.mubr.msk.f32.mxu1 %vm23685_vm1, %v23684_v0 }
 0x293   :  { %19649 = vmatmul.mubr.msk.f32.gmra.mrb[108].mxu0 %vm235_vm0, %v3799_v47  ;;  %v4661_v47 = vld [vmem:[%s29386_s0 + $0xba] sm:$0xff] }
 0x294   :  { %19651 = vmatprep.mubr.msk.f32.mxu0 %vm23685_vm1, %v23684_v0 }
 0x297   :  { %19652 = vmatmul.mubr.msk.f32.gmra.mrb[110].mxu0 %vm235_vm0, %v3800_v48  ;;  %v25256_v48 = vld [vmem:[%s29386_s0 + $0x158] sm:$0xff] }
 0x298   :  { %19654 = vmatprep.mubr.msk.f32.mxu0 %vm23685_vm1, %v23684_v0  ;;  %18780 = vmatmul.mubr.msk.f32.gmra.mrb[86].mxu1 %vm235_vm0, %v25256_v48 }
 0x299   :  { %18782 = vmatprep.mubr.msk.f32.mxu1 %vm23685_vm1, %v23684_v0 }
 0x29b   :  { %19655 = vmatmul.mubr.msk.f32.gmra.mrb[112].mxu0 %vm235_vm0, %v3801_v49  ;;  %v4662_v49 = vld [vmem:[%s29386_s0 + $0xc2] sm:$0xff] }
 0x29c   :  { %19657 = vmatprep.mubr.msk.f32.mxu0 %vm23685_vm1, %v23684_v0 }
 0x29f   :  { %19658 = vmatmul.mubr.msk.f32.gmra.mrb[114].mxu0 %vm235_vm0, %v3802_v50  ;;  %v25271_v50 = vld [vmem:[%s29386_s0 + $0x160] sm:$0xff] }
 0x2a0   :  { %19660 = vmatprep.mubr.msk.f32.mxu0 %vm23685_vm1, %v23684_v0  ;;  %18783 = vmatmul.mubr.msk.f32.gmra.mrb[88].mxu1 %vm235_vm0, %v25271_v50 }
 0x2a1   :  { %18785 = vmatprep.mubr.msk.f32.mxu1 %vm23685_vm1, %v23684_v0 }
 0x2a3   :  { %19661 = vmatmul.mubr.msk.f32.gmra.mrb[116].mxu0 %vm235_vm0, %v3803_v51  ;;  %v4663_v51 = vld [vmem:[%s29386_s0 + $0xca] sm:$0xff] }
 0x2a4   :  { %19663 = vmatprep.mubr.msk.f32.mxu0 %vm23685_vm1, %v23684_v0 }
 0x2a7   :  { %19664 = vmatmul.mubr.msk.f32.gmra.mrb[118].mxu0 %vm235_vm0, %v3804_v52  ;;  %v25286_v52 = vld [vmem:[%s29386_s0 + $0x168] sm:$0xff] }
 0x2a8   :  { %19666 = vmatprep.mubr.msk.f32.mxu0 %vm23685_vm1, %v23684_v0  ;;  %18786 = vmatmul.mubr.msk.f32.gmra.mrb[90].mxu1 %vm235_vm0, %v25286_v52 }
 0x2a9   :  { %18788 = vmatprep.mubr.msk.f32.mxu1 %vm23685_vm1, %v23684_v0 }
 0x2ab   :  { %19667 = vmatmul.mubr.msk.f32.gmra.mrb[120].mxu0 %vm235_vm0, %v3805_v53  ;;  %v4664_v53 = vld [vmem:[%s29386_s0 + $0xd2] sm:$0xff] }
 0x2ac   :  { %19669 = vmatprep.mubr.msk.f32.mxu0 %vm23685_vm1, %v23684_v0 }
 0x2af   :  { %19670 = vmatmul.mubr.msk.f32.gmra.mrb[122].mxu0 %vm235_vm0, %v3806_v54  ;;  %v25301_v54 = vld [vmem:[%s29386_s0 + $0x170] sm:$0xff] }
 0x2b0   :  { %19672 = vmatprep.mubr.msk.f32.mxu0 %vm23685_vm1, %v23684_v0  ;;  %18789 = vmatmul.mubr.msk.f32.gmra.mrb[92].mxu1 %vm235_vm0, %v25301_v54 }
 0x2b1   :  { %18791 = vmatprep.mubr.msk.f32.mxu1 %vm23685_vm1, %v23684_v0 }
 0x2b3   :  { %19673 = vmatmul.mubr.msk.f32.gmra.mrb[124].mxu0 %vm235_vm0, %v3807_v55  ;;  %v4665_v55 = vld [vmem:[%s29386_s0 + $0xda] sm:$0xff] }
 0x2b4   :  { %19675 = vmatprep.mubr.msk.f32.mxu0 %vm23685_vm1, %v23684_v0 }
 0x2b7   :  { %19676 = vmatmul.mubr.msk.f32.gmra.mrb[126].mxu0 %vm235_vm0, %v3808_v56  ;;  %v25316_v56 = vld [vmem:[%s29386_s0 + $0x178] sm:$0xff] }
 0x2b8   :  { %19678 = vmatprep.mubr.msk.f32.mxu0 %vm23685_vm1, %v23684_v0  ;;  %18792 = vmatmul.mubr.msk.f32.gmra.mrb[94].mxu1 %vm235_vm0, %v25316_v56 }
 0x2b9   :  { %18794 = vmatprep.mubr.msk.f32.mxu1 %vm23685_vm1, %v23684_v0 }
 0x2bb   :  { %19679 = vmatmul.mubr.msk.f32.gmra.mrb[128].mxu0 %vm235_vm0, %v3809_v57  ;;  %v4666_v57 = vld [vmem:[%s29386_s0 + $0xe2] sm:$0xff] }
 0x2bc   :  { %19681 = vmatprep.mubr.msk.f32.mxu0 %vm23685_vm1, %v23684_v0  ;;  %18795 = vmatmul.mubr.msk.f32.gmra.mrb[96].mxu1 %vm235_vm0, %v25331_v58 }
 0x2bd   :  { %18797 = vmatprep.mubr.msk.f32.mxu1 %vm23685_vm1, %v23684_v0 }
 0x2bf   :  { %19682 = vmatmul.mubr.msk.f32.gmra.mrb[130].mxu0 %vm235_vm0, %v3810_v11  ;;  %v4667_v11 = vld [vmem:[%s29386_s0 + $0xea] sm:$0xff] }
 0x2c0   :  { %19684 = vmatprep.mubr.msk.f32.mxu0 %vm23685_vm1, %v23684_v0  ;;  %18798 = vmatmul.mubr.msk.f32.gmra.mrb[98].mxu1 %vm235_vm0, %v25346_v59 }
 0x2c1   :  { %18800 = vmatprep.mubr.msk.f32.mxu1 %vm23685_vm1, %v23684_v0 }
 0x2c3   :  { %19685 = vmatmul.mubr.msk.f32.gmra.mrb[132].mxu0 %vm235_vm0, %v3811_v12  ;;  %v4668_v12 = vld [vmem:[%s29386_s0 + $0xf2] sm:$0xff] }
 0x2c4   :  { %19687 = vmatprep.mubr.msk.f32.mxu0 %vm23685_vm1, %v23684_v0  ;;  %18801 = vmatmul.mubr.msk.f32.gmra.mrb[100].mxu1 %vm235_vm0, %v25361_v13 }
 0x2c5   :  { %18803 = vmatprep.mubr.msk.f32.mxu1 %vm23685_vm1, %v23684_v0 }
 0x2c7   :  { %19688 = vmatmul.mubr.msk.f32.gmra.mrb[134].mxu0 %vm235_vm0, %v3812_v14  ;;  %v4669_v14 = vld [vmem:[%s29386_s0 + $0xfa] sm:$0xff] }
 0x2c8   :  { %19690 = vmatprep.mubr.msk.f32.mxu0 %vm23685_vm1, %v23684_v0  ;;  %18804 = vmatmul.mubr.msk.f32.gmra.mrb[102].mxu1 %vm235_vm0, %v25376_v15 }
 0x2c9   :  { %18806 = vmatprep.mubr.msk.f32.mxu1 %vm23685_vm1, %v23684_v0 }
 0x2cb   :  { %19691 = vmatmul.mubr.msk.f32.gmra.mrb[136].mxu0 %vm235_vm0, %v3813_v16  ;;  %v4670_v16 = vld [vmem:[%s29386_s0 + $0x102] sm:$0xff] }
 0x2cc   :  { %19695 = vmatprep.mubr.msk.f32.mxu0 %vm23685_vm1, %v23684_v0  ;;  %18807 = vmatmul.mubr.msk.f32.gmra.mrb[104].mxu1 %vm235_vm0, %v25391_v17 }
 0x2cd   :  { %18809 = vmatprep.mubr.msk.f32.mxu1 %vm23685_vm1, %v23684_v0 }
 0x2cf   :  { %19696 = vmatmul.mubr.msk.f32.vlgmr.msra.gmra.mrb[0].mxu0 %vm235_vm0, %v4640_v18  ;;  %v4671_v18 = vld [vmem:[%s29386_s0 + $0x10a] sm:$0xff] }
 0x2d0   :  { %19903 = vmatpush3.msra.mxu0 %v16587_v19  ;;  %19698 = vmatprep.mubr.msk.f32.mxu0 %vm23685_vm1, %v23684_v0  ;;  %v25406_v19 = vld [vmem:[%s29386_s0 + $0x1a8] sm:$0xff] }
 0x2d1   :  { %20111 = vmatprep.subr.mxu0 %v23684_v0  ;;  %18810 = vmatmul.mubr.msk.f32.gmra.mrb[106].mxu1 %vm235_vm0, %v25406_v19 }
 0x2d2   :  { %18812 = vmatprep.mubr.msk.f32.mxu1 %vm23685_vm1, %v23684_v0 }
 0x2d3   :  { %19699 = vmatmul.mubr.msk.f32.gmra.mrb[2].mxu0 %vm235_vm0, %v4641_v21  ;;  %v25421_v21 = vld [vmem:[%s29386_s0 + $0x1b0] sm:$0xff] }
 0x2d4   :  { %19701 = vmatprep.mubr.msk.f32.mxu0 %vm23685_vm1, %v23684_v0 }
 0x2d5   :  { %18813 = vmatmul.mubr.msk.f32.gmra.mrb[108].mxu1 %vm235_vm0, %v25421_v21 }
 0x2d6   :  { %18815 = vmatprep.mubr.msk.f32.mxu1 %vm23685_vm1, %v23684_v0 }
 0x2d7   :  { %19702 = vmatmul.mubr.msk.f32.gmra.mrb[4].mxu0 %vm235_vm0, %v4642_v23  ;;  %v25436_v23 = vld [vmem:[%s29386_s0 + $0x1b8] sm:$0xff] }
 0x2d8   :  { %19704 = vmatprep.mubr.msk.f32.mxu0 %vm23685_vm1, %v23684_v0 }
 0x2d9   :  { %18816 = vmatmul.mubr.msk.f32.gmra.mrb[110].mxu1 %vm235_vm0, %v25436_v23 }
 0x2da   :  { %18818 = vmatprep.mubr.msk.f32.mxu1 %vm23685_vm1, %v23684_v0 }
 0x2db   :  { %19705 = vmatmul.mubr.msk.f32.gmra.mrb[6].mxu0 %vm235_vm0, %v4643_v25  ;;  %v25451_v25 = vld [vmem:[%s29386_s0 + $0x1c0] sm:$0xff] }
 0x2dc   :  { %19707 = vmatprep.mubr.msk.f32.mxu0 %vm23685_vm1, %v23684_v0 }
 0x2dd   :  { %18819 = vmatmul.mubr.msk.f32.gmra.mrb[112].mxu1 %vm235_vm0, %v25451_v25 }
 0x2de   :  { %18821 = vmatprep.mubr.msk.f32.mxu1 %vm23685_vm1, %v23684_v0 }
 0x2df   :  { %19708 = vmatmul.mubr.msk.f32.gmra.mrb[8].mxu0 %vm235_vm0, %v4644_v27  ;;  %v25466_v27 = vld [vmem:[%s29386_s0 + $0x1c8] sm:$0xff] }
 0x2e0   :  { %19710 = vmatprep.mubr.msk.f32.mxu0 %vm23685_vm1, %v23684_v0 }
 0x2e1   :  { %18822 = vmatmul.mubr.msk.f32.gmra.mrb[114].mxu1 %vm235_vm0, %v25466_v27 }
 0x2e2   :  { %18824 = vmatprep.mubr.msk.f32.mxu1 %vm23685_vm1, %v23684_v0 }
 0x2e3   :  { %19711 = vmatmul.mubr.msk.f32.gmra.mrb[10].mxu0 %vm235_vm0, %v4645_v29  ;;  %v25481_v29 = vld [vmem:[%s29386_s0 + $0x1d0] sm:$0xff] }
 0x2e4   :  { %19713 = vmatprep.mubr.msk.f32.mxu0 %vm23685_vm1, %v23684_v0 }
 0x2e5   :  { %18825 = vmatmul.mubr.msk.f32.gmra.mrb[116].mxu1 %vm235_vm0, %v25481_v29 }
 0x2e6   :  { %18827 = vmatprep.mubr.msk.f32.mxu1 %vm23685_vm1, %v23684_v0 }
 0x2e7   :  { %19714 = vmatmul.mubr.msk.f32.gmra.mrb[12].mxu0 %vm235_vm0, %v4646_v31  ;;  %v25496_v31 = vld [vmem:[%s29386_s0 + $0x1d8] sm:$0xff] }
 0x2e8   :  { %19716 = vmatprep.mubr.msk.f32.mxu0 %vm23685_vm1, %v23684_v0 }
 0x2e9   :  { %18828 = vmatmul.mubr.msk.f32.gmra.mrb[118].mxu1 %vm235_vm0, %v25496_v31 }
 0x2ea   :  { %18830 = vmatprep.mubr.msk.f32.mxu1 %vm23685_vm1, %v23684_v0 }
 0x2eb   :  { %19717 = vmatmul.mubr.msk.f32.gmra.mrb[14].mxu0 %vm235_vm0, %v4647_v33  ;;  %v25511_v33 = vld [vmem:[%s29386_s0 + $0x1e0] sm:$0xff] }
 0x2ec   :  { %19719 = vmatprep.mubr.msk.f32.mxu0 %vm23685_vm1, %v23684_v0 }
 0x2ed   :  { %18831 = vmatmul.mubr.msk.f32.gmra.mrb[120].mxu1 %vm235_vm0, %v25511_v33 }
 0x2ee   :  { %18833 = vmatprep.mubr.msk.f32.mxu1 %vm23685_vm1, %v23684_v0 }
 0x2ef   :  { %19720 = vmatmul.mubr.msk.f32.gmra.mrb[16].mxu0 %vm235_vm0, %v4648_v35  ;;  %v25526_v35 = vld [vmem:[%s29386_s0 + $0x1e8] sm:$0xff] }
 0x2f0   :  { %19722 = vmatprep.mubr.msk.f32.mxu0 %vm23685_vm1, %v23684_v0 }
 0x2f1   :  { %18834 = vmatmul.mubr.msk.f32.gmra.mrb[122].mxu1 %vm235_vm0, %v25526_v35 }
 0x2f2   :  { %18836 = vmatprep.mubr.msk.f32.mxu1 %vm23685_vm1, %v23684_v0 }
 0x2f3   :  { %19723 = vmatmul.mubr.msk.f32.gmra.mrb[18].mxu0 %vm235_vm0, %v4649_v37  ;;  %v25541_v37 = vld [vmem:[%s29386_s0 + $0x1f0] sm:$0xff] }
 0x2f4   :  { %19725 = vmatprep.mubr.msk.f32.mxu0 %vm23685_vm1, %v23684_v0 }
 0x2f5   :  { %18837 = vmatmul.mubr.msk.f32.gmra.mrb[124].mxu1 %vm235_vm0, %v25541_v37 }
 0x2f6   :  { %18839 = vmatprep.mubr.msk.f32.mxu1 %vm23685_vm1, %v23684_v0 }
 0x2f7   :  { %19726 = vmatmul.mubr.msk.f32.gmra.mrb[20].mxu0 %vm235_vm0, %v4650_v39  ;;  %v25556_v39 = vld [vmem:[%s29386_s0 + $0x1f8] sm:$0xff] }
 0x2f8   :  { %19728 = vmatprep.mubr.msk.f32.mxu0 %vm23685_vm1, %v23684_v0 }
 0x2f9   :  { %18840 = vmatmul.mubr.msk.f32.gmra.mrb[126].mxu1 %vm235_vm0, %v25556_v39 }
 0x2fa   :  { %18842 = vmatprep.mubr.msk.f32.mxu1 %vm23685_vm1, %v23684_v0 }
 0x2fb   :  { %19729 = vmatmul.mubr.msk.f32.gmra.mrb[22].mxu0 %vm235_vm0, %v4651_v41  ;;  %v25571_v41 = vld [vmem:[%s29386_s0 + $0x200] sm:$0xff] }
 0x2fc   :  { %19731 = vmatprep.mubr.msk.f32.mxu0 %vm23685_vm1, %v23684_v0 }
 0x2fd   :  { %18843 = vmatmul.mubr.msk.f32.gmra.mrb[128].mxu1 %vm235_vm0, %v25571_v41 }
 0x2fe   :  { %18845 = vmatprep.mubr.msk.f32.mxu1 %vm23685_vm1, %v23684_v0 }
 0x2ff   :  { %19732 = vmatmul.mubr.msk.f32.gmra.mrb[24].mxu0 %vm235_vm0, %v4652_v43  ;;  %v4683_v43 = vld [vmem:[%s29386_s0 + $0x16a] sm:$0xff] }
 0x300   :  { %19734 = vmatprep.mubr.msk.f32.mxu0 %vm23685_vm1, %v23684_v0 }
 0x303   :  { %19735 = vmatmul.mubr.msk.f32.gmra.mrb[26].mxu0 %vm235_vm0, %v4653_v60  ;;  %v230_v60 = vld [vmem:[%s29386_s0 + $0x208] sm:$0xff] }
 0x304   :  { %19737 = vmatprep.mubr.msk.f32.mxu0 %vm23685_vm1, %v23684_v0  ;;  %18846 = vmatmul.mubr.msk.f32.gmra.mrb[130].mxu1 %vm235_vm0, %v230_v60  ;;  %v4698_v60 = vld [vmem:[%s29386_s0 + $0x1e2] sm:$0xff] }
 0x305   :  { %18848 = vmatprep.mubr.msk.f32.mxu1 %vm23685_vm1, %v23684_v0 }
 0x307   :  { %19738 = vmatmul.mubr.msk.f32.gmra.mrb[28].mxu0 %vm235_vm0, %v4654_v62  ;;  %v4684_v62 = vld [vmem:[%s29386_s0 + $0x172] sm:$0xff] }
 0x308   :  { %19740 = vmatprep.mubr.msk.f32.mxu0 %vm23685_vm1, %v23684_v0 }
 0x30b   :  { %19741 = vmatmul.mubr.msk.f32.gmra.mrb[30].mxu0 %vm235_vm0, %v4655_v1  ;;  %v231_v1 = vld [vmem:[%s29386_s0 + $0x210] sm:$0xff] }
 0x30c   :  { %19743 = vmatprep.mubr.msk.f32.mxu0 %vm23685_vm1, %v23684_v0  ;;  %18849 = vmatmul.mubr.msk.f32.gmra.mrb[132].mxu1 %vm235_vm0, %v231_v1  ;;  %v4699_v1 = vld [vmem:[%s29386_s0 + $0x1ea] sm:$0xff] }
 0x30d   :  { %18851 = vmatprep.mubr.msk.f32.mxu1 %vm23685_vm1, %v23684_v0 }
 0x30f   :  { %19744 = vmatmul.mubr.msk.f32.gmra.mrb[32].mxu0 %vm235_vm0, %v4656_v3  ;;  %v4685_v3 = vld [vmem:[%s29386_s0 + $0x17a] sm:$0xff] }
 0x310   :  { %19746 = vmatprep.mubr.msk.f32.mxu0 %vm23685_vm1, %v23684_v0 }
 0x313   :  { %19747 = vmatmul.mubr.msk.f32.gmra.mrb[34].mxu0 %vm235_vm0, %v4657_v5  ;;  %v232_v5 = vld [vmem:[%s29386_s0 + $0x218] sm:$0xff] }
 0x314   :  { %19749 = vmatprep.mubr.msk.f32.mxu0 %vm23685_vm1, %v23684_v0  ;;  %18852 = vmatmul.mubr.msk.f32.gmra.mrb[134].mxu1 %vm235_vm0, %v232_v5  ;;  %v4700_v5 = vld [vmem:[%s29386_s0 + $0x1f2] sm:$0xff] }
 0x315   :  { %18854 = vmatprep.mubr.msk.f32.mxu1 %vm23685_vm1, %v23684_v0 }
 0x317   :  { %19750 = vmatmul.mubr.msk.f32.gmra.mrb[36].mxu0 %vm235_vm0, %v4658_v7  ;;  %v4686_v7 = vld [vmem:[%s29386_s0 + $0x182] sm:$0xff] }
 0x318   :  { %19752 = vmatprep.mubr.msk.f32.mxu0 %vm23685_vm1, %v23684_v0 }
 0x31b   :  { %19753 = vmatmul.mubr.msk.f32.gmra.mrb[38].mxu0 %vm235_vm0, %v4659_v9  ;;  %v233_v9 = vld [vmem:[%s29386_s0 + $0x220] sm:$0xff] }
 0x31c   :  { %19755 = vmatprep.mubr.msk.f32.mxu0 %vm23685_vm1, %v23684_v0  ;;  %18855 = vmatmul.mubr.msk.f32.gmra.mrb[136].mxu1 %vm235_vm0, %v233_v9  ;;  %v4701_v9 = vld [vmem:[%s29386_s0 + $0x1fa] sm:$0xff] }
 0x31d   :  { %18859 = vmatprep.mubr.msk.f32.mxu1 %vm23685_vm1, %v23684_v0 }
 0x31f   :  { %19756 = vmatmul.mubr.msk.f32.gmra.mrb[40].mxu0 %vm235_vm0, %v4660_v44  ;;  %v4687_v44 = vld [vmem:[%s29386_s0 + $0x18a] sm:$0xff] }
 0x320   :  { %19758 = vmatprep.mubr.msk.f32.mxu0 %vm23685_vm1, %v23684_v0 }
 0x323   :  { %19759 = vmatmul.mubr.msk.f32.gmra.mrb[42].mxu0 %vm235_vm0, %v4661_v47  ;;  %v16237_v47 = vld [vmem:[%s29385_s1 + $0x8] sm:$0xff] }
 0x324   :  { %19761 = vmatprep.mubr.msk.f32.mxu0 %vm23685_vm1, %v23684_v0  ;;  %18858 = vmatpush3.msra.mxu1 %v16237_v47  ;;  %v4702_v47 = vld [vmem:[%s29386_s0 + $0x202] sm:$0xff] }
 0x325   :  { %21537 = vmatprep.subr.mxu1 %v23684_v0 }
 0x327   :  { %19762 = vmatmul.mubr.msk.f32.gmra.mrb[44].mxu0 %vm235_vm0, %v4662_v49  ;;  %v1060_v49 = vld [vmem:[%s29386_s0 + $0x1] sm:$0xff] }
 0x328   :  { %19764 = vmatprep.mubr.msk.f32.mxu0 %vm23685_vm1, %v23684_v0  ;;  %18860 = vmatmul.mubr.msk.f32.vlgmr.msra.gmra.mrb[0].mxu1 %vm235_vm0, %v1060_v49  ;;  %v1075_v49 = vld [vmem:[%s29386_s0 + $0x79] sm:$0xff] }
 0x329   :  { %18862 = vmatprep.mubr.msk.f32.mxu1 %vm23685_vm1, %v23684_v0 }
 0x32b   :  { %19765 = vmatmul.mubr.msk.f32.gmra.mrb[46].mxu0 %vm235_vm0, %v4663_v51  ;;  %v4688_v51 = vld [vmem:[%s29386_s0 + $0x192] sm:$0xff] }
 0x32c   :  { %19767 = vmatprep.mubr.msk.f32.mxu0 %vm23685_vm1, %v23684_v0 }
 0x32f   :  { %19768 = vmatmul.mubr.msk.f32.gmra.mrb[48].mxu0 %vm235_vm0, %v4664_v53  ;;  %v23625_v53 = vld [vmem:[%s29385_s1 + $0x10] sm:$0xff] }
 0x330   :  { %19770 = vmatprep.mubr.msk.f32.mxu0 %vm23685_vm1, %v23684_v0  ;;  %21538 = vmatpush3.msra.mxu1 %v23625_v53  ;;  %v1076_v53 = vld [vmem:[%s29386_s0 + $0x81] sm:$0xff] }
 0x333   :  { %19771 = vmatmul.mubr.msk.f32.gmra.mrb[50].mxu0 %vm235_vm0, %v4665_v55  ;;  %v1061_v55 = vld [vmem:[%s29386_s0 + $0x9] sm:$0xff] }
 0x334   :  { %19773 = vmatprep.mubr.msk.f32.mxu0 %vm23685_vm1, %v23684_v0  ;;  %18863 = vmatmul.mubr.msk.f32.gmra.mrb[2].mxu1 %vm235_vm0, %v1061_v55  ;;  %v4704_v55 = vld [vmem:[%s29386_s0 + $0x212] sm:$0xff] }
 0x335   :  { %18865 = vmatprep.mubr.msk.f32.mxu1 %vm23685_vm1, %v23684_v0 }
 0x337   :  { %19774 = vmatmul.mubr.msk.f32.gmra.mrb[52].mxu0 %vm235_vm0, %v4666_v57  ;;  %v4689_v57 = vld [vmem:[%s29386_s0 + $0x19a] sm:$0xff] }
 0x338   :  { %19776 = vmatprep.mubr.msk.f32.mxu0 %vm23685_vm1, %v23684_v0 }
 0x33b   :  { %19777 = vmatmul.mubr.msk.f32.gmra.mrb[54].mxu0 %vm235_vm0, %v4667_v11  ;;  %v1062_v11 = vld [vmem:[%s29386_s0 + $0x11] sm:$0xff] }
 0x33c   :  { %19779 = vmatprep.mubr.msk.f32.mxu0 %vm23685_vm1, %v23684_v0  ;;  %18866 = vmatmul.mubr.msk.f32.gmra.mrb[4].mxu1 %vm235_vm0, %v1062_v11  ;;  %v4705_v11 = vld [vmem:[%s29386_s0 + $0x21a] sm:$0xff] }
 0x33d   :  { %18868 = vmatprep.mubr.msk.f32.mxu1 %vm23685_vm1, %v23684_v0 }
 0x33f   :  { %19780 = vmatmul.mubr.msk.f32.gmra.mrb[56].mxu0 %vm235_vm0, %v4668_v12  ;;  %v4690_v12 = vld [vmem:[%s29386_s0 + $0x1a2] sm:$0xff] }
 0x340   :  { %19782 = vmatprep.mubr.msk.f32.mxu0 %vm23685_vm1, %v23684_v0 }
 0x343   :  { %19783 = vmatmul.mubr.msk.f32.gmra.mrb[58].mxu0 %vm235_vm0, %v4669_v14  ;;  %v1063_v14 = vld [vmem:[%s29386_s0 + $0x19] sm:$0xff] }
 0x344   :  { %19785 = vmatprep.mubr.msk.f32.mxu0 %vm23685_vm1, %v23684_v0  ;;  %18869 = vmatmul.mubr.msk.f32.gmra.mrb[6].mxu1 %vm235_vm0, %v1063_v14  ;;  %v4706_v14 = vld [vmem:[%s29386_s0 + $0x222] sm:$0xff] }
 0x345   :  { %18871 = vmatprep.mubr.msk.f32.mxu1 %vm23685_vm1, %v23684_v0 }
 0x347   :  { %19786 = vmatmul.mubr.msk.f32.gmra.mrb[60].mxu0 %vm235_vm0, %v4670_v16  ;;  %v4691_v16 = vld [vmem:[%s29386_s0 + $0x1aa] sm:$0xff] }
 0x348   :  { %19788 = vmatprep.mubr.msk.f32.mxu0 %vm23685_vm1, %v23684_v0 }
 0x34b   :  { %19789 = vmatmul.mubr.msk.f32.gmra.mrb[62].mxu0 %vm235_vm0, %v4671_v18  ;;  %v1064_v18 = vld [vmem:[%s29386_s0 + $0x21] sm:$0xff] }
 0x34c   :  { %19791 = vmatprep.mubr.msk.f32.mxu0 %vm23685_vm1, %v23684_v0  ;;  %18872 = vmatmul.mubr.msk.f32.gmra.mrb[8].mxu1 %vm235_vm0, %v1064_v18  ;;  %v4707_v18 = vld [vmem:[%s29386_s0 + $0x22a] sm:$0xff] }
 0x34d   :  { %18874 = vmatprep.mubr.msk.f32.mxu1 %vm23685_vm1, %v23684_v0 }
 0x34f   :  { %19792 = vmatmul.mubr.msk.f32.gmra.mrb[64].mxu0 %vm235_vm0, %v4672_v20  ;;  %v4692_v20 = vld [vmem:[%s29386_s0 + $0x1b2] sm:$0xff] }
 0x350   :  { %19794 = vmatprep.mubr.msk.f32.mxu0 %vm23685_vm1, %v23684_v0 }
 0x353   :  { %19795 = vmatmul.mubr.msk.f32.gmra.mrb[66].mxu0 %vm235_vm0, %v4673_v22  ;;  %v1065_v22 = vld [vmem:[%s29386_s0 + $0x29] sm:$0xff] }
 0x354   :  { %19797 = vmatprep.mubr.msk.f32.mxu0 %vm23685_vm1, %v23684_v0  ;;  %18875 = vmatmul.mubr.msk.f32.gmra.mrb[10].mxu1 %vm235_vm0, %v1065_v22  ;;  %v4708_v22 = vld [vmem:[%s29386_s0 + $0x232] sm:$0xff] }
 0x355   :  { %18877 = vmatprep.mubr.msk.f32.mxu1 %vm23685_vm1, %v23684_v0 }
 0x357   :  { %19798 = vmatmul.mubr.msk.f32.gmra.mrb[68].mxu0 %vm235_vm0, %v4674_v24  ;;  %v4693_v24 = vld [vmem:[%s29386_s0 + $0x1ba] sm:$0xff] }
 0x358   :  { %19800 = vmatprep.mubr.msk.f32.mxu0 %vm23685_vm1, %v23684_v0 }
 0x35b   :  { %19801 = vmatmul.mubr.msk.f32.gmra.mrb[70].mxu0 %vm235_vm0, %v4675_v26  ;;  %v1066_v26 = vld [vmem:[%s29386_s0 + $0x31] sm:$0xff] }
 0x35c   :  { %19803 = vmatprep.mubr.msk.f32.mxu0 %vm23685_vm1, %v23684_v0  ;;  %18878 = vmatmul.mubr.msk.f32.gmra.mrb[12].mxu1 %vm235_vm0, %v1066_v26  ;;  %v5535_v26 = vld [vmem:[%s29386_s0 + $0x20] sm:$0xff] }
 0x35d   :  { %18880 = vmatprep.mubr.msk.f32.mxu1 %vm23685_vm1, %v23684_v0 }
 0x35f   :  { %19804 = vmatmul.mubr.msk.f32.gmra.mrb[72].mxu0 %vm235_vm0, %v4676_v28  ;;  %v4694_v28 = vld [vmem:[%s29386_s0 + $0x1c2] sm:$0xff] }
 0x360   :  { %19806 = vmatprep.mubr.msk.f32.mxu0 %vm23685_vm1, %v23684_v0 }
 0x363   :  { %19807 = vmatmul.mubr.msk.f32.gmra.mrb[74].mxu0 %vm235_vm0, %v4677_v30  ;;  %v1067_v30 = vld [vmem:[%s29386_s0 + $0x39] sm:$0xff] }
 0x364   :  { %19809 = vmatprep.mubr.msk.f32.mxu0 %vm23685_vm1, %v23684_v0  ;;  %18881 = vmatmul.mubr.msk.f32.gmra.mrb[14].mxu1 %vm235_vm0, %v1067_v30  ;;  %v1082_v30 = vld [vmem:[%s29386_s0 + $0xb1] sm:$0xff] }
 0x365   :  { %18883 = vmatprep.mubr.msk.f32.mxu1 %vm23685_vm1, %v23684_v0 }
 0x367   :  { %19810 = vmatmul.mubr.msk.f32.gmra.mrb[76].mxu0 %vm235_vm0, %v4678_v32  ;;  %v4695_v32 = vld [vmem:[%s29386_s0 + $0x1ca] sm:$0xff] }
 0x368   :  { %19812 = vmatprep.mubr.msk.f32.mxu0 %vm23685_vm1, %v23684_v0 }
 0x36b   :  { %19813 = vmatmul.mubr.msk.f32.gmra.mrb[78].mxu0 %vm235_vm0, %v4679_v34  ;;  %v1068_v34 = vld [vmem:[%s29386_s0 + $0x41] sm:$0xff] }
 0x36c   :  { %19815 = vmatprep.mubr.msk.f32.mxu0 %vm23685_vm1, %v23684_v0  ;;  %18884 = vmatmul.mubr.msk.f32.gmra.mrb[16].mxu1 %vm235_vm0, %v1068_v34  ;;  %v1083_v34 = vld [vmem:[%s29386_s0 + $0xb9] sm:$0xff] }
 0x36d   :  { %18886 = vmatprep.mubr.msk.f32.mxu1 %vm23685_vm1, %v23684_v0 }
 0x36f   :  { %19816 = vmatmul.mubr.msk.f32.gmra.mrb[80].mxu0 %vm235_vm0, %v4680_v36  ;;  %v4696_v36 = vld [vmem:[%s29386_s0 + $0x1d2] sm:$0xff] }
 0x370   :  { %19818 = vmatprep.mubr.msk.f32.mxu0 %vm23685_vm1, %v23684_v0 }
 0x373   :  { %19819 = vmatmul.mubr.msk.f32.gmra.mrb[82].mxu0 %vm235_vm0, %v4681_v38  ;;  %v1069_v38 = vld [vmem:[%s29386_s0 + $0x49] sm:$0xff] }
 0x374   :  { %19821 = vmatprep.mubr.msk.f32.mxu0 %vm23685_vm1, %v23684_v0  ;;  %18887 = vmatmul.mubr.msk.f32.gmra.mrb[18].mxu1 %vm235_vm0, %v1069_v38  ;;  %v1084_v38 = vld [vmem:[%s29386_s0 + $0xc1] sm:$0xff] }
 0x375   :  { %18889 = vmatprep.mubr.msk.f32.mxu1 %vm23685_vm1, %v23684_v0 }
 0x377   :  { %19822 = vmatmul.mubr.msk.f32.gmra.mrb[84].mxu0 %vm235_vm0, %v4682_v40  ;;  %v4697_v40 = vld [vmem:[%s29386_s0 + $0x1da] sm:$0xff] }
 0x378   :  { %19824 = vmatprep.mubr.msk.f32.mxu0 %vm23685_vm1, %v23684_v0 }
 0x37b   :  { %19825 = vmatmul.mubr.msk.f32.gmra.mrb[86].mxu0 %vm235_vm0, %v4683_v43  ;;  %v1070_v43 = vld [vmem:[%s29386_s0 + $0x51] sm:$0xff] }
 0x37c   :  { %19827 = vmatprep.mubr.msk.f32.mxu0 %vm23685_vm1, %v23684_v0  ;;  %18890 = vmatmul.mubr.msk.f32.gmra.mrb[20].mxu1 %vm235_vm0, %v1070_v43  ;;  %v1085_v43 = vld [vmem:[%s29386_s0 + $0xc9] sm:$0xff] }
 0x37d   :  { %18892 = vmatprep.mubr.msk.f32.mxu1 %vm23685_vm1, %v23684_v0 }
 0x37f   :  { %19828 = vmatmul.mubr.msk.f32.gmra.mrb[88].mxu0 %vm235_vm0, %v4684_v62  ;;  %v1071_v62 = vld [vmem:[%s29386_s0 + $0x59] sm:$0xff] }
 0x380   :  { %19830 = vmatprep.mubr.msk.f32.mxu0 %vm23685_vm1, %v23684_v0  ;;  %18893 = vmatmul.mubr.msk.f32.gmra.mrb[22].mxu1 %vm235_vm0, %v1071_v62  ;;  %v1086_v62 = vld [vmem:[%s29386_s0 + $0xd1] sm:$0xff] }
 0x381   :  { %18895 = vmatprep.mubr.msk.f32.mxu1 %vm23685_vm1, %v23684_v0 }
 0x383   :  { %19831 = vmatmul.mubr.msk.f32.gmra.mrb[90].mxu0 %vm235_vm0, %v4685_v3  ;;  %v1072_v3 = vld [vmem:[%s29386_s0 + $0x61] sm:$0xff] }
 0x384   :  { %19833 = vmatprep.mubr.msk.f32.mxu0 %vm23685_vm1, %v23684_v0  ;;  %18896 = vmatmul.mubr.msk.f32.gmra.mrb[24].mxu1 %vm235_vm0, %v1072_v3  ;;  %v1087_v3 = vld [vmem:[%s29386_s0 + $0xd9] sm:$0xff] }
 0x385   :  { %18898 = vmatprep.mubr.msk.f32.mxu1 %vm23685_vm1, %v23684_v0 }
 0x387   :  { %19834 = vmatmul.mubr.msk.f32.gmra.mrb[92].mxu0 %vm235_vm0, %v4686_v7  ;;  %v1073_v7 = vld [vmem:[%s29386_s0 + $0x69] sm:$0xff] }
 0x388   :  { %19836 = vmatprep.mubr.msk.f32.mxu0 %vm23685_vm1, %v23684_v0  ;;  %18899 = vmatmul.mubr.msk.f32.gmra.mrb[26].mxu1 %vm235_vm0, %v1073_v7  ;;  %v1088_v7 = vld [vmem:[%s29386_s0 + $0xe1] sm:$0xff] }
 0x389   :  { %18901 = vmatprep.mubr.msk.f32.mxu1 %vm23685_vm1, %v23684_v0 }
 0x38b   :  { %19837 = vmatmul.mubr.msk.f32.gmra.mrb[94].mxu0 %vm235_vm0, %v4687_v44  ;;  %v1074_v44 = vld [vmem:[%s29386_s0 + $0x71] sm:$0xff] }
 0x38c   :  { %19839 = vmatprep.mubr.msk.f32.mxu0 %vm23685_vm1, %v23684_v0  ;;  %18902 = vmatmul.mubr.msk.f32.gmra.mrb[28].mxu1 %vm235_vm0, %v1074_v44  ;;  %v1089_v44 = vld [vmem:[%s29386_s0 + $0xe9] sm:$0xff] }
 0x38d   :  { %18904 = vmatprep.mubr.msk.f32.mxu1 %vm23685_vm1, %v23684_v0 }
 0x38f   :  { %19840 = vmatmul.mubr.msk.f32.gmra.mrb[96].mxu0 %vm235_vm0, %v4688_v51  ;;  %v4703_v51 = vld [vmem:[%s29386_s0 + $0x20a] sm:$0xff] }
 0x390   :  { %19842 = vmatprep.mubr.msk.f32.mxu0 %vm23685_vm1, %v23684_v0  ;;  %18905 = vmatmul.mubr.msk.f32.gmra.mrb[30].mxu1 %vm235_vm0, %v1075_v49  ;;  %v1090_v49 = vld [vmem:[%s29386_s0 + $0xf1] sm:$0xff] }
 0x391   :  { %18907 = vmatprep.mubr.msk.f32.mxu1 %vm23685_vm1, %v23684_v0 }
 0x393   :  { %19843 = vmatmul.mubr.msk.f32.gmra.mrb[98].mxu0 %vm235_vm0, %v4689_v57  ;;  %v1077_v57 = vld [vmem:[%s29386_s0 + $0x89] sm:$0xff] }
 0x394   :  { %19845 = vmatprep.mubr.msk.f32.mxu0 %vm23685_vm1, %v23684_v0  ;;  %18908 = vmatmul.mubr.msk.f32.gmra.mrb[32].mxu1 %vm235_vm0, %v1076_v53  ;;  %v1091_v53 = vld [vmem:[%s29386_s0 + $0xf9] sm:$0xff] }
 0x395   :  { %18910 = vmatprep.mubr.msk.f32.mxu1 %vm23685_vm1, %v23684_v0 }
 0x397   :  { %19846 = vmatmul.mubr.msk.f32.gmra.mrb[100].mxu0 %vm235_vm0, %v4690_v12  ;;  %v1078_v12 = vld [vmem:[%s29386_s0 + $0x91] sm:$0xff] }
 0x398   :  { %19848 = vmatprep.mubr.msk.f32.mxu0 %vm23685_vm1, %v23684_v0  ;;  %18911 = vmatmul.mubr.msk.f32.gmra.mrb[34].mxu1 %vm235_vm0, %v1077_v57  ;;  %v1092_v57 = vld [vmem:[%s29386_s0 + $0x101] sm:$0xff] }
 0x399   :  { %18913 = vmatprep.mubr.msk.f32.mxu1 %vm23685_vm1, %v23684_v0 }
 0x39b   :  { %19849 = vmatmul.mubr.msk.f32.gmra.mrb[102].mxu0 %vm235_vm0, %v4691_v16  ;;  %v1079_v16 = vld [vmem:[%s29386_s0 + $0x99] sm:$0xff] }
 0x39c   :  { %19851 = vmatprep.mubr.msk.f32.mxu0 %vm23685_vm1, %v23684_v0  ;;  %18914 = vmatmul.mubr.msk.f32.gmra.mrb[36].mxu1 %vm235_vm0, %v1078_v12  ;;  %v1093_v12 = vld [vmem:[%s29386_s0 + $0x109] sm:$0xff] }
 0x39d   :  { %18916 = vmatprep.mubr.msk.f32.mxu1 %vm23685_vm1, %v23684_v0 }
 0x39f   :  { %19852 = vmatmul.mubr.msk.f32.gmra.mrb[104].mxu0 %vm235_vm0, %v4692_v20  ;;  %v1080_v20 = vld [vmem:[%s29386_s0 + $0xa1] sm:$0xff] }
 0x3a0   :  { %19854 = vmatprep.mubr.msk.f32.mxu0 %vm23685_vm1, %v23684_v0  ;;  %18917 = vmatmul.mubr.msk.f32.gmra.mrb[38].mxu1 %vm235_vm0, %v1079_v16  ;;  %v1094_v16 = vld [vmem:[%s29386_s0 + $0x111] sm:$0xff] }
 0x3a1   :  { %18919 = vmatprep.mubr.msk.f32.mxu1 %vm23685_vm1, %v23684_v0 }
 0x3a3   :  { %19855 = vmatmul.mubr.msk.f32.gmra.mrb[106].mxu0 %vm235_vm0, %v4693_v24  ;;  %v1081_v24 = vld [vmem:[%s29386_s0 + $0xa9] sm:$0xff] }
 0x3a4   :  { %19857 = vmatprep.mubr.msk.f32.mxu0 %vm23685_vm1, %v23684_v0  ;;  %18920 = vmatmul.mubr.msk.f32.gmra.mrb[40].mxu1 %vm235_vm0, %v1080_v20  ;;  %v1095_v20 = vld [vmem:[%s29386_s0 + $0x119] sm:$0xff] }
 0x3a5   :  { %18922 = vmatprep.mubr.msk.f32.mxu1 %vm23685_vm1, %v23684_v0 }
 0x3a7   :  { %19858 = vmatmul.mubr.msk.f32.gmra.mrb[108].mxu0 %vm235_vm0, %v4694_v28  ;;  %v16657_v28 = vld [vmem:[%s29385_s1 + $0x38] sm:$0xff] }
 0x3a8   :  { %19860 = vmatprep.mubr.msk.f32.mxu0 %vm23685_vm1, %v23684_v0  ;;  %18923 = vmatmul.mubr.msk.f32.gmra.mrb[42].mxu1 %vm235_vm0, %v1081_v24  ;;  %v1096_v24 = vld [vmem:[%s29386_s0 + $0x121] sm:$0xff] }
 0x3a9   :  { %18925 = vmatprep.mubr.msk.f32.mxu1 %vm23685_vm1, %v23684_v0 }
 0x3ab   :  { %19861 = vmatmul.mubr.msk.f32.gmra.mrb[110].mxu0 %vm235_vm0, %v4695_v32  ;;  %v5536_v32 = vld [vmem:[%s29386_s0 + $0x28] sm:$0xff] }
 0x3ac   :  { %19863 = vmatprep.mubr.msk.f32.mxu0 %vm23685_vm1, %v23684_v0  ;;  %18926 = vmatmul.mubr.msk.f32.gmra.mrb[44].mxu1 %vm235_vm0, %v1082_v30  ;;  %v23629_v30 = vld [vmem:[%s29386_s0 + $0xa0] sm:$0xff] }
 0x3ad   :  { %18928 = vmatprep.mubr.msk.f32.mxu1 %vm23685_vm1, %v23684_v0 }
 0x3af   :  { %19864 = vmatmul.mubr.msk.f32.gmra.mrb[112].mxu0 %vm235_vm0, %v4696_v36  ;;  %v5537_v36 = vld [vmem:[%s29386_s0 + $0x30] sm:$0xff] }
 0x3b0   :  { %19866 = vmatprep.mubr.msk.f32.mxu0 %vm23685_vm1, %v23684_v0  ;;  %18929 = vmatmul.mubr.msk.f32.gmra.mrb[46].mxu1 %vm235_vm0, %v1083_v34  ;;  %v23630_v34 = vld [vmem:[%s29386_s0 + $0xa8] sm:$0xff] }
 0x3b1   :  { %18931 = vmatprep.mubr.msk.f32.mxu1 %vm23685_vm1, %v23684_v0 }
 0x3b3   :  { %19867 = vmatmul.mubr.msk.f32.gmra.mrb[114].mxu0 %vm235_vm0, %v4697_v40  ;;  %v5538_v40 = vld [vmem:[%s29386_s0 + $0x38] sm:$0xff] }
 0x3b4   :  { %19869 = vmatprep.mubr.msk.f32.mxu0 %vm23685_vm1, %v23684_v0  ;;  %18932 = vmatmul.mubr.msk.f32.gmra.mrb[48].mxu1 %vm235_vm0, %v1084_v38  ;;  %v23631_v38 = vld [vmem:[%s29386_s0 + $0xb0] sm:$0xff] }
 0x3b5   :  { %18934 = vmatprep.mubr.msk.f32.mxu1 %vm23685_vm1, %v23684_v0 }
 0x3b7   :  { %19870 = vmatmul.mubr.msk.f32.gmra.mrb[116].mxu0 %vm235_vm0, %v4698_v60  ;;  %v5539_v60 = vld [vmem:[%s29386_s0 + $0x40] sm:$0xff] }
 0x3b8   :  { %19872 = vmatprep.mubr.msk.f32.mxu0 %vm23685_vm1, %v23684_v0  ;;  %18935 = vmatmul.mubr.msk.f32.gmra.mrb[50].mxu1 %vm235_vm0, %v1085_v43  ;;  %v23632_v43 = vld [vmem:[%s29386_s0 + $0xb8] sm:$0xff] }
 0x3b9   :  { %18937 = vmatprep.mubr.msk.f32.mxu1 %vm23685_vm1, %v23684_v0 }
 0x3bb   :  { %19873 = vmatmul.mubr.msk.f32.gmra.mrb[118].mxu0 %vm235_vm0, %v4699_v1  ;;  %v5540_v1 = vld [vmem:[%s29386_s0 + $0x48] sm:$0xff] }
 0x3bc   :  { %19875 = vmatprep.mubr.msk.f32.mxu0 %vm23685_vm1, %v23684_v0  ;;  %18938 = vmatmul.mubr.msk.f32.gmra.mrb[52].mxu1 %vm235_vm0, %v1086_v62  ;;  %v23633_v62 = vld [vmem:[%s29386_s0 + $0xc0] sm:$0xff] }
 0x3bd   :  { %18940 = vmatprep.mubr.msk.f32.mxu1 %vm23685_vm1, %v23684_v0 }
 0x3bf   :  { %19876 = vmatmul.mubr.msk.f32.gmra.mrb[120].mxu0 %vm235_vm0, %v4700_v5  ;;  %v5541_v5 = vld [vmem:[%s29386_s0 + $0x50] sm:$0xff] }
 0x3c0   :  { %19878 = vmatprep.mubr.msk.f32.mxu0 %vm23685_vm1, %v23684_v0  ;;  %18941 = vmatmul.mubr.msk.f32.gmra.mrb[54].mxu1 %vm235_vm0, %v1087_v3  ;;  %v23634_v3 = vld [vmem:[%s29386_s0 + $0xc8] sm:$0xff] }
 0x3c1   :  { %18943 = vmatprep.mubr.msk.f32.mxu1 %vm23685_vm1, %v23684_v0 }
 0x3c3   :  { %19879 = vmatmul.mubr.msk.f32.gmra.mrb[122].mxu0 %vm235_vm0, %v4701_v9  ;;  %v5542_v9 = vld [vmem:[%s29386_s0 + $0x58] sm:$0xff] }
 0x3c4   :  { %19881 = vmatprep.mubr.msk.f32.mxu0 %vm23685_vm1, %v23684_v0  ;;  %18944 = vmatmul.mubr.msk.f32.gmra.mrb[56].mxu1 %vm235_vm0, %v1088_v7  ;;  %v23635_v7 = vld [vmem:[%s29386_s0 + $0xd0] sm:$0xff] }
 0x3c5   :  { %18946 = vmatprep.mubr.msk.f32.mxu1 %vm23685_vm1, %v23684_v0 }
 0x3c7   :  { %19882 = vmatmul.mubr.msk.f32.gmra.mrb[124].mxu0 %vm235_vm0, %v4702_v47  ;;  %v5543_v47 = vld [vmem:[%s29386_s0 + $0x60] sm:$0xff] }
 0x3c8   :  { %19884 = vmatprep.mubr.msk.f32.mxu0 %vm23685_vm1, %v23684_v0  ;;  %18947 = vmatmul.mubr.msk.f32.gmra.mrb[58].mxu1 %vm235_vm0, %v1089_v44  ;;  %v23636_v44 = vld [vmem:[%s29386_s0 + $0xd8] sm:$0xff] }
 0x3c9   :  { %18949 = vmatprep.mubr.msk.f32.mxu1 %vm23685_vm1, %v23684_v0 }
 0x3cb   :  { %19885 = vmatmul.mubr.msk.f32.gmra.mrb[126].mxu0 %vm235_vm0, %v4703_v51  ;;  %v5544_v51 = vld [vmem:[%s29386_s0 + $0x68] sm:$0xff] }
 0x3cc   :  { %19887 = vmatprep.mubr.msk.f32.mxu0 %vm23685_vm1, %v23684_v0  ;;  %18950 = vmatmul.mubr.msk.f32.gmra.mrb[60].mxu1 %vm235_vm0, %v1090_v49  ;;  %v23637_v49 = vld [vmem:[%s29386_s0 + $0xe0] sm:$0xff] }
 0x3cd   :  { %18952 = vmatprep.mubr.msk.f32.mxu1 %vm23685_vm1, %v23684_v0 }
 0x3cf   :  { %19888 = vmatmul.mubr.msk.f32.gmra.mrb[128].mxu0 %vm235_vm0, %v4704_v55  ;;  %v5545_v55 = vld [vmem:[%s29386_s0 + $0x70] sm:$0xff] }
 0x3d0   :  { %19890 = vmatprep.mubr.msk.f32.mxu0 %vm23685_vm1, %v23684_v0  ;;  %18953 = vmatmul.mubr.msk.f32.gmra.mrb[62].mxu1 %vm235_vm0, %v1091_v53  ;;  %v23638_v53 = vld [vmem:[%s29386_s0 + $0xe8] sm:$0xff] }
 0x3d1   :  { %18955 = vmatprep.mubr.msk.f32.mxu1 %vm23685_vm1, %v23684_v0 }
 0x3d3   :  { %19891 = vmatmul.mubr.msk.f32.gmra.mrb[130].mxu0 %vm235_vm0, %v4705_v11  ;;  %v5546_v11 = vld [vmem:[%s29386_s0 + $0x78] sm:$0xff] }
 0x3d4   :  { %19893 = vmatprep.mubr.msk.f32.mxu0 %vm23685_vm1, %v23684_v0  ;;  %18956 = vmatmul.mubr.msk.f32.gmra.mrb[64].mxu1 %vm235_vm0, %v1092_v57  ;;  %v23639_v57 = vld [vmem:[%s29386_s0 + $0xf0] sm:$0xff] }
 0x3d5   :  { %18958 = vmatprep.mubr.msk.f32.mxu1 %vm23685_vm1, %v23684_v0 }
 0x3d7   :  { %19894 = vmatmul.mubr.msk.f32.gmra.mrb[132].mxu0 %vm235_vm0, %v4706_v14  ;;  %v5547_v14 = vld [vmem:[%s29386_s0 + $0x80] sm:$0xff] }
 0x3d8   :  { %19896 = vmatprep.mubr.msk.f32.mxu0 %vm23685_vm1, %v23684_v0  ;;  %18959 = vmatmul.mubr.msk.f32.gmra.mrb[66].mxu1 %vm235_vm0, %v1093_v12  ;;  %v23640_v12 = vld [vmem:[%s29386_s0 + $0xf8] sm:$0xff] }
 0x3d9   :  { %18961 = vmatprep.mubr.msk.f32.mxu1 %vm23685_vm1, %v23684_v0 }
 0x3db   :  { %19897 = vmatmul.mubr.msk.f32.gmra.mrb[134].mxu0 %vm235_vm0, %v4707_v18  ;;  %v23626_v18 = vld [vmem:[%s29386_s0 + $0x88] sm:$0xff] }
 0x3dc   :  { %19899 = vmatprep.mubr.msk.f32.mxu0 %vm23685_vm1, %v23684_v0  ;;  %18962 = vmatmul.mubr.msk.f32.gmra.mrb[68].mxu1 %vm235_vm0, %v1094_v16  ;;  %v23641_v16 = vld [vmem:[%s29386_s0 + $0x100] sm:$0xff] }
 0x3dd   :  { %18964 = vmatprep.mubr.msk.f32.mxu1 %vm23685_vm1, %v23684_v0 }
 0x3df   :  { %19900 = vmatmul.mubr.msk.f32.gmra.mrb[136].mxu0 %vm235_vm0, %v4708_v22  ;;  %v23627_v22 = vld [vmem:[%s29386_s0 + $0x90] sm:$0xff] }
 0x3e0   :  { %19904 = vmatprep.mubr.msk.f32.mxu0 %vm23685_vm1, %v23684_v0  ;;  %18965 = vmatmul.mubr.msk.f32.gmra.mrb[70].mxu1 %vm235_vm0, %v1095_v20  ;;  %v1111_v20 = vld [vmem:[%s29386_s0 + $0x199] sm:$0xff] }
 0x3e1   :  { %18967 = vmatprep.mubr.msk.f32.mxu1 %vm23685_vm1, %v23684_v0 }
 0x3e3   :  { %19905 = vmatmul.mubr.msk.f32.vlgmr.msra.gmra.mrb[0].mxu0 %vm235_vm0, %v5535_v26  ;;  %v23628_v26 = vld [vmem:[%s29386_s0 + $0x98] sm:$0xff] }
 0x3e4   :  { %20112 = vmatpush3.msra.mxu0 %v16657_v28  ;;  %19907 = vmatprep.mubr.msk.f32.mxu0 %vm23685_vm1, %v23684_v0  ;;  %v1097_v28 = vld [vmem:[%s29386_s0 + $0x129] sm:$0xff] }
 0x3e5   :  { %20320 = vmatprep.subr.mxu0 %v23684_v0  ;;  %18968 = vmatmul.mubr.msk.f32.gmra.mrb[72].mxu1 %vm235_vm0, %v1096_v24  ;;  %v26560_v24 = vld [vmem:[%s29387_s2] ss:$0 sm:$0xff] }
 0x3e6   :  { %18970 = vmatprep.mubr.msk.f32.mxu1 %vm23685_vm1, %v23684_v0  ;;  %72 = vst [vmem:[#allocation2 + $0x168] sm:$0xff] %v26560_v24  ;;  %73 = vst [vmem:[#allocation2 + $0x170] sm:$0xff] %v26560_v24 }
 0x3e7   :  { %19908 = vmatmul.mubr.msk.f32.gmra.mrb[2].mxu0 %vm235_vm0, %v5536_v32  ;;  %v1098_v32 = vld [vmem:[%s29386_s0 + $0x131] sm:$0xff]  ;;  %74 = vst [vmem:[#allocation2 + $0x178] sm:$0xff] %v26560_v24  ;;  %75 = vst [vmem:[#allocation2 + $0x180] sm:$0xff] %v26560_v24 }
 0x3e8   :  { %19910 = vmatprep.mubr.msk.f32.mxu0 %vm23685_vm1, %v23684_v0  ;;  %76 = vst [vmem:[#allocation2 + $0x188] sm:$0xff] %v26560_v24  ;;  %77 = vst [vmem:[#allocation2 + $0x190] sm:$0xff] %v26560_v24 }
 0x3e9   :  { %18971 = vmatmul.mubr.msk.f32.gmra.mrb[74].mxu1 %vm235_vm0, %v1097_v28  ;;  %78 = vst [vmem:[#allocation2 + $0x198] sm:$0xff] %v26560_v24  ;;  %79 = vst [vmem:[#allocation2 + $0x1a0] sm:$0xff] %v26560_v24 }
 0x3ea   :  { %18973 = vmatprep.mubr.msk.f32.mxu1 %vm23685_vm1, %v23684_v0  ;;  %80 = vst [vmem:[#allocation2 + $0x1a8] sm:$0xff] %v26560_v24  ;;  %81 = vst [vmem:[#allocation2 + $0x1b0] sm:$0xff] %v26560_v24 }
 0x3eb   :  { %19911 = vmatmul.mubr.msk.f32.gmra.mrb[4].mxu0 %vm235_vm0, %v5537_v36  ;;  %v1099_v36 = vld [vmem:[%s29386_s0 + $0x139] sm:$0xff]  ;;  %82 = vst [vmem:[#allocation2 + $0x1b8] sm:$0xff] %v26560_v24  ;;  %83 = vst [vmem:[#allocation2 + $0x1c0] sm:$0xff] %v26560_v24 }
 0x3ec   :  { %19913 = vmatprep.mubr.msk.f32.mxu0 %vm23685_vm1, %v23684_v0  ;;  %84 = vst [vmem:[#allocation2 + $0x1c8] sm:$0xff] %v26560_v24  ;;  %85 = vst [vmem:[#allocation2 + $0x1d0] sm:$0xff] %v26560_v24 }
 0x3ed   :  { %18974 = vmatmul.mubr.msk.f32.gmra.mrb[76].mxu1 %vm235_vm0, %v1098_v32  ;;  %86 = vst [vmem:[#allocation2 + $0x1d8] sm:$0xff] %v26560_v24  ;;  %87 = vst [vmem:[#allocation2 + $0x1e0] sm:$0xff] %v26560_v24 }
 0x3ee   :  { %18976 = vmatprep.mubr.msk.f32.mxu1 %vm23685_vm1, %v23684_v0  ;;  %88 = vst [vmem:[#allocation2 + $0x1e8] sm:$0xff] %v26560_v24  ;;  %89 = vst [vmem:[#allocation2 + $0x1f0] sm:$0xff] %v26560_v24 }
 0x3ef   :  { %19914 = vmatmul.mubr.msk.f32.gmra.mrb[6].mxu0 %vm235_vm0, %v5538_v40  ;;  %v1100_v40 = vld [vmem:[%s29386_s0 + $0x141] sm:$0xff]  ;;  %90 = vst [vmem:[#allocation2 + $0x1f8] sm:$0xff] %v26560_v24  ;;  %91 = vst [vmem:[#allocation2 + $0x200] sm:$0xff] %v26560_v24 }
 0x3f0   :  { %19916 = vmatprep.mubr.msk.f32.mxu0 %vm23685_vm1, %v23684_v0  ;;  %92 = vst [vmem:[#allocation2 + $0x208] sm:$0xff] %v26560_v24  ;;  %93 = vst [vmem:[#allocation2 + $0x210] sm:$0xff] %v26560_v24 }
 0x3f1   :  { %18977 = vmatmul.mubr.msk.f32.gmra.mrb[78].mxu1 %vm235_vm0, %v1099_v36  ;;  %94 = vst [vmem:[#allocation2 + $0x218] sm:$0xff] %v26560_v24  ;;  %95 = vst [vmem:[#allocation2 + $0x220] sm:$0xff] %v26560_v24 }
 0x3f2   :  { %18979 = vmatprep.mubr.msk.f32.mxu1 %vm23685_vm1, %v23684_v0 }
 0x3f3   :  { %19917 = vmatmul.mubr.msk.f32.gmra.mrb[8].mxu0 %vm235_vm0, %v5539_v60  ;;  %v1101_v60 = vld [vmem:[%s29386_s0 + $0x149] sm:$0xff] }
 0x3f4   :  { %19919 = vmatprep.mubr.msk.f32.mxu0 %vm23685_vm1, %v23684_v0 }
 0x3f5   :  { %18980 = vmatmul.mubr.msk.f32.gmra.mrb[80].mxu1 %vm235_vm0, %v1100_v40 }
 0x3f6   :  { %18982 = vmatprep.mubr.msk.f32.mxu1 %vm23685_vm1, %v23684_v0 }
 0x3f7   :  { %19920 = vmatmul.mubr.msk.f32.gmra.mrb[10].mxu0 %vm235_vm0, %v5540_v1  ;;  %v1102_v1 = vld [vmem:[%s29386_s0 + $0x151] sm:$0xff] }
 0x3f8   :  { %19922 = vmatprep.mubr.msk.f32.mxu0 %vm23685_vm1, %v23684_v0 }
 0x3f9   :  { %18983 = vmatmul.mubr.msk.f32.gmra.mrb[82].mxu1 %vm235_vm0, %v1101_v60  ;;  %v23643_v60 = vld [vmem:[%s29386_s0 + $0x210] sm:$0xff] }
 0x3fa   :  { %18985 = vmatprep.mubr.msk.f32.mxu1 %vm23685_vm1, %v23684_v0 }
 0x3fb   :  { %19923 = vmatmul.mubr.msk.f32.gmra.mrb[12].mxu0 %vm235_vm0, %v5541_v5  ;;  %v1103_v5 = vld [vmem:[%s29386_s0 + $0x159] sm:$0xff] }
 0x3fc   :  { %19925 = vmatprep.mubr.msk.f32.mxu0 %vm23685_vm1, %v23684_v0 }
 0x3fd   :  { %18986 = vmatmul.mubr.msk.f32.gmra.mrb[84].mxu1 %vm235_vm0, %v1102_v1  ;;  %v2011_v1 = vld [vmem:[%s29386_s0 + $0x1c2] sm:$0xff] }
 0x3fe   :  { %18988 = vmatprep.mubr.msk.f32.mxu1 %vm23685_vm1, %v23684_v0 }
 0x3ff   :  { %19926 = vmatmul.mubr.msk.f32.gmra.mrb[14].mxu0 %vm235_vm0, %v5542_v9  ;;  %v1104_v9 = vld [vmem:[%s29386_s0 + $0x161] sm:$0xff] }
 0x400   :  { %19928 = vmatprep.mubr.msk.f32.mxu0 %vm23685_vm1, %v23684_v0 }
 0x401   :  { %18989 = vmatmul.mubr.msk.f32.gmra.mrb[86].mxu1 %vm235_vm0, %v1103_v5 }
 0x402   :  { %18991 = vmatprep.mubr.msk.f32.mxu1 %vm23685_vm1, %v23684_v0 }
 0x403   :  { %19929 = vmatmul.mubr.msk.f32.gmra.mrb[16].mxu0 %vm235_vm0, %v5543_v47  ;;  %v1105_v47 = vld [vmem:[%s29386_s0 + $0x169] sm:$0xff] }
 0x404   :  { %19931 = vmatprep.mubr.msk.f32.mxu0 %vm23685_vm1, %v23684_v0 }
 0x405   :  { %18992 = vmatmul.mubr.msk.f32.gmra.mrb[88].mxu1 %vm235_vm0, %v1104_v9 }
 0x406   :  { %18994 = vmatprep.mubr.msk.f32.mxu1 %vm23685_vm1, %v23684_v0 }
 0x407   :  { %19932 = vmatmul.mubr.msk.f32.gmra.mrb[18].mxu0 %vm235_vm0, %v5544_v51  ;;  %v1106_v51 = vld [vmem:[%s29386_s0 + $0x171] sm:$0xff] }
 0x408   :  { %19934 = vmatprep.mubr.msk.f32.mxu0 %vm23685_vm1, %v23684_v0 }
 0x409   :  { %18995 = vmatmul.mubr.msk.f32.gmra.mrb[90].mxu1 %vm235_vm0, %v1105_v47 }
 0x40a   :  { %18997 = vmatprep.mubr.msk.f32.mxu1 %vm23685_vm1, %v23684_v0 }
 0x40b   :  { %19935 = vmatmul.mubr.msk.f32.gmra.mrb[20].mxu0 %vm235_vm0, %v5545_v55  ;;  %v1107_v55 = vld [vmem:[%s29386_s0 + $0x179] sm:$0xff] }
 0x40c   :  { %19937 = vmatprep.mubr.msk.f32.mxu0 %vm23685_vm1, %v23684_v0 }
 0x40d   :  { %18998 = vmatmul.mubr.msk.f32.gmra.mrb[92].mxu1 %vm235_vm0, %v1106_v51  ;;  %v23645_v51 = vld [vmem:[%s29386_s0 + $0x220] sm:$0xff] }
 0x40e   :  { %19000 = vmatprep.mubr.msk.f32.mxu1 %vm23685_vm1, %v23684_v0 }
 0x40f   :  { %19938 = vmatmul.mubr.msk.f32.gmra.mrb[22].mxu0 %vm235_vm0, %v5546_v11  ;;  %v1108_v11 = vld [vmem:[%s29386_s0 + $0x181] sm:$0xff] }
 0x410   :  { %19940 = vmatprep.mubr.msk.f32.mxu0 %vm23685_vm1, %v23684_v0 }
 0x411   :  { %19001 = vmatmul.mubr.msk.f32.gmra.mrb[94].mxu1 %vm235_vm0, %v1107_v55  ;;  %v2013_v55 = vld [vmem:[%s29386_s0 + $0x1d2] sm:$0xff] }
 0x412   :  { %19003 = vmatprep.mubr.msk.f32.mxu1 %vm23685_vm1, %v23684_v0 }
 0x413   :  { %19941 = vmatmul.mubr.msk.f32.gmra.mrb[24].mxu0 %vm235_vm0, %v5547_v14  ;;  %v1109_v14 = vld [vmem:[%s29386_s0 + $0x189] sm:$0xff] }
 0x414   :  { %19943 = vmatprep.mubr.msk.f32.mxu0 %vm23685_vm1, %v23684_v0 }
 0x415   :  { %19004 = vmatmul.mubr.msk.f32.gmra.mrb[96].mxu1 %vm235_vm0, %v1108_v11 }
 0x416   :  { %19006 = vmatprep.mubr.msk.f32.mxu1 %vm23685_vm1, %v23684_v0 }
 0x417   :  { %19944 = vmatmul.mubr.msk.f32.gmra.mrb[26].mxu0 %vm235_vm0, %v23626_v18  ;;  %v1110_v18 = vld [vmem:[%s29386_s0 + $0x191] sm:$0xff] }
 0x418   :  { %19946 = vmatprep.mubr.msk.f32.mxu0 %vm23685_vm1, %v23684_v0 }
 0x419   :  { %19007 = vmatmul.mubr.msk.f32.gmra.mrb[98].mxu1 %vm235_vm0, %v1109_v14 }
 0x41a   :  { %19009 = vmatprep.mubr.msk.f32.mxu1 %vm23685_vm1, %v23684_v0 }
 0x41b   :  { %19947 = vmatmul.mubr.msk.f32.gmra.mrb[28].mxu0 %vm235_vm0, %v23627_v22  ;;  %v1112_v22 = vld [vmem:[%s29386_s0 + $0x1a1] sm:$0xff] }
 0x41c   :  { %19949 = vmatprep.mubr.msk.f32.mxu0 %vm23685_vm1, %v23684_v0 }
 0x41d   :  { %19010 = vmatmul.mubr.msk.f32.gmra.mrb[100].mxu1 %vm235_vm0, %v1110_v18  ;;  %v5601_v18 = vld [vmem:[%s29386_s0 + $0x230] sm:$0xff] }
 0x41e   :  { %19012 = vmatprep.mubr.msk.f32.mxu1 %vm23685_vm1, %v23684_v0 }
 0x41f   :  { %19950 = vmatmul.mubr.msk.f32.gmra.mrb[30].mxu0 %vm235_vm0, %v23628_v26 }
 0x420   :  { %19952 = vmatprep.mubr.msk.f32.mxu0 %vm23685_vm1, %v23684_v0 }
 0x421   :  { %19013 = vmatmul.mubr.msk.f32.gmra.mrb[102].mxu1 %vm235_vm0, %v1111_v20 }
 0x422   :  { %19015 = vmatprep.mubr.msk.f32.mxu1 %vm23685_vm1, %v23684_v0 }
 0x423   :  { %19953 = vmatmul.mubr.msk.f32.gmra.mrb[32].mxu0 %vm235_vm0, %v23629_v30  ;;  %v2009_v30 = vld [vmem:[%s29386_s0 + $0x1b2] sm:$0xff] }
 0x424   :  { %19955 = vmatprep.mubr.msk.f32.mxu0 %vm23685_vm1, %v23684_v0 }
 0x425   :  { %19016 = vmatmul.mubr.msk.f32.gmra.mrb[104].mxu1 %vm235_vm0, %v1112_v22 }
 0x426   :  { %19018 = vmatprep.mubr.msk.f32.mxu1 %vm23685_vm1, %v23684_v0 }
 0x427   :  { %19956 = vmatmul.mubr.msk.f32.gmra.mrb[34].mxu0 %vm235_vm0, %v23630_v34 }
 0x428   :  { %19958 = vmatprep.mubr.msk.f32.mxu0 %vm23685_vm1, %v23684_v0 }
 0x42b   :  { %19959 = vmatmul.mubr.msk.f32.gmra.mrb[36].mxu0 %vm235_vm0, %v23631_v38  ;;  %v2010_v38 = vld [vmem:[%s29386_s0 + $0x1ba] sm:$0xff] }
 0x42c   :  { %19961 = vmatprep.mubr.msk.f32.mxu0 %vm23685_vm1, %v23684_v0 }
 0x42f   :  { %19962 = vmatmul.mubr.msk.f32.gmra.mrb[38].mxu0 %vm235_vm0, %v23632_v43 }
 0x430   :  { %19964 = vmatprep.mubr.msk.f32.mxu0 %vm23685_vm1, %v23684_v0 }
 0x433   :  { %19965 = vmatmul.mubr.msk.f32.gmra.mrb[40].mxu0 %vm235_vm0, %v23633_v62 }
 0x434   :  { %19967 = vmatprep.mubr.msk.f32.mxu0 %vm23685_vm1, %v23684_v0 }
 0x437   :  { %19968 = vmatmul.mubr.msk.f32.gmra.mrb[42].mxu0 %vm235_vm0, %v23634_v3 }
 0x438   :  { %19970 = vmatprep.mubr.msk.f32.mxu0 %vm23685_vm1, %v23684_v0 }
 0x43b   :  { %19971 = vmatmul.mubr.msk.f32.gmra.mrb[44].mxu0 %vm235_vm0, %v23635_v7  ;;  %v23644_v7 = vld [vmem:[%s29386_s0 + $0x218] sm:$0xff] }
 0x43c   :  { %19973 = vmatprep.mubr.msk.f32.mxu0 %vm23685_vm1, %v23684_v0 }
 0x43f   :  { %19974 = vmatmul.mubr.msk.f32.gmra.mrb[46].mxu0 %vm235_vm0, %v23636_v44  ;;  %v2012_v44 = vld [vmem:[%s29386_s0 + $0x1ca] sm:$0xff] }
 0x440   :  { %19976 = vmatprep.mubr.msk.f32.mxu0 %vm23685_vm1, %v23684_v0 }
 0x443   :  { %19977 = vmatmul.mubr.msk.f32.gmra.mrb[48].mxu0 %vm235_vm0, %v23637_v49 }
 0x444   :  { %19979 = vmatprep.mubr.msk.f32.mxu0 %vm23685_vm1, %v23684_v0 }
 0x447   :  { %19980 = vmatmul.mubr.msk.f32.gmra.mrb[50].mxu0 %vm235_vm0, %v23638_v53 }
 0x448   :  { %19982 = vmatprep.mubr.msk.f32.mxu0 %vm23685_vm1, %v23684_v0 }
 0x44b   :  { %19983 = vmatmul.mubr.msk.f32.gmra.mrb[52].mxu0 %vm235_vm0, %v23639_v57  ;;  %v5600_v57 = vld [vmem:[%s29386_s0 + $0x228] sm:$0xff] }
 0x44c   :  { %19985 = vmatprep.mubr.msk.f32.mxu0 %vm23685_vm1, %v23684_v0 }
 0x44f   :  { %19986 = vmatmul.mubr.msk.f32.gmra.mrb[54].mxu0 %vm235_vm0, %v23640_v12 }
 0x450   :  { %19988 = vmatprep.mubr.msk.f32.mxu0 %vm23685_vm1, %v23684_v0 }
 0x453   :  { %19989 = vmatmul.mubr.msk.f32.gmra.mrb[56].mxu0 %vm235_vm0, %v23641_v16  ;;  %v2014_v16 = vld [vmem:[%s29386_s0 + $0x1da] sm:$0xff] }
 0x454   :  { %19991 = vmatprep.mubr.msk.f32.mxu0 %vm23685_vm1, %v23684_v0 }
 0x457   :  { %19992 = vmatmul.mubr.msk.f32.gmra.mrb[58].mxu0 %vm235_vm0, %v25106_v42  ;;  %v1113_v42 = vld [vmem:[%s29386_s0 + $0x1a9] sm:$0xff] }
 0x458   :  { %19994 = vmatprep.mubr.msk.f32.mxu0 %vm23685_vm1, %v23684_v0  ;;  %19019 = vmatmul.mubr.msk.f32.gmra.mrb[106].mxu1 %vm235_vm0, %v1113_v42 }
 0x459   :  { %19021 = vmatprep.mubr.msk.f32.mxu1 %vm23685_vm1, %v23684_v0 }
 0x45b   :  { %19995 = vmatmul.mubr.msk.f32.gmra.mrb[60].mxu0 %vm235_vm0, %v25121_v45  ;;  %v1114_v45 = vld [vmem:[%s29386_s0 + $0x1b1] sm:$0xff] }
 0x45c   :  { %19997 = vmatprep.mubr.msk.f32.mxu0 %vm23685_vm1, %v23684_v0  ;;  %19022 = vmatmul.mubr.msk.f32.gmra.mrb[108].mxu1 %vm235_vm0, %v1114_v45  ;;  %v2015_v45 = vld [vmem:[%s29386_s0 + $0x1e2] sm:$0xff] }
 0x45d   :  { %19024 = vmatprep.mubr.msk.f32.mxu1 %vm23685_vm1, %v23684_v0 }
 0x45f   :  { %19998 = vmatmul.mubr.msk.f32.gmra.mrb[62].mxu0 %vm235_vm0, %v25136_v61  ;;  %v1115_v61 = vld [vmem:[%s29386_s0 + $0x1b9] sm:$0xff] }
 0x460   :  { %20000 = vmatprep.mubr.msk.f32.mxu0 %vm23685_vm1, %v23684_v0  ;;  %19025 = vmatmul.mubr.msk.f32.gmra.mrb[110].mxu1 %vm235_vm0, %v1115_v61  ;;  %v5602_v61 = vld [vmem:[%s29386_s0 + $0x238] sm:$0xff] }
 0x461   :  { %19027 = vmatprep.mubr.msk.f32.mxu1 %vm23685_vm1, %v23684_v0 }
 0x463   :  { %20001 = vmatmul.mubr.msk.f32.gmra.mrb[64].mxu0 %vm235_vm0, %v25151_v63  ;;  %v1116_v63 = vld [vmem:[%s29386_s0 + $0x1c1] sm:$0xff] }
 0x464   :  { %20003 = vmatprep.mubr.msk.f32.mxu0 %vm23685_vm1, %v23684_v0  ;;  %19028 = vmatmul.mubr.msk.f32.gmra.mrb[112].mxu1 %vm235_vm0, %v1116_v63 }
 0x465   :  { %19030 = vmatprep.mubr.msk.f32.mxu1 %vm23685_vm1, %v23684_v0 }
 0x467   :  { %20004 = vmatmul.mubr.msk.f32.gmra.mrb[66].mxu0 %vm235_vm0, %v25166_v2  ;;  %v1117_v2 = vld [vmem:[%s29386_s0 + $0x1c9] sm:$0xff] }
 0x468   :  { %20006 = vmatprep.mubr.msk.f32.mxu0 %vm23685_vm1, %v23684_v0  ;;  %19031 = vmatmul.mubr.msk.f32.gmra.mrb[114].mxu1 %vm235_vm0, %v1117_v2 }
 0x469   :  { %19033 = vmatprep.mubr.msk.f32.mxu1 %vm23685_vm1, %v23684_v0 }
 0x46b   :  { %20007 = vmatmul.mubr.msk.f32.gmra.mrb[68].mxu0 %vm235_vm0, %v25181_v4  ;;  %v1118_v4 = vld [vmem:[%s29386_s0 + $0x1d1] sm:$0xff] }
 0x46c   :  { %20009 = vmatprep.mubr.msk.f32.mxu0 %vm23685_vm1, %v23684_v0  ;;  %19034 = vmatmul.mubr.msk.f32.gmra.mrb[116].mxu1 %vm235_vm0, %v1118_v4 }
 0x46d   :  { %19036 = vmatprep.mubr.msk.f32.mxu1 %vm23685_vm1, %v23684_v0 }
 0x46f   :  { %20010 = vmatmul.mubr.msk.f32.gmra.mrb[70].mxu0 %vm235_vm0, %v25196_v6  ;;  %v1119_v6 = vld [vmem:[%s29386_s0 + $0x1d9] sm:$0xff] }
 0x470   :  { %20012 = vmatprep.mubr.msk.f32.mxu0 %vm23685_vm1, %v23684_v0  ;;  %19037 = vmatmul.mubr.msk.f32.gmra.mrb[118].mxu1 %vm235_vm0, %v1119_v6  ;;  %v2016_v6 = vld [vmem:[%s29386_s0 + $0x1ea] sm:$0xff] }
 0x471   :  { %19039 = vmatprep.mubr.msk.f32.mxu1 %vm23685_vm1, %v23684_v0 }
 0x473   :  { %20013 = vmatmul.mubr.msk.f32.gmra.mrb[72].mxu0 %vm235_vm0, %v25211_v8  ;;  %v1120_v8 = vld [vmem:[%s29386_s0 + $0x1e1] sm:$0xff] }
 0x474   :  { %20015 = vmatprep.mubr.msk.f32.mxu0 %vm23685_vm1, %v23684_v0  ;;  %19040 = vmatmul.mubr.msk.f32.gmra.mrb[120].mxu1 %vm235_vm0, %v1120_v8  ;;  %v5603_v8 = vld [vmem:[%s29386_s0 + $0x240] sm:$0xff] }
 0x475   :  { %19042 = vmatprep.mubr.msk.f32.mxu1 %vm23685_vm1, %v23684_v0 }
 0x477   :  { %20016 = vmatmul.mubr.msk.f32.gmra.mrb[74].mxu0 %vm235_vm0, %v25226_v10  ;;  %v1121_v10 = vld [vmem:[%s29386_s0 + $0x1e9] sm:$0xff] }
 0x478   :  { %20018 = vmatprep.mubr.msk.f32.mxu0 %vm23685_vm1, %v23684_v0  ;;  %19043 = vmatmul.mubr.msk.f32.gmra.mrb[122].mxu1 %vm235_vm0, %v1121_v10 }
 0x479   :  { %19045 = vmatprep.mubr.msk.f32.mxu1 %vm23685_vm1, %v23684_v0 }
 0x47b   :  { %20019 = vmatmul.mubr.msk.f32.gmra.mrb[76].mxu0 %vm235_vm0, %v25241_v46  ;;  %v1122_v46 = vld [vmem:[%s29386_s0 + $0x1f1] sm:$0xff] }
 0x47c   :  { %20021 = vmatprep.mubr.msk.f32.mxu0 %vm23685_vm1, %v23684_v0  ;;  %19046 = vmatmul.mubr.msk.f32.gmra.mrb[124].mxu1 %vm235_vm0, %v1122_v46 }
 0x47d   :  { %19048 = vmatprep.mubr.msk.f32.mxu1 %vm23685_vm1, %v23684_v0 }
 0x47f   :  { %20022 = vmatmul.mubr.msk.f32.gmra.mrb[78].mxu0 %vm235_vm0, %v25256_v48  ;;  %v1123_v48 = vld [vmem:[%s29386_s0 + $0x1f9] sm:$0xff] }
 0x480   :  { %20024 = vmatprep.mubr.msk.f32.mxu0 %vm23685_vm1, %v23684_v0  ;;  %19049 = vmatmul.mubr.msk.f32.gmra.mrb[126].mxu1 %vm235_vm0, %v1123_v48 }
 0x481   :  { %19051 = vmatprep.mubr.msk.f32.mxu1 %vm23685_vm1, %v23684_v0 }
 0x483   :  { %20025 = vmatmul.mubr.msk.f32.gmra.mrb[80].mxu0 %vm235_vm0, %v25271_v50  ;;  %v1124_v50 = vld [vmem:[%s29386_s0 + $0x201] sm:$0xff] }
 0x484   :  { %20027 = vmatprep.mubr.msk.f32.mxu0 %vm23685_vm1, %v23684_v0  ;;  %19052 = vmatmul.mubr.msk.f32.gmra.mrb[128].mxu1 %vm235_vm0, %v1124_v50  ;;  %v2017_v50 = vld [vmem:[%s29386_s0 + $0x1f2] sm:$0xff] }
 0x485   :  { %19054 = vmatprep.mubr.msk.f32.mxu1 %vm23685_vm1, %v23684_v0 }
 0x487   :  { %20028 = vmatmul.mubr.msk.f32.gmra.mrb[82].mxu0 %vm235_vm0, %v25286_v52  ;;  %v1125_v52 = vld [vmem:[%s29386_s0 + $0x209] sm:$0xff] }
 0x488   :  { %20030 = vmatprep.mubr.msk.f32.mxu0 %vm23685_vm1, %v23684_v0  ;;  %19055 = vmatmul.mubr.msk.f32.gmra.mrb[130].mxu1 %vm235_vm0, %v1125_v52 }
 0x489   :  { %19057 = vmatprep.mubr.msk.f32.mxu1 %vm23685_vm1, %v23684_v0 }
 0x48b   :  { %20031 = vmatmul.mubr.msk.f32.gmra.mrb[84].mxu0 %vm235_vm0, %v25301_v54  ;;  %v1126_v54 = vld [vmem:[%s29386_s0 + $0x211] sm:$0xff] }
 0x48c   :  { %20033 = vmatprep.mubr.msk.f32.mxu0 %vm23685_vm1, %v23684_v0  ;;  %19058 = vmatmul.mubr.msk.f32.gmra.mrb[132].mxu1 %vm235_vm0, %v1126_v54 }
 0x48d   :  { %19060 = vmatprep.mubr.msk.f32.mxu1 %vm23685_vm1, %v23684_v0 }
 0x48f   :  { %20034 = vmatmul.mubr.msk.f32.gmra.mrb[86].mxu0 %vm235_vm0, %v25316_v56  ;;  %v1127_v56 = vld [vmem:[%s29386_s0 + $0x219] sm:$0xff] }
 0x490   :  { %20036 = vmatprep.mubr.msk.f32.mxu0 %vm23685_vm1, %v23684_v0  ;;  %19061 = vmatmul.mubr.msk.f32.gmra.mrb[134].mxu1 %vm235_vm0, %v1127_v56  ;;  %v16727_v56 = vld [vmem:[%s29385_s1 + $0x40] sm:$0xff] }
 0x491   :  { %19063 = vmatprep.mubr.msk.f32.mxu1 %vm23685_vm1, %v23684_v0 }
 0x493   :  { %20037 = vmatmul.mubr.msk.f32.gmra.mrb[88].mxu0 %vm235_vm0, %v25331_v58  ;;  %v1128_v58 = vld [vmem:[%s29386_s0 + $0x221] sm:$0xff] }
 0x494   :  { %20039 = vmatprep.mubr.msk.f32.mxu0 %vm23685_vm1, %v23684_v0  ;;  %19064 = vmatmul.mubr.msk.f32.gmra.mrb[136].mxu1 %vm235_vm0, %v1128_v58  ;;  %v23646_v58 = vld [vmem:[%s29386_s0 + $0x21] sm:$0xff] }
 0x495   :  { %19191 = vmatprep.mubr.msk.f32.mxu1 %vm23685_vm1, %v23684_v0 }
 0x497   :  { %20040 = vmatmul.mubr.msk.f32.gmra.mrb[90].mxu0 %vm235_vm0, %v25346_v59  ;;  %v1996_v59 = vld [vmem:[%s29386_s0 + $0x14a] sm:$0xff] }
 0x498   :  { %20042 = vmatprep.mubr.msk.f32.mxu0 %vm23685_vm1, %v23684_v0  ;;  %19192 = vmatmul.mubr.msk.f32.vlgmr.msra.gmra.mrb[82].mxu1 %vm235_vm0, %v1996_v59 }
 0x499   :  { %19194 = vmatprep.mubr.msk.f32.mxu1 %vm23685_vm1, %v23684_v0 }
 0x49b   :  { %20043 = vmatmul.mubr.msk.f32.gmra.mrb[92].mxu0 %vm235_vm0, %v25361_v13  ;;  %v1997_v13 = vld [vmem:[%s29386_s0 + $0x152] sm:$0xff] }
 0x49c   :  { %20045 = vmatprep.mubr.msk.f32.mxu0 %vm23685_vm1, %v23684_v0  ;;  %19195 = vmatmul.mubr.msk.f32.gmra.mrb[84].mxu1 %vm235_vm0, %v1997_v13  ;;  %v2018_v13 = vld [vmem:[%s29386_s0 + $0x1fa] sm:$0xff] }
 0x49d   :  { %19197 = vmatprep.mubr.msk.f32.mxu1 %vm23685_vm1, %v23684_v0 }
 0x49f   :  { %20046 = vmatmul.mubr.msk.f32.gmra.mrb[94].mxu0 %vm235_vm0, %v25376_v15  ;;  %v1998_v15 = vld [vmem:[%s29386_s0 + $0x15a] sm:$0xff] }
 0x4a0   :  { %20048 = vmatprep.mubr.msk.f32.mxu0 %vm23685_vm1, %v23684_v0  ;;  %19198 = vmatmul.mubr.msk.f32.gmra.mrb[86].mxu1 %vm235_vm0, %v1998_v15 }
 0x4a1   :  { %19200 = vmatprep.mubr.msk.f32.mxu1 %vm23685_vm1, %v23684_v0 }
 0x4a3   :  { %20049 = vmatmul.mubr.msk.f32.gmra.mrb[96].mxu0 %vm235_vm0, %v25391_v17  ;;  %v1999_v17 = vld [vmem:[%s29386_s0 + $0x162] sm:$0xff] }
 0x4a4   :  { %20051 = vmatprep.mubr.msk.f32.mxu0 %vm23685_vm1, %v23684_v0  ;;  %19201 = vmatmul.mubr.msk.f32.gmra.mrb[88].mxu1 %vm235_vm0, %v1999_v17 }
 0x4a5   :  { %19203 = vmatprep.mubr.msk.f32.mxu1 %vm23685_vm1, %v23684_v0 }
 0x4a7   :  { %20052 = vmatmul.mubr.msk.f32.gmra.mrb[98].mxu0 %vm235_vm0, %v25406_v19  ;;  %v2000_v19 = vld [vmem:[%s29386_s0 + $0x16a] sm:$0xff] }
 0x4a8   :  { %20054 = vmatprep.mubr.msk.f32.mxu0 %vm23685_vm1, %v23684_v0  ;;  %19204 = vmatmul.mubr.msk.f32.gmra.mrb[90].mxu1 %vm235_vm0, %v2000_v19  ;;  %v23647_v19 = vld [vmem:[%s29386_s0 + $0x29] sm:$0xff] }
 0x4a9   :  { %19206 = vmatprep.mubr.msk.f32.mxu1 %vm23685_vm1, %v23684_v0 }
 0x4ab   :  { %20055 = vmatmul.mubr.msk.f32.gmra.mrb[100].mxu0 %vm235_vm0, %v25421_v21  ;;  %v2001_v21 = vld [vmem:[%s29386_s0 + $0x172] sm:$0xff] }
 0x4ac   :  { %20057 = vmatprep.mubr.msk.f32.mxu0 %vm23685_vm1, %v23684_v0  ;;  %19207 = vmatmul.mubr.msk.f32.gmra.mrb[92].mxu1 %vm235_vm0, %v2001_v21 }
 0x4ad   :  { %19209 = vmatprep.mubr.msk.f32.mxu1 %vm23685_vm1, %v23684_v0 }
 0x4af   :  { %20058 = vmatmul.mubr.msk.f32.gmra.mrb[102].mxu0 %vm235_vm0, %v25436_v23  ;;  %v2002_v23 = vld [vmem:[%s29386_s0 + $0x17a] sm:$0xff] }
 0x4b0   :  { %20060 = vmatprep.mubr.msk.f32.mxu0 %vm23685_vm1, %v23684_v0  ;;  %19210 = vmatmul.mubr.msk.f32.gmra.mrb[94].mxu1 %vm235_vm0, %v2002_v23  ;;  %v2019_v23 = vld [vmem:[%s29386_s0 + $0x202] sm:$0xff] }
 0x4b1   :  { %19212 = vmatprep.mubr.msk.f32.mxu1 %vm23685_vm1, %v23684_v0 }
 0x4b3   :  { %20061 = vmatmul.mubr.msk.f32.gmra.mrb[104].mxu0 %vm235_vm0, %v25451_v25  ;;  %v2003_v25 = vld [vmem:[%s29386_s0 + $0x182] sm:$0xff] }
 0x4b4   :  { %20063 = vmatprep.mubr.msk.f32.mxu0 %vm23685_vm1, %v23684_v0  ;;  %19213 = vmatmul.mubr.msk.f32.gmra.mrb[96].mxu1 %vm235_vm0, %v2003_v25 }
 0x4b5   :  { %19215 = vmatprep.mubr.msk.f32.mxu1 %vm23685_vm1, %v23684_v0 }
 0x4b7   :  { %20064 = vmatmul.mubr.msk.f32.gmra.mrb[106].mxu0 %vm235_vm0, %v25466_v27  ;;  %v2004_v27 = vld [vmem:[%s29386_s0 + $0x18a] sm:$0xff] }
 0x4b8   :  { %20066 = vmatprep.mubr.msk.f32.mxu0 %vm23685_vm1, %v23684_v0  ;;  %19216 = vmatmul.mubr.msk.f32.gmra.mrb[98].mxu1 %vm235_vm0, %v2004_v27 }
 0x4b9   :  { %19218 = vmatprep.mubr.msk.f32.mxu1 %vm23685_vm1, %v23684_v0 }
 0x4bb   :  { %20067 = vmatmul.mubr.msk.f32.gmra.mrb[108].mxu0 %vm235_vm0, %v25481_v29  ;;  %v2005_v29 = vld [vmem:[%s29386_s0 + $0x192] sm:$0xff] }
 0x4bc   :  { %20069 = vmatprep.mubr.msk.f32.mxu0 %vm23685_vm1, %v23684_v0  ;;  %19219 = vmatmul.mubr.msk.f32.gmra.mrb[100].mxu1 %vm235_vm0, %v2005_v29  ;;  %v23648_v29 = vld [vmem:[%s29386_s0 + $0x31] sm:$0xff] }
 0x4bd   :  { %19221 = vmatprep.mubr.msk.f32.mxu1 %vm23685_vm1, %v23684_v0 }
 0x4bf   :  { %20070 = vmatmul.mubr.msk.f32.gmra.mrb[110].mxu0 %vm235_vm0, %v25496_v31  ;;  %v2006_v31 = vld [vmem:[%s29386_s0 + $0x19a] sm:$0xff] }
 0x4c0   :  { %20072 = vmatprep.mubr.msk.f32.mxu0 %vm23685_vm1, %v23684_v0  ;;  %19222 = vmatmul.mubr.msk.f32.gmra.mrb[102].mxu1 %vm235_vm0, %v2006_v31 }
 0x4c1   :  { %19224 = vmatprep.mubr.msk.f32.mxu1 %vm23685_vm1, %v23684_v0 }
 0x4c3   :  { %20073 = vmatmul.mubr.msk.f32.gmra.mrb[112].mxu0 %vm235_vm0, %v25511_v33  ;;  %v2007_v33 = vld [vmem:[%s29386_s0 + $0x1a2] sm:$0xff] }
 0x4c4   :  { %20075 = vmatprep.mubr.msk.f32.mxu0 %vm23685_vm1, %v23684_v0  ;;  %19225 = vmatmul.mubr.msk.f32.gmra.mrb[104].mxu1 %vm235_vm0, %v2007_v33  ;;  %v2020_v33 = vld [vmem:[%s29386_s0 + $0x20a] sm:$0xff] }
 0x4c5   :  { %19227 = vmatprep.mubr.msk.f32.mxu1 %vm23685_vm1, %v23684_v0 }
 0x4c7   :  { %20076 = vmatmul.mubr.msk.f32.gmra.mrb[114].mxu0 %vm235_vm0, %v25526_v35  ;;  %v1404_v35 = vpop.f32.mrb[0].mxu1 }
 0x4c8   :  { %20078 = vmatprep.mubr.msk.f32.mxu0 %vm23685_vm1, %v23684_v0  ;;  %v18861_v26 = vpop.f32.mrb[1].mxu1  ;;  %v21541_v28 = vadd.f32 %v26560_v24, %v1404_v35 }
 0x4c9   :  { %v23649_v26 = vld [vmem:[%s29386_s0 + $0x39] sm:$0xff] }
 0x4ca   :  { %21542 = vst [vmem:[#allocation2] sm:$0xff] %v21541_v28 }
 0x4cb   :  { %20079 = vmatmul.mubr.msk.f32.gmra.mrb[116].mxu0 %vm235_vm0, %v25541_v37  ;;  %v2008_v37 = vld [vmem:[%s29386_s0 + $0x1aa] sm:$0xff] }
 0x4cc   :  { %20081 = vmatprep.mubr.msk.f32.mxu0 %vm23685_vm1, %v23684_v0  ;;  %19228 = vmatmul.mubr.msk.f32.gmra.mrb[106].mxu1 %vm235_vm0, %v2008_v37 }
 0x4cd   :  { %19230 = vmatprep.mubr.msk.f32.mxu1 %vm23685_vm1, %v23684_v0 }
 0x4cf   :  { %20082 = vmatmul.mubr.msk.f32.gmra.mrb[118].mxu0 %vm235_vm0, %v25556_v39  ;;  %v1409_v39 = vpop.f32.mrb[2].mxu1 }
 0x4d0   :  { %20084 = vmatprep.mubr.msk.f32.mxu0 %vm23685_vm1, %v23684_v0  ;;  %v21547_v32 = vadd.f32 %v26560_v24, %v1409_v39  ;;  %v18864_v34 = vpop.f32.mrb[3].mxu1  ;;  %19231 = vmatmul.mubr.msk.f32.gmra.mrb[108].mxu1 %vm235_vm0, %v2009_v30  ;;  %v2021_v39 = vld [vmem:[%s29386_s0 + $0x212] sm:$0xff] }
 0x4d1   :  { %19233 = vmatprep.mubr.msk.f32.mxu1 %vm23685_vm1, %v23684_v0  ;;  %v1414_v36 = vpop.f32.mrb[4].mxu1  ;;  %v23650_v34 = vld [vmem:[%s29386_s0 + $0x41] sm:$0xff] }
 0x4d2   :  { %21548 = vst [vmem:[#allocation2 + $0x8] sm:$0xff] %v21547_v32  ;;  %v21553_v40 = vadd.f32 %v26560_v24, %v1414_v36  ;;  %v18867_v43 = vpop.f32.mrb[5].mxu1  ;;  %v2022_v36 = vld [vmem:[%s29386_s0 + $0x21a] sm:$0xff] }
 0x4d3   :  { %20085 = vmatmul.mubr.msk.f32.gmra.mrb[120].mxu0 %vm235_vm0, %v25571_v41  ;;  %v23642_v41 = vld [vmem:[%s29386_s0 + $0x208] sm:$0xff]  ;;  %v1419_v62 = vpop.f32.mrb[6].mxu1 }
 0x4d4   :  { %20087 = vmatprep.mubr.msk.f32.mxu0 %vm23685_vm1, %v23684_v0  ;;  %19234 = vmatmul.mubr.msk.f32.gmra.mrb[110].mxu1 %vm235_vm0, %v2010_v38  ;;  %21554 = vst [vmem:[#allocation2 + $0x10] sm:$0xff] %v21553_v40  ;;  %v21559_v3 = vadd.f32 %v26560_v24, %v1419_v62  ;;  %v18870_v5 = vpop.f32.mrb[7].mxu1  ;;  %v23651_v43 = vld [vmem:[%s29386_s0 + $0x49] sm:$0xff] }
 0x4d5   :  { %19236 = vmatprep.mubr.msk.f32.mxu1 %vm23685_vm1, %v23684_v0  ;;  %v1424_v9 = vpop.f32.mrb[8].mxu1  ;;  %v2023_v62 = vld [vmem:[%s29386_s0 + $0x222] sm:$0xff]  ;;  %v23652_v5 = vld [vmem:[%s29386_s0 + $0x51] sm:$0xff] }
 0x4d6   :  { %21560 = vst [vmem:[#allocation2 + $0x18] sm:$0xff] %v21559_v3  ;;  %v21565_v47 = vadd.f32 %v26560_v24, %v1424_v9  ;;  %v18873_v49 = vpop.f32.mrb[9].mxu1 }
 0x4d7   :  { %20088 = vmatmul.mubr.msk.f32.gmra.mrb[122].mxu0 %vm235_vm0, %v23642_v41  ;;  %v1429_v53 = vpop.f32.mrb[10].mxu1 }
 0x4d8   :  { %20090 = vmatprep.mubr.msk.f32.mxu0 %vm23685_vm1, %v23684_v0  ;;  %19237 = vmatmul.mubr.msk.f32.gmra.mrb[112].mxu1 %vm235_vm0, %v2011_v1  ;;  %21566 = vst [vmem:[#allocation2 + $0x20] sm:$0xff] %v21565_v47  ;;  %v21571_v11 = vadd.f32 %v26560_v24, %v1429_v53  ;;  %v18876_v12 = vpop.f32.mrb[11].mxu1  ;;  %v23653_v47 = vld [vmem:[%s29386_s0 + $0x59] sm:$0xff] }
 0x4d9   :  { %19239 = vmatprep.mubr.msk.f32.mxu1 %vm23685_vm1, %v23684_v0  ;;  %v1434_v14 = vpop.f32.mrb[12].mxu1 }
 0x4da   :  { %21572 = vst [vmem:[#allocation2 + $0x28] sm:$0xff] %v21571_v11  ;;  %v21577_v20 = vadd.f32 %v26560_v24, %v1434_v14  ;;  %v18879_v22 = vpop.f32.mrb[13].mxu1  ;;  %v23655_v14 = vld [vmem:[%s29386_s0 + $0x69] sm:$0xff] }
 0x4db   :  { %20091 = vmatmul.mubr.msk.f32.gmra.mrb[124].mxu0 %vm235_vm0, %v23643_v60  ;;  %v1439_v42 = vpop.f32.mrb[14].mxu1  ;;  %v23656_v22 = vld [vmem:[%s29386_s0 + $0x71] sm:$0xff] }
 0x4dc   :  { %20093 = vmatprep.mubr.msk.f32.mxu0 %vm23685_vm1, %v23684_v0  ;;  %19240 = vmatmul.mubr.msk.f32.gmra.mrb[114].mxu1 %vm235_vm0, %v2012_v44  ;;  %21578 = vst [vmem:[#allocation2 + $0x30] sm:$0xff] %v21577_v20  ;;  %v21583_v63 = vadd.f32 %v26560_v24, %v1439_v42  ;;  %v18882_v2 = vpop.f32.mrb[15].mxu1 }
 0x4dd   :  { %19242 = vmatprep.mubr.msk.f32.mxu1 %vm23685_vm1, %v23684_v0  ;;  %v1444_v4 = vpop.f32.mrb[16].mxu1 }
 0x4de   :  { %21584 = vst [vmem:[#allocation2 + $0x38] sm:$0xff] %v21583_v63  ;;  %v21589_v10 = vadd.f32 %v26560_v24, %v1444_v4  ;;  %v18885_v46 = vpop.f32.mrb[17].mxu1  ;;  %v23657_v63 = vld [vmem:[%s29386_s0 + $0x79] sm:$0xff] }
 0x4df   :  { %20094 = vmatmul.mubr.msk.f32.gmra.mrb[126].mxu0 %vm235_vm0, %v23644_v7  ;;  %v1449_v48 = vpop.f32.mrb[18].mxu1 }
 0x4e0   :  { %20096 = vmatprep.mubr.msk.f32.mxu0 %vm23685_vm1, %v23684_v0  ;;  %19243 = vmatmul.mubr.msk.f32.gmra.mrb[116].mxu1 %vm235_vm0, %v2013_v55  ;;  %21590 = vst [vmem:[#allocation2 + $0x40] sm:$0xff] %v21589_v10  ;;  %v21595_v52 = vadd.f32 %v26560_v24, %v1449_v48  ;;  %v18888_v54 = vpop.f32.mrb[19].mxu1  ;;  %v23654_v55 = vld [vmem:[%s29386_s0 + $0x61] sm:$0xff] }
 0x4e1   :  { %19245 = vmatprep.mubr.msk.f32.mxu1 %vm23685_vm1, %v23684_v0  ;;  %v1454_v59 = vpop.f32.mrb[20].mxu1 }
 0x4e2   :  { %21596 = vst [vmem:[#allocation2 + $0x48] sm:$0xff] %v21595_v52  ;;  %v21601_v15 = vadd.f32 %v26560_v24, %v1454_v59  ;;  %v18891_v17 = vpop.f32.mrb[21].mxu1 }
 0x4e3   :  { %20097 = vmatmul.mubr.msk.f32.gmra.mrb[128].mxu0 %vm235_vm0, %v23645_v51  ;;  %v1459_v21 = vpop.f32.mrb[22].mxu1  ;;  %v23661_v17 = vld [vmem:[%s29386_s0 + $0x99] sm:$0xff] }
 0x4e4   :  { %20099 = vmatprep.mubr.msk.f32.mxu0 %vm23685_vm1, %v23684_v0  ;;  %19246 = vmatmul.mubr.msk.f32.gmra.mrb[118].mxu1 %vm235_vm0, %v2014_v16  ;;  %21602 = vst [vmem:[#allocation2 + $0x50] sm:$0xff] %v21601_v15  ;;  %v21607_v25 = vadd.f32 %v26560_v24, %v1459_v21  ;;  %v18894_v27 = vpop.f32.mrb[23].mxu1 }
 0x4e5   :  { %19248 = vmatprep.mubr.msk.f32.mxu1 %vm23685_vm1, %v23684_v0  ;;  %v1464_v31 = vpop.f32.mrb[24].mxu1 }
 0x4e6   :  { %21608 = vst [vmem:[#allocation2 + $0x58] sm:$0xff] %v21607_v25  ;;  %v21613_v35 = vadd.f32 %v26560_v24, %v1464_v31  ;;  %v18897_v37 = vpop.f32.mrb[25].mxu1  ;;  %v23662_v25 = vld [vmem:[%s29386_s0 + $0xa1] sm:$0xff] }
 0x4e7   :  { %20100 = vmatmul.mubr.msk.f32.gmra.mrb[130].mxu0 %vm235_vm0, %v5600_v57  ;;  %v1469_v28 = vpop.f32.mrb[26].mxu1 }
 0x4e8   :  { %20102 = vmatprep.mubr.msk.f32.mxu0 %vm23685_vm1, %v23684_v0  ;;  %19249 = vmatmul.mubr.msk.f32.gmra.mrb[120].mxu1 %vm235_vm0, %v2015_v45  ;;  %21614 = vst [vmem:[#allocation2 + $0x60] sm:$0xff] %v21613_v35  ;;  %v21619_v30 = vadd.f32 %v26560_v24, %v1469_v28  ;;  %v18900_v32 = vpop.f32.mrb[27].mxu1  ;;  %v23664_v28 = vld [vmem:[%s29386_s0 + $0xb1] sm:$0xff] }
 0x4e9   :  { %19251 = vmatprep.mubr.msk.f32.mxu1 %vm23685_vm1, %v23684_v0  ;;  %v1474_v41 = vpop.f32.mrb[28].mxu1 }
 0x4ea   :  { %21620 = vst [vmem:[#allocation2 + $0x68] sm:$0xff] %v21619_v30  ;;  %v21625_v38 = vadd.f32 %v26560_v24, %v1474_v41  ;;  %v18903_v40 = vpop.f32.mrb[29].mxu1 }
 0x4eb   :  { %20103 = vmatmul.mubr.msk.f32.gmra.mrb[132].mxu0 %vm235_vm0, %v5601_v18  ;;  %v1479_v60 = vpop.f32.mrb[30].mxu1  ;;  %v23666_v40 = vld [vmem:[%s29386_s0 + $0xc1] sm:$0xff] }
 0x4ec   :  { %20105 = vmatprep.mubr.msk.f32.mxu0 %vm23685_vm1, %v23684_v0  ;;  %19252 = vmatmul.mubr.msk.f32.gmra.mrb[122].mxu1 %vm235_vm0, %v2016_v6  ;;  %21626 = vst [vmem:[#allocation2 + $0x70] sm:$0xff] %v21625_v38  ;;  %v21631_v1 = vadd.f32 %v26560_v24, %v1479_v60  ;;  %v18906_v3 = vpop.f32.mrb[31].mxu1 }
 0x4ed   :  { %19254 = vmatprep.mubr.msk.f32.mxu1 %vm23685_vm1, %v23684_v0  ;;  %v1484_v7 = vpop.f32.mrb[32].mxu1 }
 0x4ee   :  { %21632 = vst [vmem:[#allocation2 + $0x78] sm:$0xff] %v21631_v1  ;;  %v21637_v9 = vadd.f32 %v26560_v24, %v1484_v7  ;;  %v18909_v44 = vpop.f32.mrb[33].mxu1  ;;  %v23667_v1 = vld [vmem:[%s29386_s0 + $0xc9] sm:$0xff] }
 0x4ef   :  { %20106 = vmatmul.mubr.msk.f32.gmra.mrb[134].mxu0 %vm235_vm0, %v5602_v61  ;;  %v1489_v49 = vpop.f32.mrb[34].mxu1 }
 0x4f0   :  { %20108 = vmatprep.mubr.msk.f32.mxu0 %vm23685_vm1, %v23684_v0  ;;  %19255 = vmatmul.mubr.msk.f32.gmra.mrb[124].mxu1 %vm235_vm0, %v2017_v50  ;;  %21638 = vst [vmem:[#allocation2 + $0x80] sm:$0xff] %v21637_v9  ;;  %v21643_v51 = vadd.f32 %v26560_v24, %v1489_v49  ;;  %v18912_v53 = vpop.f32.mrb[35].mxu1  ;;  %v23659_v50 = vld [vmem:[%s29386_s0 + $0x89] sm:$0xff]  ;;  %v23668_v9 = vld [vmem:[%s29386_s0 + $0xd1] sm:$0xff] }
 0x4f1   :  { %19257 = vmatprep.mubr.msk.f32.mxu1 %vm23685_vm1, %v23684_v0  ;;  %v1494_v57 = vpop.f32.mrb[36].mxu1 }
 0x4f2   :  { %21644 = vst [vmem:[#allocation2 + $0x88] sm:$0xff] %v21643_v51  ;;  %v21649_v11 = vadd.f32 %v26560_v24, %v1494_v57  ;;  %v18915_v12 = vpop.f32.mrb[37].mxu1  ;;  %v23669_v51 = vld [vmem:[%s29386_s0 + $0xd9] sm:$0xff] }
 0x4f3   :  { %20109 = vmatmul.mubr.msk.f32.gmra.mrb[136].mxu0 %vm235_vm0, %v5603_v8  ;;  %v1499_v16 = vpop.f32.mrb[38].mxu1  ;;  %v23658_v8 = vld [vmem:[%s29386_s0 + $0x81] sm:$0xff] }
 0x4f4   :  { %20113 = vmatprep.mubr.msk.f32.mxu0 %vm23685_vm1, %v23684_v0  ;;  %19258 = vmatmul.mubr.msk.f32.gmra.mrb[126].mxu1 %vm235_vm0, %v2018_v13  ;;  %21650 = vst [vmem:[#allocation2 + $0x90] sm:$0xff] %v21649_v11  ;;  %v21655_v18 = vadd.f32 %v26560_v24, %v1499_v16  ;;  %v18918_v20 = vpop.f32.mrb[39].mxu1  ;;  %v23670_v11 = vld [vmem:[%s29386_s0 + $0xe1] sm:$0xff] }
 0x4f5   :  { %19260 = vmatprep.mubr.msk.f32.mxu1 %vm23685_vm1, %v23684_v0  ;;  %v1504_v42 = vpop.f32.mrb[40].mxu1 }
 0x4f6   :  { %21656 = vst [vmem:[#allocation2 + $0x98] sm:$0xff] %v21655_v18  ;;  %v21661_v45 = vadd.f32 %v26560_v24, %v1504_v42  ;;  %v18921_v61 = vpop.f32.mrb[41].mxu1  ;;  %v23671_v18 = vld [vmem:[%s29386_s0 + $0xe9] sm:$0xff] }
 0x4f7   :  { %20114 = vmatmul.mubr.msk.f32.vlgmr.msra.gmra.mrb[0].mxu0 %vm235_vm0, %v23646_v58  ;;  %v1509_v2 = vpop.f32.mrb[42].mxu1  ;;  %v23660_v58 = vld [vmem:[%s29386_s0 + $0x91] sm:$0xff] }
 0x4f8   :  { %20321 = vmatpush3.msra.mxu0 %v16727_v56  ;;  %20116 = vmatprep.mubr.msk.f32.mxu0 %vm23685_vm1, %v23684_v0  ;;  %21662 = vst [vmem:[#allocation2 + $0xa0] sm:$0xff] %v21661_v45  ;;  %v21667_v4 = vadd.f32 %v26560_v24, %v1509_v2  ;;  %v18924_v6 = vpop.f32.mrb[43].mxu1  ;;  %v23672_v45 = vld [vmem:[%s29386_s0 + $0xf1] sm:$0xff] }
 0x4f9   :  { %19261 = vmatmul.mubr.msk.f32.gmra.mrb[128].mxu1 %vm235_vm0, %v2019_v23  ;;  %v1514_v10 = vpop.f32.mrb[44].mxu1 }
 0x4fa   :  { %19263 = vmatprep.mubr.msk.f32.mxu1 %vm23685_vm1, %v23684_v0  ;;  %21668 = vst [vmem:[#allocation2 + $0xa8] sm:$0xff] %v21667_v4  ;;  %v21673_v46 = vadd.f32 %v26560_v24, %v1514_v10  ;;  %v18927_v48 = vpop.f32.mrb[45].mxu1  ;;  %v23673_v4 = vld [vmem:[%s29386_s0 + $0xf9] sm:$0xff] }
 0x4fb   :  { %20117 = vmatmul.mubr.msk.f32.gmra.mrb[2].mxu0 %vm235_vm0, %v23647_v19  ;;  %v1519_v52 = vpop.f32.mrb[46].mxu1 }
 0x4fc   :  { %20119 = vmatprep.mubr.msk.f32.mxu0 %vm23685_vm1, %v23684_v0  ;;  %21674 = vst [vmem:[#allocation2 + $0xb0] sm:$0xff] %v21673_v46  ;;  %v21679_v54 = vadd.f32 %v26560_v24, %v1519_v52  ;;  %v18930_v56 = vpop.f32.mrb[47].mxu1  ;;  %v23674_v46 = vld [vmem:[%s29386_s0 + $0x101] sm:$0xff] }
 0x4fd   :  { %19264 = vmatmul.mubr.msk.f32.gmra.mrb[130].mxu1 %vm235_vm0, %v2020_v33  ;;  %v1524_v59 = vpop.f32.mrb[48].mxu1  ;;  %v23663_v33 = vld [vmem:[%s29386_s0 + $0xa9] sm:$0xff] }
 0x4fe   :  { %19266 = vmatprep.mubr.msk.f32.mxu1 %vm23685_vm1, %v23684_v0  ;;  %21680 = vst [vmem:[#allocation2 + $0xb8] sm:$0xff] %v21679_v54  ;;  %v21685_v13 = vadd.f32 %v26560_v24, %v1524_v59  ;;  %v18933_v15 = vpop.f32.mrb[49].mxu1  ;;  %v23675_v54 = vld [vmem:[%s29386_s0 + $0x109] sm:$0xff] }
 0x4ff   :  { %20120 = vmatmul.mubr.msk.f32.gmra.mrb[4].mxu0 %vm235_vm0, %v23648_v29  ;;  %v1529_v19 = vpop.f32.mrb[50].mxu1 }
 0x500   :  { %20122 = vmatprep.mubr.msk.f32.mxu0 %vm23685_vm1, %v23684_v0  ;;  %21686 = vst [vmem:[#allocation2 + $0xc0] sm:$0xff] %v21685_v13  ;;  %v21691_v21 = vadd.f32 %v26560_v24, %v1529_v19  ;;  %v18936_v23 = vpop.f32.mrb[51].mxu1  ;;  %v23676_v13 = vld [vmem:[%s29386_s0 + $0x111] sm:$0xff] }
 0x501   :  { %19267 = vmatmul.mubr.msk.f32.gmra.mrb[132].mxu1 %vm235_vm0, %v2021_v39  ;;  %v1534_v27 = vpop.f32.mrb[52].mxu1 }
 0x502   :  { %19269 = vmatprep.mubr.msk.f32.mxu1 %vm23685_vm1, %v23684_v0  ;;  %21692 = vst [vmem:[#allocation2 + $0xc8] sm:$0xff] %v21691_v21  ;;  %v21697_v29 = vadd.f32 %v26560_v24, %v1534_v27  ;;  %v18939_v31 = vpop.f32.mrb[53].mxu1  ;;  %v23677_v21 = vld [vmem:[%s29386_s0 + $0x119] sm:$0xff] }
 0x503   :  { %20123 = vmatmul.mubr.msk.f32.gmra.mrb[6].mxu0 %vm235_vm0, %v23649_v26  ;;  %v1539_v35 = vpop.f32.mrb[54].mxu1 }
 0x504   :  { %20125 = vmatprep.mubr.msk.f32.mxu0 %vm23685_vm1, %v23684_v0  ;;  %21698 = vst [vmem:[#allocation2 + $0xd0] sm:$0xff] %v21697_v29  ;;  %v21703_v37 = vadd.f32 %v26560_v24, %v1539_v35  ;;  %v18942_v26 = vpop.f32.mrb[55].mxu1  ;;  %v23678_v29 = vld [vmem:[%s29386_s0 + $0x121] sm:$0xff] }
 0x505   :  { %19270 = vmatmul.mubr.msk.f32.gmra.mrb[134].mxu1 %vm235_vm0, %v2022_v36  ;;  %v1544_v39 = vpop.f32.mrb[56].mxu1 }
 0x506   :  { %19272 = vmatprep.mubr.msk.f32.mxu1 %vm23685_vm1, %v23684_v0  ;;  %21704 = vst [vmem:[#allocation2 + $0xd8] sm:$0xff] %v21703_v37  ;;  %v21709_v30 = vadd.f32 %v26560_v24, %v1544_v39  ;;  %v18945_v32 = vpop.f32.mrb[57].mxu1  ;;  %v23679_v37 = vld [vmem:[%s29386_s0 + $0x129] sm:$0xff] }
 0x507   :  { %20126 = vmatmul.mubr.msk.f32.gmra.mrb[8].mxu0 %vm235_vm0, %v23650_v34  ;;  %v23665_v34 = vld [vmem:[%s29386_s0 + $0xb9] sm:$0xff]  ;;  %v1549_v41 = vpop.f32.mrb[58].mxu1 }
 0x508   :  { %20128 = vmatprep.mubr.msk.f32.mxu0 %vm23685_vm1, %v23684_v0  ;;  %21710 = vst [vmem:[#allocation2 + $0xe0] sm:$0xff] %v21709_v30  ;;  %v21715_v36 = vadd.f32 %v26560_v24, %v1549_v41  ;;  %v18948_v38 = vpop.f32.mrb[59].mxu1  ;;  %v23680_v30 = vld [vmem:[%s29386_s0 + $0x131] sm:$0xff] }
 0x509   :  { %19273 = vmatmul.mubr.msk.f32.gmra.mrb[136].mxu1 %vm235_vm0, %v2023_v62  ;;  %v141_v38 = vld [vmem:[#allocation2 + $0x168] sm:$0xff] }
 0x50a   :  { %21716 = vst [vmem:[#allocation2 + $0xe8] sm:$0xff] %v21715_v36  ;;  %v23681_v36 = vld [vmem:[%s29386_s0 + $0x139] sm:$0xff] }
 0x50b   :  { %20129 = vmatmul.mubr.msk.f32.gmra.mrb[10].mxu0 %vm235_vm0, %v23651_v43  ;;  %v1554_v43 = vpop.f32.mrb[60].mxu1 }
 0x50c   :  { %20131 = vmatprep.mubr.msk.f32.mxu0 %vm23685_vm1, %v23684_v0  ;;  %v21721_v60 = vadd.f32 %v26560_v24, %v1554_v43  ;;  %v18951_v62 = vpop.f32.mrb[61].mxu1 }
 0x50d   :  { %v1559_v3 = vpop.f32.mrb[62].mxu1  ;;  %v23682_v62 = vld [vmem:[%s29386_s0 + $0x141] sm:$0xff] }
 0x50e   :  { %21722 = vst [vmem:[#allocation2 + $0xf0] sm:$0xff] %v21721_v60  ;;  %v18954_v7 = vpop.f32.mrb[63].mxu1 }
 0x50f   :  { %20132 = vmatmul.mubr.msk.f32.gmra.mrb[12].mxu0 %vm235_vm0, %v23652_v5  ;;  %v21727_v5 = vadd.f32 %v26560_v24, %v1559_v3  ;;  %v1564_v44 = vpop.f32.mrb[64].mxu1  ;;  %v23683_v7 = vld [vmem:[%s29386_s0 + $0x149] sm:$0xff] }
 0x510   :  { %20134 = vmatprep.mubr.msk.f32.mxu0 %vm23685_vm1, %v23684_v0  ;;  %v18957_v49 = vpop.f32.mrb[65].mxu1 }
 0x511   :  { %21728 = vst [vmem:[#allocation2 + $0xf8] sm:$0xff] %v21727_v5  ;;  %v1569_v53 = vpop.f32.mrb[66].mxu1 }
 0x512   :  { %v18960_v57 = vpop.f32.mrb[67].mxu1 }
 0x513   :  { %20135 = vmatmul.mubr.msk.f32.gmra.mrb[14].mxu0 %vm235_vm0, %v23653_v47  ;;  %v21733_v47 = vadd.f32 %v26560_v24, %v1564_v44  ;;  %v1574_v12 = vpop.f32.mrb[68].mxu1  ;;  %v6468_v44 = vld [vmem:[%s29386_s0 + $0x151] sm:$0xff] }
 0x514   :  { %20137 = vmatprep.mubr.msk.f32.mxu0 %vm23685_vm1, %v23684_v0  ;;  %v18963_v16 = vpop.f32.mrb[69].mxu1 }
 0x515   :  { %21734 = vst [vmem:[#allocation2 + $0x100] sm:$0xff] %v21733_v47  ;;  %v1579_v20 = vpop.f32.mrb[70].mxu1  ;;  %v6470_v16 = vld [vmem:[%s29386_s0 + $0x161] sm:$0xff] }
 0x516   :  { %v18966_v42 = vpop.f32.mrb[71].mxu1 }
 0x517   :  { %20138 = vmatmul.mubr.msk.f32.gmra.mrb[16].mxu0 %vm235_vm0, %v23654_v55  ;;  %v21739_v55 = vadd.f32 %v26560_v24, %v1569_v53  ;;  %v1584_v61 = vpop.f32.mrb[72].mxu1  ;;  %v144_v53 = vld [vmem:[#allocation2 + $0x180] sm:$0xff]  ;;  %v146_v42 = vld [vmem:[#allocation2 + $0x190] sm:$0xff] }
 0x518   :  { %20140 = vmatprep.mubr.msk.f32.mxu0 %vm23685_vm1, %v23684_v0  ;;  %v18969_v2 = vpop.f32.mrb[73].mxu1 }
 0x519   :  { %21740 = vst [vmem:[#allocation2 + $0x108] sm:$0xff] %v21739_v55  ;;  %v1589_v6 = vpop.f32.mrb[74].mxu1  ;;  %v6469_v55 = vld [vmem:[%s29386_s0 + $0x159] sm:$0xff] }
 0x51a   :  { %v18972_v10 = vpop.f32.mrb[75].mxu1 }
 0x51b   :  { %20141 = vmatmul.mubr.msk.f32.gmra.mrb[18].mxu0 %vm235_vm0, %v23655_v14  ;;  %v21745_v14 = vadd.f32 %v26560_v24, %v1574_v12  ;;  %v1594_v48 = vpop.f32.mrb[76].mxu1 }
 0x51c   :  { %20143 = vmatprep.mubr.msk.f32.mxu0 %vm23685_vm1, %v23684_v0  ;;  %v18975_v52 = vpop.f32.mrb[77].mxu1 }
 0x51d   :  { %21746 = vst [vmem:[#allocation2 + $0x110] sm:$0xff] %v21745_v14  ;;  %v1599_v56 = vpop.f32.mrb[78].mxu1  ;;  %v145_v14 = vld [vmem:[#allocation2 + $0x188] sm:$0xff] }
 0x51e   :  { %v18978_v59 = vpop.f32.mrb[79].mxu1 }
 0x51f   :  { %20144 = vmatmul.mubr.msk.f32.gmra.mrb[20].mxu0 %vm235_vm0, %v23656_v22  ;;  %v21751_v22 = vadd.f32 %v26560_v24, %v1579_v20  ;;  %v1604_v15 = vpop.f32.mrb[80].mxu1  ;;  %v6474_v59 = vld [vmem:[%s29386_s0 + $0x181] sm:$0xff] }
 0x520   :  { %20146 = vmatprep.mubr.msk.f32.mxu0 %vm23685_vm1, %v23684_v0  ;;  %v18981_v19 = vpop.f32.mrb[81].mxu1 }
 0x521   :  { %21752 = vst [vmem:[#allocation2 + $0x118] sm:$0xff] %v21751_v22  ;;  %v150_v19 = vld [vmem:[#allocation2 + $0x1b0] sm:$0xff] }
 0x523   :  { %20147 = vmatmul.mubr.msk.f32.gmra.mrb[22].mxu0 %vm235_vm0, %v23657_v63  ;;  %v21757_v63 = vadd.f32 %v26560_v24, %v1584_v61 }
 0x524   :  { %20149 = vmatprep.mubr.msk.f32.mxu0 %vm23685_vm1, %v23684_v0 }
 0x525   :  { %21758 = vst [vmem:[#allocation2 + $0x120] sm:$0xff] %v21757_v63 }
 0x527   :  { %20150 = vmatmul.mubr.msk.f32.gmra.mrb[24].mxu0 %vm235_vm0, %v23658_v8  ;;  %v21763_v8 = vadd.f32 %v26560_v24, %v1589_v6  ;;  %v6472_v6 = vld [vmem:[%s29386_s0 + $0x171] sm:$0xff] }
 0x528   :  { %20152 = vmatprep.mubr.msk.f32.mxu0 %vm23685_vm1, %v23684_v0 }
 0x529   :  { %21764 = vst [vmem:[#allocation2 + $0x128] sm:$0xff] %v21763_v8 }
 0x52b   :  { %20153 = vmatmul.mubr.msk.f32.gmra.mrb[26].mxu0 %vm235_vm0, %v23659_v50  ;;  %v21769_v50 = vadd.f32 %v26560_v24, %v1594_v48  ;;  %v148_v48 = vld [vmem:[#allocation2 + $0x1a0] sm:$0xff] }
 0x52c   :  { %20155 = vmatprep.mubr.msk.f32.mxu0 %vm23685_vm1, %v23684_v0 }
 0x52d   :  { %21770 = vst [vmem:[#allocation2 + $0x130] sm:$0xff] %v21769_v50  ;;  %v6473_v50 = vld [vmem:[%s29386_s0 + $0x179] sm:$0xff] }
 0x52f   :  { %20156 = vmatmul.mubr.msk.f32.gmra.mrb[28].mxu0 %vm235_vm0, %v23660_v58  ;;  %v21775_v58 = vadd.f32 %v26560_v24, %v1599_v56 }
 0x530   :  { %20158 = vmatprep.mubr.msk.f32.mxu0 %vm23685_vm1, %v23684_v0 }
 0x531   :  { %21776 = vst [vmem:[#allocation2 + $0x138] sm:$0xff] %v21775_v58  ;;  %v149_v58 = vld [vmem:[#allocation2 + $0x1a8] sm:$0xff] }
 0x533   :  { %20159 = vmatmul.mubr.msk.f32.gmra.mrb[30].mxu0 %vm235_vm0, %v23661_v17  ;;  %v21781_v17 = vadd.f32 %v26560_v24, %v1604_v15 }
 0x534   :  { %20161 = vmatprep.mubr.msk.f32.mxu0 %vm23685_vm1, %v23684_v0 }
 0x535   :  { %21782 = vst [vmem:[#allocation2 + $0x140] sm:$0xff] %v21781_v17 }
 0x537   :  { %20162 = vmatmul.mubr.msk.f32.gmra.mrb[32].mxu0 %vm235_vm0, %v23662_v25 }
 0x538   :  { %20164 = vmatprep.mubr.msk.f32.mxu0 %vm23685_vm1, %v23684_v0 }
 0x53b   :  { %20165 = vmatmul.mubr.msk.f32.gmra.mrb[34].mxu0 %vm235_vm0, %v23663_v33 }
 0x53c   :  { %20167 = vmatprep.mubr.msk.f32.mxu0 %vm23685_vm1, %v23684_v0 }
 0x53f   :  { %20168 = vmatmul.mubr.msk.f32.gmra.mrb[36].mxu0 %vm235_vm0, %v23664_v28 }
 0x540   :  { %20170 = vmatprep.mubr.msk.f32.mxu0 %vm23685_vm1, %v23684_v0 }
 0x543   :  { %20171 = vmatmul.mubr.msk.f32.gmra.mrb[38].mxu0 %vm235_vm0, %v23665_v34 }
 0x544   :  { %20173 = vmatprep.mubr.msk.f32.mxu0 %vm23685_vm1, %v23684_v0 }
 0x547   :  { %20174 = vmatmul.mubr.msk.f32.gmra.mrb[40].mxu0 %vm235_vm0, %v23666_v40 }
 0x548   :  { %20176 = vmatprep.mubr.msk.f32.mxu0 %vm23685_vm1, %v23684_v0 }
 0x54b   :  { %20177 = vmatmul.mubr.msk.f32.gmra.mrb[42].mxu0 %vm235_vm0, %v23667_v1 }
 0x54c   :  { %20179 = vmatprep.mubr.msk.f32.mxu0 %vm23685_vm1, %v23684_v0 }
 0x54f   :  { %20180 = vmatmul.mubr.msk.f32.gmra.mrb[44].mxu0 %vm235_vm0, %v23668_v9  ;;  %v143_v9 = vld [vmem:[#allocation2 + $0x178] sm:$0xff] }
 0x550   :  { %20182 = vmatprep.mubr.msk.f32.mxu0 %vm23685_vm1, %v23684_v0 }
 0x553   :  { %20183 = vmatmul.mubr.msk.f32.gmra.mrb[46].mxu0 %vm235_vm0, %v23669_v51 }
 0x554   :  { %20185 = vmatprep.mubr.msk.f32.mxu0 %vm23685_vm1, %v23684_v0 }
 0x557   :  { %20186 = vmatmul.mubr.msk.f32.gmra.mrb[48].mxu0 %vm235_vm0, %v23670_v11 }
 0x558   :  { %20188 = vmatprep.mubr.msk.f32.mxu0 %vm23685_vm1, %v23684_v0 }
 0x55b   :  { %20189 = vmatmul.mubr.msk.f32.gmra.mrb[50].mxu0 %vm235_vm0, %v23671_v18 }
 0x55c   :  { %20191 = vmatprep.mubr.msk.f32.mxu0 %vm23685_vm1, %v23684_v0 }
 0x55f   :  { %20192 = vmatmul.mubr.msk.f32.gmra.mrb[52].mxu0 %vm235_vm0, %v23672_v45  ;;  %v6471_v45 = vld [vmem:[%s29386_s0 + $0x169] sm:$0xff] }
 0x560   :  { %20194 = vmatprep.mubr.msk.f32.mxu0 %vm23685_vm1, %v23684_v0 }
 0x563   :  { %20195 = vmatmul.mubr.msk.f32.gmra.mrb[54].mxu0 %vm235_vm0, %v23673_v4  ;;  %v147_v4 = vld [vmem:[#allocation2 + $0x198] sm:$0xff] }
 0x564   :  { %20197 = vmatprep.mubr.msk.f32.mxu0 %vm23685_vm1, %v23684_v0 }
 0x567   :  { %20198 = vmatmul.mubr.msk.f32.gmra.mrb[56].mxu0 %vm235_vm0, %v23674_v46 }
 0x568   :  { %20200 = vmatprep.mubr.msk.f32.mxu0 %vm23685_vm1, %v23684_v0 }
 0x56b   :  { %20201 = vmatmul.mubr.msk.f32.gmra.mrb[58].mxu0 %vm235_vm0, %v23675_v54  ;;  %v2504_v23 = vpop.f32.mrb[82].mxu1 }
 0x56c   :  { %20203 = vmatprep.mubr.msk.f32.mxu0 %vm23685_vm1, %v23684_v0  ;;  %v21787_v25 = vadd.f32 %v26560_v24, %v2504_v23  ;;  %v19193_v27 = vpop.f32.mrb[83].mxu1 }
 0x56e   :  { %21788 = vst [vmem:[#allocation2 + $0x148] sm:$0xff] %v21787_v25 }
 0x56f   :  { %20204 = vmatmul.mubr.msk.f32.gmra.mrb[60].mxu0 %vm235_vm0, %v23676_v13  ;;  %v2509_v31 = vpop.f32.mrb[84].mxu1 }
 0x570   :  { %20206 = vmatprep.mubr.msk.f32.mxu0 %vm23685_vm1, %v23684_v0  ;;  %v21793_v33 = vadd.f32 %v26560_v24, %v2509_v31  ;;  %v19196_v35 = vpop.f32.mrb[85].mxu1  ;;  %v6476_v31 = vld [vmem:[%s29386_s0 + $0x191] sm:$0xff] }
 0x572   :  { %21794 = vst [vmem:[#allocation2 + $0x150] sm:$0xff] %v21793_v33 }
 0x573   :  { %20207 = vmatmul.mubr.msk.f32.gmra.mrb[62].mxu0 %vm235_vm0, %v23677_v21  ;;  %v2514_v26 = vpop.f32.mrb[86].mxu1  ;;  %v6475_v21 = vld [vmem:[%s29386_s0 + $0x189] sm:$0xff] }
 0x574   :  { %20209 = vmatprep.mubr.msk.f32.mxu0 %vm23685_vm1, %v23684_v0  ;;  %v21799_v28 = vadd.f32 %v26560_v24, %v2514_v26  ;;  %v19199_v39 = vpop.f32.mrb[87].mxu1  ;;  %v152_v26 = vld [vmem:[#allocation2 + $0x1c0] sm:$0xff] }
 0x576   :  { %21800 = vst [vmem:[#allocation2 + $0x158] sm:$0xff] %v21799_v28  ;;  %v6477_v28 = vld [vmem:[%s29386_s0 + $0x199] sm:$0xff] }
 0x577   :  { %20210 = vmatmul.mubr.msk.f32.gmra.mrb[64].mxu0 %vm235_vm0, %v23678_v29  ;;  %v2519_v32 = vpop.f32.mrb[88].mxu1  ;;  %v151_v29 = vld [vmem:[#allocation2 + $0x1b8] sm:$0xff] }
 0x578   :  { %20212 = vmatprep.mubr.msk.f32.mxu0 %vm23685_vm1, %v23684_v0  ;;  %v21805_v34 = vadd.f32 %v26560_v24, %v2519_v32  ;;  %v19202_v41 = vpop.f32.mrb[89].mxu1  ;;  %v142_v24 = vld [vmem:[#allocation2 + $0x170] sm:$0xff] }
 0x579   :  { %v6478_v41 = vld [vmem:[%s29386_s0 + $0x1a1] sm:$0xff] }
 0x57a   :  { %21806 = vst [vmem:[#allocation2 + $0x160] sm:$0xff] %v21805_v34  ;;  %v153_v34 = vld [vmem:[#allocation2 + $0x1c8] sm:$0xff] }
 0x57b   :  { %20213 = vmatmul.mubr.msk.f32.gmra.mrb[66].mxu0 %vm235_vm0, %v23679_v37  ;;  %v2524_v40 = vpop.f32.mrb[90].mxu1 }
 0x57c   :  { %20215 = vmatprep.mubr.msk.f32.mxu0 %vm23685_vm1, %v23684_v0  ;;  %v21811_v43 = vadd.f32 %v2524_v40, %v141_v38  ;;  %v19205_v60 = vpop.f32.mrb[91].mxu1 }
 0x57d   :  { %v6479_v60 = vld [vmem:[%s29386_s0 + $0x1a9] sm:$0xff] }
 0x57e   :  { %21812 = vst [vmem:[#allocation2 + $0x168] sm:$0xff] %v21811_v43  ;;  %v154_v43 = vld [vmem:[#allocation2 + $0x1d0] sm:$0xff] }
 0x57f   :  { %20216 = vmatmul.mubr.msk.f32.gmra.mrb[68].mxu0 %vm235_vm0, %v23680_v30  ;;  %v2529_v1 = vpop.f32.mrb[92].mxu1 }
 0x580   :  { %20218 = vmatprep.mubr.msk.f32.mxu0 %vm23685_vm1, %v23684_v0  ;;  %v21817_v3 = vadd.f32 %v2529_v1, %v142_v24  ;;  %v19208_v5 = vpop.f32.mrb[93].mxu1 }
 0x581   :  { %v6480_v5 = vld [vmem:[%s29386_s0 + $0x1b1] sm:$0xff] }
 0x582   :  { %21818 = vst [vmem:[#allocation2 + $0x170] sm:$0xff] %v21817_v3  ;;  %v155_v3 = vld [vmem:[#allocation2 + $0x1d8] sm:$0xff] }
 0x583   :  { %20219 = vmatmul.mubr.msk.f32.gmra.mrb[70].mxu0 %vm235_vm0, %v23681_v36  ;;  %v2534_v47 = vpop.f32.mrb[94].mxu1 }
 0x584   :  { %20221 = vmatprep.mubr.msk.f32.mxu0 %vm23685_vm1, %v23684_v0  ;;  %v21823_v49 = vadd.f32 %v2534_v47, %v143_v9  ;;  %v19211_v51 = vpop.f32.mrb[95].mxu1  ;;  %v156_v47 = vld [vmem:[#allocation2 + $0x1e0] sm:$0xff] }
 0x586   :  { %21824 = vst [vmem:[#allocation2 + $0x178] sm:$0xff] %v21823_v49  ;;  %v6481_v49 = vld [vmem:[%s29386_s0 + $0x1b9] sm:$0xff] }
 0x587   :  { %20222 = vmatmul.mubr.msk.f32.gmra.mrb[72].mxu0 %vm235_vm0, %v23682_v62  ;;  %v2539_v57 = vpop.f32.mrb[96].mxu1 }
 0x588   :  { %20224 = vmatprep.mubr.msk.f32.mxu0 %vm23685_vm1, %v23684_v0  ;;  %v21829_v11 = vadd.f32 %v2539_v57, %v144_v53  ;;  %v19214_v12 = vpop.f32.mrb[97].mxu1  ;;  %v157_v57 = vld [vmem:[#allocation2 + $0x1e8] sm:$0xff] }
 0x58a   :  { %21830 = vst [vmem:[#allocation2 + $0x180] sm:$0xff] %v21829_v11  ;;  %v6482_v11 = vld [vmem:[%s29386_s0 + $0x1c1] sm:$0xff] }
 0x58b   :  { %20225 = vmatmul.mubr.msk.f32.gmra.mrb[74].mxu0 %vm235_vm0, %v23683_v7  ;;  %v2544_v18 = vpop.f32.mrb[98].mxu1 }
 0x58c   :  { %20227 = vmatprep.mubr.msk.f32.mxu0 %vm23685_vm1, %v23684_v0  ;;  %v21835_v20 = vadd.f32 %v2544_v18, %v145_v14  ;;  %v19217_v22 = vpop.f32.mrb[99].mxu1  ;;  %v158_v18 = vld [vmem:[#allocation2 + $0x1f0] sm:$0xff] }
 0x58e   :  { %21836 = vst [vmem:[#allocation2 + $0x188] sm:$0xff] %v21835_v20  ;;  %v6483_v20 = vld [vmem:[%s29386_s0 + $0x1c9] sm:$0xff] }
 0x58f   :  { %20228 = vmatmul.mubr.msk.f32.gmra.mrb[76].mxu0 %vm235_vm0, %v6468_v44  ;;  %v2549_v61 = vpop.f32.mrb[100].mxu1 }
 0x590   :  { %20230 = vmatprep.mubr.msk.f32.mxu0 %vm23685_vm1, %v23684_v0  ;;  %v21841_v63 = vadd.f32 %v2549_v61, %v146_v42  ;;  %v19220_v2 = vpop.f32.mrb[101].mxu1  ;;  %v159_v61 = vld [vmem:[#allocation2 + $0x1f8] sm:$0xff] }
 0x592   :  { %21842 = vst [vmem:[#allocation2 + $0x190] sm:$0xff] %v21841_v63  ;;  %v6484_v63 = vld [vmem:[%s29386_s0 + $0x1d1] sm:$0xff] }
 0x593   :  { %20231 = vmatmul.mubr.msk.f32.gmra.mrb[78].mxu0 %vm235_vm0, %v6469_v55  ;;  %v2554_v8 = vpop.f32.mrb[102].mxu1 }
 0x594   :  { %20233 = vmatprep.mubr.msk.f32.mxu0 %vm23685_vm1, %v23684_v0  ;;  %v21847_v10 = vadd.f32 %v2554_v8, %v147_v4  ;;  %v19223_v46 = vpop.f32.mrb[103].mxu1  ;;  %v160_v8 = vld [vmem:[#allocation2 + $0x200] sm:$0xff] }
 0x596   :  { %21848 = vst [vmem:[#allocation2 + $0x198] sm:$0xff] %v21847_v10  ;;  %v6485_v10 = vld [vmem:[%s29386_s0 + $0x1d9] sm:$0xff] }
 0x597   :  { %20234 = vmatmul.mubr.msk.f32.gmra.mrb[80].mxu0 %vm235_vm0, %v6470_v16  ;;  %v2559_v52 = vpop.f32.mrb[104].mxu1 }
 0x598   :  { %20236 = vmatprep.mubr.msk.f32.mxu0 %vm23685_vm1, %v23684_v0  ;;  %v21853_v54 = vadd.f32 %v2559_v52, %v148_v48  ;;  %v19226_v56 = vpop.f32.mrb[105].mxu1  ;;  %v161_v52 = vld [vmem:[#allocation2 + $0x208] sm:$0xff] }
 0x59a   :  { %21854 = vst [vmem:[#allocation2 + $0x1a0] sm:$0xff] %v21853_v54  ;;  %v6486_v54 = vld [vmem:[%s29386_s0 + $0x1e1] sm:$0xff] }
 0x59b   :  { %20237 = vmatmul.mubr.msk.f32.gmra.mrb[82].mxu0 %vm235_vm0, %v6471_v45 }
 0x59c   :  { %20239 = vmatprep.mubr.msk.f32.mxu0 %vm23685_vm1, %v23684_v0 }
 0x59f   :  { %20240 = vmatmul.mubr.msk.f32.gmra.mrb[84].mxu0 %vm235_vm0, %v6472_v6  ;;  %v2564_v13 = vpop.f32.mrb[106].mxu1 }
 0x5a0   :  { %20242 = vmatprep.mubr.msk.f32.mxu0 %vm23685_vm1, %v23684_v0  ;;  %v21859_v15 = vadd.f32 %v2564_v13, %v149_v58  ;;  %v19229_v17 = vpop.f32.mrb[107].mxu1  ;;  %v162_v13 = vld [vmem:[#allocation2 + $0x210] sm:$0xff] }
 0x5a2   :  { %21860 = vst [vmem:[#allocation2 + $0x1a8] sm:$0xff] %v21859_v15  ;;  %v6487_v15 = vld [vmem:[%s29386_s0 + $0x1e9] sm:$0xff] }
 0x5a3   :  { %20243 = vmatmul.mubr.msk.f32.gmra.mrb[86].mxu0 %vm235_vm0, %v6473_v50  ;;  %v2569_v23 = vpop.f32.mrb[108].mxu1 }
 0x5a4   :  { %20245 = vmatprep.mubr.msk.f32.mxu0 %vm23685_vm1, %v23684_v0  ;;  %v21865_v25 = vadd.f32 %v2569_v23, %v150_v19  ;;  %v19232_v27 = vpop.f32.mrb[109].mxu1  ;;  %v163_v23 = vld [vmem:[#allocation2 + $0x218] sm:$0xff] }
 0x5a6   :  { %21866 = vst [vmem:[#allocation2 + $0x1b0] sm:$0xff] %v21865_v25  ;;  %v6488_v25 = vld [vmem:[%s29386_s0 + $0x1f1] sm:$0xff] }
 0x5a7   :  { %20246 = vmatmul.mubr.msk.f32.gmra.mrb[88].mxu0 %vm235_vm0, %v6474_v59  ;;  %v2574_v33 = vpop.f32.mrb[110].mxu1 }
 0x5a8   :  { %20248 = vmatprep.mubr.msk.f32.mxu0 %vm23685_vm1, %v23684_v0  ;;  %v21871_v35 = vadd.f32 %v2574_v33, %v151_v29  ;;  %v19235_v37 = vpop.f32.mrb[111].mxu1  ;;  %v164_v33 = vld [vmem:[#allocation2 + $0x220] sm:$0xff] }
 0x5aa   :  { %21872 = vst [vmem:[#allocation2 + $0x1b8] sm:$0xff] %v21871_v35  ;;  %v6489_v35 = vld [vmem:[%s29386_s0 + $0x1f9] sm:$0xff] }
 0x5ab   :  { %20249 = vmatmul.mubr.msk.f32.gmra.mrb[90].mxu0 %vm235_vm0, %v6475_v21  ;;  %v2579_v39 = vpop.f32.mrb[112].mxu1 }
 0x5ac   :  { %20251 = vmatprep.mubr.msk.f32.mxu0 %vm23685_vm1, %v23684_v0  ;;  %v21877_v30 = vadd.f32 %v2579_v39, %v152_v26  ;;  %v19238_v32 = vpop.f32.mrb[113].mxu1  ;;  %v6490_v39 = vld [vmem:[%s29386_s0 + $0x201] sm:$0xff] }
 0x5ad   :  { %v6492_v32 = vld [vmem:[%s29386_s0 + $0x211] sm:$0xff] }
 0x5ae   :  { %21878 = vst [vmem:[#allocation2 + $0x1c0] sm:$0xff] %v21877_v30  ;;  %v6491_v30 = vld [vmem:[%s29386_s0 + $0x209] sm:$0xff] }
 0x5af   :  { %20252 = vmatmul.mubr.msk.f32.gmra.mrb[92].mxu0 %vm235_vm0, %v6476_v31  ;;  %v2584_v36 = vpop.f32.mrb[114].mxu1 }
 0x5b0   :  { %20254 = vmatprep.mubr.msk.f32.mxu0 %vm23685_vm1, %v23684_v0  ;;  %v21883_v38 = vadd.f32 %v2584_v36, %v153_v34  ;;  %v19241_v40 = vpop.f32.mrb[115].mxu1  ;;  %v6493_v34 = vld [vmem:[%s29386_s0 + $0x219] sm:$0xff]  ;;  %v6495_v36 = vld [vmem:[%s29386_s0 + $0x229] sm:$0xff] }
 0x5b1   :  { %v6497_v40 = vld [vmem:[%s29386_s0 + $0x239] sm:$0xff] }
 0x5b2   :  { %21884 = vst [vmem:[#allocation2 + $0x1c8] sm:$0xff] %v21883_v38  ;;  %v6496_v38 = vld [vmem:[%s29386_s0 + $0x231] sm:$0xff] }
 0x5b3   :  { %20255 = vmatmul.mubr.msk.f32.gmra.mrb[94].mxu0 %vm235_vm0, %v6477_v28  ;;  %v2589_v62 = vpop.f32.mrb[116].mxu1 }
 0x5b4   :  { %20257 = vmatprep.mubr.msk.f32.mxu0 %vm23685_vm1, %v23684_v0  ;;  %v21889_v24 = vadd.f32 %v2589_v62, %v154_v43  ;;  %v19244_v1 = vpop.f32.mrb[117].mxu1  ;;  %v6498_v43 = vld [vmem:[%s29386_s0 + $0x241] sm:$0xff]  ;;  %v7326_v62 = vld [vmem:[%s29386_s0 + $0x2a] sm:$0xff] }
 0x5b5   :  { %v7328_v1 = vld [vmem:[%s29386_s0 + $0x3a] sm:$0xff] }
 0x5b6   :  { %21890 = vst [vmem:[#allocation2 + $0x1d0] sm:$0xff] %v21889_v24  ;;  %v7327_v24 = vld [vmem:[%s29386_s0 + $0x32] sm:$0xff] }
 0x5b7   :  { %20258 = vmatmul.mubr.msk.f32.gmra.mrb[96].mxu0 %vm235_vm0, %v6478_v41  ;;  %v2594_v7 = vpop.f32.mrb[118].mxu1  ;;  %v6494_v41 = vld [vmem:[%s29386_s0 + $0x221] sm:$0xff] }
 0x5b8   :  { %20260 = vmatprep.mubr.msk.f32.mxu0 %vm23685_vm1, %v23684_v0  ;;  %v21895_v9 = vadd.f32 %v2594_v7, %v155_v3  ;;  %v19247_v44 = vpop.f32.mrb[119].mxu1  ;;  %v7329_v3 = vld [vmem:[%s29386_s0 + $0x42] sm:$0xff]  ;;  %v7331_v7 = vld [vmem:[%s29386_s0 + $0x52] sm:$0xff] }
 0x5b9   :  { %v7333_v44 = vld [vmem:[%s29386_s0 + $0x62] sm:$0xff] }
 0x5ba   :  { %21896 = vst [vmem:[#allocation2 + $0x1d8] sm:$0xff] %v21895_v9  ;;  %v7332_v9 = vld [vmem:[%s29386_s0 + $0x5a] sm:$0xff] }
 0x5bb   :  { %20261 = vmatmul.mubr.msk.f32.gmra.mrb[98].mxu0 %vm235_vm0, %v6479_v60  ;;  %v2599_v51 = vpop.f32.mrb[120].mxu1  ;;  %v7325_v60 = vld [vmem:[%s29386_s0 + $0x22] sm:$0xff] }
 0x5bc   :  { %20263 = vmatprep.mubr.msk.f32.mxu0 %vm23685_vm1, %v23684_v0  ;;  %v21901_v53 = vadd.f32 %v2599_v51, %v156_v47  ;;  %v19250_v55 = vpop.f32.mrb[121].mxu1  ;;  %v7334_v47 = vld [vmem:[%s29386_s0 + $0x6a] sm:$0xff]  ;;  %v7336_v51 = vld [vmem:[%s29386_s0 + $0x7a] sm:$0xff] }
 0x5bd   :  { %v7338_v55 = vld [vmem:[%s29386_s0 + $0x8a] sm:$0xff] }
 0x5be   :  { %21902 = vst [vmem:[#allocation2 + $0x1e0] sm:$0xff] %v21901_v53  ;;  %v7337_v53 = vld [vmem:[%s29386_s0 + $0x82] sm:$0xff] }
 0x5bf   :  { %20264 = vmatmul.mubr.msk.f32.gmra.mrb[100].mxu0 %vm235_vm0, %v6480_v5  ;;  %v2604_v12 = vpop.f32.mrb[122].mxu1  ;;  %v7330_v5 = vld [vmem:[%s29386_s0 + $0x4a] sm:$0xff] }
 0x5c0   :  { %20266 = vmatprep.mubr.msk.f32.mxu0 %vm23685_vm1, %v23684_v0  ;;  %v21907_v14 = vadd.f32 %v2604_v12, %v157_v57  ;;  %v19253_v16 = vpop.f32.mrb[123].mxu1  ;;  %v7339_v57 = vld [vmem:[%s29386_s0 + $0x92] sm:$0xff]  ;;  %v7341_v12 = vld [vmem:[%s29386_s0 + $0xa2] sm:$0xff] }
 0x5c1   :  { %v7343_v16 = vld [vmem:[%s29386_s0 + $0xb2] sm:$0xff] }
 0x5c2   :  { %21908 = vst [vmem:[#allocation2 + $0x1e8] sm:$0xff] %v21907_v14  ;;  %v7342_v14 = vld [vmem:[%s29386_s0 + $0xaa] sm:$0xff] }
 0x5c3   :  { %20267 = vmatmul.mubr.msk.f32.gmra.mrb[102].mxu0 %vm235_vm0, %v6481_v49  ;;  %v2609_v22 = vpop.f32.mrb[124].mxu1  ;;  %v7335_v49 = vld [vmem:[%s29386_s0 + $0x72] sm:$0xff] }
 0x5c4   :  { %20269 = vmatprep.mubr.msk.f32.mxu0 %vm23685_vm1, %v23684_v0  ;;  %v21913_v42 = vadd.f32 %v2609_v22, %v158_v18  ;;  %v19256_v45 = vpop.f32.mrb[125].mxu1  ;;  %v7344_v18 = vld [vmem:[%s29386_s0 + $0xba] sm:$0xff]  ;;  %v7346_v22 = vld [vmem:[%s29386_s0 + $0xca] sm:$0xff] }
 0x5c5   :  { %v8558_v45 = vld [vmem:[%s29388_s3 + $0x8] sm:$0xff] }
 0x5c6   :  { %21914 = vst [vmem:[#allocation2 + $0x1f0] sm:$0xff] %v21913_v42  ;;  %v8557_v42 = vld [vmem:[%s29388_s3] sm:$0xff] }
 0x5c7   :  { %20270 = vmatmul.mubr.msk.f32.gmra.mrb[104].mxu0 %vm235_vm0, %v6482_v11  ;;  %v2614_v2 = vpop.f32.mrb[126].mxu1  ;;  %v7340_v11 = vld [vmem:[%s29386_s0 + $0x9a] sm:$0xff] }
 0x5c8   :  { %20272 = vmatprep.mubr.msk.f32.mxu0 %vm23685_vm1, %v23684_v0  ;;  %v21919_v4 = vadd.f32 %v2614_v2, %v159_v61  ;;  %v19259_v6 = vpop.f32.mrb[127].mxu1  ;;  %v21465_v61 = vpack.c.bf16 %v8558_v45, %v8557_v42  ;;  %v8559_v2 = vld [vmem:[%s29388_s3 + $0x10] sm:$0xff]  ;;  %v21567_v42 = vld [vmem:[#allocation2 + $0x20] sm:$0xff] }
 0x5ca   :  { %21920 = vst [vmem:[#allocation2 + $0x1f8] sm:$0xff] %v21919_v4  ;;  %21466 = vmatprep.subr.bf16.mxu1 %v21465_v61  ;;  %v8560_v4 = vld [vmem:[%s29388_s3 + $0x18] sm:$0xff] }
 0x5cb   :  { %20273 = vmatmul.mubr.msk.f32.gmra.mrb[106].mxu0 %vm235_vm0, %v6483_v20  ;;  %v7345_v20 = vld [vmem:[%s29386_s0 + $0xc2] sm:$0xff]  ;;  %21468 = vmatpush3.bf16.msra.mxu1 %v21465_v61  ;;  %v21469_v6 = vpack.c.bf16 %v8560_v4, %v8559_v2 }
 0x5cc   :  { %20275 = vmatprep.mubr.msk.f32.mxu0 %vm23685_vm1, %v23684_v0  ;;  %v2619_v46 = vpop.f32.mrb[128].mxu1 }
 0x5cd   :  { %v21925_v48 = vadd.f32 %v2619_v46, %v160_v8  ;;  %v19262_v50 = vpop.f32.mrb[129].mxu1  ;;  %21470 = vmatprep.subr.bf16.mxu1 %v21469_v6  ;;  %v7348_v8 = vld [vmem:[%s29386_s0 + $0xda] sm:$0xff]  ;;  %v7350_v46 = vld [vmem:[%s29386_s0 + $0xea] sm:$0xff] }
 0x5ce   :  { %v7352_v50 = vld [vmem:[%s29386_s0 + $0xfa] sm:$0xff] }
 0x5cf   :  { %20276 = vmatmul.mubr.msk.f32.gmra.mrb[108].mxu0 %vm235_vm0, %v6484_v63  ;;  %21926 = vst [vmem:[#allocation2 + $0x200] sm:$0xff] %v21925_v48  ;;  %v7347_v63 = vld [vmem:[%s29386_s0 + $0xd2] sm:$0xff]  ;;  %21472 = vmatpush3.bf16.msra.mxu1 %v21469_v6  ;;  %v21573_v6 = vld [vmem:[#allocation2 + $0x28] sm:$0xff] }
 0x5d0   :  { %20278 = vmatprep.mubr.msk.f32.mxu0 %vm23685_vm1, %v23684_v0  ;;  %v2624_v56 = vpop.f32.mrb[130].mxu1  ;;  %v7351_v48 = vld [vmem:[%s29386_s0 + $0xf2] sm:$0xff] }
 0x5d1   :  { %v21931_v58 = vadd.f32 %v2624_v56, %v161_v52  ;;  %v19265_v59 = vpop.f32.mrb[131].mxu1  ;;  %v7353_v52 = vld [vmem:[%s29386_s0 + $0x102] sm:$0xff]  ;;  %v7355_v56 = vld [vmem:[%s29386_s0 + $0x112] sm:$0xff] }
 0x5d2   :  { %v7357_v59 = vld [vmem:[%s29386_s0 + $0x122] sm:$0xff] }
 0x5d3   :  { %20279 = vmatmul.mubr.msk.f32.gmra.mrb[110].mxu0 %vm235_vm0, %v6485_v10  ;;  %21932 = vst [vmem:[#allocation2 + $0x208] sm:$0xff] %v21931_v58  ;;  %v7349_v10 = vld [vmem:[%s29386_s0 + $0xe2] sm:$0xff]  ;;  %v7356_v58 = vld [vmem:[%s29386_s0 + $0x11a] sm:$0xff] }
 0x5d4   :  { %20281 = vmatprep.mubr.msk.f32.mxu0 %vm23685_vm1, %v23684_v0  ;;  %v2629_v17 = vpop.f32.mrb[132].mxu1 }
 0x5d5   :  { %v21937_v19 = vadd.f32 %v2629_v17, %v162_v13  ;;  %v19268_v21 = vpop.f32.mrb[133].mxu1  ;;  %v7358_v13 = vld [vmem:[%s29386_s0 + $0x12a] sm:$0xff]  ;;  %v7360_v17 = vld [vmem:[%s29386_s0 + $0x13a] sm:$0xff] }
 0x5d6   :  { %v7362_v21 = vld [vmem:[%s29386_s0 + $0x14a] sm:$0xff] }
 0x5d7   :  { %20282 = vmatmul.mubr.msk.f32.gmra.mrb[112].mxu0 %vm235_vm0, %v6486_v54  ;;  %21938 = vst [vmem:[#allocation2 + $0x210] sm:$0xff] %v21937_v19  ;;  %v7354_v54 = vld [vmem:[%s29386_s0 + $0x10a] sm:$0xff]  ;;  %v7361_v19 = vld [vmem:[%s29386_s0 + $0x142] sm:$0xff] }
 0x5d8   :  { %20284 = vmatprep.mubr.msk.f32.mxu0 %vm23685_vm1, %v23684_v0  ;;  %v2634_v27 = vpop.f32.mrb[134].mxu1 }
 0x5d9   :  { %v21943_v29 = vadd.f32 %v2634_v27, %v163_v23  ;;  %v19271_v31 = vpop.f32.mrb[135].mxu1  ;;  %v7363_v23 = vld [vmem:[%s29386_s0 + $0x152] sm:$0xff]  ;;  %v7365_v27 = vld [vmem:[%s29386_s0 + $0x162] sm:$0xff] }
 0x5da   :  { %v7367_v31 = vld [vmem:[%s29386_s0 + $0x172] sm:$0xff] }
 0x5db   :  { %20285 = vmatmul.mubr.msk.f32.gmra.mrb[114].mxu0 %vm235_vm0, %v6487_v15  ;;  %21944 = vst [vmem:[#allocation2 + $0x218] sm:$0xff] %v21943_v29  ;;  %v7359_v15 = vld [vmem:[%s29386_s0 + $0x132] sm:$0xff]  ;;  %v7366_v29 = vld [vmem:[%s29386_s0 + $0x16a] sm:$0xff] }
 0x5dc   :  { %20287 = vmatprep.mubr.msk.f32.mxu0 %vm23685_vm1, %v23684_v0  ;;  %v2639_v37 = vpop.f32.mrb[136].mxu1 }
 0x5dd   :  { %v21949_v26 = vadd.f32 %v2639_v37, %v164_v33  ;;  %v19274_v28 = vpop.f32.mrb[137].mxu1  ;;  %v7368_v33 = vld [vmem:[%s29386_s0 + $0x17a] sm:$0xff]  ;;  %v7370_v37 = vld [vmem:[%s29386_s0 + $0x18a] sm:$0xff] }
 0x5de   :  { %v7372_v28 = vld [vmem:[%s29386_s0 + $0x19a] sm:$0xff] }
 0x5df   :  { %20288 = vmatmul.mubr.msk.f32.gmra.mrb[116].mxu0 %vm235_vm0, %v6488_v25  ;;  %21950 = vst [vmem:[#allocation2 + $0x220] sm:$0xff] %v21949_v26  ;;  %v7364_v25 = vld [vmem:[%s29386_s0 + $0x15a] sm:$0xff]  ;;  %v7371_v26 = vld [vmem:[%s29386_s0 + $0x192] sm:$0xff] }
 0x5e0   :  { %20290 = vmatprep.mubr.msk.f32.mxu0 %vm23685_vm1, %v23684_v0 }
 0x5e3   :  { %20291 = vmatmul.mubr.msk.f32.gmra.mrb[118].mxu0 %vm235_vm0, %v6489_v35  ;;  %v7369_v35 = vld [vmem:[%s29386_s0 + $0x182] sm:$0xff] }
 0x5e4   :  { %20293 = vmatprep.mubr.msk.f32.mxu0 %vm23685_vm1, %v23684_v0 }
 0x5e7   :  { %20294 = vmatmul.mubr.msk.f32.gmra.mrb[120].mxu0 %vm235_vm0, %v6490_v39  ;;  %v7373_v39 = vld [vmem:[%s29386_s0 + $0x1a2] sm:$0xff] }
 0x5e8   :  { %20296 = vmatprep.mubr.msk.f32.mxu0 %vm23685_vm1, %v23684_v0 }
 0x5eb   :  { %20297 = vmatmul.mubr.msk.f32.gmra.mrb[122].mxu0 %vm235_vm0, %v6491_v30  ;;  %v7374_v30 = vld [vmem:[%s29386_s0 + $0x1aa] sm:$0xff] }
 0x5ec   :  { %20299 = vmatprep.mubr.msk.f32.mxu0 %vm23685_vm1, %v23684_v0 }
 0x5ef   :  { %20300 = vmatmul.mubr.msk.f32.gmra.mrb[124].mxu0 %vm235_vm0, %v6492_v32  ;;  %v7375_v32 = vld [vmem:[%s29386_s0 + $0x1b2] sm:$0xff] }
 0x5f0   :  { %20302 = vmatprep.mubr.msk.f32.mxu0 %vm23685_vm1, %v23684_v0 }
 0x5f3   :  { %20303 = vmatmul.mubr.msk.f32.gmra.mrb[126].mxu0 %vm235_vm0, %v6493_v34  ;;  %v7376_v34 = vld [vmem:[%s29386_s0 + $0x1ba] sm:$0xff] }
 0x5f4   :  { %20305 = vmatprep.mubr.msk.f32.mxu0 %vm23685_vm1, %v23684_v0 }
 0x5f7   :  { %20306 = vmatmul.mubr.msk.f32.gmra.mrb[128].mxu0 %vm235_vm0, %v6494_v41  ;;  %v7377_v41 = vld [vmem:[%s29386_s0 + $0x1c2] sm:$0xff] }
 0x5f8   :  { %20308 = vmatprep.mubr.msk.f32.mxu0 %vm23685_vm1, %v23684_v0 }
 0x5fb   :  { %20309 = vmatmul.mubr.msk.f32.gmra.mrb[130].mxu0 %vm235_vm0, %v6495_v36  ;;  %v7378_v36 = vld [vmem:[%s29386_s0 + $0x1ca] sm:$0xff] }
 0x5fc   :  { %20311 = vmatprep.mubr.msk.f32.mxu0 %vm23685_vm1, %v23684_v0 }
 0x5ff   :  { %20312 = vmatmul.mubr.msk.f32.gmra.mrb[132].mxu0 %vm235_vm0, %v6496_v38 }
 0x600   :  { %20314 = vmatprep.mubr.msk.f32.mxu0 %vm23685_vm1, %v23684_v0 }
 0x603   :  { %20315 = vmatmul.mubr.msk.f32.gmra.mrb[134].mxu0 %vm235_vm0, %v6497_v40  ;;  %v21543_v40 = vld [vmem:[#allocation2] sm:$0xff] }
 0x604   :  { %20317 = vmatprep.mubr.msk.f32.mxu0 %vm23685_vm1, %v23684_v0 }
 0x607   :  { %20318 = vmatmul.mubr.msk.f32.gmra.mrb[136].mxu0 %vm235_vm0, %v6498_v43 }
 0x608   :  { %20322 = vmatprep.mubr.msk.f32.mxu0 %vm23685_vm1, %v23684_v0 }
 0x60b   :  { %20323 = vmatmul.mubr.msk.f32.vlgmr.msra.gmra.mrb[0].mxu0 %vm235_vm0, %v7325_v60 }
 0x60c   :  { %20325 = vmatprep.mubr.msk.f32.mxu0 %vm23685_vm1, %v23684_v0 }
 0x60f   :  { %20326 = vmatmul.mubr.msk.f32.gmra.mrb[2].mxu0 %vm235_vm0, %v7326_v62  ;;  %v7379_v62 = vld [vmem:[%s29386_s0 + $0x1d2] sm:$0xff] }
 0x610   :  { %20328 = vmatprep.mubr.msk.f32.mxu0 %vm23685_vm1, %v23684_v0 }
 0x613   :  { %20329 = vmatmul.mubr.msk.f32.gmra.mrb[4].mxu0 %vm235_vm0, %v7327_v24 }
 0x614   :  { %20331 = vmatprep.mubr.msk.f32.mxu0 %vm23685_vm1, %v23684_v0 }
 0x617   :  { %20332 = vmatmul.mubr.msk.f32.gmra.mrb[6].mxu0 %vm235_vm0, %v7328_v1 }
 0x618   :  { %20334 = vmatprep.mubr.msk.f32.mxu0 %vm23685_vm1, %v23684_v0 }
 0x61b   :  { %20335 = vmatmul.mubr.msk.f32.gmra.mrb[8].mxu0 %vm235_vm0, %v7329_v3  ;;  %v21549_v3 = vld [vmem:[#allocation2 + $0x8] sm:$0xff] }
 0x61c   :  { %20337 = vmatprep.mubr.msk.f32.mxu0 %vm23685_vm1, %v23684_v0 }
 0x61f   :  { %20338 = vmatmul.mubr.msk.f32.gmra.mrb[10].mxu0 %vm235_vm0, %v7330_v5 }
 0x620   :  { %20340 = vmatprep.mubr.msk.f32.mxu0 %vm23685_vm1, %v23684_v0 }
 0x623   :  { %20341 = vmatmul.mubr.msk.f32.gmra.mrb[12].mxu0 %vm235_vm0, %v7331_v7 }
 0x624   :  { %20343 = vmatprep.mubr.msk.f32.mxu0 %vm23685_vm1, %v23684_v0 }
 0x627   :  { %20344 = vmatmul.mubr.msk.f32.gmra.mrb[14].mxu0 %vm235_vm0, %v7332_v9  ;;  %v7380_v9 = vld [vmem:[%s29386_s0 + $0x1da] sm:$0xff] }
 0x628   :  { %20346 = vmatprep.mubr.msk.f32.mxu0 %vm23685_vm1, %v23684_v0 }
 0x62b   :  { %20347 = vmatmul.mubr.msk.f32.gmra.mrb[16].mxu0 %vm235_vm0, %v7333_v44 }
 0x62c   :  { %20349 = vmatprep.mubr.msk.f32.mxu0 %vm23685_vm1, %v23684_v0 }
 0x62f   :  { %20350 = vmatmul.mubr.msk.f32.gmra.mrb[18].mxu0 %vm235_vm0, %v7334_v47 }
 0x630   :  { %20352 = vmatprep.mubr.msk.f32.mxu0 %vm23685_vm1, %v23684_v0 }
 0x633   :  { %20353 = vmatmul.mubr.msk.f32.gmra.mrb[20].mxu0 %vm235_vm0, %v7335_v49  ;;  %v21555_v49 = vld [vmem:[#allocation2 + $0x10] sm:$0xff] }
 0x634   :  { %20355 = vmatprep.mubr.msk.f32.mxu0 %vm23685_vm1, %v23684_v0 }
 0x637   :  { %20356 = vmatmul.mubr.msk.f32.gmra.mrb[22].mxu0 %vm235_vm0, %v7336_v51 }
 0x638   :  { %20358 = vmatprep.mubr.msk.f32.mxu0 %vm23685_vm1, %v23684_v0 }
 0x63b   :  { %20359 = vmatmul.mubr.msk.f32.gmra.mrb[24].mxu0 %vm235_vm0, %v7337_v53 }
 0x63c   :  { %20361 = vmatprep.mubr.msk.f32.mxu0 %vm23685_vm1, %v23684_v0 }
 0x63f   :  { %20362 = vmatmul.mubr.msk.f32.gmra.mrb[26].mxu0 %vm235_vm0, %v7338_v55  ;;  %v7381_v55 = vld [vmem:[%s29386_s0 + $0x1e2] sm:$0xff] }
 0x640   :  { %20364 = vmatprep.mubr.msk.f32.mxu0 %vm23685_vm1, %v23684_v0 }
 0x643   :  { %20365 = vmatmul.mubr.msk.f32.gmra.mrb[28].mxu0 %vm235_vm0, %v7339_v57 }
 0x644   :  { %20367 = vmatprep.mubr.msk.f32.mxu0 %vm23685_vm1, %v23684_v0 }
 0x647   :  { %20368 = vmatmul.mubr.msk.f32.gmra.mrb[30].mxu0 %vm235_vm0, %v7340_v11 }
 0x648   :  { %20370 = vmatprep.mubr.msk.f32.mxu0 %vm23685_vm1, %v23684_v0 }
 0x64b   :  { %20371 = vmatmul.mubr.msk.f32.gmra.mrb[32].mxu0 %vm235_vm0, %v7341_v12  ;;  %v21561_v12 = vld [vmem:[#allocation2 + $0x18] sm:$0xff] }
 0x64c   :  { %20373 = vmatprep.mubr.msk.f32.mxu0 %vm23685_vm1, %v23684_v0 }
 0x64f   :  { %20374 = vmatmul.mubr.msk.f32.gmra.mrb[34].mxu0 %vm235_vm0, %v7342_v14 }
 0x650   :  { %20376 = vmatprep.mubr.msk.f32.mxu0 %vm23685_vm1, %v23684_v0 }
 0x653   :  { %20377 = vmatmul.mubr.msk.f32.gmra.mrb[36].mxu0 %vm235_vm0, %v7343_v16 }
 0x654   :  { %20379 = vmatprep.mubr.msk.f32.mxu0 %vm23685_vm1, %v23684_v0 }
 0x657   :  { %20380 = vmatmul.mubr.msk.f32.gmra.mrb[38].mxu0 %vm235_vm0, %v7344_v18  ;;  %v7382_v18 = vld [vmem:[%s29386_s0 + $0x1ea] sm:$0xff] }
 0x658   :  { %20382 = vmatprep.mubr.msk.f32.mxu0 %vm23685_vm1, %v23684_v0 }
 0x65b   :  { %20383 = vmatmul.mubr.msk.f32.gmra.mrb[40].mxu0 %vm235_vm0, %v7345_v20 }
 0x65c   :  { %20385 = vmatprep.mubr.msk.f32.mxu0 %vm23685_vm1, %v23684_v0 }
 0x65f   :  { %20386 = vmatmul.mubr.msk.f32.gmra.mrb[42].mxu0 %vm235_vm0, %v7346_v22 }
 0x660   :  { %20388 = vmatprep.mubr.msk.f32.mxu0 %vm23685_vm1, %v23684_v0 }
 0x663   :  { %20389 = vmatmul.mubr.msk.f32.gmra.mrb[44].mxu0 %vm235_vm0, %v7347_v63  ;;  %v7383_v63 = vld [vmem:[%s29386_s0 + $0x1f2] sm:$0xff] }
 0x664   :  { %20391 = vmatprep.mubr.msk.f32.mxu0 %vm23685_vm1, %v23684_v0 }
 0x667   :  { %20392 = vmatmul.mubr.msk.f32.gmra.mrb[46].mxu0 %vm235_vm0, %v7348_v8 }
 0x668   :  { %20394 = vmatprep.mubr.msk.f32.mxu0 %vm23685_vm1, %v23684_v0 }
 0x66b   :  { %20395 = vmatmul.mubr.msk.f32.gmra.mrb[48].mxu0 %vm235_vm0, %v7349_v10 }
 0x66c   :  { %20397 = vmatprep.mubr.msk.f32.mxu0 %vm23685_vm1, %v23684_v0 }
 0x66f   :  { %20398 = vmatmul.mubr.msk.f32.gmra.mrb[50].mxu0 %vm235_vm0, %v7350_v46  ;;  %v7384_v46 = vld [vmem:[%s29386_s0 + $0x1fa] sm:$0xff] }
 0x670   :  { %20400 = vmatprep.mubr.msk.f32.mxu0 %vm23685_vm1, %v23684_v0 }
 0x673   :  { %20401 = vmatmul.mubr.msk.f32.gmra.mrb[52].mxu0 %vm235_vm0, %v7351_v48 }
 0x674   :  { %20403 = vmatprep.mubr.msk.f32.mxu0 %vm23685_vm1, %v23684_v0 }
 0x677   :  { %20404 = vmatmul.mubr.msk.f32.gmra.mrb[54].mxu0 %vm235_vm0, %v7352_v50 }
 0x678   :  { %20406 = vmatprep.mubr.msk.f32.mxu0 %vm23685_vm1, %v23684_v0 }
 0x67b   :  { %20407 = vmatmul.mubr.msk.f32.gmra.mrb[56].mxu0 %vm235_vm0, %v7353_v52  ;;  %v21579_v52 = vld [vmem:[#allocation2 + $0x30] sm:$0xff] }
 0x67c   :  { %20409 = vmatprep.mubr.msk.f32.mxu0 %vm23685_vm1, %v23684_v0 }
 0x67f   :  { %20410 = vmatmul.mubr.msk.f32.gmra.mrb[58].mxu0 %vm235_vm0, %v7354_v54 }
 0x680   :  { %20412 = vmatprep.mubr.msk.f32.mxu0 %vm23685_vm1, %v23684_v0 }
 0x683   :  { %20413 = vmatmul.mubr.msk.f32.gmra.mrb[60].mxu0 %vm235_vm0, %v7355_v56 }
 0x684   :  { %20415 = vmatprep.mubr.msk.f32.mxu0 %vm23685_vm1, %v23684_v0 }
 0x687   :  { %20416 = vmatmul.mubr.msk.f32.gmra.mrb[62].mxu0 %vm235_vm0, %v7356_v58  ;;  %v16862_v58 = vld [vmem:[%s29388_s3 + $0x20] sm:$0xff] }
 0x688   :  { %20418 = vmatprep.mubr.msk.f32.mxu0 %vm23685_vm1, %v23684_v0 }
 0x68b   :  { %20419 = vmatmul.mubr.msk.f32.gmra.mrb[64].mxu0 %vm235_vm0, %v7357_v59  ;;  %v16863_v59 = vld [vmem:[%s29388_s3 + $0x28] sm:$0xff] }
 0x68c   :  { %20421 = vmatprep.mubr.msk.f32.mxu0 %vm23685_vm1, %v23684_v0 }
 0x68f   :  { %20422 = vmatmul.mubr.msk.f32.gmra.mrb[66].mxu0 %vm235_vm0, %v7358_v13  ;;  %v7385_v13 = vld [vmem:[%s29386_s0 + $0x202] sm:$0xff] }
 0x690   :  { %20424 = vmatprep.mubr.msk.f32.mxu0 %vm23685_vm1, %v23684_v0 }
 0x693   :  { %20425 = vmatmul.mubr.msk.f32.gmra.mrb[68].mxu0 %vm235_vm0, %v7359_v15  ;;  %v21473_v15 = vpack.c.bf16 %v16863_v59, %v16862_v58  ;;  %v21645_v58 = vld [vmem:[#allocation2 + $0x88] sm:$0xff] }
 0x694   :  { %20427 = vmatprep.mubr.msk.f32.mxu0 %vm23685_vm1, %v23684_v0 }
 0x695   :  { %21474 = vmatprep.subr.bf16.mxu1 %v21473_v15 }
 0x697   :  { %20428 = vmatmul.mubr.msk.f32.gmra.mrb[70].mxu0 %vm235_vm0, %v7360_v17 }
 0x698   :  { %20430 = vmatprep.mubr.msk.f32.mxu0 %vm23685_vm1, %v23684_v0 }
 0x69b   :  { %20431 = vmatmul.mubr.msk.f32.gmra.mrb[72].mxu0 %vm235_vm0, %v7361_v19 }
 0x69c   :  { %20433 = vmatprep.mubr.msk.f32.mxu0 %vm23685_vm1, %v23684_v0 }
 0x69f   :  { %20434 = vmatmul.mubr.msk.f32.gmra.mrb[74].mxu0 %vm235_vm0, %v7362_v21  ;;  %v21585_v21 = vld [vmem:[#allocation2 + $0x38] sm:$0xff] }
 0x6a0   :  { %20436 = vmatprep.mubr.msk.f32.mxu0 %vm23685_vm1, %v23684_v0 }
 0x6a3   :  { %20437 = vmatmul.mubr.msk.f32.gmra.mrb[76].mxu0 %vm235_vm0, %v7363_v23 }
 0x6a4   :  { %20439 = vmatprep.mubr.msk.f32.mxu0 %vm23685_vm1, %v23684_v0 }
 0x6a7   :  { %20440 = vmatmul.mubr.msk.f32.gmra.mrb[78].mxu0 %vm235_vm0, %v7364_v25 }
 0x6a8   :  { %20442 = vmatprep.mubr.msk.f32.mxu0 %vm23685_vm1, %v23684_v0 }
 0x6ab   :  { %20443 = vmatmul.mubr.msk.f32.gmra.mrb[80].mxu0 %vm235_vm0, %v7365_v27  ;;  %v7386_v27 = vld [vmem:[%s29386_s0 + $0x20a] sm:$0xff] }
 0x6ac   :  { %20445 = vmatprep.mubr.msk.f32.mxu0 %vm23685_vm1, %v23684_v0 }
 0x6af   :  { %20446 = vmatmul.mubr.msk.f32.gmra.mrb[82].mxu0 %vm235_vm0, %v7366_v29 }
 0x6b0   :  { %20448 = vmatprep.mubr.msk.f32.mxu0 %vm23685_vm1, %v23684_v0 }
 0x6b3   :  { %20449 = vmatmul.mubr.msk.f32.gmra.mrb[84].mxu0 %vm235_vm0, %v7367_v31 }
 0x6b4   :  { %20451 = vmatprep.mubr.msk.f32.mxu0 %vm23685_vm1, %v23684_v0 }
 0x6b7   :  { %20452 = vmatmul.mubr.msk.f32.gmra.mrb[86].mxu0 %vm235_vm0, %v7368_v33  ;;  %v21591_v33 = vld [vmem:[#allocation2 + $0x40] sm:$0xff] }
 0x6b8   :  { %20454 = vmatprep.mubr.msk.f32.mxu0 %vm23685_vm1, %v23684_v0 }
 0x6bb   :  { %20455 = vmatmul.mubr.msk.f32.gmra.mrb[88].mxu0 %vm235_vm0, %v7369_v35 }
 0x6bc   :  { %20457 = vmatprep.mubr.msk.f32.mxu0 %vm23685_vm1, %v23684_v0 }
 0x6bf   :  { %20458 = vmatmul.mubr.msk.f32.gmra.mrb[90].mxu0 %vm235_vm0, %v7370_v37 }
 0x6c0   :  { %20460 = vmatprep.mubr.msk.f32.mxu0 %vm23685_vm1, %v23684_v0 }
 0x6c3   :  { %20461 = vmatmul.mubr.msk.f32.gmra.mrb[92].mxu0 %vm235_vm0, %v7371_v26  ;;  %v7387_v26 = vld [vmem:[%s29386_s0 + $0x212] sm:$0xff] }
 0x6c4   :  { %20463 = vmatprep.mubr.msk.f32.mxu0 %vm23685_vm1, %v23684_v0 }
 0x6c7   :  { %20464 = vmatmul.mubr.msk.f32.gmra.mrb[94].mxu0 %vm235_vm0, %v7372_v28 }
 0x6c8   :  { %20466 = vmatprep.mubr.msk.f32.mxu0 %vm23685_vm1, %v23684_v0 }
 0x6cb   :  { %20467 = vmatmul.mubr.msk.f32.gmra.mrb[96].mxu0 %vm235_vm0, %v7373_v39 }
 0x6cc   :  { %20469 = vmatprep.mubr.msk.f32.mxu0 %vm23685_vm1, %v23684_v0 }
 0x6cf   :  { %20470 = vmatmul.mubr.msk.f32.gmra.mrb[98].mxu0 %vm235_vm0, %v7374_v30  ;;  %v21597_v30 = vld [vmem:[#allocation2 + $0x48] sm:$0xff] }
 0x6d0   :  { %20472 = vmatprep.mubr.msk.f32.mxu0 %vm23685_vm1, %v23684_v0 }
 0x6d3   :  { %20473 = vmatmul.mubr.msk.f32.gmra.mrb[100].mxu0 %vm235_vm0, %v7375_v32 }
 0x6d4   :  { %20475 = vmatprep.mubr.msk.f32.mxu0 %vm23685_vm1, %v23684_v0 }
 0x6d7   :  { %20476 = vmatmul.mubr.msk.f32.gmra.mrb[102].mxu0 %vm235_vm0, %v7376_v34 }
 0x6d8   :  { %20478 = vmatprep.mubr.msk.f32.mxu0 %vm23685_vm1, %v23684_v0 }
 0x6db   :  { %20479 = vmatmul.mubr.msk.f32.gmra.mrb[104].mxu0 %vm235_vm0, %v7377_v41  ;;  %v7388_v41 = vld [vmem:[%s29386_s0 + $0x21a] sm:$0xff] }
 0x6dc   :  { %20481 = vmatprep.mubr.msk.f32.mxu0 %vm23685_vm1, %v23684_v0 }
 0x6de   :  { %v7669_v38 = vpop.f32.mrb[0].mxu0 }
 0x6df   :  { %v21544_v43 = vadd.f32 %v21543_v40, %v7669_v38  ;;  %v20324_v60 = vpop.f32.mrb[1].mxu0  ;;  %20482 = vmatmul.mubr.msk.f32.gmra.mrb[106].mxu0 %vm235_vm0, %v7378_v36  ;;  %v21603_v40 = vld [vmem:[#allocation2 + $0x50] sm:$0xff] }
 0x6e0   :  { %20484 = vmatprep.mubr.msk.f32.mxu0 %vm23685_vm1, %v23684_v0 }
 0x6e1   :  { %v8220_v24 = vmax.f32 %v21544_v43, 0.0 }
 0x6e2   :  { %v7674_v1 = vpop.f32.mrb[2].mxu0 }
 0x6e3   :  { %8289 = vst [vmem:[#allocation2] sm:$0xff] %v8220_v24  ;;  %v21550_v5 = vadd.f32 %v21549_v3, %v7674_v1  ;;  %v20327_v7 = vpop.f32.mrb[3].mxu0  ;;  %20485 = vmatmul.mubr.msk.f32.gmra.mrb[108].mxu0 %vm235_vm0, %v7379_v62  ;;  %20537 = vmatprep.mubr.msk.f32.mxu1 %vm8561_vm2, %v8220_v24  ;;  %v7389_v62 = vld [vmem:[%s29386_s0 + $0x222] sm:$0xff]  ;;  %v21609_v3 = vld [vmem:[#allocation2 + $0x58] sm:$0xff] }
 0x6e4   :  { %20487 = vmatprep.mubr.msk.f32.mxu0 %vm23685_vm1, %v23684_v0 }
 0x6e5   :  { %v8221_v44 = vmax.f32 %v21550_v5, 0.0 }
 0x6e6   :  { %v7679_v47 = vpop.f32.mrb[4].mxu0 }
 0x6e7   :  { %8290 = vst [vmem:[#allocation2 + $0x8] sm:$0xff] %v8221_v44  ;;  %v21556_v51 = vadd.f32 %v21555_v49, %v7679_v47  ;;  %v20330_v53 = vpop.f32.mrb[5].mxu0  ;;  %20488 = vmatmul.mubr.msk.f32.gmra.mrb[110].mxu0 %vm235_vm0, %v7380_v9  ;;  %20538 = vmatmul.mubr.msk.f32.vlgmr.msra.gmra.mrb[138].mxu1 %vm8561_vm2, %v8221_v44  ;;  %v7390_v9 = vld [vmem:[%s29386_s0 + $0x22a] sm:$0xff]  ;;  %v21615_v49 = vld [vmem:[#allocation2 + $0x60] sm:$0xff] }
 0x6e8   :  { %20490 = vmatprep.mubr.msk.f32.mxu0 %vm23685_vm1, %v23684_v0  ;;  %21476 = vmatpush3.bf16.msra.mxu1 %v21473_v15 }
 0x6e9   :  { %v8222_v57 = vmax.f32 %v21556_v51, 0.0 }
 0x6ea   :  { %v7684_v11 = vpop.f32.mrb[6].mxu0 }
 0x6eb   :  { %8291 = vst [vmem:[#allocation2 + $0x10] sm:$0xff] %v8222_v57  ;;  %v21562_v14 = vadd.f32 %v21561_v12, %v7684_v11  ;;  %v20333_v16 = vpop.f32.mrb[7].mxu0  ;;  %20491 = vmatmul.mubr.msk.f32.gmra.mrb[112].mxu0 %vm235_vm0, %v7381_v55  ;;  %20540 = vmatprep.mubr.msk.f32.mxu1 %vm8561_vm2, %v8222_v57  ;;  %v7391_v55 = vld [vmem:[%s29386_s0 + $0x232] sm:$0xff]  ;;  %v21621_v12 = vld [vmem:[#allocation2 + $0x68] sm:$0xff] }
 0x6ec   :  { %20493 = vmatprep.mubr.msk.f32.mxu0 %vm23685_vm1, %v23684_v0 }
 0x6ed   :  { %v8223_v20 = vmax.f32 %v21562_v14, 0.0 }
 0x6ee   :  { %v7689_v22 = vpop.f32.mrb[8].mxu0 }
 0x6ef   :  { %8292 = vst [vmem:[#allocation2 + $0x18] sm:$0xff] %v8223_v20  ;;  %v21568_v45 = vadd.f32 %v21567_v42, %v7689_v22  ;;  %v20336_v61 = vpop.f32.mrb[9].mxu0  ;;  %20494 = vmatmul.mubr.msk.f32.gmra.mrb[114].mxu0 %vm235_vm0, %v7382_v18  ;;  %20541 = vmatmul.mubr.msk.f32.gmra.mrb[140].mxu1 %vm8561_vm2, %v8223_v20  ;;  %v7392_v18 = vld [vmem:[%s29386_s0 + $0x23a] sm:$0xff]  ;;  %v21627_v42 = vld [vmem:[#allocation2 + $0x70] sm:$0xff] }
 0x6f0   :  { %20496 = vmatprep.mubr.msk.f32.mxu0 %vm23685_vm1, %v23684_v0 }
 0x6f1   :  { %v8224_v2 = vmax.f32 %v21568_v45, 0.0 }
 0x6f2   :  { %v7694_v4 = vpop.f32.mrb[10].mxu0 }
 0x6f3   :  { %8293 = vst [vmem:[#allocation2 + $0x20] sm:$0xff] %v8224_v2  ;;  %v21574_v8 = vadd.f32 %v21573_v6, %v7694_v4  ;;  %v20339_v10 = vpop.f32.mrb[11].mxu0  ;;  %20497 = vmatmul.mubr.msk.f32.gmra.mrb[116].mxu0 %vm235_vm0, %v7383_v63  ;;  %20543 = vmatprep.mubr.msk.f32.mxu1 %vm8561_vm2, %v8224_v2  ;;  %v7393_v63 = vld [vmem:[%s29386_s0 + $0x242] sm:$0xff]  ;;  %v21633_v6 = vld [vmem:[#allocation2 + $0x78] sm:$0xff] }
 0x6f4   :  { %20499 = vmatprep.mubr.msk.f32.mxu0 %vm23685_vm1, %v23684_v0 }
 0x6f5   :  { %v8225_v48 = vmax.f32 %v21574_v8, 0.0 }
 0x6f6   :  { %v7699_v50 = vpop.f32.mrb[12].mxu0 }
 0x6f7   :  { %8294 = vst [vmem:[#allocation2 + $0x28] sm:$0xff] %v8225_v48  ;;  %v21580_v54 = vadd.f32 %v21579_v52, %v7699_v50  ;;  %v20342_v56 = vpop.f32.mrb[13].mxu0  ;;  %20500 = vmatmul.mubr.msk.f32.gmra.mrb[118].mxu0 %vm235_vm0, %v7384_v46  ;;  %20544 = vmatmul.mubr.msk.f32.gmra.mrb[142].mxu1 %vm8561_vm2, %v8225_v48  ;;  %v21639_v50 = vld [vmem:[#allocation2 + $0x80] sm:$0xff] }
 0x6f8   :  { %20502 = vmatprep.mubr.msk.f32.mxu0 %vm23685_vm1, %v23684_v0 }
 0x6f9   :  { %v8226_v17 = vmax.f32 %v21580_v54, 0.0 }
 0x6fa   :  { %v7704_v19 = vpop.f32.mrb[14].mxu0 }
 0x6fb   :  { %8295 = vst [vmem:[#allocation2 + $0x30] sm:$0xff] %v8226_v17  ;;  %v21586_v23 = vadd.f32 %v21585_v21, %v7704_v19  ;;  %v20345_v25 = vpop.f32.mrb[15].mxu0  ;;  %20503 = vmatmul.mubr.msk.f32.gmra.mrb[120].mxu0 %vm235_vm0, %v7385_v13  ;;  %20546 = vmatprep.mubr.msk.f32.mxu1 %vm8561_vm2, %v8226_v17  ;;  %v21651_v19 = vld [vmem:[#allocation2 + $0x90] sm:$0xff] }
 0x6fc   :  { %20505 = vmatprep.mubr.msk.f32.mxu0 %vm23685_vm1, %v23684_v0 }
 0x6fd   :  { %v8227_v29 = vmax.f32 %v21586_v23, 0.0 }
 0x6fe   :  { %v7709_v31 = vpop.f32.mrb[16].mxu0 }
 0x6ff   :  { %8296 = vst [vmem:[#allocation2 + $0x38] sm:$0xff] %v8227_v29  ;;  %v21592_v35 = vadd.f32 %v21591_v33, %v7709_v31  ;;  %v20348_v37 = vpop.f32.mrb[17].mxu0  ;;  %20506 = vmatmul.mubr.msk.f32.gmra.mrb[122].mxu0 %vm235_vm0, %v7386_v27  ;;  %20547 = vmatmul.mubr.msk.f32.gmra.mrb[144].mxu1 %vm8561_vm2, %v8227_v29  ;;  %v21657_v29 = vld [vmem:[#allocation2 + $0x98] sm:$0xff] }
 0x700   :  { %20508 = vmatprep.mubr.msk.f32.mxu0 %vm23685_vm1, %v23684_v0 }
 0x701   :  { %v8228_v28 = vmax.f32 %v21592_v35, 0.0 }
 0x702   :  { %v7714_v39 = vpop.f32.mrb[18].mxu0 }
 0x703   :  { %8297 = vst [vmem:[#allocation2 + $0x40] sm:$0xff] %v8228_v28  ;;  %v21598_v32 = vadd.f32 %v21597_v30, %v7714_v39  ;;  %v20351_v34 = vpop.f32.mrb[19].mxu0  ;;  %20509 = vmatmul.mubr.msk.f32.gmra.mrb[124].mxu0 %vm235_vm0, %v7387_v26  ;;  %20549 = vmatprep.mubr.msk.f32.mxu1 %vm8561_vm2, %v8228_v28  ;;  %v21663_v26 = vld [vmem:[#allocation2 + $0xa0] sm:$0xff] }
 0x704   :  { %20511 = vmatprep.mubr.msk.f32.mxu0 %vm23685_vm1, %v23684_v0  ;;  %v21669_v34 = vld [vmem:[#allocation2 + $0xa8] sm:$0xff] }
 0x705   :  { %v8229_v36 = vmax.f32 %v21598_v32, 0.0 }
 0x706   :  { %v7719_v38 = vpop.f32.mrb[20].mxu0 }
 0x707   :  { %8298 = vst [vmem:[#allocation2 + $0x48] sm:$0xff] %v8229_v36  ;;  %v21604_v43 = vadd.f32 %v21603_v40, %v7719_v38  ;;  %v20354_v60 = vpop.f32.mrb[21].mxu0  ;;  %20512 = vmatmul.mubr.msk.f32.gmra.mrb[126].mxu0 %vm235_vm0, %v7388_v41  ;;  %20550 = vmatmul.mubr.msk.f32.gmra.mrb[146].mxu1 %vm8561_vm2, %v8229_v36 }
 0x708   :  { %20514 = vmatprep.mubr.msk.f32.mxu0 %vm23685_vm1, %v23684_v0 }
 0x709   :  { %v8230_v24 = vmax.f32 %v21604_v43, 0.0  ;;  %v21675_v43 = vld [vmem:[#allocation2 + $0xb0] sm:$0xff] }
 0x70a   :  { %v7724_v1 = vpop.f32.mrb[22].mxu0 }
 0x70b   :  { %8299 = vst [vmem:[#allocation2 + $0x50] sm:$0xff] %v8230_v24  ;;  %v21610_v5 = vadd.f32 %v21609_v3, %v7724_v1  ;;  %v20357_v7 = vpop.f32.mrb[23].mxu0  ;;  %20515 = vmatmul.mubr.msk.f32.gmra.mrb[128].mxu0 %vm235_vm0, %v7389_v62  ;;  %20552 = vmatprep.mubr.msk.f32.mxu1 %vm8561_vm2, %v8230_v24  ;;  %v16864_v24 = vld [vmem:[%s29388_s3 + $0x30] sm:$0xff]  ;;  %v16865_v1 = vld [vmem:[%s29388_s3 + $0x38] sm:$0xff] }
 0x70c   :  { %20517 = vmatprep.mubr.msk.f32.mxu0 %vm23685_vm1, %v23684_v0  ;;  %v21477_v3 = vpack.c.bf16 %v16865_v1, %v16864_v24  ;;  %v21753_v1 = vld [vmem:[#allocation2 + $0x118] sm:$0xff] }
 0x70d   :  { %v8231_v44 = vmax.f32 %v21610_v5, 0.0 }
 0x70e   :  { %v7729_v47 = vpop.f32.mrb[24].mxu0  ;;  %21478 = vmatprep.subr.bf16.mxu1 %v21477_v3 }
 0x70f   :  { %8300 = vst [vmem:[#allocation2 + $0x58] sm:$0xff] %v8231_v44  ;;  %v21616_v51 = vadd.f32 %v21615_v49, %v7729_v47  ;;  %v20360_v53 = vpop.f32.mrb[25].mxu0  ;;  %20518 = vmatmul.mubr.msk.f32.gmra.mrb[130].mxu0 %vm235_vm0, %v7390_v9  ;;  %20553 = vmatmul.mubr.msk.f32.gmra.mrb[148].mxu1 %vm8561_vm2, %v8231_v44  ;;  %v21681_v9 = vld [vmem:[#allocation2 + $0xb8] sm:$0xff] }
 0x710   :  { %20520 = vmatprep.mubr.msk.f32.mxu0 %vm23685_vm1, %v23684_v0  ;;  %21480 = vmatpush3.bf16.msra.mxu1 %v21477_v3  ;;  %v21687_v53 = vld [vmem:[#allocation2 + $0xc0] sm:$0xff] }
 0x711   :  { %v8232_v57 = vmax.f32 %v21616_v51, 0.0 }
 0x712   :  { %v7734_v11 = vpop.f32.mrb[26].mxu0 }
 0x713   :  { %8301 = vst [vmem:[#allocation2 + $0x60] sm:$0xff] %v8232_v57  ;;  %v21622_v14 = vadd.f32 %v21621_v12, %v7734_v11  ;;  %v20363_v16 = vpop.f32.mrb[27].mxu0  ;;  %20521 = vmatmul.mubr.msk.f32.gmra.mrb[132].mxu0 %vm235_vm0, %v7391_v55  ;;  %20555 = vmatprep.mubr.msk.f32.mxu1 %vm8561_vm2, %v8232_v57 }
 0x714   :  { %20523 = vmatprep.mubr.msk.f32.mxu0 %vm23685_vm1, %v23684_v0 }
 0x715   :  { %v8233_v20 = vmax.f32 %v21622_v14, 0.0  ;;  %v21693_v14 = vld [vmem:[#allocation2 + $0xc8] sm:$0xff] }
 0x716   :  { %v7739_v22 = vpop.f32.mrb[28].mxu0 }
 0x717   :  { %8302 = vst [vmem:[#allocation2 + $0x68] sm:$0xff] %v8233_v20  ;;  %v21628_v45 = vadd.f32 %v21627_v42, %v7739_v22  ;;  %v20366_v61 = vpop.f32.mrb[29].mxu0  ;;  %20524 = vmatmul.mubr.msk.f32.gmra.mrb[134].mxu0 %vm235_vm0, %v7392_v18  ;;  %20556 = vmatmul.mubr.msk.f32.gmra.mrb[150].mxu1 %vm8561_vm2, %v8233_v20  ;;  %v21699_v42 = vld [vmem:[#allocation2 + $0xd0] sm:$0xff] }
 0x718   :  { %20526 = vmatprep.mubr.msk.f32.mxu0 %vm23685_vm1, %v23684_v0 }
 0x719   :  { %v8234_v2 = vmax.f32 %v21628_v45, 0.0 }
 0x71a   :  { %v7744_v4 = vpop.f32.mrb[30].mxu0 }
 0x71b   :  { %8303 = vst [vmem:[#allocation2 + $0x70] sm:$0xff] %v8234_v2  ;;  %v21634_v8 = vadd.f32 %v21633_v6, %v7744_v4  ;;  %v20369_v10 = vpop.f32.mrb[31].mxu0  ;;  %20527 = vmatmul.mubr.msk.f32.gmra.mrb[136].mxu0 %vm235_vm0, %v7393_v63  ;;  %20558 = vmatprep.mubr.msk.f32.mxu1 %vm8561_vm2, %v8234_v2  ;;  %v21705_v4 = vld [vmem:[#allocation2 + $0xd8] sm:$0xff] }
 0x71d   :  { %v8235_v46 = vmax.f32 %v21634_v8, 0.0 }
 0x71e   :  { %v7749_v48 = vpop.f32.mrb[32].mxu0 }
 0x71f   :  { %8304 = vst [vmem:[#allocation2 + $0x78] sm:$0xff] %v8235_v46  ;;  %v21640_v52 = vadd.f32 %v21639_v50, %v7749_v48  ;;  %v20372_v0 = vpop.f32.mrb[33].mxu0  ;;  %20559 = vmatmul.mubr.msk.f32.gmra.mrb[152].mxu1 %vm8561_vm2, %v8235_v46  ;;  %v21711_v48 = vld [vmem:[#allocation2 + $0xe0] sm:$0xff] }
 0x721   :  { %v8236_v54 = vmax.f32 %v21640_v52, 0.0 }
 0x722   :  { %v7754_v56 = vpop.f32.mrb[34].mxu0 }
 0x723   :  { %8305 = vst [vmem:[#allocation2 + $0x80] sm:$0xff] %v8236_v54  ;;  %v21646_v59 = vadd.f32 %v21645_v58, %v7754_v56  ;;  %v20375_v13 = vpop.f32.mrb[35].mxu0  ;;  %20561 = vmatprep.mubr.msk.f32.mxu1 %vm8561_vm2, %v8236_v54  ;;  %v21717_v56 = vld [vmem:[#allocation2 + $0xe8] sm:$0xff] }
 0x725   :  { %v8237_v15 = vmax.f32 %v21646_v59, 0.0 }
 0x726   :  { %v7759_v17 = vpop.f32.mrb[36].mxu0 }
 0x727   :  { %8306 = vst [vmem:[#allocation2 + $0x88] sm:$0xff] %v8237_v15  ;;  %v21652_v21 = vadd.f32 %v21651_v19, %v7759_v17  ;;  %v20378_v23 = vpop.f32.mrb[37].mxu0  ;;  %20562 = vmatmul.mubr.msk.f32.gmra.mrb[154].mxu1 %vm8561_vm2, %v8237_v15  ;;  %v21723_v17 = vld [vmem:[#allocation2 + $0xf0] sm:$0xff] }
 0x729   :  { %v8238_v25 = vmax.f32 %v21652_v21, 0.0 }
 0x72a   :  { %v7764_v27 = vpop.f32.mrb[38].mxu0 }
 0x72b   :  { %8307 = vst [vmem:[#allocation2 + $0x90] sm:$0xff] %v8238_v25  ;;  %v21658_v31 = vadd.f32 %v21657_v29, %v7764_v27  ;;  %v20381_v33 = vpop.f32.mrb[39].mxu0  ;;  %20564 = vmatprep.mubr.msk.f32.mxu1 %vm8561_vm2, %v8238_v25  ;;  %v21729_v27 = vld [vmem:[#allocation2 + $0xf8] sm:$0xff] }
 0x72d   :  { %v8239_v35 = vmax.f32 %v21658_v31, 0.0 }
 0x72e   :  { %v7769_v37 = vpop.f32.mrb[40].mxu0 }
 0x72f   :  { %8308 = vst [vmem:[#allocation2 + $0x98] sm:$0xff] %v8239_v35  ;;  %v21664_v28 = vadd.f32 %v21663_v26, %v7769_v37  ;;  %v20384_v39 = vpop.f32.mrb[41].mxu0  ;;  %20565 = vmatmul.mubr.msk.f32.gmra.mrb[156].mxu1 %vm8561_vm2, %v8239_v35  ;;  %v21735_v37 = vld [vmem:[#allocation2 + $0x100] sm:$0xff] }
 0x731   :  { %v8240_v30 = vmax.f32 %v21664_v28, 0.0 }
 0x732   :  { %v7774_v32 = vpop.f32.mrb[42].mxu0 }
 0x733   :  { %8309 = vst [vmem:[#allocation2 + $0xa0] sm:$0xff] %v8240_v30  ;;  %v21670_v41 = vadd.f32 %v21669_v34, %v7774_v32  ;;  %v20387_v36 = vpop.f32.mrb[43].mxu0  ;;  %20567 = vmatprep.mubr.msk.f32.mxu1 %vm8561_vm2, %v8240_v30  ;;  %v21741_v32 = vld [vmem:[#allocation2 + $0x108] sm:$0xff] }
 0x735   :  { %v8241_v38 = vmax.f32 %v21670_v41, 0.0 }
 0x736   :  { %v7779_v40 = vpop.f32.mrb[44].mxu0 }
 0x737   :  { %8310 = vst [vmem:[#allocation2 + $0xa8] sm:$0xff] %v8241_v38  ;;  %v21676_v60 = vadd.f32 %v21675_v43, %v7779_v40  ;;  %v20390_v62 = vpop.f32.mrb[45].mxu0  ;;  %20568 = vmatmul.mubr.msk.f32.gmra.mrb[158].mxu1 %vm8561_vm2, %v8241_v38  ;;  %v21747_v40 = vld [vmem:[#allocation2 + $0x110] sm:$0xff] }
 0x739   :  { %v8242_v5 = vmax.f32 %v21676_v60, 0.0 }
 0x73a   :  { %v7784_v7 = vpop.f32.mrb[46].mxu0 }
 0x73b   :  { %8311 = vst [vmem:[#allocation2 + $0xb0] sm:$0xff] %v8242_v5  ;;  %v21682_v44 = vadd.f32 %v21681_v9, %v7784_v7  ;;  %v20393_v47 = vpop.f32.mrb[47].mxu0  ;;  %20570 = vmatprep.mubr.msk.f32.mxu1 %vm8561_vm2, %v8242_v5 }
 0x73d   :  { %v8243_v49 = vmax.f32 %v21682_v44, 0.0  ;;  %v21759_v44 = vld [vmem:[#allocation2 + $0x120] sm:$0xff] }
 0x73e   :  { %v7789_v51 = vpop.f32.mrb[48].mxu0 }
 0x73f   :  { %8312 = vst [vmem:[#allocation2 + $0xb8] sm:$0xff] %v8243_v49  ;;  %v21688_v55 = vadd.f32 %v21687_v53, %v7789_v51  ;;  %v20396_v57 = vpop.f32.mrb[49].mxu0  ;;  %20571 = vmatmul.mubr.msk.f32.gmra.mrb[160].mxu1 %vm8561_vm2, %v8243_v49 }
 0x741   :  { %v8244_v11 = vmax.f32 %v21688_v55, 0.0  ;;  %v21765_v55 = vld [vmem:[#allocation2 + $0x128] sm:$0xff] }
 0x742   :  { %v7794_v12 = vpop.f32.mrb[50].mxu0 }
 0x743   :  { %8313 = vst [vmem:[#allocation2 + $0xc0] sm:$0xff] %v8244_v11  ;;  %v21694_v16 = vadd.f32 %v21693_v14, %v7794_v12  ;;  %v20399_v18 = vpop.f32.mrb[51].mxu0  ;;  %20573 = vmatprep.mubr.msk.f32.mxu1 %vm8561_vm2, %v8244_v11  ;;  %v16930_v12 = vld [vmem:[%s29388_s3 + $0x40] sm:$0xff]  ;;  %v16931_v14 = vld [vmem:[%s29388_s3 + $0x48] sm:$0xff] }
 0x745   :  { %v8245_v20 = vmax.f32 %v21694_v16, 0.0  ;;  %v27670_v16 = vpack.c.bf16 %v16931_v14, %v16930_v12  ;;  %v21843_v14 = vld [vmem:[#allocation2 + $0x190] sm:$0xff] }
 0x746   :  { %v7799_v22 = vpop.f32.mrb[52].mxu0 }
 0x747   :  { %8314 = vst [vmem:[#allocation2 + $0xc8] sm:$0xff] %v8245_v20  ;;  %v21700_v45 = vadd.f32 %v21699_v42, %v7799_v22  ;;  %v20402_v61 = vpop.f32.mrb[53].mxu0  ;;  %20574 = vmatmul.mubr.msk.f32.gmra.mrb[162].mxu1 %vm8561_vm2, %v8245_v20  ;;  %v21771_v22 = vld [vmem:[#allocation2 + $0x130] sm:$0xff]  ;;  %21482 = vmatprep.subr.bf16.mxu1 %v27670_v16 }
 0x749   :  { %v8246_v63 = vmax.f32 %v21700_v45, 0.0 }
 0x74a   :  { %v7804_v2 = vpop.f32.mrb[54].mxu0 }
 0x74b   :  { %8315 = vst [vmem:[#allocation2 + $0xd0] sm:$0xff] %v8246_v63  ;;  %v21706_v6 = vadd.f32 %v21705_v4, %v7804_v2  ;;  %v20405_v8 = vpop.f32.mrb[55].mxu0  ;;  %20576 = vmatprep.mubr.msk.f32.mxu1 %vm8561_vm2, %v8246_v63  ;;  %v21777_v2 = vld [vmem:[#allocation2 + $0x138] sm:$0xff] }
 0x74d   :  { %v8247_v10 = vmax.f32 %v21706_v6, 0.0 }
 0x74e   :  { %v7809_v46 = vpop.f32.mrb[56].mxu0 }
 0x74f   :  { %8316 = vst [vmem:[#allocation2 + $0xd8] sm:$0xff] %v8247_v10  ;;  %v21712_v50 = vadd.f32 %v21711_v48, %v7809_v46  ;;  %v20408_v52 = vpop.f32.mrb[57].mxu0  ;;  %20577 = vmatmul.mubr.msk.f32.gmra.mrb[164].mxu1 %vm8561_vm2, %v8247_v10  ;;  %v21783_v46 = vld [vmem:[#allocation2 + $0x140] sm:$0xff] }
 0x751   :  { %v8248_v0 = vmax.f32 %v21712_v50, 0.0 }
 0x752   :  { %v7814_v54 = vpop.f32.mrb[58].mxu0 }
 0x753   :  { %8317 = vst [vmem:[#allocation2 + $0xe0] sm:$0xff] %v8248_v0  ;;  %v21718_v58 = vadd.f32 %v21717_v56, %v7814_v54  ;;  %v20411_v59 = vpop.f32.mrb[59].mxu0  ;;  %20579 = vmatprep.mubr.msk.f32.mxu1 %vm8561_vm2, %v8248_v0  ;;  %v21789_v54 = vld [vmem:[#allocation2 + $0x148] sm:$0xff] }
 0x755   :  { %v8249_v13 = vmax.f32 %v21718_v58, 0.0 }
 0x756   :  { %v7819_v15 = vpop.f32.mrb[60].mxu0 }
 0x757   :  { %8318 = vst [vmem:[#allocation2 + $0xe8] sm:$0xff] %v8249_v13  ;;  %v21724_v19 = vadd.f32 %v21723_v17, %v7819_v15  ;;  %v20414_v21 = vpop.f32.mrb[61].mxu0  ;;  %20580 = vmatmul.mubr.msk.f32.gmra.mrb[166].mxu1 %vm8561_vm2, %v8249_v13  ;;  %v21795_v15 = vld [vmem:[#allocation2 + $0x150] sm:$0xff] }
 0x759   :  { %v8250_v23 = vmax.f32 %v21724_v19, 0.0 }
 0x75a   :  { %v7824_v25 = vpop.f32.mrb[62].mxu0 }
 0x75b   :  { %8319 = vst [vmem:[#allocation2 + $0xf0] sm:$0xff] %v8250_v23  ;;  %v21730_v29 = vadd.f32 %v21729_v27, %v7824_v25  ;;  %v20417_v31 = vpop.f32.mrb[63].mxu0  ;;  %20582 = vmatprep.mubr.msk.f32.mxu1 %vm8561_vm2, %v8250_v23  ;;  %v21801_v25 = vld [vmem:[#allocation2 + $0x158] sm:$0xff] }
 0x75d   :  { %v8251_v33 = vmax.f32 %v21730_v29, 0.0 }
 0x75e   :  { %v7829_v35 = vpop.f32.mrb[64].mxu0 }
 0x75f   :  { %8320 = vst [vmem:[#allocation2 + $0xf8] sm:$0xff] %v8251_v33  ;;  %v21736_v26 = vadd.f32 %v21735_v37, %v7829_v35  ;;  %v20420_v28 = vpop.f32.mrb[65].mxu0  ;;  %20583 = vmatmul.mubr.msk.f32.gmra.mrb[168].mxu1 %vm8561_vm2, %v8251_v33  ;;  %v21807_v35 = vld [vmem:[#allocation2 + $0x160] sm:$0xff] }
 0x761   :  { %v8252_v39 = vmax.f32 %v21736_v26, 0.0 }
 0x762   :  { %v7834_v30 = vpop.f32.mrb[66].mxu0 }
 0x763   :  { %8321 = vst [vmem:[#allocation2 + $0x100] sm:$0xff] %v8252_v39  ;;  %v21742_v34 = vadd.f32 %v21741_v32, %v7834_v30  ;;  %v20423_v41 = vpop.f32.mrb[67].mxu0  ;;  %20585 = vmatprep.mubr.msk.f32.mxu1 %vm8561_vm2, %v8252_v39  ;;  %v21813_v30 = vld [vmem:[#allocation2 + $0x168] sm:$0xff] }
 0x765   :  { %v8253_v36 = vmax.f32 %v21742_v34, 0.0 }
 0x766   :  { %v7839_v38 = vpop.f32.mrb[68].mxu0 }
 0x767   :  { %8322 = vst [vmem:[#allocation2 + $0x108] sm:$0xff] %v8253_v36  ;;  %v21748_v43 = vadd.f32 %v21747_v40, %v7839_v38  ;;  %v20426_v60 = vpop.f32.mrb[69].mxu0  ;;  %20586 = vmatmul.mubr.msk.f32.gmra.mrb[170].mxu1 %vm8561_vm2, %v8253_v36  ;;  %v21819_v38 = vld [vmem:[#allocation2 + $0x170] sm:$0xff] }
 0x769   :  { %v8254_v62 = vmax.f32 %v21748_v43, 0.0 }
 0x76a   :  { %v7844_v24 = vpop.f32.mrb[70].mxu0 }
 0x76b   :  { %8323 = vst [vmem:[#allocation2 + $0x110] sm:$0xff] %v8254_v62  ;;  %v21754_v3 = vadd.f32 %v21753_v1, %v7844_v24  ;;  %v20429_v5 = vpop.f32.mrb[71].mxu0  ;;  %20588 = vmatprep.mubr.msk.f32.mxu1 %vm8561_vm2, %v8254_v62  ;;  %v21825_v24 = vld [vmem:[#allocation2 + $0x178] sm:$0xff] }
 0x76d   :  { %v8255_v7 = vmax.f32 %v21754_v3, 0.0 }
 0x76e   :  { %v7849_v9 = vpop.f32.mrb[72].mxu0 }
 0x76f   :  { %8324 = vst [vmem:[#allocation2 + $0x118] sm:$0xff] %v8255_v7  ;;  %v21760_v47 = vadd.f32 %v21759_v44, %v7849_v9  ;;  %v20432_v49 = vpop.f32.mrb[73].mxu0  ;;  %20589 = vmatmul.mubr.msk.f32.gmra.mrb[172].mxu1 %vm8561_vm2, %v8255_v7  ;;  %v21831_v9 = vld [vmem:[#allocation2 + $0x180] sm:$0xff] }
 0x771   :  { %v8256_v51 = vmax.f32 %v21760_v47, 0.0 }
 0x772   :  { %v7854_v53 = vpop.f32.mrb[74].mxu0 }
 0x773   :  { %8325 = vst [vmem:[#allocation2 + $0x120] sm:$0xff] %v8256_v51  ;;  %v21766_v57 = vadd.f32 %v21765_v55, %v7854_v53  ;;  %v20435_v11 = vpop.f32.mrb[75].mxu0  ;;  %20591 = vmatprep.mubr.msk.f32.mxu1 %vm8561_vm2, %v8256_v51  ;;  %v21837_v53 = vld [vmem:[#allocation2 + $0x188] sm:$0xff] }
 0x775   :  { %v8257_v18 = vmax.f32 %v21766_v57, 0.0 }
 0x776   :  { %v7859_v20 = vpop.f32.mrb[76].mxu0 }
 0x777   :  { %8326 = vst [vmem:[#allocation2 + $0x128] sm:$0xff] %v8257_v18  ;;  %v21772_v42 = vadd.f32 %v21771_v22, %v7859_v20  ;;  %v20438_v45 = vpop.f32.mrb[77].mxu0  ;;  %20592 = vmatmul.mubr.msk.f32.gmra.mrb[174].mxu1 %vm8561_vm2, %v8257_v18 }
 0x778   :  { %v21849_v45 = vld [vmem:[#allocation2 + $0x198] sm:$0xff] }
 0x779   :  { %v8258_v61 = vmax.f32 %v21772_v42, 0.0 }
 0x77a   :  { %v7864_v63 = vpop.f32.mrb[78].mxu0 }
 0x77b   :  { %8327 = vst [vmem:[#allocation2 + $0x130] sm:$0xff] %v8258_v61  ;;  %v21778_v4 = vadd.f32 %v21777_v2, %v7864_v63  ;;  %v20441_v6 = vpop.f32.mrb[79].mxu0  ;;  %20594 = vmatprep.mubr.msk.f32.mxu1 %vm8561_vm2, %v8258_v61 }
 0x77c   :  { %v21855_v6 = vld [vmem:[#allocation2 + $0x1a0] sm:$0xff] }
 0x77d   :  { %v8259_v8 = vmax.f32 %v21778_v4, 0.0 }
 0x77e   :  { %v7869_v10 = vpop.f32.mrb[80].mxu0 }
 0x77f   :  { %8328 = vst [vmem:[#allocation2 + $0x138] sm:$0xff] %v8259_v8  ;;  %v21784_v48 = vadd.f32 %v21783_v46, %v7869_v10  ;;  %v20444_v50 = vpop.f32.mrb[81].mxu0  ;;  %20595 = vmatmul.mubr.msk.f32.gmra.mrb[176].mxu1 %vm8561_vm2, %v8259_v8 }
 0x780   :  { %v21861_v50 = vld [vmem:[#allocation2 + $0x1a8] sm:$0xff] }
 0x781   :  { %v8260_v52 = vmax.f32 %v21784_v48, 0.0 }
 0x782   :  { %v7874_v0 = vpop.f32.mrb[82].mxu0 }
 0x783   :  { %8329 = vst [vmem:[#allocation2 + $0x140] sm:$0xff] %v8260_v52  ;;  %v21790_v56 = vadd.f32 %v21789_v54, %v7874_v0  ;;  %v20447_v58 = vpop.f32.mrb[83].mxu0  ;;  %20597 = vmatprep.mubr.msk.f32.mxu1 %vm8561_vm2, %v8260_v52 }
 0x784   :  { %v21867_v58 = vld [vmem:[#allocation2 + $0x1b0] sm:$0xff] }
 0x785   :  { %v8261_v59 = vmax.f32 %v21790_v56, 0.0 }
 0x786   :  { %v7879_v13 = vpop.f32.mrb[84].mxu0 }
 0x787   :  { %8330 = vst [vmem:[#allocation2 + $0x148] sm:$0xff] %v8261_v59  ;;  %v21796_v17 = vadd.f32 %v21795_v15, %v7879_v13  ;;  %v20450_v19 = vpop.f32.mrb[85].mxu0  ;;  %20598 = vmatmul.mubr.msk.f32.gmra.mrb[178].mxu1 %vm8561_vm2, %v8261_v59 }
 0x788   :  { %v21873_v19 = vld [vmem:[#allocation2 + $0x1b8] sm:$0xff] }
 0x789   :  { %v8262_v21 = vmax.f32 %v21796_v17, 0.0 }
 0x78a   :  { %v7884_v23 = vpop.f32.mrb[86].mxu0 }
 0x78b   :  { %8331 = vst [vmem:[#allocation2 + $0x150] sm:$0xff] %v8262_v21  ;;  %v21802_v27 = vadd.f32 %v21801_v25, %v7884_v23  ;;  %v20453_v29 = vpop.f32.mrb[87].mxu0  ;;  %20600 = vmatprep.mubr.msk.f32.mxu1 %vm8561_vm2, %v8262_v21 }
 0x78c   :  { %v21879_v29 = vld [vmem:[#allocation2 + $0x1c0] sm:$0xff] }
 0x78d   :  { %v8263_v31 = vmax.f32 %v21802_v27, 0.0 }
 0x78e   :  { %v7889_v33 = vpop.f32.mrb[88].mxu0 }
 0x78f   :  { %8332 = vst [vmem:[#allocation2 + $0x158] sm:$0xff] %v8263_v31  ;;  %v21808_v37 = vadd.f32 %v21807_v35, %v7889_v33  ;;  %v20456_v26 = vpop.f32.mrb[89].mxu0  ;;  %20601 = vmatmul.mubr.msk.f32.gmra.mrb[180].mxu1 %vm8561_vm2, %v8263_v31 }
 0x790   :  { %v21885_v26 = vld [vmem:[#allocation2 + $0x1c8] sm:$0xff] }
 0x791   :  { %v8264_v28 = vmax.f32 %v21808_v37, 0.0 }
 0x792   :  { %v7894_v39 = vpop.f32.mrb[90].mxu0 }
 0x793   :  { %8333 = vst [vmem:[#allocation2 + $0x160] sm:$0xff] %v8264_v28  ;;  %v21814_v32 = vadd.f32 %v21813_v30, %v7894_v39  ;;  %v20459_v34 = vpop.f32.mrb[91].mxu0  ;;  %20603 = vmatprep.mubr.msk.f32.mxu1 %vm8561_vm2, %v8264_v28 }
 0x794   :  { %v21891_v34 = vld [vmem:[#allocation2 + $0x1d0] sm:$0xff] }
 0x795   :  { %v8265_v41 = vmax.f32 %v21814_v32, 0.0 }
 0x796   :  { %v7899_v36 = vpop.f32.mrb[92].mxu0 }
 0x797   :  { %8334 = vst [vmem:[#allocation2 + $0x168] sm:$0xff] %v8265_v41  ;;  %v21820_v40 = vadd.f32 %v21819_v38, %v7899_v36  ;;  %v20462_v43 = vpop.f32.mrb[93].mxu0  ;;  %20604 = vmatmul.mubr.msk.f32.gmra.mrb[182].mxu1 %vm8561_vm2, %v8265_v41 }
 0x798   :  { %v21897_v43 = vld [vmem:[#allocation2 + $0x1d8] sm:$0xff] }
 0x799   :  { %v8266_v60 = vmax.f32 %v21820_v40, 0.0 }
 0x79a   :  { %v7904_v62 = vpop.f32.mrb[94].mxu0 }
 0x79b   :  { %8335 = vst [vmem:[#allocation2 + $0x170] sm:$0xff] %v8266_v60  ;;  %v21826_v1 = vadd.f32 %v21825_v24, %v7904_v62  ;;  %v20465_v3 = vpop.f32.mrb[95].mxu0  ;;  %20606 = vmatprep.mubr.msk.f32.mxu1 %vm8561_vm2, %v8266_v60 }
 0x79c   :  { %v21903_v3 = vld [vmem:[#allocation2 + $0x1e0] sm:$0xff] }
 0x79d   :  { %v8267_v5 = vmax.f32 %v21826_v1, 0.0 }
 0x79e   :  { %v7909_v7 = vpop.f32.mrb[96].mxu0 }
 0x79f   :  { %8336 = vst [vmem:[#allocation2 + $0x178] sm:$0xff] %v8267_v5  ;;  %v21832_v44 = vadd.f32 %v21831_v9, %v7909_v7  ;;  %v20468_v47 = vpop.f32.mrb[97].mxu0  ;;  %20607 = vmatmul.mubr.msk.f32.gmra.mrb[184].mxu1 %vm8561_vm2, %v8267_v5 }
 0x7a0   :  { %v21909_v47 = vld [vmem:[#allocation2 + $0x1e8] sm:$0xff] }
 0x7a1   :  { %v8268_v49 = vmax.f32 %v21832_v44, 0.0 }
 0x7a2   :  { %v7914_v51 = vpop.f32.mrb[98].mxu0 }
 0x7a3   :  { %8337 = vst [vmem:[#allocation2 + $0x180] sm:$0xff] %v8268_v49  ;;  %v21838_v55 = vadd.f32 %v21837_v53, %v7914_v51  ;;  %v20471_v57 = vpop.f32.mrb[99].mxu0  ;;  %20609 = vmatprep.mubr.msk.f32.mxu1 %vm8561_vm2, %v8268_v49 }
 0x7a4   :  { %v21915_v57 = vld [vmem:[#allocation2 + $0x1f0] sm:$0xff] }
 0x7a5   :  { %v8269_v11 = vmax.f32 %v21838_v55, 0.0 }
 0x7a6   :  { %v7919_v12 = vpop.f32.mrb[100].mxu0 }
 0x7a7   :  { %8338 = vst [vmem:[#allocation2 + $0x188] sm:$0xff] %v8269_v11  ;;  %v21844_v18 = vadd.f32 %v21843_v14, %v7919_v12  ;;  %v20474_v20 = vpop.f32.mrb[101].mxu0  ;;  %20610 = vmatmul.mubr.msk.f32.gmra.mrb[186].mxu1 %vm8561_vm2, %v8269_v11 }
 0x7a8   :  { %v21921_v20 = vld [vmem:[#allocation2 + $0x1f8] sm:$0xff] }
 0x7a9   :  { %v8270_v22 = vmax.f32 %v21844_v18, 0.0 }
 0x7aa   :  { %v7924_v42 = vpop.f32.mrb[102].mxu0 }
 0x7ab   :  { %8339 = vst [vmem:[#allocation2 + $0x190] sm:$0xff] %v8270_v22  ;;  %v21850_v61 = vadd.f32 %v21849_v45, %v7924_v42  ;;  %v20477_v63 = vpop.f32.mrb[103].mxu0  ;;  %20612 = vmatprep.mubr.msk.f32.mxu1 %vm8561_vm2, %v8270_v22 }
 0x7ac   :  { %v21927_v63 = vld [vmem:[#allocation2 + $0x200] sm:$0xff] }
 0x7ad   :  { %v8271_v2 = vmax.f32 %v21850_v61, 0.0 }
 0x7ae   :  { %v7929_v4 = vpop.f32.mrb[104].mxu0 }
 0x7af   :  { %8340 = vst [vmem:[#allocation2 + $0x198] sm:$0xff] %v8271_v2  ;;  %v21856_v8 = vadd.f32 %v21855_v6, %v7929_v4  ;;  %v20480_v10 = vpop.f32.mrb[105].mxu0  ;;  %20613 = vmatmul.mubr.msk.f32.gmra.mrb[188].mxu1 %vm8561_vm2, %v8271_v2  ;;  %v16932_v2 = vld [vmem:[%s29388_s3 + $0x50] sm:$0xff]  ;;  %v16933_v4 = vld [vmem:[%s29388_s3 + $0x58] sm:$0xff] }
 0x7b0   :  { %v9331_v10 = vld [vmem:[#allocation2 + $0x1] sm:$0xff] }
 0x7b1   :  { %v8272_v46 = vmax.f32 %v21856_v8, 0.0 }
 0x7b2   :  { %v7934_v48 = vpop.f32.mrb[106].mxu0 }
 0x7b3   :  { %8341 = vst [vmem:[#allocation2 + $0x1a0] sm:$0xff] %v8272_v46  ;;  %v21862_v52 = vadd.f32 %v21861_v50, %v7934_v48  ;;  %v20483_v0 = vpop.f32.mrb[107].mxu0  ;;  %20615 = vmatprep.mubr.msk.f32.mxu1 %vm8561_vm2, %v8272_v46  ;;  %v21485_v48 = vpack.c.bf16 %v16933_v4, %v16932_v2  ;;  %v27860_v2 = vld [vmem:[#allocation2 + $0xe1] sm:$0xff]  ;;  %v27864_v4 = vld [vmem:[#allocation2 + $0xe9] sm:$0xff] }
 0x7b4   :  { %v9332_v0 = vld [vmem:[#allocation2 + $0x9] sm:$0xff] }
 0x7b5   :  { %v8273_v54 = vmax.f32 %v21862_v52, 0.0  ;;  %v21933_v52 = vld [vmem:[#allocation2 + $0x208] sm:$0xff] }
 0x7b6   :  { %v7939_v56 = vpop.f32.mrb[108].mxu0 }
 0x7b7   :  { %8342 = vst [vmem:[#allocation2 + $0x1a8] sm:$0xff] %v8273_v54  ;;  %v21868_v59 = vadd.f32 %v21867_v58, %v7939_v56  ;;  %v20486_v13 = vpop.f32.mrb[109].mxu0  ;;  %20616 = vmatmul.mubr.msk.f32.gmra.mrb[190].mxu1 %vm8561_vm2, %v8273_v54  ;;  %v27743_v58 = vld [vmem:[#allocation2 + $0x11] sm:$0xff] }
 0x7b8   :  { %v16999_v13 = vld [vmem:[%s29388_s3 + $0x68] sm:$0xff] }
 0x7b9   :  { %v8274_v15 = vmax.f32 %v21868_v59, 0.0  ;;  %v16998_v59 = vld [vmem:[%s29388_s3 + $0x60] sm:$0xff] }
 0x7ba   :  { %v7944_v17 = vpop.f32.mrb[110].mxu0 }
 0x7bb   :  { %8343 = vst [vmem:[#allocation2 + $0x1b0] sm:$0xff] %v8274_v15  ;;  %v21874_v21 = vadd.f32 %v21873_v19, %v7944_v17  ;;  %v20489_v23 = vpop.f32.mrb[111].mxu0  ;;  %20618 = vmatprep.mubr.msk.f32.mxu1 %vm8561_vm2, %v8274_v15  ;;  %v27755_v17 = vpack.c.bf16 %v16999_v13, %v16998_v59  ;;  %v27896_v59 = vld [vmem:[#allocation2 + $0x129] sm:$0xff]  ;;  %v27900_v13 = vld [vmem:[#allocation2 + $0x131] sm:$0xff] }
 0x7bc   :  { %v27757_v23 = vld [vmem:[#allocation2 + $0x19] sm:$0xff] }
 0x7bd   :  { %v8275_v25 = vmax.f32 %v21874_v21, 0.0  ;;  %v21939_v21 = vld [vmem:[#allocation2 + $0x210] sm:$0xff] }
 0x7be   :  { %v7949_v27 = vpop.f32.mrb[112].mxu0 }
 0x7bf   :  { %8344 = vst [vmem:[#allocation2 + $0x1b8] sm:$0xff] %v8275_v25  ;;  %v21880_v31 = vadd.f32 %v21879_v29, %v7949_v27  ;;  %v20492_v33 = vpop.f32.mrb[113].mxu0  ;;  %20619 = vmatmul.mubr.msk.f32.gmra.mrb[192].mxu1 %vm8561_vm2, %v8275_v25  ;;  %v27763_v29 = vld [vmem:[#allocation2 + $0x21] sm:$0xff] }
 0x7c0   :  { %v21945_v33 = vld [vmem:[#allocation2 + $0x218] sm:$0xff] }
 0x7c1   :  { %v8276_v35 = vmax.f32 %v21880_v31, 0.0 }
 0x7c2   :  { %v7954_v37 = vpop.f32.mrb[114].mxu0 }
 0x7c3   :  { %8345 = vst [vmem:[#allocation2 + $0x1c0] sm:$0xff] %v8276_v35  ;;  %v21886_v28 = vadd.f32 %v21885_v26, %v7954_v37  ;;  %v20495_v39 = vpop.f32.mrb[115].mxu0  ;;  %20621 = vmatprep.mubr.msk.f32.mxu1 %vm8561_vm2, %v8276_v35  ;;  %v27768_v35 = vld [vmem:[#allocation2 + $0x29] sm:$0xff] }
 0x7c5   :  { %v27693_v30 = vmax.f32 %v21886_v28, 0.0  ;;  %v27772_v28 = vld [vmem:[#allocation2 + $0x31] sm:$0xff] }
 0x7c6   :  { %v7959_v32 = vpop.f32.mrb[116].mxu0 }
 0x7c7   :  { %8346 = vst [vmem:[#allocation2 + $0x1c8] sm:$0xff] %v27693_v30  ;;  %v21892_v41 = vadd.f32 %v21891_v34, %v7959_v32  ;;  %v20498_v36 = vpop.f32.mrb[117].mxu0  ;;  %20622 = vmatmul.mubr.msk.f32.gmra.mrb[194].mxu1 %vm8561_vm2, %v27693_v30  ;;  %v21951_v34 = vld [vmem:[#allocation2 + $0x220] sm:$0xff] }
 0x7c9   :  { %v27698_v38 = vmax.f32 %v21892_v41, 0.0  ;;  %v27776_v41 = vld [vmem:[#allocation2 + $0x39] sm:$0xff] }
 0x7ca   :  { %v7964_v40 = vpop.f32.mrb[118].mxu0 }
 0x7cb   :  { %8347 = vst [vmem:[#allocation2 + $0x1d0] sm:$0xff] %v27698_v38  ;;  %v21898_v60 = vadd.f32 %v21897_v43, %v7964_v40  ;;  %v20501_v62 = vpop.f32.mrb[119].mxu0  ;;  %20624 = vmatprep.mubr.msk.f32.mxu1 %vm8561_vm2, %v27698_v38  ;;  %v27780_v43 = vld [vmem:[#allocation2 + $0x41] sm:$0xff] }
 0x7cc   :  { %v27784_v62 = vld [vmem:[#allocation2 + $0x49] sm:$0xff] }
 0x7cd   :  { %v27703_v24 = vmax.f32 %v21898_v60, 0.0 }
 0x7ce   :  { %v7969_v1 = vpop.f32.mrb[120].mxu0 }
 0x7cf   :  { %8348 = vst [vmem:[#allocation2 + $0x1d8] sm:$0xff] %v27703_v24  ;;  %v21904_v5 = vadd.f32 %v21903_v3, %v7969_v1  ;;  %v20504_v7 = vpop.f32.mrb[121].mxu0  ;;  %20625 = vmatmul.mubr.msk.f32.gmra.mrb[196].mxu1 %vm8561_vm2, %v27703_v24  ;;  %v27788_v1 = vld [vmem:[#allocation2 + $0x51] sm:$0xff]  ;;  %v27792_v3 = vld [vmem:[#allocation2 + $0x59] sm:$0xff] }
 0x7d0   :  { %v27800_v7 = vld [vmem:[#allocation2 + $0x69] sm:$0xff] }
 0x7d1   :  { %v27708_v9 = vmax.f32 %v21904_v5, 0.0  ;;  %v27796_v5 = vld [vmem:[#allocation2 + $0x61] sm:$0xff] }
 0x7d2   :  { %v7974_v44 = vpop.f32.mrb[122].mxu0 }
 0x7d3   :  { %8349 = vst [vmem:[#allocation2 + $0x1e0] sm:$0xff] %v27708_v9  ;;  %v21910_v49 = vadd.f32 %v21909_v47, %v7974_v44  ;;  %v20507_v51 = vpop.f32.mrb[123].mxu0  ;;  %20627 = vmatprep.mubr.msk.f32.mxu1 %vm8561_vm2, %v27708_v9  ;;  %v27804_v44 = vld [vmem:[#allocation2 + $0x71] sm:$0xff]  ;;  %v27808_v47 = vld [vmem:[#allocation2 + $0x79] sm:$0xff] }
 0x7d4   :  { %v27816_v51 = vld [vmem:[#allocation2 + $0x89] sm:$0xff] }
 0x7d5   :  { %v27713_v53 = vmax.f32 %v21910_v49, 0.0  ;;  %v27812_v49 = vld [vmem:[#allocation2 + $0x81] sm:$0xff] }
 0x7d6   :  { %v7979_v55 = vpop.f32.mrb[124].mxu0 }
 0x7d7   :  { %8350 = vst [vmem:[#allocation2 + $0x1e8] sm:$0xff] %v27713_v53  ;;  %v21916_v11 = vadd.f32 %v21915_v57, %v7979_v55  ;;  %v20510_v12 = vpop.f32.mrb[125].mxu0  ;;  %20628 = vmatmul.mubr.msk.f32.gmra.mrb[198].mxu1 %vm8561_vm2, %v27713_v53  ;;  %v27820_v55 = vld [vmem:[#allocation2 + $0x91] sm:$0xff]  ;;  %v27824_v57 = vld [vmem:[#allocation2 + $0x99] sm:$0xff] }
 0x7d8   :  { %v27832_v12 = vld [vmem:[#allocation2 + $0xa9] sm:$0xff] }
 0x7d9   :  { %v27718_v14 = vmax.f32 %v21916_v11, 0.0  ;;  %v27828_v11 = vld [vmem:[#allocation2 + $0xa1] sm:$0xff] }
 0x7da   :  { %v7984_v18 = vpop.f32.mrb[126].mxu0 }
 0x7db   :  { %8351 = vst [vmem:[#allocation2 + $0x1f0] sm:$0xff] %v27718_v14  ;;  %v21922_v22 = vadd.f32 %v21921_v20, %v7984_v18  ;;  %v20513_v42 = vpop.f32.mrb[127].mxu0  ;;  %20630 = vmatprep.mubr.msk.f32.mxu1 %vm8561_vm2, %v27718_v14  ;;  %v27836_v18 = vld [vmem:[#allocation2 + $0xb1] sm:$0xff]  ;;  %v27840_v20 = vld [vmem:[#allocation2 + $0xb9] sm:$0xff] }
 0x7dc   :  { %v27848_v42 = vld [vmem:[#allocation2 + $0xc9] sm:$0xff] }
 0x7dd   :  { %v27723_v45 = vmax.f32 %v21922_v22, 0.0  ;;  %v27844_v22 = vld [vmem:[#allocation2 + $0xc1] sm:$0xff] }
 0x7de   :  { %v7989_v61 = vpop.f32.mrb[128].mxu0 }
 0x7df   :  { %8352 = vst [vmem:[#allocation2 + $0x1f8] sm:$0xff] %v27723_v45  ;;  %v27732_v6 = vadd.f32 %v21927_v63, %v7989_v61  ;;  %v20516_v8 = vpop.f32.mrb[129].mxu0  ;;  %20631 = vmatmul.mubr.msk.f32.gmra.mrb[200].mxu1 %vm8561_vm2, %v27723_v45  ;;  %v27852_v61 = vld [vmem:[#allocation2 + $0xd1] sm:$0xff]  ;;  %v27856_v63 = vld [vmem:[#allocation2 + $0xd9] sm:$0xff] }
 0x7e0   :  { %20641 = vmatprep.mubr.msk.f32.mxu1 %vm8561_vm2, %v9331_v10  ;;  %v27868_v8 = vld [vmem:[#allocation2 + $0xf1] sm:$0xff]  ;;  %v27872_v10 = vld [vmem:[#allocation2 + $0xf9] sm:$0xff] }
 0x7e1   :  { %v29392_v46 = vmax.f32 %v27732_v6, 0.0 }
 0x7e2   :  { %v7994_v50 = vpop.f32.mrb[130].mxu0 }
 0x7e3   :  { %8353 = vst [vmem:[#allocation2 + $0x200] sm:$0xff] %v29392_v46  ;;  %v27740_v54 = vadd.f32 %v21933_v52, %v7994_v50  ;;  %v20519_v56 = vpop.f32.mrb[131].mxu0  ;;  %20642 = vmatmul.mubr.msk.f32.vlgmr.msra.gmra.mrb[138].mxu1 %vm8561_vm2, %v9332_v0  ;;  %v27880_v50 = vld [vmem:[#allocation2 + $0x109] sm:$0xff]  ;;  %v27884_v52 = vld [vmem:[#allocation2 + $0x111] sm:$0xff]  ;;  %v27888_v0 = vld [vmem:[#allocation2 + $0x119] sm:$0xff] }
 0x7e4   :  { %20644 = vmatprep.mubr.msk.f32.mxu1 %vm8561_vm2, %v27743_v58  ;;  %21484 = vmatpush3.bf16.msra.mxu1 %v27670_v16  ;;  %v27892_v56 = vld [vmem:[#allocation2 + $0x121] sm:$0xff]  ;;  %v27968_v46 = vld [vmem:[#allocation2 + $0x1b9] sm:$0xff] }
 0x7e5   :  { %v29391_v15 = vmax.f32 %v27740_v54, 0.0  ;;  %21486 = vmatprep.subr.bf16.mxu1 %v21485_v48  ;;  %29524 = vst [vmem:[#allocation11_spill] sm:$0xff] %v27968_v46 }
 0x7e6   :  { %v7999_v19 = vpop.f32.mrb[132].mxu0 }
 0x7e7   :  { %8354 = vst [vmem:[#allocation2 + $0x208] sm:$0xff] %v29391_v15  ;;  %v21940_v25 = vadd.f32 %v21939_v21, %v7999_v19  ;;  %v20522_v27 = vpop.f32.mrb[133].mxu0  ;;  %20645 = vmatmul.mubr.msk.f32.gmra.mrb[140].mxu1 %vm8561_vm2, %v27757_v23  ;;  %v27904_v19 = vld [vmem:[#allocation2 + $0x139] sm:$0xff]  ;;  %v27908_v21 = vld [vmem:[#allocation2 + $0x141] sm:$0xff]  ;;  %v27964_v15 = vld [vmem:[#allocation2 + $0x1b1] sm:$0xff] }
 0x7e8   :  { %20647 = vmatprep.mubr.msk.f32.mxu1 %vm8561_vm2, %v27763_v29  ;;  %21488 = vmatpush3.bf16.msra.mxu1 %v21485_v48  ;;  %v27876_v48 = vld [vmem:[#allocation2 + $0x101] sm:$0xff]  ;;  %v27916_v27 = vld [vmem:[#allocation2 + $0x151] sm:$0xff]  ;;  %29523 = vst [vmem:[#allocation10_spill] sm:$0xff] %v27964_v15 }
 0x7e9   :  { %v8286_v16 = vmax.f32 %v21940_v25, 0.0  ;;  %21490 = vmatprep.subr.bf16.mxu1 %v27755_v17  ;;  %v27912_v25 = vld [vmem:[#allocation2 + $0x149] sm:$0xff] }
 0x7ea   :  { %v8004_v31 = vpop.f32.mrb[134].mxu0 }
 0x7eb   :  { %8355 = vst [vmem:[#allocation2 + $0x210] sm:$0xff] %v8286_v16  ;;  %v21946_v37 = vadd.f32 %v21945_v33, %v8004_v31  ;;  %v20525_v26 = vpop.f32.mrb[135].mxu0  ;;  %20648 = vmatmul.mubr.msk.f32.gmra.mrb[142].mxu1 %vm8561_vm2, %v27768_v35  ;;  %v27920_v16 = vld [vmem:[#allocation2 + $0x159] sm:$0xff]  ;;  %v27924_v31 = vld [vmem:[#allocation2 + $0x161] sm:$0xff]  ;;  %v27928_v33 = vld [vmem:[#allocation2 + $0x169] sm:$0xff] }
 0x7ec   :  { %20650 = vmatprep.mubr.msk.f32.mxu1 %vm8561_vm2, %v27772_v28  ;;  %v27936_v26 = vld [vmem:[#allocation2 + $0x179] sm:$0xff] }
 0x7ed   :  { %v8287_v39 = vmax.f32 %v21946_v37, 0.0  ;;  %v27932_v37 = vld [vmem:[#allocation2 + $0x171] sm:$0xff]  ;;  %29516 = vst [vmem:[#allocation3_spill] sm:$0xff] %v27936_v26 }
 0x7ee   :  { %v8009_v32 = vpop.f32.mrb[136].mxu0 }
 0x7ef   :  { %8356 = vst [vmem:[#allocation2 + $0x218] sm:$0xff] %v8287_v39  ;;  %v21952_v36 = vadd.f32 %v21951_v34, %v8009_v32  ;;  %v20528_v40 = vpop.f32.mrb[137].mxu0  ;;  %20651 = vmatmul.mubr.msk.f32.gmra.mrb[144].mxu1 %vm8561_vm2, %v27776_v41  ;;  %v27940_v39 = vld [vmem:[#allocation2 + $0x181] sm:$0xff]  ;;  %v27944_v32 = vld [vmem:[#allocation2 + $0x189] sm:$0xff]  ;;  %v27948_v34 = vld [vmem:[#allocation2 + $0x191] sm:$0xff] }
 0x7f0   :  { %20653 = vmatprep.mubr.msk.f32.mxu1 %vm8561_vm2, %v27780_v43  ;;  %29517 = vst [vmem:[#allocation4_spill] sm:$0xff] %v27940_v39  ;;  %29518 = vst [vmem:[#allocation5_spill] sm:$0xff] %v27944_v32  ;;  %v27956_v40 = vld [vmem:[#allocation2 + $0x1a1] sm:$0xff] }
 0x7f1   :  { %v8288_v60 = vmax.f32 %v21952_v36, 0.0  ;;  %29519 = vst [vmem:[#allocation6_spill] sm:$0xff] %v27948_v34  ;;  %v27952_v36 = vld [vmem:[#allocation2 + $0x199] sm:$0xff]  ;;  %29521 = vst [vmem:[#allocation8_spill] sm:$0xff] %v27956_v40 }
 0x7f2   :  { %29520 = vst [vmem:[#allocation7_spill] sm:$0xff] %v27952_v36 }
 0x7f3   :  { %8357 = vst [vmem:[#allocation2 + $0x220] sm:$0xff] %v8288_v60  ;;  %20654 = vmatmul.mubr.msk.f32.gmra.mrb[146].mxu1 %vm8561_vm2, %v27784_v62  ;;  %v27960_v60 = vld [vmem:[#allocation2 + $0x1a9] sm:$0xff] }
 0x7f4   :  { %20656 = vmatprep.mubr.msk.f32.mxu1 %vm8561_vm2, %v27788_v1  ;;  %29522 = vst [vmem:[#allocation9_spill] sm:$0xff] %v27960_v60 }
 0x7f7   :  { %20657 = vmatmul.mubr.msk.f32.gmra.mrb[148].mxu1 %vm8561_vm2, %v27792_v3 }
 0x7f8   :  { %20659 = vmatprep.mubr.msk.f32.mxu1 %vm8561_vm2, %v27796_v5 }
 0x7fb   :  { %20660 = vmatmul.mubr.msk.f32.gmra.mrb[150].mxu1 %vm8561_vm2, %v27800_v7 }
 0x7fc   :  { %20662 = vmatprep.mubr.msk.f32.mxu1 %vm8561_vm2, %v27804_v44 }
 0x7ff   :  { %20663 = vmatmul.mubr.msk.f32.gmra.mrb[152].mxu1 %vm8561_vm2, %v27808_v47 }
 0x800   :  { %20665 = vmatprep.mubr.msk.f32.mxu1 %vm8561_vm2, %v27812_v49 }
 0x803   :  { %20666 = vmatmul.mubr.msk.f32.gmra.mrb[154].mxu1 %vm8561_vm2, %v27816_v51 }
 0x804   :  { %20668 = vmatprep.mubr.msk.f32.mxu1 %vm8561_vm2, %v27820_v55 }
 0x807   :  { %20669 = vmatmul.mubr.msk.f32.gmra.mrb[156].mxu1 %vm8561_vm2, %v27824_v57 }
 0x808   :  { %20671 = vmatprep.mubr.msk.f32.mxu1 %vm8561_vm2, %v27828_v11 }
 0x80b   :  { %20672 = vmatmul.mubr.msk.f32.gmra.mrb[158].mxu1 %vm8561_vm2, %v27832_v12 }
 0x80c   :  { %20674 = vmatprep.mubr.msk.f32.mxu1 %vm8561_vm2, %v27836_v18 }
 0x80f   :  { %20675 = vmatmul.mubr.msk.f32.gmra.mrb[160].mxu1 %vm8561_vm2, %v27840_v20 }
 0x810   :  { %20677 = vmatprep.mubr.msk.f32.mxu1 %vm8561_vm2, %v27844_v22 }
 0x813   :  { %20678 = vmatmul.mubr.msk.f32.gmra.mrb[162].mxu1 %vm8561_vm2, %v27848_v42 }
 0x814   :  { %20680 = vmatprep.mubr.msk.f32.mxu1 %vm8561_vm2, %v27852_v61 }
 0x817   :  { %20681 = vmatmul.mubr.msk.f32.gmra.mrb[164].mxu1 %vm8561_vm2, %v27856_v63 }
 0x818   :  { %20683 = vmatprep.mubr.msk.f32.mxu1 %vm8561_vm2, %v27860_v2 }
 0x81b   :  { %20684 = vmatmul.mubr.msk.f32.gmra.mrb[166].mxu1 %vm8561_vm2, %v27864_v4 }
 0x81c   :  { %20686 = vmatprep.mubr.msk.f32.mxu1 %vm8561_vm2, %v27868_v8 }
 0x81f   :  { %20687 = vmatmul.mubr.msk.f32.gmra.mrb[168].mxu1 %vm8561_vm2, %v27872_v10 }
 0x820   :  { %20689 = vmatprep.mubr.msk.f32.mxu1 %vm8561_vm2, %v27876_v48 }
 0x823   :  { %20690 = vmatmul.mubr.msk.f32.gmra.mrb[170].mxu1 %vm8561_vm2, %v27880_v50 }
 0x824   :  { %20692 = vmatprep.mubr.msk.f32.mxu1 %vm8561_vm2, %v27884_v52 }
 0x827   :  { %20693 = vmatmul.mubr.msk.f32.gmra.mrb[172].mxu1 %vm8561_vm2, %v27888_v0 }
 0x828   :  { %20695 = vmatprep.mubr.msk.f32.mxu1 %vm8561_vm2, %v27892_v56 }
 0x82b   :  { %20696 = vmatmul.mubr.msk.f32.gmra.mrb[174].mxu1 %vm8561_vm2, %v27896_v59 }
 0x82c   :  { %20698 = vmatprep.mubr.msk.f32.mxu1 %vm8561_vm2, %v27900_v13 }
 0x82f   :  { %20699 = vmatmul.mubr.msk.f32.gmra.mrb[176].mxu1 %vm8561_vm2, %v27904_v19 }
 0x830   :  { %20701 = vmatprep.mubr.msk.f32.mxu1 %vm8561_vm2, %v27908_v21 }
 0x833   :  { %20702 = vmatmul.mubr.msk.f32.gmra.mrb[178].mxu1 %vm8561_vm2, %v27912_v25 }
 0x834   :  { %20704 = vmatprep.mubr.msk.f32.mxu1 %vm8561_vm2, %v27916_v27 }
 0x837   :  { %20705 = vmatmul.mubr.msk.f32.gmra.mrb[180].mxu1 %vm8561_vm2, %v27920_v16 }
 0x838   :  { %20707 = vmatprep.mubr.msk.f32.mxu1 %vm8561_vm2, %v27924_v31 }
 0x83b   :  { %20708 = vmatmul.mubr.msk.f32.gmra.mrb[182].mxu1 %vm8561_vm2, %v27928_v33 }
 0x83c   :  { %20710 = vmatprep.mubr.msk.f32.mxu1 %vm8561_vm2, %v27932_v37 }
 0x83f   :  { %20711 = vmatmul.mubr.msk.f32.gmra.mrb[184].mxu1 %vm8561_vm2, %v27936_v26  ;;  %v17067_v26 = vld [vmem:[%s29388_s3 + $0x88] sm:$0xff] }
 0x840   :  { %20713 = vmatprep.mubr.msk.f32.mxu1 %vm8561_vm2, %v27940_v39  ;;  %v17066_v39 = vld [vmem:[%s29388_s3 + $0x80] sm:$0xff] }
 0x843   :  { %20714 = vmatmul.mubr.msk.f32.gmra.mrb[186].mxu1 %vm8561_vm2, %v27944_v32  ;;  %v10170_v32 = vld [vmem:[#allocation2 + $0xa] sm:$0xff] }
 0x844   :  { %20716 = vmatprep.mubr.msk.f32.mxu1 %vm8561_vm2, %v27948_v34  ;;  %v10169_v34 = vld [vmem:[#allocation2 + $0x2] sm:$0xff] }
 0x847   :  { %20717 = vmatmul.mubr.msk.f32.gmra.mrb[188].mxu1 %vm8561_vm2, %v27952_v36  ;;  %v27972_v36 = vld [vmem:[#allocation2 + $0x1c1] sm:$0xff] }
 0x848   :  { %20719 = vmatprep.mubr.msk.f32.mxu1 %vm8561_vm2, %v27956_v40  ;;  %29525 = vst [vmem:[#allocation12_spill] sm:$0xff] %v27972_v36  ;;  %v27976_v40 = vld [vmem:[#allocation2 + $0x1c9] sm:$0xff] }
 0x849   :  { %29526 = vst [vmem:[#allocation13_spill] sm:$0xff] %v27976_v40 }
 0x84b   :  { %20720 = vmatmul.mubr.msk.f32.gmra.mrb[190].mxu1 %vm8561_vm2, %v27960_v60  ;;  %v27980_v60 = vld [vmem:[#allocation2 + $0x1d1] sm:$0xff] }
 0x84c   :  { %20722 = vmatprep.mubr.msk.f32.mxu1 %vm8561_vm2, %v27964_v15  ;;  %29527 = vst [vmem:[#allocation14_spill] sm:$0xff] %v27980_v60  ;;  %v27984_v15 = vld [vmem:[#allocation2 + $0x1d9] sm:$0xff] }
 0x84d   :  { %29528 = vst [vmem:[#allocation15_spill] sm:$0xff] %v27984_v15 }
 0x84f   :  { %20723 = vmatmul.mubr.msk.f32.gmra.mrb[192].mxu1 %vm8561_vm2, %v27968_v46  ;;  %v27988_v46 = vld [vmem:[#allocation2 + $0x1e1] sm:$0xff] }
 0x850   :  { %20725 = vmatprep.mubr.msk.f32.mxu1 %vm8561_vm2, %v27972_v36  ;;  %29529 = vst [vmem:[#allocation16_spill] sm:$0xff] %v27988_v46  ;;  %v27992_v36 = vld [vmem:[#allocation2 + $0x1e9] sm:$0xff] }
 0x851   :  { %29530 = vst [vmem:[#allocation17_spill] sm:$0xff] %v27992_v36 }
 0x853   :  { %20726 = vmatmul.mubr.msk.f32.gmra.mrb[194].mxu1 %vm8561_vm2, %v27976_v40  ;;  %v27996_v40 = vld [vmem:[#allocation2 + $0x1f1] sm:$0xff] }
 0x854   :  { %20728 = vmatprep.mubr.msk.f32.mxu1 %vm8561_vm2, %v27980_v60  ;;  %29531 = vst [vmem:[#allocation18_spill] sm:$0xff] %v27996_v40  ;;  %v28000_v60 = vld [vmem:[#allocation2 + $0x1f9] sm:$0xff] }
 0x855   :  { %29532 = vst [vmem:[#allocation19_spill] sm:$0xff] %v28000_v60 }
 0x857   :  { %20729 = vmatmul.mubr.msk.f32.gmra.mrb[196].mxu1 %vm8561_vm2, %v27984_v15  ;;  %v17000_v15 = vld [vmem:[%s29388_s3 + $0x70] sm:$0xff] }
 0x858   :  { %20731 = vmatprep.mubr.msk.f32.mxu1 %vm8561_vm2, %v27988_v46  ;;  %v17001_v46 = vld [vmem:[%s29388_s3 + $0x78] sm:$0xff] }
 0x85b   :  { %20732 = vmatmul.mubr.msk.f32.gmra.mrb[198].mxu1 %vm8561_vm2, %v27992_v36  ;;  %v21493_v36 = vpack.c.bf16 %v17001_v46, %v17000_v15  ;;  %v28023_v46 = vpack.c.bf16 %v17067_v26, %v17066_v39  ;;  %v28025_v15 = vld [vmem:[#allocation2 + $0x1a] sm:$0xff]  ;;  %v28046_v39 = vld [vmem:[#allocation2 + $0x42] sm:$0xff] }
 0x85c   :  { %20734 = vmatprep.mubr.msk.f32.mxu1 %vm8561_vm2, %v27996_v40  ;;  %v28012_v40 = vld [vmem:[#allocation2 + $0x12] sm:$0xff]  ;;  %29534 = vst [vmem:[#allocation21_spill] sm:$0xff] %v28025_v15  ;;  %v28042_v26 = vld [vmem:[#allocation2 + $0x3a] sm:$0xff]  ;;  %29539 = vst [vmem:[#allocation26_spill] sm:$0xff] %v28046_v39 }
 0x85d   :  { %29533 = vst [vmem:[#allocation20_spill] sm:$0xff] %v28012_v40  ;;  %29538 = vst [vmem:[#allocation25_spill] sm:$0xff] %v28042_v26 }
 0x85f   :  { %20735 = vmatmul.mubr.msk.f32.gmra.mrb[200].mxu1 %vm8561_vm2, %v28000_v60  ;;  %v17135_v60 = vld [vmem:[%s29388_s3 + $0xa8] sm:$0xff] }
 0x860   :  { %20745 = vmatprep.mubr.msk.f32.mxu1 %vm8561_vm2, %v10169_v34  ;;  %v28034_v34 = vld [vmem:[#allocation2 + $0x2a] sm:$0xff] }
 0x861   :  { %29536 = vst [vmem:[#allocation23_spill] sm:$0xff] %v28034_v34 }
 0x863   :  { %20746 = vmatmul.mubr.msk.f32.vlgmr.msra.gmra.mrb[138].mxu1 %vm8561_vm2, %v10170_v32  ;;  %v28029_v32 = vld [vmem:[#allocation2 + $0x22] sm:$0xff] }
 0x864   :  { %20748 = vmatprep.mubr.msk.f32.mxu1 %vm8561_vm2, %v28012_v40  ;;  %21492 = vmatpush3.bf16.msra.mxu1 %v27755_v17  ;;  %29535 = vst [vmem:[#allocation22_spill] sm:$0xff] %v28029_v32  ;;  %v28038_v17 = vld [vmem:[#allocation2 + $0x32] sm:$0xff]  ;;  %v17134_v40 = vld [vmem:[%s29388_s3 + $0xa0] sm:$0xff] }
 0x865   :  { %21494 = vmatprep.subr.bf16.mxu1 %v21493_v36  ;;  %29537 = vst [vmem:[#allocation24_spill] sm:$0xff] %v28038_v17 }
 0x867   :  { %20749 = vmatmul.mubr.msk.f32.gmra.mrb[140].mxu1 %vm8561_vm2, %v28025_v15  ;;  %v11008_v15 = vld [vmem:[#allocation2 + $0x18] sm:$0xff] }
 0x868   :  { %20751 = vmatprep.mubr.msk.f32.mxu1 %vm8561_vm2, %v28029_v32  ;;  %21496 = vmatpush3.bf16.msra.mxu1 %v21493_v36  ;;  %v28050_v36 = vld [vmem:[#allocation2 + $0x4a] sm:$0xff] }
 0x869   :  { %21498 = vmatprep.subr.bf16.mxu1 %v28023_v46  ;;  %29540 = vst [vmem:[#allocation27_spill] sm:$0xff] %v28050_v36  ;;  %v11007_v32 = vld [vmem:[#allocation2 + $0x10] sm:$0xff] }
 0x86b   :  { %20752 = vmatmul.mubr.msk.f32.gmra.mrb[142].mxu1 %vm8561_vm2, %v28034_v34  ;;  %v28054_v34 = vld [vmem:[#allocation2 + $0x52] sm:$0xff] }
 0x86c   :  { %20754 = vmatprep.mubr.msk.f32.mxu1 %vm8561_vm2, %v28038_v17  ;;  %29541 = vst [vmem:[#allocation28_spill] sm:$0xff] %v28054_v34  ;;  %v28058_v17 = vld [vmem:[#allocation2 + $0x5a] sm:$0xff] }
 0x86d   :  { %29542 = vst [vmem:[#allocation29_spill] sm:$0xff] %v28058_v17 }
 0x86f   :  { %20755 = vmatmul.mubr.msk.f32.gmra.mrb[144].mxu1 %vm8561_vm2, %v28042_v26  ;;  %v28062_v26 = vld [vmem:[#allocation2 + $0x62] sm:$0xff] }
 0x870   :  { %20757 = vmatprep.mubr.msk.f32.mxu1 %vm8561_vm2, %v28046_v39  ;;  %29543 = vst [vmem:[#allocation30_spill] sm:$0xff] %v28062_v26  ;;  %v28066_v39 = vld [vmem:[#allocation2 + $0x6a] sm:$0xff] }
 0x871   :  { %29544 = vst [vmem:[#allocation31_spill] sm:$0xff] %v28066_v39 }
 0x873   :  { %20758 = vmatmul.mubr.msk.f32.gmra.mrb[146].mxu1 %vm8561_vm2, %v28050_v36  ;;  %v28070_v36 = vld [vmem:[#allocation2 + $0x72] sm:$0xff] }
 0x874   :  { %20760 = vmatprep.mubr.msk.f32.mxu1 %vm8561_vm2, %v28054_v34  ;;  %29545 = vst [vmem:[#allocation32_spill] sm:$0xff] %v28070_v36  ;;  %v28074_v34 = vld [vmem:[#allocation2 + $0x7a] sm:$0xff] }
 0x875   :  { %29546 = vst [vmem:[#allocation33_spill] sm:$0xff] %v28074_v34 }
 0x877   :  { %20761 = vmatmul.mubr.msk.f32.gmra.mrb[148].mxu1 %vm8561_vm2, %v28058_v17  ;;  %v28078_v17 = vld [vmem:[#allocation2 + $0x82] sm:$0xff] }
 0x878   :  { %20763 = vmatprep.mubr.msk.f32.mxu1 %vm8561_vm2, %v28062_v26  ;;  %29547 = vst [vmem:[#allocation34_spill] sm:$0xff] %v28078_v17  ;;  %v28082_v26 = vld [vmem:[#allocation2 + $0x8a] sm:$0xff] }
 0x879   :  { %29548 = vst [vmem:[#allocation35_spill] sm:$0xff] %v28082_v26 }
 0x87b   :  { %20764 = vmatmul.mubr.msk.f32.gmra.mrb[150].mxu1 %vm8561_vm2, %v28066_v39  ;;  %v28086_v39 = vld [vmem:[#allocation2 + $0x92] sm:$0xff] }
 0x87c   :  { %20766 = vmatprep.mubr.msk.f32.mxu1 %vm8561_vm2, %v28070_v36  ;;  %29549 = vst [vmem:[#allocation36_spill] sm:$0xff] %v28086_v39  ;;  %v28090_v36 = vld [vmem:[#allocation2 + $0x9a] sm:$0xff] }
 0x87d   :  { %29550 = vst [vmem:[#allocation37_spill] sm:$0xff] %v28090_v36 }
 0x87f   :  { %20767 = vmatmul.mubr.msk.f32.gmra.mrb[152].mxu1 %vm8561_vm2, %v28074_v34  ;;  %v28094_v34 = vld [vmem:[#allocation2 + $0xa2] sm:$0xff] }
 0x880   :  { %20769 = vmatprep.mubr.msk.f32.mxu1 %vm8561_vm2, %v28078_v17  ;;  %29551 = vst [vmem:[#allocation38_spill] sm:$0xff] %v28094_v34  ;;  %v28098_v17 = vld [vmem:[#allocation2 + $0xaa] sm:$0xff] }
 0x881   :  { %29552 = vst [vmem:[#allocation39_spill] sm:$0xff] %v28098_v17 }
 0x883   :  { %20770 = vmatmul.mubr.msk.f32.gmra.mrb[154].mxu1 %vm8561_vm2, %v28082_v26  ;;  %v28102_v26 = vld [vmem:[#allocation2 + $0xb2] sm:$0xff] }
 0x884   :  { %20772 = vmatprep.mubr.msk.f32.mxu1 %vm8561_vm2, %v28086_v39  ;;  %29553 = vst [vmem:[#allocation40_spill] sm:$0xff] %v28102_v26  ;;  %v28106_v39 = vld [vmem:[#allocation2 + $0xba] sm:$0xff] }
 0x885   :  { %29554 = vst [vmem:[#allocation41_spill] sm:$0xff] %v28106_v39 }
 0x887   :  { %20773 = vmatmul.mubr.msk.f32.gmra.mrb[156].mxu1 %vm8561_vm2, %v28090_v36  ;;  %v28110_v36 = vld [vmem:[#allocation2 + $0xc2] sm:$0xff] }
 0x888   :  { %20775 = vmatprep.mubr.msk.f32.mxu1 %vm8561_vm2, %v28094_v34  ;;  %29555 = vst [vmem:[#allocation42_spill] sm:$0xff] %v28110_v36  ;;  %v28114_v34 = vld [vmem:[#allocation2 + $0xca] sm:$0xff] }
 0x889   :  { %29556 = vst [vmem:[#allocation43_spill] sm:$0xff] %v28114_v34 }
 0x88b   :  { %20776 = vmatmul.mubr.msk.f32.gmra.mrb[158].mxu1 %vm8561_vm2, %v28098_v17  ;;  %v28118_v17 = vld [vmem:[#allocation2 + $0xd2] sm:$0xff] }
 0x88c   :  { %20778 = vmatprep.mubr.msk.f32.mxu1 %vm8561_vm2, %v28102_v26  ;;  %29557 = vst [vmem:[#allocation44_spill] sm:$0xff] %v28118_v17  ;;  %v28122_v26 = vld [vmem:[#allocation2 + $0xda] sm:$0xff] }
 0x88d   :  { %29558 = vst [vmem:[#allocation45_spill] sm:$0xff] %v28122_v26 }
 0x88f   :  { %20779 = vmatmul.mubr.msk.f32.gmra.mrb[160].mxu1 %vm8561_vm2, %v28106_v39  ;;  %v28126_v39 = vld [vmem:[#allocation2 + $0xe2] sm:$0xff] }
 0x890   :  { %20781 = vmatprep.mubr.msk.f32.mxu1 %vm8561_vm2, %v28110_v36  ;;  %29559 = vst [vmem:[#allocation46_spill] sm:$0xff] %v28126_v39  ;;  %v28130_v36 = vld [vmem:[#allocation2 + $0xea] sm:$0xff] }
 0x891   :  { %29560 = vst [vmem:[#allocation47_spill] sm:$0xff] %v28130_v36 }
 0x893   :  { %20782 = vmatmul.mubr.msk.f32.gmra.mrb[162].mxu1 %vm8561_vm2, %v28114_v34  ;;  %v28134_v34 = vld [vmem:[#allocation2 + $0xf2] sm:$0xff] }
 0x894   :  { %20784 = vmatprep.mubr.msk.f32.mxu1 %vm8561_vm2, %v28118_v17  ;;  %29561 = vst [vmem:[#allocation48_spill] sm:$0xff] %v28134_v34  ;;  %v28138_v17 = vld [vmem:[#allocation2 + $0xfa] sm:$0xff] }
 0x895   :  { %29562 = vst [vmem:[#allocation49_spill] sm:$0xff] %v28138_v17 }
 0x897   :  { %20785 = vmatmul.mubr.msk.f32.gmra.mrb[164].mxu1 %vm8561_vm2, %v28122_v26  ;;  %v28142_v26 = vld [vmem:[#allocation2 + $0x102] sm:$0xff] }
 0x898   :  { %20787 = vmatprep.mubr.msk.f32.mxu1 %vm8561_vm2, %v28126_v39  ;;  %29563 = vst [vmem:[#allocation50_spill] sm:$0xff] %v28142_v26  ;;  %v28146_v39 = vld [vmem:[#allocation2 + $0x10a] sm:$0xff] }
 0x899   :  { %29564 = vst [vmem:[#allocation51_spill] sm:$0xff] %v28146_v39 }
 0x89b   :  { %20788 = vmatmul.mubr.msk.f32.gmra.mrb[166].mxu1 %vm8561_vm2, %v28130_v36  ;;  %v28150_v36 = vld [vmem:[#allocation2 + $0x112] sm:$0xff] }
 0x89c   :  { %20790 = vmatprep.mubr.msk.f32.mxu1 %vm8561_vm2, %v28134_v34  ;;  %29565 = vst [vmem:[#allocation52_spill] sm:$0xff] %v28150_v36  ;;  %v28154_v34 = vld [vmem:[#allocation2 + $0x11a] sm:$0xff] }
 0x89d   :  { %29566 = vst [vmem:[#allocation53_spill] sm:$0xff] %v28154_v34 }
 0x89f   :  { %20791 = vmatmul.mubr.msk.f32.gmra.mrb[168].mxu1 %vm8561_vm2, %v28138_v17  ;;  %v28158_v17 = vld [vmem:[#allocation2 + $0x122] sm:$0xff] }
 0x8a0   :  { %20793 = vmatprep.mubr.msk.f32.mxu1 %vm8561_vm2, %v28142_v26  ;;  %29567 = vst [vmem:[#allocation54_spill] sm:$0xff] %v28158_v17  ;;  %v28162_v26 = vld [vmem:[#allocation2 + $0x12a] sm:$0xff] }
 0x8a1   :  { %29568 = vst [vmem:[#allocation55_spill] sm:$0xff] %v28162_v26 }
 0x8a3   :  { %20794 = vmatmul.mubr.msk.f32.gmra.mrb[170].mxu1 %vm8561_vm2, %v28146_v39  ;;  %v28166_v39 = vld [vmem:[#allocation2 + $0x132] sm:$0xff] }
 0x8a4   :  { %20796 = vmatprep.mubr.msk.f32.mxu1 %vm8561_vm2, %v28150_v36  ;;  %29569 = vst [vmem:[#allocation56_spill] sm:$0xff] %v28166_v39  ;;  %v28170_v36 = vld [vmem:[#allocation2 + $0x13a] sm:$0xff] }
 0x8a5   :  { %29570 = vst [vmem:[#allocation57_spill] sm:$0xff] %v28170_v36 }
 0x8a7   :  { %20797 = vmatmul.mubr.msk.f32.gmra.mrb[172].mxu1 %vm8561_vm2, %v28154_v34  ;;  %v28174_v34 = vld [vmem:[#allocation2 + $0x142] sm:$0xff] }
 0x8a8   :  { %20799 = vmatprep.mubr.msk.f32.mxu1 %vm8561_vm2, %v28158_v17  ;;  %29571 = vst [vmem:[#allocation58_spill] sm:$0xff] %v28174_v34  ;;  %v28178_v17 = vld [vmem:[#allocation2 + $0x14a] sm:$0xff] }
 0x8a9   :  { %29572 = vst [vmem:[#allocation59_spill] sm:$0xff] %v28178_v17 }
 0x8ab   :  { %20800 = vmatmul.mubr.msk.f32.gmra.mrb[174].mxu1 %vm8561_vm2, %v28162_v26  ;;  %v28182_v26 = vld [vmem:[#allocation2 + $0x152] sm:$0xff] }
 0x8ac   :  { %20802 = vmatprep.mubr.msk.f32.mxu1 %vm8561_vm2, %v28166_v39  ;;  %29573 = vst [vmem:[#allocation60_spill] sm:$0xff] %v28182_v26  ;;  %v28186_v39 = vld [vmem:[#allocation2 + $0x15a] sm:$0xff] }
 0x8ad   :  { %29574 = vst [vmem:[#allocation61_spill] sm:$0xff] %v28186_v39 }
 0x8af   :  { %20803 = vmatmul.mubr.msk.f32.gmra.mrb[176].mxu1 %vm8561_vm2, %v28170_v36  ;;  %v28190_v36 = vld [vmem:[#allocation2 + $0x162] sm:$0xff] }
 0x8b0   :  { %20805 = vmatprep.mubr.msk.f32.mxu1 %vm8561_vm2, %v28174_v34  ;;  %29575 = vst [vmem:[#allocation62_spill] sm:$0xff] %v28190_v36  ;;  %v28194_v34 = vld [vmem:[#allocation2 + $0x16a] sm:$0xff] }
 0x8b1   :  { %29576 = vst [vmem:[#allocation63_spill] sm:$0xff] %v28194_v34 }
 0x8b3   :  { %20806 = vmatmul.mubr.msk.f32.gmra.mrb[178].mxu1 %vm8561_vm2, %v28178_v17  ;;  %v28198_v17 = vld [vmem:[#allocation2 + $0x172] sm:$0xff] }
 0x8b4   :  { %20808 = vmatprep.mubr.msk.f32.mxu1 %vm8561_vm2, %v28182_v26  ;;  %29577 = vst [vmem:[#allocation64_spill] sm:$0xff] %v28198_v17  ;;  %v28202_v26 = vld [vmem:[#allocation2 + $0x17a] sm:$0xff] }
 0x8b5   :  { %29578 = vst [vmem:[#allocation65_spill] sm:$0xff] %v28202_v26 }
 0x8b7   :  { %20809 = vmatmul.mubr.msk.f32.gmra.mrb[180].mxu1 %vm8561_vm2, %v28186_v39  ;;  %v28206_v39 = vld [vmem:[#allocation2 + $0x182] sm:$0xff] }
 0x8b8   :  { %20811 = vmatprep.mubr.msk.f32.mxu1 %vm8561_vm2, %v28190_v36  ;;  %29579 = vst [vmem:[#allocation66_spill] sm:$0xff] %v28206_v39  ;;  %v28210_v36 = vld [vmem:[#allocation2 + $0x18a] sm:$0xff] }
 0x8b9   :  { %29580 = vst [vmem:[#allocation67_spill] sm:$0xff] %v28210_v36 }
 0x8bb   :  { %20812 = vmatmul.mubr.msk.f32.gmra.mrb[182].mxu1 %vm8561_vm2, %v28194_v34  ;;  %v28214_v34 = vld [vmem:[#allocation2 + $0x192] sm:$0xff] }
 0x8bc   :  { %20814 = vmatprep.mubr.msk.f32.mxu1 %vm8561_vm2, %v28198_v17  ;;  %29581 = vst [vmem:[#allocation68_spill] sm:$0xff] %v28214_v34  ;;  %v28218_v17 = vld [vmem:[#allocation2 + $0x19a] sm:$0xff] }
 0x8bd   :  { %29582 = vst [vmem:[#allocation69_spill] sm:$0xff] %v28218_v17 }
 0x8bf   :  { %20815 = vmatmul.mubr.msk.f32.gmra.mrb[184].mxu1 %vm8561_vm2, %v28202_v26  ;;  %v28222_v26 = vld [vmem:[#allocation2 + $0x1a2] sm:$0xff] }
 0x8c0   :  { %20817 = vmatprep.mubr.msk.f32.mxu1 %vm8561_vm2, %v28206_v39  ;;  %29583 = vst [vmem:[#allocation70_spill] sm:$0xff] %v28222_v26  ;;  %v28226_v39 = vld [vmem:[#allocation2 + $0x1aa] sm:$0xff] }
 0x8c1   :  { %29584 = vst [vmem:[#allocation71_spill] sm:$0xff] %v28226_v39 }
 0x8c3   :  { %20818 = vmatmul.mubr.msk.f32.gmra.mrb[186].mxu1 %vm8561_vm2, %v28210_v36  ;;  %v28230_v36 = vld [vmem:[#allocation2 + $0x1b2] sm:$0xff] }
 0x8c4   :  { %20820 = vmatprep.mubr.msk.f32.mxu1 %vm8561_vm2, %v28214_v34  ;;  %29585 = vst [vmem:[#allocation72_spill] sm:$0xff] %v28230_v36  ;;  %v28234_v34 = vld [vmem:[#allocation2 + $0x1ba] sm:$0xff] }
 0x8c5   :  { %29586 = vst [vmem:[#allocation73_spill] sm:$0xff] %v28234_v34 }
 0x8c7   :  { %20821 = vmatmul.mubr.msk.f32.gmra.mrb[188].mxu1 %vm8561_vm2, %v28218_v17  ;;  %v28238_v17 = vld [vmem:[#allocation2 + $0x1c2] sm:$0xff] }
 0x8c8   :  { %20823 = vmatprep.mubr.msk.f32.mxu1 %vm8561_vm2, %v28222_v26  ;;  %29587 = vst [vmem:[#allocation74_spill] sm:$0xff] %v28238_v17  ;;  %v28242_v26 = vld [vmem:[#allocation2 + $0x1ca] sm:$0xff] }
 0x8c9   :  { %29588 = vst [vmem:[#allocation75_spill] sm:$0xff] %v28242_v26 }
 0x8cb   :  { %20824 = vmatmul.mubr.msk.f32.gmra.mrb[190].mxu1 %vm8561_vm2, %v28226_v39  ;;  %v28246_v39 = vld [vmem:[#allocation2 + $0x1d2] sm:$0xff] }
 0x8cc   :  { %20826 = vmatprep.mubr.msk.f32.mxu1 %vm8561_vm2, %v28230_v36  ;;  %29589 = vst [vmem:[#allocation76_spill] sm:$0xff] %v28246_v39  ;;  %v28250_v36 = vld [vmem:[#allocation2 + $0x1da] sm:$0xff] }
 0x8cd   :  { %29590 = vst [vmem:[#allocation77_spill] sm:$0xff] %v28250_v36 }
 0x8cf   :  { %20827 = vmatmul.mubr.msk.f32.gmra.mrb[192].mxu1 %vm8561_vm2, %v28234_v34  ;;  %v28254_v34 = vld [vmem:[#allocation2 + $0x1e2] sm:$0xff] }
 0x8d0   :  { %20829 = vmatprep.mubr.msk.f32.mxu1 %vm8561_vm2, %v28238_v17  ;;  %29591 = vst [vmem:[#allocation78_spill] sm:$0xff] %v28254_v34  ;;  %v28258_v17 = vld [vmem:[#allocation2 + $0x1ea] sm:$0xff] }
 0x8d1   :  { %29592 = vst [vmem:[#allocation79_spill] sm:$0xff] %v28258_v17 }
 0x8d3   :  { %20830 = vmatmul.mubr.msk.f32.gmra.mrb[194].mxu1 %vm8561_vm2, %v28242_v26  ;;  %v28262_v26 = vld [vmem:[#allocation2 + $0x1f2] sm:$0xff] }
 0x8d4   :  { %20832 = vmatprep.mubr.msk.f32.mxu1 %vm8561_vm2, %v28246_v39  ;;  %29593 = vst [vmem:[#allocation80_spill] sm:$0xff] %v28262_v26  ;;  %v28266_v39 = vld [vmem:[#allocation2 + $0x1fa] sm:$0xff] }
 0x8d7   :  { %20833 = vmatmul.mubr.msk.f32.gmra.mrb[196].mxu1 %vm8561_vm2, %v28250_v36  ;;  %v17068_v36 = vld [vmem:[%s29388_s3 + $0x90] sm:$0xff] }
 0x8d8   :  { %20835 = vmatprep.mubr.msk.f32.mxu1 %vm8561_vm2, %v28254_v34  ;;  %v17069_v34 = vld [vmem:[%s29388_s3 + $0x98] sm:$0xff] }
 0x8db   :  { %20836 = vmatmul.mubr.msk.f32.gmra.mrb[198].mxu1 %vm8561_vm2, %v28258_v17  ;;  %v21501_v17 = vpack.c.bf16 %v17069_v34, %v17068_v36  ;;  %v28291_v34 = vld [vmem:[#allocation2 + $0x28] sm:$0xff]  ;;  %v28300_v36 = vld [vmem:[#allocation2 + $0x38] sm:$0xff] }
 0x8dc   :  { %20838 = vmatprep.mubr.msk.f32.mxu1 %vm8561_vm2, %v28262_v26  ;;  %v28278_v26 = vld [vmem:[#allocation2 + $0x20] sm:$0xff]  ;;  %29594 = vst [vmem:[#allocation81_spill] sm:$0xff] %v28300_v36 }
 0x8df   :  { %20839 = vmatmul.mubr.msk.f32.gmra.mrb[200].mxu1 %vm8561_vm2, %v28266_v39 }
 0x8e0   :  { %20849 = vmatprep.mubr.msk.f32.mxu1 %vm8561_vm2, %v11007_v32  ;;  %v28289_v32 = vpack.c.bf16 %v17135_v60, %v17134_v40  ;;  %v28304_v40 = vld [vmem:[#allocation2 + $0x40] sm:$0xff]  ;;  %v28308_v60 = vld [vmem:[#allocation2 + $0x48] sm:$0xff] }
 0x8e1   :  { %29595 = vst [vmem:[#allocation82_spill] sm:$0xff] %v28304_v40  ;;  %29596 = vst [vmem:[#allocation83_spill] sm:$0xff] %v28308_v60 }
 0x8e3   :  { %20850 = vmatmul.mubr.msk.f32.vlgmr.msra.gmra.mrb[138].mxu1 %vm8561_vm2, %v11008_v15  ;;  %v28295_v15 = vld [vmem:[#allocation2 + $0x30] sm:$0xff] }
 0x8e4   :  { %20852 = vmatprep.mubr.msk.f32.mxu1 %vm8561_vm2, %v28278_v26  ;;  %21500 = vmatpush3.bf16.msra.mxu1 %v28023_v46  ;;  %v28312_v46 = vld [vmem:[#allocation2 + $0x50] sm:$0xff] }
 0x8e5   :  { %21502 = vmatprep.subr.bf16.mxu1 %v21501_v17  ;;  %29597 = vst [vmem:[#allocation84_spill] sm:$0xff] %v28312_v46 }
 0x8e7   :  { %20853 = vmatmul.mubr.msk.f32.gmra.mrb[140].mxu1 %vm8561_vm2, %v28291_v34 }
 0x8e8   :  { %20855 = vmatprep.mubr.msk.f32.mxu1 %vm8561_vm2, %v28295_v15  ;;  %21504 = vmatpush3.bf16.msra.mxu1 %v21501_v17  ;;  %v28316_v17 = vld [vmem:[#allocation2 + $0x58] sm:$0xff] }
 0x8e9   :  { %21506 = vmatprep.subr.bf16.mxu1 %v28289_v32  ;;  %29598 = vst [vmem:[#allocation85_spill] sm:$0xff] %v28316_v17 }
 0x8eb   :  { %20856 = vmatmul.mubr.msk.f32.gmra.mrb[142].mxu1 %vm8561_vm2, %v28300_v36  ;;  %v28320_v36 = vld [vmem:[#allocation2 + $0x60] sm:$0xff] }
 0x8ec   :  { %20858 = vmatprep.mubr.msk.f32.mxu1 %vm8561_vm2, %v28304_v40  ;;  %29599 = vst [vmem:[#allocation86_spill] sm:$0xff] %v28320_v36  ;;  %v28324_v40 = vld [vmem:[#allocation2 + $0x68] sm:$0xff] }
 0x8ed   :  { %29600 = vst [vmem:[#allocation87_spill] sm:$0xff] %v28324_v40 }
 0x8ef   :  { %20859 = vmatmul.mubr.msk.f32.gmra.mrb[144].mxu1 %vm8561_vm2, %v28308_v60  ;;  %v28328_v60 = vld [vmem:[#allocation2 + $0x70] sm:$0xff] }
 0x8f0   :  { %20861 = vmatprep.mubr.msk.f32.mxu1 %vm8561_vm2, %v28312_v46  ;;  %29601 = vst [vmem:[#allocation88_spill] sm:$0xff] %v28328_v60  ;;  %v28332_v46 = vld [vmem:[#allocation2 + $0x78] sm:$0xff] }
 0x8f1   :  { %29602 = vst [vmem:[#allocation89_spill] sm:$0xff] %v28332_v46 }
 0x8f3   :  { %20862 = vmatmul.mubr.msk.f32.gmra.mrb[146].mxu1 %vm8561_vm2, %v28316_v17  ;;  %v28336_v17 = vld [vmem:[#allocation2 + $0x80] sm:$0xff] }
 0x8f4   :  { %20864 = vmatprep.mubr.msk.f32.mxu1 %vm8561_vm2, %v28320_v36  ;;  %29603 = vst [vmem:[#allocation90_spill] sm:$0xff] %v28336_v17  ;;  %v28340_v36 = vld [vmem:[#allocation2 + $0x88] sm:$0xff] }
 0x8f5   :  { %29604 = vst [vmem:[#allocation91_spill] sm:$0xff] %v28340_v36 }
 0x8f7   :  { %20865 = vmatmul.mubr.msk.f32.gmra.mrb[148].mxu1 %vm8561_vm2, %v28324_v40  ;;  %v28344_v40 = vld [vmem:[#allocation2 + $0x90] sm:$0xff] }
 0x8f8   :  { %20867 = vmatprep.mubr.msk.f32.mxu1 %vm8561_vm2, %v28328_v60  ;;  %29605 = vst [vmem:[#allocation92_spill] sm:$0xff] %v28344_v40  ;;  %v28348_v60 = vld [vmem:[#allocation2 + $0x98] sm:$0xff] }
 0x8f9   :  { %29606 = vst [vmem:[#allocation93_spill] sm:$0xff] %v28348_v60 }
 0x8fb   :  { %20868 = vmatmul.mubr.msk.f32.gmra.mrb[150].mxu1 %vm8561_vm2, %v28332_v46  ;;  %v28352_v46 = vld [vmem:[#allocation2 + $0xa0] sm:$0xff] }
 0x8fc   :  { %20870 = vmatprep.mubr.msk.f32.mxu1 %vm8561_vm2, %v28336_v17  ;;  %29607 = vst [vmem:[#allocation94_spill] sm:$0xff] %v28352_v46  ;;  %v28356_v17 = vld [vmem:[#allocation2 + $0xa8] sm:$0xff] }
 0x8fd   :  { %29608 = vst [vmem:[#allocation95_spill] sm:$0xff] %v28356_v17 }
 0x8ff   :  { %20871 = vmatmul.mubr.msk.f32.gmra.mrb[152].mxu1 %vm8561_vm2, %v28340_v36  ;;  %v28360_v36 = vld [vmem:[#allocation2 + $0xb0] sm:$0xff] }
 0x900   :  { %20873 = vmatprep.mubr.msk.f32.mxu1 %vm8561_vm2, %v28344_v40  ;;  %29609 = vst [vmem:[#allocation96_spill] sm:$0xff] %v28360_v36  ;;  %v28364_v40 = vld [vmem:[#allocation2 + $0xb8] sm:$0xff] }
 0x901   :  { %29610 = vst [vmem:[#allocation97_spill] sm:$0xff] %v28364_v40 }
 0x903   :  { %20874 = vmatmul.mubr.msk.f32.gmra.mrb[154].mxu1 %vm8561_vm2, %v28348_v60  ;;  %v28368_v60 = vld [vmem:[#allocation2 + $0xc0] sm:$0xff] }
 0x904   :  { %20876 = vmatprep.mubr.msk.f32.mxu1 %vm8561_vm2, %v28352_v46  ;;  %29611 = vst [vmem:[#allocation98_spill] sm:$0xff] %v28368_v60  ;;  %v28372_v46 = vld [vmem:[#allocation2 + $0xc8] sm:$0xff] }
 0x905   :  { %29612 = vst [vmem:[#allocation99_spill] sm:$0xff] %v28372_v46 }
 0x907   :  { %20877 = vmatmul.mubr.msk.f32.gmra.mrb[156].mxu1 %vm8561_vm2, %v28356_v17  ;;  %v28376_v17 = vld [vmem:[#allocation2 + $0xd0] sm:$0xff] }
 0x908   :  { %20879 = vmatprep.mubr.msk.f32.mxu1 %vm8561_vm2, %v28360_v36  ;;  %29613 = vst [vmem:[#allocation100_spill] sm:$0xff] %v28376_v17  ;;  %v28380_v36 = vld [vmem:[#allocation2 + $0xd8] sm:$0xff] }
 0x909   :  { %29614 = vst [vmem:[#allocation101_spill] sm:$0xff] %v28380_v36 }
 0x90b   :  { %20880 = vmatmul.mubr.msk.f32.gmra.mrb[158].mxu1 %vm8561_vm2, %v28364_v40  ;;  %v28384_v40 = vld [vmem:[#allocation2 + $0xe0] sm:$0xff] }
 0x90c   :  { %20882 = vmatprep.mubr.msk.f32.mxu1 %vm8561_vm2, %v28368_v60  ;;  %29615 = vst [vmem:[#allocation102_spill] sm:$0xff] %v28384_v40  ;;  %v28388_v60 = vld [vmem:[#allocation2 + $0xe8] sm:$0xff] }
 0x90d   :  { %29616 = vst [vmem:[#allocation103_spill] sm:$0xff] %v28388_v60 }
 0x90f   :  { %20883 = vmatmul.mubr.msk.f32.gmra.mrb[160].mxu1 %vm8561_vm2, %v28372_v46  ;;  %v28392_v46 = vld [vmem:[#allocation2 + $0xf0] sm:$0xff] }
 0x910   :  { %20885 = vmatprep.mubr.msk.f32.mxu1 %vm8561_vm2, %v28376_v17  ;;  %29617 = vst [vmem:[#allocation104_spill] sm:$0xff] %v28392_v46  ;;  %v28396_v17 = vld [vmem:[#allocation2 + $0xf8] sm:$0xff] }
 0x911   :  { %29618 = vst [vmem:[#allocation105_spill] sm:$0xff] %v28396_v17 }
 0x913   :  { %20886 = vmatmul.mubr.msk.f32.gmra.mrb[162].mxu1 %vm8561_vm2, %v28380_v36  ;;  %v28400_v36 = vld [vmem:[#allocation2 + $0x100] sm:$0xff] }
 0x914   :  { %20888 = vmatprep.mubr.msk.f32.mxu1 %vm8561_vm2, %v28384_v40  ;;  %29619 = vst [vmem:[#allocation106_spill] sm:$0xff] %v28400_v36  ;;  %v28404_v40 = vld [vmem:[#allocation2 + $0x108] sm:$0xff] }
 0x915   :  { %29620 = vst [vmem:[#allocation107_spill] sm:$0xff] %v28404_v40 }
 0x917   :  { %20889 = vmatmul.mubr.msk.f32.gmra.mrb[164].mxu1 %vm8561_vm2, %v28388_v60  ;;  %v28408_v60 = vld [vmem:[#allocation2 + $0x110] sm:$0xff] }
 0x918   :  { %20891 = vmatprep.mubr.msk.f32.mxu1 %vm8561_vm2, %v28392_v46  ;;  %29621 = vst [vmem:[#allocation108_spill] sm:$0xff] %v28408_v60  ;;  %v28412_v46 = vld [vmem:[#allocation2 + $0x118] sm:$0xff] }
 0x919   :  { %29622 = vst [vmem:[#allocation109_spill] sm:$0xff] %v28412_v46 }
 0x91b   :  { %20892 = vmatmul.mubr.msk.f32.gmra.mrb[166].mxu1 %vm8561_vm2, %v28396_v17  ;;  %v28416_v17 = vld [vmem:[#allocation2 + $0x120] sm:$0xff] }
 0x91c   :  { %20894 = vmatprep.mubr.msk.f32.mxu1 %vm8561_vm2, %v28400_v36  ;;  %29623 = vst [vmem:[#allocation110_spill] sm:$0xff] %v28416_v17  ;;  %v28420_v36 = vld [vmem:[#allocation2 + $0x128] sm:$0xff] }
 0x91d   :  { %29624 = vst [vmem:[#allocation111_spill] sm:$0xff] %v28420_v36 }
 0x91f   :  { %20895 = vmatmul.mubr.msk.f32.gmra.mrb[168].mxu1 %vm8561_vm2, %v28404_v40  ;;  %v28424_v40 = vld [vmem:[#allocation2 + $0x130] sm:$0xff] }
 0x920   :  { %20897 = vmatprep.mubr.msk.f32.mxu1 %vm8561_vm2, %v28408_v60  ;;  %29625 = vst [vmem:[#allocation112_spill] sm:$0xff] %v28424_v40  ;;  %v28428_v60 = vld [vmem:[#allocation2 + $0x138] sm:$0xff] }
 0x921   :  { %29626 = vst [vmem:[#allocation113_spill] sm:$0xff] %v28428_v60 }
 0x923   :  { %20898 = vmatmul.mubr.msk.f32.gmra.mrb[170].mxu1 %vm8561_vm2, %v28412_v46  ;;  %v28432_v46 = vld [vmem:[#allocation2 + $0x140] sm:$0xff] }
 0x924   :  { %20900 = vmatprep.mubr.msk.f32.mxu1 %vm8561_vm2, %v28416_v17  ;;  %29627 = vst [vmem:[#allocation114_spill] sm:$0xff] %v28432_v46  ;;  %v28436_v17 = vld [vmem:[#allocation2 + $0x148] sm:$0xff] }
 0x925   :  { %29628 = vst [vmem:[#allocation115_spill] sm:$0xff] %v28436_v17 }
 0x927   :  { %20901 = vmatmul.mubr.msk.f32.gmra.mrb[172].mxu1 %vm8561_vm2, %v28420_v36  ;;  %v28440_v36 = vld [vmem:[#allocation2 + $0x150] sm:$0xff] }
 0x928   :  { %20903 = vmatprep.mubr.msk.f32.mxu1 %vm8561_vm2, %v28424_v40  ;;  %29629 = vst [vmem:[#allocation116_spill] sm:$0xff] %v28440_v36  ;;  %v28444_v40 = vld [vmem:[#allocation2 + $0x158] sm:$0xff] }
 0x929   :  { %29630 = vst [vmem:[#allocation117_spill] sm:$0xff] %v28444_v40 }
 0x92b   :  { %20904 = vmatmul.mubr.msk.f32.gmra.mrb[174].mxu1 %vm8561_vm2, %v28428_v60  ;;  %v28448_v60 = vld [vmem:[#allocation2 + $0x160] sm:$0xff] }
 0x92c   :  { %20906 = vmatprep.mubr.msk.f32.mxu1 %vm8561_vm2, %v28432_v46  ;;  %29631 = vst [vmem:[#allocation118_spill] sm:$0xff] %v28448_v60  ;;  %v28452_v46 = vld [vmem:[#allocation2 + $0x168] sm:$0xff] }
 0x92d   :  { %29632 = vst [vmem:[#allocation119_spill] sm:$0xff] %v28452_v46 }
 0x92f   :  { %20907 = vmatmul.mubr.msk.f32.gmra.mrb[176].mxu1 %vm8561_vm2, %v28436_v17  ;;  %v28456_v17 = vld [vmem:[#allocation2 + $0x170] sm:$0xff] }
 0x930   :  { %20909 = vmatprep.mubr.msk.f32.mxu1 %vm8561_vm2, %v28440_v36  ;;  %29633 = vst [vmem:[#allocation120_spill] sm:$0xff] %v28456_v17  ;;  %v28460_v36 = vld [vmem:[#allocation2 + $0x178] sm:$0xff] }
 0x931   :  { %29634 = vst [vmem:[#allocation121_spill] sm:$0xff] %v28460_v36 }
 0x933   :  { %20910 = vmatmul.mubr.msk.f32.gmra.mrb[178].mxu1 %vm8561_vm2, %v28444_v40  ;;  %v28464_v40 = vld [vmem:[#allocation2 + $0x180] sm:$0xff] }
 0x934   :  { %20912 = vmatprep.mubr.msk.f32.mxu1 %vm8561_vm2, %v28448_v60  ;;  %29635 = vst [vmem:[#allocation122_spill] sm:$0xff] %v28464_v40  ;;  %v28468_v60 = vld [vmem:[#allocation2 + $0x188] sm:$0xff] }
 0x935   :  { %29636 = vst [vmem:[#allocation123_spill] sm:$0xff] %v28468_v60 }
 0x937   :  { %20913 = vmatmul.mubr.msk.f32.gmra.mrb[180].mxu1 %vm8561_vm2, %v28452_v46  ;;  %v28472_v46 = vld [vmem:[#allocation2 + $0x190] sm:$0xff] }
 0x938   :  { %20915 = vmatprep.mubr.msk.f32.mxu1 %vm8561_vm2, %v28456_v17  ;;  %29637 = vst [vmem:[#allocation124_spill] sm:$0xff] %v28472_v46  ;;  %v28476_v17 = vld [vmem:[#allocation2 + $0x198] sm:$0xff] }
 0x939   :  { %29638 = vst [vmem:[#allocation125_spill] sm:$0xff] %v28476_v17 }
 0x93b   :  { %20916 = vmatmul.mubr.msk.f32.gmra.mrb[182].mxu1 %vm8561_vm2, %v28460_v36  ;;  %v28480_v36 = vld [vmem:[#allocation2 + $0x1a0] sm:$0xff] }
 0x93c   :  { %20918 = vmatprep.mubr.msk.f32.mxu1 %vm8561_vm2, %v28464_v40  ;;  %v28484_v40 = vld [vmem:[#allocation2 + $0x1a8] sm:$0xff] }
 0x93f   :  { %20919 = vmatmul.mubr.msk.f32.gmra.mrb[184].mxu1 %vm8561_vm2, %v28468_v60  ;;  %v28488_v60 = vld [vmem:[#allocation2 + $0x1b0] sm:$0xff] }
 0x940   :  { %20921 = vmatprep.mubr.msk.f32.mxu1 %vm8561_vm2, %v28472_v46  ;;  %v28492_v46 = vld [vmem:[#allocation2 + $0x1b8] sm:$0xff] }
 0x943   :  { %20922 = vmatmul.mubr.msk.f32.gmra.mrb[186].mxu1 %vm8561_vm2, %v28476_v17  ;;  %v28496_v17 = vld [vmem:[#allocation2 + $0x1c0] sm:$0xff] }
 0x944   :  { %20924 = vmatprep.mubr.msk.f32.mxu1 %vm8561_vm2, %v28480_v36 }
 0x947   :  { %20925 = vmatmul.mubr.msk.f32.gmra.mrb[188].mxu1 %vm8561_vm2, %v28484_v40 }
 0x948   :  { %20927 = vmatprep.mubr.msk.f32.mxu1 %vm8561_vm2, %v28488_v60 }
 0x94b   :  { %20928 = vmatmul.mubr.msk.f32.gmra.mrb[190].mxu1 %vm8561_vm2, %v28492_v46 }
 0x94c   :  { %20930 = vmatprep.mubr.msk.f32.mxu1 %vm8561_vm2, %v28496_v17 }
 0x94f   :  { %20931 = vmatmul.mubr.msk.f32.gmra.mrb[192].mxu1 %vm8561_vm2, %v27693_v30  ;;  %v29639_v30 = vmax.f32 %v27732_v6, 0.0 }
 0x950   :  { %20933 = vmatprep.mubr.msk.f32.mxu1 %vm8561_vm2, %v27698_v38  ;;  %v17136_v38 = vld [vmem:[%s29388_s3 + $0xb0] sm:$0xff] }
 0x953   :  { %20934 = vmatmul.mubr.msk.f32.gmra.mrb[194].mxu1 %vm8561_vm2, %v27703_v24  ;;  %v17137_v24 = vld [vmem:[%s29388_s3 + $0xb8] sm:$0xff] }
 0x954   :  { %20936 = vmatprep.mubr.msk.f32.mxu1 %vm8561_vm2, %v27708_v9  ;;  %v29640_v9 = vmax.f32 %v27740_v54, 0.0  ;;  %v29641_v54 = vld [vmem:[#allocation3_spill] sm:$0xff] }
 0x957   :  { %20937 = vmatmul.mubr.msk.f32.gmra.mrb[196].mxu1 %vm8561_vm2, %v27713_v53  ;;  %v21509_v53 = vpack.c.bf16 %v17137_v24, %v17136_v38  ;;  %v29681_v38 = vld [vmem:[#allocation43_spill] sm:$0xff]  ;;  %v29682_v24 = vld [vmem:[#allocation44_spill] sm:$0xff] }
 0x958   :  { %20939 = vmatprep.mubr.msk.f32.mxu1 %vm8561_vm2, %v27718_v14  ;;  %v17202_v14 = vld [vmem:[%s29388_s3 + $0xc0] sm:$0xff] }
 0x95b   :  { %20940 = vmatmul.mubr.msk.f32.gmra.mrb[198].mxu1 %vm8561_vm2, %v27723_v45  ;;  %v17203_v45 = vld [vmem:[%s29388_s3 + $0xc8] sm:$0xff] }
 0x95c   :  { %20942 = vmatprep.mubr.msk.f32.mxu1 %vm8561_vm2, %v29639_v30  ;;  %v28539_v6 = vpack.c.bf16 %v17203_v45, %v17202_v14  ;;  %v29680_v30 = vld [vmem:[#allocation42_spill] sm:$0xff]  ;;  %v29685_v14 = vld [vmem:[#allocation47_spill] sm:$0xff]  ;;  %v29686_v45 = vld [vmem:[#allocation48_spill] sm:$0xff] }
 0x95f   :  { %20943 = vmatmul.mubr.msk.f32.gmra.mrb[200].mxu1 %vm8561_vm2, %v29640_v9  ;;  %v29683_v9 = vld [vmem:[#allocation45_spill] sm:$0xff] }
 0x960   :  { %20953 = vmatprep.mubr.msk.f32.mxu1 %vm8561_vm2, %v27743_v58  ;;  %v29642_v58 = vld [vmem:[#allocation4_spill] sm:$0xff] }
 0x963   :  { %20954 = vmatmul.mubr.msk.f32.vlgmr.msra.gmra.mrb[138].mxu1 %vm8561_vm2, %v27757_v23  ;;  %v29643_v23 = vld [vmem:[#allocation5_spill] sm:$0xff] }
 0x964   :  { %20956 = vmatprep.mubr.msk.f32.mxu1 %vm8561_vm2, %v27763_v29  ;;  %21508 = vmatpush3.bf16.msra.mxu1 %v28289_v32  ;;  %v29644_v29 = vld [vmem:[#allocation6_spill] sm:$0xff]  ;;  %v29679_v32 = vld [vmem:[#allocation41_spill] sm:$0xff] }
 0x965   :  { %21510 = vmatprep.subr.bf16.mxu1 %v21509_v53 }
 0x967   :  { %20957 = vmatmul.mubr.msk.f32.gmra.mrb[140].mxu1 %vm8561_vm2, %v27768_v35  ;;  %v29645_v35 = vld [vmem:[#allocation7_spill] sm:$0xff] }
 0x968   :  { %20959 = vmatprep.mubr.msk.f32.mxu1 %vm8561_vm2, %v27772_v28  ;;  %21512 = vmatpush3.bf16.msra.mxu1 %v21509_v53  ;;  %v29646_v28 = vld [vmem:[#allocation8_spill] sm:$0xff]  ;;  %v29684_v53 = vld [vmem:[#allocation46_spill] sm:$0xff] }
 0x969   :  { %21514 = vmatprep.subr.bf16.mxu1 %v28539_v6 }
 0x96b   :  { %20960 = vmatmul.mubr.msk.f32.gmra.mrb[142].mxu1 %vm8561_vm2, %v27776_v41  ;;  %v29647_v41 = vld [vmem:[#allocation9_spill] sm:$0xff] }
 0x96c   :  { %20962 = vmatprep.mubr.msk.f32.mxu1 %vm8561_vm2, %v27780_v43  ;;  %v29648_v43 = vld [vmem:[#allocation10_spill] sm:$0xff] }
 0x96f   :  { %20963 = vmatmul.mubr.msk.f32.gmra.mrb[144].mxu1 %vm8561_vm2, %v27784_v62  ;;  %v29649_v62 = vld [vmem:[#allocation11_spill] sm:$0xff] }
 0x970   :  { %20965 = vmatprep.mubr.msk.f32.mxu1 %vm8561_vm2, %v27788_v1  ;;  %v29650_v1 = vld [vmem:[#allocation12_spill] sm:$0xff] }
 0x973   :  { %20966 = vmatmul.mubr.msk.f32.gmra.mrb[146].mxu1 %vm8561_vm2, %v27792_v3  ;;  %v29651_v3 = vld [vmem:[#allocation13_spill] sm:$0xff] }
 0x974   :  { %20968 = vmatprep.mubr.msk.f32.mxu1 %vm8561_vm2, %v27796_v5  ;;  %v29652_v5 = vld [vmem:[#allocation14_spill] sm:$0xff] }
 0x977   :  { %20969 = vmatmul.mubr.msk.f32.gmra.mrb[148].mxu1 %vm8561_vm2, %v27800_v7  ;;  %v29653_v7 = vld [vmem:[#allocation15_spill] sm:$0xff] }
 0x978   :  { %20971 = vmatprep.mubr.msk.f32.mxu1 %vm8561_vm2, %v27804_v44  ;;  %v29654_v44 = vld [vmem:[#allocation16_spill] sm:$0xff] }
 0x97b   :  { %20972 = vmatmul.mubr.msk.f32.gmra.mrb[150].mxu1 %vm8561_vm2, %v27808_v47  ;;  %v29655_v47 = vld [vmem:[#allocation17_spill] sm:$0xff] }
 0x97c   :  { %20974 = vmatprep.mubr.msk.f32.mxu1 %vm8561_vm2, %v27812_v49  ;;  %v29656_v49 = vld [vmem:[#allocation18_spill] sm:$0xff] }
 0x97f   :  { %20975 = vmatmul.mubr.msk.f32.gmra.mrb[152].mxu1 %vm8561_vm2, %v27816_v51  ;;  %v29657_v51 = vld [vmem:[#allocation19_spill] sm:$0xff] }
 0x980   :  { %20977 = vmatprep.mubr.msk.f32.mxu1 %vm8561_vm2, %v27820_v55  ;;  %v28660_v55 = vld [vmem:[#allocation2 + $0x201] sm:$0xff] }
 0x983   :  { %20978 = vmatmul.mubr.msk.f32.gmra.mrb[154].mxu1 %vm8561_vm2, %v27824_v57  ;;  %v28664_v57 = vld [vmem:[#allocation2 + $0x209] sm:$0xff] }
 0x984   :  { %20980 = vmatprep.mubr.msk.f32.mxu1 %vm8561_vm2, %v27828_v11  ;;  %v17204_v11 = vld [vmem:[%s29388_s3 + $0xd0] sm:$0xff] }
 0x987   :  { %20981 = vmatmul.mubr.msk.f32.gmra.mrb[156].mxu1 %vm8561_vm2, %v27832_v12  ;;  %v17205_v12 = vld [vmem:[%s29388_s3 + $0xd8] sm:$0xff] }
 0x988   :  { %20983 = vmatprep.mubr.msk.f32.mxu1 %vm8561_vm2, %v27836_v18  ;;  %v29658_v18 = vld [vmem:[#allocation20_spill] sm:$0xff] }
 0x98b   :  { %20984 = vmatmul.mubr.msk.f32.gmra.mrb[158].mxu1 %vm8561_vm2, %v27840_v20  ;;  %v21517_v20 = vpack.c.bf16 %v17205_v12, %v17204_v11  ;;  %v29705_v11 = vld [vmem:[#allocation67_spill] sm:$0xff]  ;;  %v29706_v12 = vld [vmem:[#allocation68_spill] sm:$0xff] }
 0x98c   :  { %20986 = vmatprep.mubr.msk.f32.mxu1 %vm8561_vm2, %v27844_v22  ;;  %v29659_v22 = vld [vmem:[#allocation21_spill] sm:$0xff] }
 0x98f   :  { %20987 = vmatmul.mubr.msk.f32.gmra.mrb[160].mxu1 %vm8561_vm2, %v27848_v42  ;;  %v17270_v42 = vld [vmem:[%s29388_s3 + $0xe0] sm:$0xff] }
 0x990   :  { %20989 = vmatprep.mubr.msk.f32.mxu1 %vm8561_vm2, %v27852_v61  ;;  %v17271_v61 = vld [vmem:[%s29388_s3 + $0xe8] sm:$0xff] }
 0x993   :  { %20990 = vmatmul.mubr.msk.f32.gmra.mrb[162].mxu1 %vm8561_vm2, %v27856_v63  ;;  %v29660_v63 = vld [vmem:[#allocation22_spill] sm:$0xff] }
 0x994   :  { %20992 = vmatprep.mubr.msk.f32.mxu1 %vm8561_vm2, %v27860_v2  ;;  %v28687_v2 = vpack.c.bf16 %v17271_v61, %v17270_v42  ;;  %v29710_v42 = vld [vmem:[#allocation72_spill] sm:$0xff]  ;;  %v29711_v61 = vld [vmem:[#allocation73_spill] sm:$0xff] }
 0x997   :  { %20993 = vmatmul.mubr.msk.f32.gmra.mrb[164].mxu1 %vm8561_vm2, %v27864_v4  ;;  %v29661_v4 = vld [vmem:[#allocation23_spill] sm:$0xff] }
 0x998   :  { %20995 = vmatprep.mubr.msk.f32.mxu1 %vm8561_vm2, %v27868_v8  ;;  %v29662_v8 = vld [vmem:[#allocation24_spill] sm:$0xff] }
 0x99b   :  { %20996 = vmatmul.mubr.msk.f32.gmra.mrb[166].mxu1 %vm8561_vm2, %v27872_v10  ;;  %v29663_v10 = vld [vmem:[#allocation25_spill] sm:$0xff] }
 0x99c   :  { %20998 = vmatprep.mubr.msk.f32.mxu1 %vm8561_vm2, %v27876_v48  ;;  %v29664_v48 = vld [vmem:[#allocation26_spill] sm:$0xff] }
 0x99f   :  { %20999 = vmatmul.mubr.msk.f32.gmra.mrb[168].mxu1 %vm8561_vm2, %v27880_v50  ;;  %v29665_v50 = vld [vmem:[#allocation27_spill] sm:$0xff] }
 0x9a0   :  { %21001 = vmatprep.mubr.msk.f32.mxu1 %vm8561_vm2, %v27884_v52  ;;  %v29666_v52 = vld [vmem:[#allocation28_spill] sm:$0xff] }
 0x9a3   :  { %21002 = vmatmul.mubr.msk.f32.gmra.mrb[170].mxu1 %vm8561_vm2, %v27888_v0  ;;  %v29667_v0 = vld [vmem:[#allocation29_spill] sm:$0xff] }
 0x9a4   :  { %21004 = vmatprep.mubr.msk.f32.mxu1 %vm8561_vm2, %v27892_v56  ;;  %v29668_v56 = vld [vmem:[#allocation30_spill] sm:$0xff] }
 0x9a7   :  { %21005 = vmatmul.mubr.msk.f32.gmra.mrb[172].mxu1 %vm8561_vm2, %v27896_v59  ;;  %v29669_v59 = vld [vmem:[#allocation31_spill] sm:$0xff] }
 0x9a8   :  { %21007 = vmatprep.mubr.msk.f32.mxu1 %vm8561_vm2, %v27900_v13  ;;  %v29670_v13 = vld [vmem:[#allocation32_spill] sm:$0xff] }
 0x9ab   :  { %21008 = vmatmul.mubr.msk.f32.gmra.mrb[174].mxu1 %vm8561_vm2, %v27904_v19  ;;  %v29671_v19 = vld [vmem:[#allocation33_spill] sm:$0xff] }
 0x9ac   :  { %21010 = vmatprep.mubr.msk.f32.mxu1 %vm8561_vm2, %v27908_v21  ;;  %v29672_v21 = vld [vmem:[#allocation34_spill] sm:$0xff] }
 0x9af   :  { %21011 = vmatmul.mubr.msk.f32.gmra.mrb[176].mxu1 %vm8561_vm2, %v27912_v25  ;;  %v29673_v25 = vld [vmem:[#allocation35_spill] sm:$0xff] }
 0x9b0   :  { %21013 = vmatprep.mubr.msk.f32.mxu1 %vm8561_vm2, %v27916_v27  ;;  %v29674_v27 = vld [vmem:[#allocation36_spill] sm:$0xff] }
 0x9b3   :  { %21014 = vmatmul.mubr.msk.f32.gmra.mrb[178].mxu1 %vm8561_vm2, %v27920_v16  ;;  %v29675_v16 = vld [vmem:[#allocation37_spill] sm:$0xff] }
 0x9b4   :  { %21016 = vmatprep.mubr.msk.f32.mxu1 %vm8561_vm2, %v27924_v31  ;;  %v29676_v31 = vld [vmem:[#allocation38_spill] sm:$0xff] }
 0x9b7   :  { %21017 = vmatmul.mubr.msk.f32.gmra.mrb[180].mxu1 %vm8561_vm2, %v27928_v33  ;;  %v29677_v33 = vld [vmem:[#allocation39_spill] sm:$0xff] }
 0x9b8   :  { %21019 = vmatprep.mubr.msk.f32.mxu1 %vm8561_vm2, %v27932_v37  ;;  %v29678_v37 = vld [vmem:[#allocation40_spill] sm:$0xff] }
 0x9bb   :  { %21020 = vmatmul.mubr.msk.f32.gmra.mrb[182].mxu1 %vm8561_vm2, %v29641_v54  ;;  %v29688_v54 = vld [vmem:[#allocation50_spill] sm:$0xff] }
 0x9bc   :  { %21022 = vmatprep.mubr.msk.f32.mxu1 %vm8561_vm2, %v29642_v58  ;;  %v29689_v58 = vld [vmem:[#allocation51_spill] sm:$0xff] }
 0x9bf   :  { %21023 = vmatmul.mubr.msk.f32.gmra.mrb[184].mxu1 %vm8561_vm2, %v29643_v23  ;;  %v29690_v23 = vld [vmem:[#allocation52_spill] sm:$0xff] }
 0x9c0   :  { %21025 = vmatprep.mubr.msk.f32.mxu1 %vm8561_vm2, %v29644_v29  ;;  %v29691_v29 = vld [vmem:[#allocation53_spill] sm:$0xff] }
 0x9c3   :  { %21026 = vmatmul.mubr.msk.f32.gmra.mrb[186].mxu1 %vm8561_vm2, %v29645_v35  ;;  %v29692_v35 = vld [vmem:[#allocation54_spill] sm:$0xff] }
 0x9c4   :  { %21028 = vmatprep.mubr.msk.f32.mxu1 %vm8561_vm2, %v29646_v28  ;;  %v29693_v28 = vld [vmem:[#allocation55_spill] sm:$0xff] }
 0x9c7   :  { %21029 = vmatmul.mubr.msk.f32.gmra.mrb[188].mxu1 %vm8561_vm2, %v29647_v41  ;;  %v29694_v41 = vld [vmem:[#allocation56_spill] sm:$0xff] }
 0x9c8   :  { %21031 = vmatprep.mubr.msk.f32.mxu1 %vm8561_vm2, %v29648_v43  ;;  %v29695_v43 = vld [vmem:[#allocation57_spill] sm:$0xff] }
 0x9cb   :  { %21032 = vmatmul.mubr.msk.f32.gmra.mrb[190].mxu1 %vm8561_vm2, %v29649_v62  ;;  %v29696_v62 = vld [vmem:[#allocation58_spill] sm:$0xff] }
 0x9cc   :  { %21034 = vmatprep.mubr.msk.f32.mxu1 %vm8561_vm2, %v29650_v1  ;;  %v29697_v1 = vld [vmem:[#allocation59_spill] sm:$0xff] }
 0x9cf   :  { %21035 = vmatmul.mubr.msk.f32.gmra.mrb[192].mxu1 %vm8561_vm2, %v29651_v3  ;;  %v29698_v3 = vld [vmem:[#allocation60_spill] sm:$0xff] }
 0x9d0   :  { %21037 = vmatprep.mubr.msk.f32.mxu1 %vm8561_vm2, %v29652_v5  ;;  %v29699_v5 = vld [vmem:[#allocation61_spill] sm:$0xff] }
 0x9d3   :  { %21038 = vmatmul.mubr.msk.f32.gmra.mrb[194].mxu1 %vm8561_vm2, %v29653_v7  ;;  %v29700_v7 = vld [vmem:[#allocation62_spill] sm:$0xff] }
 0x9d4   :  { %21040 = vmatprep.mubr.msk.f32.mxu1 %vm8561_vm2, %v29654_v44  ;;  %v29701_v44 = vld [vmem:[#allocation63_spill] sm:$0xff] }
 0x9d7   :  { %21041 = vmatmul.mubr.msk.f32.gmra.mrb[196].mxu1 %vm8561_vm2, %v29655_v47  ;;  %v29702_v47 = vld [vmem:[#allocation64_spill] sm:$0xff] }
 0x9d8   :  { %21043 = vmatprep.mubr.msk.f32.mxu1 %vm8561_vm2, %v29656_v49  ;;  %v29703_v49 = vld [vmem:[#allocation65_spill] sm:$0xff] }
 0x9db   :  { %21044 = vmatmul.mubr.msk.f32.gmra.mrb[198].mxu1 %vm8561_vm2, %v29657_v51  ;;  %v29704_v51 = vld [vmem:[#allocation66_spill] sm:$0xff] }
 0x9dc   :  { %21046 = vmatprep.mubr.msk.f32.mxu1 %vm8561_vm2, %v28660_v55 }
 0x9df   :  { %21047 = vmatmul.mubr.msk.f32.gmra.mrb[200].mxu1 %vm8561_vm2, %v28664_v57 }
 0x9e0   :  { %21057 = vmatprep.mubr.msk.f32.mxu1 %vm8561_vm2, %v29658_v18  ;;  %v29707_v18 = vld [vmem:[#allocation69_spill] sm:$0xff] }
 0x9e3   :  { %21058 = vmatmul.mubr.msk.f32.vlgmr.msra.gmra.mrb[138].mxu1 %vm8561_vm2, %v29659_v22  ;;  %v29709_v22 = vld [vmem:[#allocation71_spill] sm:$0xff] }
 0x9e4   :  { %21060 = vmatprep.mubr.msk.f32.mxu1 %vm8561_vm2, %v29660_v63  ;;  %21516 = vmatpush3.bf16.msra.mxu1 %v28539_v6  ;;  %v29687_v6 = vld [vmem:[#allocation49_spill] sm:$0xff]  ;;  %v29712_v63 = vld [vmem:[#allocation74_spill] sm:$0xff] }
 0x9e5   :  { %21518 = vmatprep.subr.bf16.mxu1 %v21517_v20 }
 0x9e7   :  { %21061 = vmatmul.mubr.msk.f32.gmra.mrb[140].mxu1 %vm8561_vm2, %v29661_v4  ;;  %v29713_v4 = vld [vmem:[#allocation75_spill] sm:$0xff] }
 0x9e8   :  { %21063 = vmatprep.mubr.msk.f32.mxu1 %vm8561_vm2, %v29662_v8  ;;  %21520 = vmatpush3.bf16.msra.mxu1 %v21517_v20  ;;  %v29708_v20 = vld [vmem:[#allocation70_spill] sm:$0xff]  ;;  %v29714_v8 = vld [vmem:[#allocation76_spill] sm:$0xff] }
 0x9e9   :  { %21522 = vmatprep.subr.bf16.mxu1 %v28687_v2 }
 0x9eb   :  { %21064 = vmatmul.mubr.msk.f32.gmra.mrb[142].mxu1 %vm8561_vm2, %v29663_v10  ;;  %v29715_v10 = vld [vmem:[#allocation77_spill] sm:$0xff] }
 0x9ec   :  { %21066 = vmatprep.mubr.msk.f32.mxu1 %vm8561_vm2, %v29664_v48  ;;  %v29716_v48 = vld [vmem:[#allocation78_spill] sm:$0xff] }
 0x9ef   :  { %21067 = vmatmul.mubr.msk.f32.gmra.mrb[144].mxu1 %vm8561_vm2, %v29665_v50  ;;  %v29717_v50 = vld [vmem:[#allocation79_spill] sm:$0xff] }
 0x9f0   :  { %21069 = vmatprep.mubr.msk.f32.mxu1 %vm8561_vm2, %v29666_v52  ;;  %v29718_v52 = vld [vmem:[#allocation80_spill] sm:$0xff] }
 0x9f3   :  { %21070 = vmatmul.mubr.msk.f32.gmra.mrb[146].mxu1 %vm8561_vm2, %v29667_v0  ;;  %v28808_v0 = vld [vmem:[#allocation2 + $0x202] sm:$0xff] }
 0x9f4   :  { %21072 = vmatprep.mubr.msk.f32.mxu1 %vm8561_vm2, %v29668_v56  ;;  %v28812_v56 = vld [vmem:[#allocation2 + $0x20a] sm:$0xff] }
 0x9f7   :  { %21073 = vmatmul.mubr.msk.f32.gmra.mrb[148].mxu1 %vm8561_vm2, %v29669_v59  ;;  %v17272_v59 = vld [vmem:[%s29388_s3 + $0xf0] sm:$0xff] }
 0x9f8   :  { %21075 = vmatprep.mubr.msk.f32.mxu1 %vm8561_vm2, %v29670_v13  ;;  %v17273_v13 = vld [vmem:[%s29388_s3 + $0xf8] sm:$0xff] }
 0x9fb   :  { %21076 = vmatmul.mubr.msk.f32.gmra.mrb[150].mxu1 %vm8561_vm2, %v29671_v19  ;;  %v17338_v19 = vld [vmem:[%s29388_s3 + $0x100] sm:$0xff] }
 0x9fc   :  { %21078 = vmatprep.mubr.msk.f32.mxu1 %vm8561_vm2, %v29672_v21  ;;  %v17339_v21 = vld [vmem:[%s29388_s3 + $0x108] sm:$0xff] }
 0x9ff   :  { %21079 = vmatmul.mubr.msk.f32.gmra.mrb[152].mxu1 %vm8561_vm2, %v29673_v25  ;;  %v28835_v25 = vpack.c.bf16 %v17339_v21, %v17338_v19  ;;  %v17341_v19 = vld [vmem:[%s29388_s3 + $0x118] sm:$0xff]  ;;  %v14359_v21 = vld [vmem:[#allocation2 + $0x21] sm:$0xff] }
 0xa00   :  { %21081 = vmatprep.mubr.msk.f32.mxu1 %vm8561_vm2, %v29674_v27  ;;  %v29721_v27 = vld [vmem:[#allocation83_spill] sm:$0xff] }
 0xa03   :  { %21082 = vmatmul.mubr.msk.f32.gmra.mrb[154].mxu1 %vm8561_vm2, %v29675_v16  ;;  %v29722_v16 = vld [vmem:[#allocation84_spill] sm:$0xff] }
 0xa04   :  { %21084 = vmatprep.mubr.msk.f32.mxu1 %vm8561_vm2, %v29676_v31  ;;  %v29725_v31 = vld [vmem:[#allocation87_spill] sm:$0xff] }
 0xa07   :  { %21085 = vmatmul.mubr.msk.f32.gmra.mrb[156].mxu1 %vm8561_vm2, %v29677_v33  ;;  %v29726_v33 = vld [vmem:[#allocation88_spill] sm:$0xff] }
 0xa08   :  { %21087 = vmatprep.mubr.msk.f32.mxu1 %vm8561_vm2, %v29678_v37  ;;  %v29727_v37 = vld [vmem:[#allocation89_spill] sm:$0xff] }
 0xa0b   :  { %21088 = vmatmul.mubr.msk.f32.gmra.mrb[158].mxu1 %vm8561_vm2, %v29679_v32  ;;  %v29728_v32 = vld [vmem:[#allocation90_spill] sm:$0xff] }
 0xa0c   :  { %21090 = vmatprep.mubr.msk.f32.mxu1 %vm8561_vm2, %v29680_v30  ;;  %v29729_v30 = vld [vmem:[#allocation91_spill] sm:$0xff] }
 0xa0f   :  { %21091 = vmatmul.mubr.msk.f32.gmra.mrb[160].mxu1 %vm8561_vm2, %v29681_v38  ;;  %v29730_v38 = vld [vmem:[#allocation92_spill] sm:$0xff] }
 0xa10   :  { %21093 = vmatprep.mubr.msk.f32.mxu1 %vm8561_vm2, %v29682_v24  ;;  %v29731_v24 = vld [vmem:[#allocation93_spill] sm:$0xff] }
 0xa13   :  { %21094 = vmatmul.mubr.msk.f32.gmra.mrb[162].mxu1 %vm8561_vm2, %v29683_v9  ;;  %v29732_v9 = vld [vmem:[#allocation94_spill] sm:$0xff] }
 0xa14   :  { %21096 = vmatprep.mubr.msk.f32.mxu1 %vm8561_vm2, %v29684_v53  ;;  %v29733_v53 = vld [vmem:[#allocation95_spill] sm:$0xff] }
 0xa17   :  { %21097 = vmatmul.mubr.msk.f32.gmra.mrb[164].mxu1 %vm8561_vm2, %v29685_v14  ;;  %v29734_v14 = vld [vmem:[#allocation96_spill] sm:$0xff] }
 0xa18   :  { %21099 = vmatprep.mubr.msk.f32.mxu1 %vm8561_vm2, %v29686_v45  ;;  %v29735_v45 = vld [vmem:[#allocation97_spill] sm:$0xff] }
 0xa1b   :  { %21100 = vmatmul.mubr.msk.f32.gmra.mrb[166].mxu1 %vm8561_vm2, %v29687_v6  ;;  %v29736_v6 = vld [vmem:[#allocation98_spill] sm:$0xff] }
 0xa1c   :  { %21102 = vmatprep.mubr.msk.f32.mxu1 %vm8561_vm2, %v29688_v54  ;;  %v29737_v54 = vld [vmem:[#allocation99_spill] sm:$0xff] }
 0xa1f   :  { %21103 = vmatmul.mubr.msk.f32.gmra.mrb[168].mxu1 %vm8561_vm2, %v29689_v58  ;;  %v29738_v58 = vld [vmem:[#allocation100_spill] sm:$0xff] }
 0xa20   :  { %21105 = vmatprep.mubr.msk.f32.mxu1 %vm8561_vm2, %v29690_v23  ;;  %v29739_v23 = vld [vmem:[#allocation101_spill] sm:$0xff] }
 0xa23   :  { %21106 = vmatmul.mubr.msk.f32.gmra.mrb[170].mxu1 %vm8561_vm2, %v29691_v29  ;;  %v29740_v29 = vld [vmem:[#allocation102_spill] sm:$0xff] }
 0xa24   :  { %21108 = vmatprep.mubr.msk.f32.mxu1 %vm8561_vm2, %v29692_v35  ;;  %v29741_v35 = vld [vmem:[#allocation103_spill] sm:$0xff] }
 0xa27   :  { %21109 = vmatmul.mubr.msk.f32.gmra.mrb[172].mxu1 %vm8561_vm2, %v29693_v28  ;;  %v29742_v28 = vld [vmem:[#allocation104_spill] sm:$0xff] }
 0xa28   :  { %21111 = vmatprep.mubr.msk.f32.mxu1 %vm8561_vm2, %v29694_v41  ;;  %v29743_v41 = vld [vmem:[#allocation105_spill] sm:$0xff] }
 0xa2b   :  { %21112 = vmatmul.mubr.msk.f32.gmra.mrb[174].mxu1 %vm8561_vm2, %v29695_v43  ;;  %v29744_v43 = vld [vmem:[#allocation106_spill] sm:$0xff] }
 0xa2c   :  { %21114 = vmatprep.mubr.msk.f32.mxu1 %vm8561_vm2, %v29696_v62  ;;  %v29745_v62 = vld [vmem:[#allocation107_spill] sm:$0xff] }
 0xa2f   :  { %21115 = vmatmul.mubr.msk.f32.gmra.mrb[176].mxu1 %vm8561_vm2, %v29697_v1  ;;  %v29746_v1 = vld [vmem:[#allocation108_spill] sm:$0xff] }
 0xa30   :  { %21117 = vmatprep.mubr.msk.f32.mxu1 %vm8561_vm2, %v29698_v3  ;;  %v29747_v3 = vld [vmem:[#allocation109_spill] sm:$0xff] }
 0xa33   :  { %21118 = vmatmul.mubr.msk.f32.gmra.mrb[178].mxu1 %vm8561_vm2, %v29699_v5  ;;  %v29748_v5 = vld [vmem:[#allocation110_spill] sm:$0xff] }
 0xa34   :  { %21120 = vmatprep.mubr.msk.f32.mxu1 %vm8561_vm2, %v29700_v7  ;;  %v29749_v7 = vld [vmem:[#allocation111_spill] sm:$0xff] }
 0xa37   :  { %21121 = vmatmul.mubr.msk.f32.gmra.mrb[180].mxu1 %vm8561_vm2, %v29701_v44  ;;  %v29750_v44 = vld [vmem:[#allocation112_spill] sm:$0xff] }
 0xa38   :  { %21123 = vmatprep.mubr.msk.f32.mxu1 %vm8561_vm2, %v29702_v47  ;;  %v29751_v47 = vld [vmem:[#allocation113_spill] sm:$0xff] }
 0xa3b   :  { %21124 = vmatmul.mubr.msk.f32.gmra.mrb[182].mxu1 %vm8561_vm2, %v29703_v49  ;;  %v29752_v49 = vld [vmem:[#allocation114_spill] sm:$0xff] }
 0xa3c   :  { %21126 = vmatprep.mubr.msk.f32.mxu1 %vm8561_vm2, %v29704_v51  ;;  %v29753_v51 = vld [vmem:[#allocation115_spill] sm:$0xff] }
 0xa3f   :  { %21127 = vmatmul.mubr.msk.f32.gmra.mrb[184].mxu1 %vm8561_vm2, %v29705_v11  ;;  %v29754_v11 = vld [vmem:[#allocation116_spill] sm:$0xff] }
 0xa40   :  { %21129 = vmatprep.mubr.msk.f32.mxu1 %vm8561_vm2, %v29706_v12  ;;  %v29755_v12 = vld [vmem:[#allocation117_spill] sm:$0xff] }
 0xa43   :  { %21130 = vmatmul.mubr.msk.f32.gmra.mrb[186].mxu1 %vm8561_vm2, %v29707_v18  ;;  %v29756_v18 = vld [vmem:[#allocation118_spill] sm:$0xff] }
 0xa44   :  { %21132 = vmatprep.mubr.msk.f32.mxu1 %vm8561_vm2, %v29708_v20  ;;  %v29757_v20 = vld [vmem:[#allocation119_spill] sm:$0xff] }
 0xa47   :  { %21133 = vmatmul.mubr.msk.f32.gmra.mrb[188].mxu1 %vm8561_vm2, %v29709_v22  ;;  %v29758_v22 = vld [vmem:[#allocation120_spill] sm:$0xff] }
 0xa48   :  { %21135 = vmatprep.mubr.msk.f32.mxu1 %vm8561_vm2, %v29710_v42  ;;  %v29759_v42 = vld [vmem:[#allocation121_spill] sm:$0xff] }
 0xa4b   :  { %21136 = vmatmul.mubr.msk.f32.gmra.mrb[190].mxu1 %vm8561_vm2, %v29711_v61  ;;  %v29760_v61 = vld [vmem:[#allocation122_spill] sm:$0xff] }
 0xa4c   :  { %21138 = vmatprep.mubr.msk.f32.mxu1 %vm8561_vm2, %v29712_v63  ;;  %v29761_v63 = vld [vmem:[#allocation123_spill] sm:$0xff] }
 0xa4f   :  { %21139 = vmatmul.mubr.msk.f32.gmra.mrb[192].mxu1 %vm8561_vm2, %v29713_v4  ;;  %v29762_v4 = vld [vmem:[#allocation124_spill] sm:$0xff] }
 0xa50   :  { %21141 = vmatprep.mubr.msk.f32.mxu1 %vm8561_vm2, %v29714_v8  ;;  %v29763_v8 = vld [vmem:[#allocation125_spill] sm:$0xff] }
 0xa53   :  { %21142 = vmatmul.mubr.msk.f32.gmra.mrb[194].mxu1 %vm8561_vm2, %v29715_v10  ;;  %v13574_v10 = vld [vmem:[#allocation2 + $0x1c8] sm:$0xff] }
 0xa54   :  { %21144 = vmatprep.mubr.msk.f32.mxu1 %vm8561_vm2, %v29716_v48  ;;  %v13575_v48 = vld [vmem:[#allocation2 + $0x1d0] sm:$0xff] }
 0xa57   :  { %21145 = vmatmul.mubr.msk.f32.gmra.mrb[196].mxu1 %vm8561_vm2, %v29717_v50  ;;  %v13576_v50 = vld [vmem:[#allocation2 + $0x1d8] sm:$0xff] }
 0xa58   :  { %21147 = vmatprep.mubr.msk.f32.mxu1 %vm8561_vm2, %v29718_v52  ;;  %v13582_v52 = vld [vmem:[#allocation2 + $0x208] sm:$0xff] }
 0xa5b   :  { %21148 = vmatmul.mubr.msk.f32.gmra.mrb[198].mxu1 %vm8561_vm2, %v28266_v39  ;;  %v21525_v39 = vpack.c.bf16 %v17273_v13, %v17272_v59  ;;  %v13583_v59 = vld [vmem:[#allocation2 + $0x210] sm:$0xff]  ;;  %v13584_v13 = vld [vmem:[#allocation2 + $0x218] sm:$0xff] }
 0xa5c   :  { %21150 = vmatprep.mubr.msk.f32.mxu1 %vm8561_vm2, %v28808_v0 }
 0xa5f   :  { %21151 = vmatmul.mubr.msk.f32.gmra.mrb[200].mxu1 %vm8561_vm2, %v28812_v56 }
 0xa60   :  { %21161 = vmatprep.mubr.msk.f32.mxu1 %vm8561_vm2, %v28278_v26  ;;  %v29719_v26 = vld [vmem:[#allocation81_spill] sm:$0xff] }
 0xa63   :  { %21162 = vmatmul.mubr.msk.f32.vlgmr.msra.gmra.mrb[138].mxu1 %vm8561_vm2, %v28291_v34  ;;  %v29720_v34 = vld [vmem:[#allocation82_spill] sm:$0xff] }
 0xa64   :  { %21164 = vmatprep.mubr.msk.f32.mxu1 %vm8561_vm2, %v28295_v15  ;;  %21524 = vmatpush3.bf16.msra.mxu1 %v28687_v2  ;;  %v29723_v15 = vld [vmem:[#allocation85_spill] sm:$0xff]  ;;  %v29724_v2 = vld [vmem:[#allocation86_spill] sm:$0xff] }
 0xa65   :  { %21526 = vmatprep.subr.bf16.mxu1 %v21525_v39 }
 0xa67   :  { %21165 = vmatmul.mubr.msk.f32.gmra.mrb[140].mxu1 %vm8561_vm2, %v29719_v26 }
 0xa68   :  { %21167 = vmatprep.mubr.msk.f32.mxu1 %vm8561_vm2, %v29720_v34  ;;  %21528 = vmatpush3.bf16.msra.mxu1 %v21525_v39  ;;  %v17340_v39 = vld [vmem:[%s29388_s3 + $0x110] sm:$0xff] }
 0xa69   :  { %21530 = vmatprep.subr.bf16.mxu1 %v28835_v25  ;;  %v21533_v26 = vpack.c.bf16 %v17341_v19, %v17340_v39  ;;  %v14360_v34 = vld [vmem:[#allocation2 + $0x29] sm:$0xff]  ;;  %v14417_v19 = vld [vmem:[#allocation2 + $0x1f1] sm:$0xff] }
 0xa6a   :  { %v14416_v39 = vld [vmem:[#allocation2 + $0x1e9] sm:$0xff] }
 0xa6b   :  { %21168 = vmatmul.mubr.msk.f32.gmra.mrb[142].mxu1 %vm8561_vm2, %v29721_v27  ;;  %v14361_v27 = vld [vmem:[#allocation2 + $0x31] sm:$0xff] }
 0xa6c   :  { %21170 = vmatprep.mubr.msk.f32.mxu1 %vm8561_vm2, %v29722_v16  ;;  %v14362_v16 = vld [vmem:[#allocation2 + $0x39] sm:$0xff] }
 0xa6f   :  { %21171 = vmatmul.mubr.msk.f32.gmra.mrb[144].mxu1 %vm8561_vm2, %v29723_v15  ;;  %v14363_v15 = vld [vmem:[#allocation2 + $0x41] sm:$0xff] }
 0xa70   :  { %21173 = vmatprep.mubr.msk.f32.mxu1 %vm8561_vm2, %v29724_v2  ;;  %v14364_v2 = vld [vmem:[#allocation2 + $0x49] sm:$0xff] }
 0xa73   :  { %21174 = vmatmul.mubr.msk.f32.gmra.mrb[146].mxu1 %vm8561_vm2, %v29725_v31  ;;  %v14365_v31 = vld [vmem:[#allocation2 + $0x51] sm:$0xff] }
 0xa74   :  { %21176 = vmatprep.mubr.msk.f32.mxu1 %vm8561_vm2, %v29726_v33  ;;  %v14366_v33 = vld [vmem:[#allocation2 + $0x59] sm:$0xff] }
 0xa77   :  { %21177 = vmatmul.mubr.msk.f32.gmra.mrb[148].mxu1 %vm8561_vm2, %v29727_v37  ;;  %v14367_v37 = vld [vmem:[#allocation2 + $0x61] sm:$0xff] }
 0xa78   :  { %21179 = vmatprep.mubr.msk.f32.mxu1 %vm8561_vm2, %v29728_v32  ;;  %v14369_v32 = vld [vmem:[#allocation2 + $0x71] sm:$0xff] }
 0xa7b   :  { %21180 = vmatmul.mubr.msk.f32.gmra.mrb[150].mxu1 %vm8561_vm2, %v29729_v30  ;;  %v14370_v30 = vld [vmem:[#allocation2 + $0x79] sm:$0xff] }
 0xa7c   :  { %21182 = vmatprep.mubr.msk.f32.mxu1 %vm8561_vm2, %v29730_v38  ;;  %v14371_v38 = vld [vmem:[#allocation2 + $0x81] sm:$0xff] }
 0xa7f   :  { %21183 = vmatmul.mubr.msk.f32.gmra.mrb[152].mxu1 %vm8561_vm2, %v29731_v24  ;;  %v14372_v24 = vld [vmem:[#allocation2 + $0x89] sm:$0xff] }
 0xa80   :  { %21185 = vmatprep.mubr.msk.f32.mxu1 %vm8561_vm2, %v29732_v9  ;;  %v14373_v9 = vld [vmem:[#allocation2 + $0x91] sm:$0xff] }
 0xa83   :  { %21186 = vmatmul.mubr.msk.f32.gmra.mrb[154].mxu1 %vm8561_vm2, %v29733_v53  ;;  %v14374_v53 = vld [vmem:[#allocation2 + $0x99] sm:$0xff] }
 0xa84   :  { %21188 = vmatprep.mubr.msk.f32.mxu1 %vm8561_vm2, %v29734_v14  ;;  %v14375_v14 = vld [vmem:[#allocation2 + $0xa1] sm:$0xff] }
 0xa87   :  { %21189 = vmatmul.mubr.msk.f32.gmra.mrb[156].mxu1 %vm8561_vm2, %v29735_v45  ;;  %v14376_v45 = vld [vmem:[#allocation2 + $0xa9] sm:$0xff] }
 0xa88   :  { %21191 = vmatprep.mubr.msk.f32.mxu1 %vm8561_vm2, %v29736_v6  ;;  %v14377_v6 = vld [vmem:[#allocation2 + $0xb1] sm:$0xff] }
 0xa8b   :  { %21192 = vmatmul.mubr.msk.f32.gmra.mrb[158].mxu1 %vm8561_vm2, %v29737_v54  ;;  %v14378_v54 = vld [vmem:[#allocation2 + $0xb9] sm:$0xff] }
 0xa8c   :  { %21194 = vmatprep.mubr.msk.f32.mxu1 %vm8561_vm2, %v29738_v58  ;;  %v14379_v58 = vld [vmem:[#allocation2 + $0xc1] sm:$0xff] }
 0xa8f   :  { %21195 = vmatmul.mubr.msk.f32.gmra.mrb[160].mxu1 %vm8561_vm2, %v29739_v23  ;;  %v14380_v23 = vld [vmem:[#allocation2 + $0xc9] sm:$0xff] }
 0xa90   :  { %21197 = vmatprep.mubr.msk.f32.mxu1 %vm8561_vm2, %v29740_v29  ;;  %v14381_v29 = vld [vmem:[#allocation2 + $0xd1] sm:$0xff] }
 0xa93   :  { %21198 = vmatmul.mubr.msk.f32.gmra.mrb[162].mxu1 %vm8561_vm2, %v29741_v35  ;;  %v14382_v35 = vld [vmem:[#allocation2 + $0xd9] sm:$0xff] }
 0xa94   :  { %21200 = vmatprep.mubr.msk.f32.mxu1 %vm8561_vm2, %v29742_v28  ;;  %v14383_v28 = vld [vmem:[#allocation2 + $0xe1] sm:$0xff] }
 0xa97   :  { %21201 = vmatmul.mubr.msk.f32.gmra.mrb[164].mxu1 %vm8561_vm2, %v29743_v41  ;;  %v14384_v41 = vld [vmem:[#allocation2 + $0xe9] sm:$0xff] }
 0xa98   :  { %21203 = vmatprep.mubr.msk.f32.mxu1 %vm8561_vm2, %v29744_v43  ;;  %v14385_v43 = vld [vmem:[#allocation2 + $0xf1] sm:$0xff] }
 0xa9b   :  { %21204 = vmatmul.mubr.msk.f32.gmra.mrb[166].mxu1 %vm8561_vm2, %v29745_v62  ;;  %v14386_v62 = vld [vmem:[#allocation2 + $0xf9] sm:$0xff] }
 0xa9c   :  { %21206 = vmatprep.mubr.msk.f32.mxu1 %vm8561_vm2, %v29746_v1  ;;  %v14387_v1 = vld [vmem:[#allocation2 + $0x101] sm:$0xff] }
 0xa9f   :  { %21207 = vmatmul.mubr.msk.f32.gmra.mrb[168].mxu1 %vm8561_vm2, %v29747_v3  ;;  %v14388_v3 = vld [vmem:[#allocation2 + $0x109] sm:$0xff] }
 0xaa0   :  { %21209 = vmatprep.mubr.msk.f32.mxu1 %vm8561_vm2, %v29748_v5  ;;  %v14389_v5 = vld [vmem:[#allocation2 + $0x111] sm:$0xff] }
 0xaa3   :  { %21210 = vmatmul.mubr.msk.f32.gmra.mrb[170].mxu1 %vm8561_vm2, %v29749_v7  ;;  %v14390_v7 = vld [vmem:[#allocation2 + $0x119] sm:$0xff] }
 0xaa4   :  { %21212 = vmatprep.mubr.msk.f32.mxu1 %vm8561_vm2, %v29750_v44  ;;  %v14391_v44 = vld [vmem:[#allocation2 + $0x121] sm:$0xff] }
 0xaa7   :  { %21213 = vmatmul.mubr.msk.f32.gmra.mrb[172].mxu1 %vm8561_vm2, %v29751_v47  ;;  %v14392_v47 = vld [vmem:[#allocation2 + $0x129] sm:$0xff] }
 0xaa8   :  { %21215 = vmatprep.mubr.msk.f32.mxu1 %vm8561_vm2, %v29752_v49  ;;  %v14393_v49 = vld [vmem:[#allocation2 + $0x131] sm:$0xff] }
 0xaab   :  { %21216 = vmatmul.mubr.msk.f32.gmra.mrb[174].mxu1 %vm8561_vm2, %v29753_v51  ;;  %v14394_v51 = vld [vmem:[#allocation2 + $0x139] sm:$0xff] }
 0xaac   :  { %21218 = vmatprep.mubr.msk.f32.mxu1 %vm8561_vm2, %v29754_v11  ;;  %v14395_v11 = vld [vmem:[#allocation2 + $0x141] sm:$0xff] }
 0xaaf   :  { %21219 = vmatmul.mubr.msk.f32.gmra.mrb[176].mxu1 %vm8561_vm2, %v29755_v12  ;;  %v14396_v12 = vld [vmem:[#allocation2 + $0x149] sm:$0xff] }
 0xab0   :  { %21221 = vmatprep.mubr.msk.f32.mxu1 %vm8561_vm2, %v29756_v18  ;;  %v14397_v18 = vld [vmem:[#allocation2 + $0x151] sm:$0xff] }
 0xab3   :  { %21222 = vmatmul.mubr.msk.f32.gmra.mrb[178].mxu1 %vm8561_vm2, %v29757_v20  ;;  %v14398_v20 = vld [vmem:[#allocation2 + $0x159] sm:$0xff] }
 0xab4   :  { %21224 = vmatprep.mubr.msk.f32.mxu1 %vm8561_vm2, %v29758_v22  ;;  %v14399_v22 = vld [vmem:[#allocation2 + $0x161] sm:$0xff] }
 0xab7   :  { %21225 = vmatmul.mubr.msk.f32.gmra.mrb[180].mxu1 %vm8561_vm2, %v29759_v42  ;;  %v14400_v42 = vld [vmem:[#allocation2 + $0x169] sm:$0xff] }
 0xab8   :  { %21227 = vmatprep.mubr.msk.f32.mxu1 %vm8561_vm2, %v29760_v61  ;;  %v14401_v61 = vld [vmem:[#allocation2 + $0x171] sm:$0xff] }
 0xabb   :  { %21228 = vmatmul.mubr.msk.f32.gmra.mrb[182].mxu1 %vm8561_vm2, %v29761_v63  ;;  %v14402_v63 = vld [vmem:[#allocation2 + $0x179] sm:$0xff] }
 0xabc   :  { %21230 = vmatprep.mubr.msk.f32.mxu1 %vm8561_vm2, %v29762_v4  ;;  %v14403_v4 = vld [vmem:[#allocation2 + $0x181] sm:$0xff] }
 0xabf   :  { %21231 = vmatmul.mubr.msk.f32.gmra.mrb[184].mxu1 %vm8561_vm2, %v29763_v8  ;;  %v14404_v8 = vld [vmem:[#allocation2 + $0x189] sm:$0xff] }
 0xac0   :  { %21233 = vmatprep.mubr.msk.f32.mxu1 %vm8561_vm2, %v28480_v36  ;;  %v13577_v36 = vld [vmem:[#allocation2 + $0x1e0] sm:$0xff] }
 0xac3   :  { %21234 = vmatmul.mubr.msk.f32.gmra.mrb[186].mxu1 %vm8561_vm2, %v28484_v40  ;;  %v13578_v40 = vld [vmem:[#allocation2 + $0x1e8] sm:$0xff] }
 0xac4   :  { %21236 = vmatprep.mubr.msk.f32.mxu1 %vm8561_vm2, %v28488_v60  ;;  %v13579_v60 = vld [vmem:[#allocation2 + $0x1f0] sm:$0xff] }
 0xac7   :  { %21237 = vmatmul.mubr.msk.f32.gmra.mrb[188].mxu1 %vm8561_vm2, %v28492_v46  ;;  %v13580_v46 = vld [vmem:[#allocation2 + $0x1f8] sm:$0xff] }
 0xac8   :  { %21239 = vmatprep.mubr.msk.f32.mxu1 %vm8561_vm2, %v28496_v17  ;;  %v13581_v17 = vld [vmem:[#allocation2 + $0x200] sm:$0xff] }
 0xacb   :  { %21240 = vmatmul.mubr.msk.f32.gmra.mrb[190].mxu1 %vm8561_vm2, %v13574_v10  ;;  %v14405_v10 = vld [vmem:[#allocation2 + $0x191] sm:$0xff] }
 0xacc   :  { %21242 = vmatprep.mubr.msk.f32.mxu1 %vm8561_vm2, %v13575_v48  ;;  %v14406_v48 = vld [vmem:[#allocation2 + $0x199] sm:$0xff] }
 0xacf   :  { %21243 = vmatmul.mubr.msk.f32.gmra.mrb[192].mxu1 %vm8561_vm2, %v13576_v50  ;;  %v14407_v50 = vld [vmem:[#allocation2 + $0x1a1] sm:$0xff] }
 0xad0   :  { %21245 = vmatprep.mubr.msk.f32.mxu1 %vm8561_vm2, %v13577_v36  ;;  %v14408_v36 = vld [vmem:[#allocation2 + $0x1a9] sm:$0xff] }
 0xad3   :  { %21246 = vmatmul.mubr.msk.f32.gmra.mrb[194].mxu1 %vm8561_vm2, %v13578_v40  ;;  %v14409_v40 = vld [vmem:[#allocation2 + $0x1b1] sm:$0xff] }
 0xad4   :  { %21248 = vmatprep.mubr.msk.f32.mxu1 %vm8561_vm2, %v13579_v60  ;;  %v14410_v60 = vld [vmem:[#allocation2 + $0x1b9] sm:$0xff] }
 0xad7   :  { %21249 = vmatmul.mubr.msk.f32.gmra.mrb[196].mxu1 %vm8561_vm2, %v13580_v46  ;;  %v14411_v46 = vld [vmem:[#allocation2 + $0x1c1] sm:$0xff] }
 0xad8   :  { %21251 = vmatprep.mubr.msk.f32.mxu1 %vm8561_vm2, %v13581_v17  ;;  %v14412_v17 = vld [vmem:[#allocation2 + $0x1c9] sm:$0xff] }
 0xadb   :  { %21252 = vmatmul.mubr.msk.f32.gmra.mrb[198].mxu1 %vm8561_vm2, %v13582_v52  ;;  %v14413_v52 = vld [vmem:[#allocation2 + $0x1d1] sm:$0xff] }
 0xadc   :  { %21254 = vmatprep.mubr.msk.f32.mxu1 %vm8561_vm2, %v13583_v59  ;;  %v14414_v59 = vld [vmem:[#allocation2 + $0x1d9] sm:$0xff] }
 0xadf   :  { %21255 = vmatmul.mubr.msk.f32.gmra.mrb[200].mxu1 %vm8561_vm2, %v13584_v13  ;;  %v14415_v13 = vld [vmem:[#allocation2 + $0x1e1] sm:$0xff] }
 0xae0   :  { %21265 = vmatprep.mubr.msk.f32.mxu1 %vm8561_vm2, %v14359_v21  ;;  %v14418_v21 = vld [vmem:[#allocation2 + $0x1f9] sm:$0xff] }
 0xae3   :  { %21266 = vmatmul.mubr.msk.f32.vlgmr.msra.gmra.mrb[138].mxu1 %vm8561_vm2, %v14360_v34  ;;  %v14422_v34 = vld [vmem:[#allocation2 + $0x219] sm:$0xff] }
 0xae4   :  { %21268 = vmatprep.mubr.msk.f32.mxu1 %vm8561_vm2, %v14361_v27  ;;  %21532 = vmatpush3.bf16.msra.mxu1 %v28835_v25  ;;  %v14368_v25 = vld [vmem:[#allocation2 + $0x69] sm:$0xff] }
 0xae5   :  { %21534 = vmatprep.subr.bf16.mxu1 %v21533_v26  ;;  %v15197_v27 = vld [vmem:[#allocation2 + $0x22] sm:$0xff] }
 0xae7   :  { %21269 = vmatmul.mubr.msk.f32.gmra.mrb[140].mxu1 %vm8561_vm2, %v14362_v16  ;;  %v29026_v16 = vld [vmem:[%s29389_s4] ss:$0 sm:$0xff] }
 0xae8   :  { %21271 = vmatprep.mubr.msk.f32.mxu1 %vm8561_vm2, %v14363_v15  ;;  %21536 = vmatpush3.bf16.msra.mxu1 %v21533_v26  ;;  %v14421_v26 = vld [vmem:[#allocation2 + $0x211] sm:$0xff]  ;;  %8423 = vst [vmem:[%s29390_s5 + $0x1d0] sm:$0xff] %v29026_v16  ;;  %8424 = vst [vmem:[%s29390_s5 + $0x1d8] sm:$0xff] %v29026_v16  ;;  %v15200_v15 = vld [vmem:[#allocation2 + $0x3a] sm:$0xff] }
 0xae9   :  { %8425 = vst [vmem:[%s29390_s5 + $0x1e0] sm:$0xff] %v29026_v16  ;;  %8426 = vst [vmem:[%s29390_s5 + $0x1e8] sm:$0xff] %v29026_v16 }
 0xaea   :  { %8427 = vst [vmem:[%s29390_s5 + $0x1f0] sm:$0xff] %v29026_v16  ;;  %8428 = vst [vmem:[%s29390_s5 + $0x1f8] sm:$0xff] %v29026_v16 }
 0xaeb   :  { %21272 = vmatmul.mubr.msk.f32.gmra.mrb[142].mxu1 %vm8561_vm2, %v14364_v2  ;;  %v15201_v2 = vld [vmem:[#allocation2 + $0x42] sm:$0xff] }
 0xaec   :  { %21274 = vmatprep.mubr.msk.f32.mxu1 %vm8561_vm2, %v14365_v31  ;;  %v15202_v31 = vld [vmem:[#allocation2 + $0x4a] sm:$0xff] }
 0xaef   :  { %21275 = vmatmul.mubr.msk.f32.gmra.mrb[144].mxu1 %vm8561_vm2, %v14366_v33  ;;  %v15203_v33 = vld [vmem:[#allocation2 + $0x52] sm:$0xff] }
 0xaf0   :  { %21277 = vmatprep.mubr.msk.f32.mxu1 %vm8561_vm2, %v14367_v37  ;;  %v15204_v37 = vld [vmem:[#allocation2 + $0x5a] sm:$0xff] }
 0xaf3   :  { %21278 = vmatmul.mubr.msk.f32.gmra.mrb[146].mxu1 %vm8561_vm2, %v14368_v25  ;;  %v15205_v25 = vld [vmem:[#allocation2 + $0x62] sm:$0xff] }
 0xaf4   :  { %21280 = vmatprep.mubr.msk.f32.mxu1 %vm8561_vm2, %v14369_v32  ;;  %v15206_v32 = vld [vmem:[#allocation2 + $0x6a] sm:$0xff] }
 0xaf7   :  { %21281 = vmatmul.mubr.msk.f32.gmra.mrb[148].mxu1 %vm8561_vm2, %v14370_v30  ;;  %v15207_v30 = vld [vmem:[#allocation2 + $0x72] sm:$0xff] }
 0xaf8   :  { %21283 = vmatprep.mubr.msk.f32.mxu1 %vm8561_vm2, %v14371_v38  ;;  %v15208_v38 = vld [vmem:[#allocation2 + $0x7a] sm:$0xff] }
 0xafb   :  { %21284 = vmatmul.mubr.msk.f32.gmra.mrb[150].mxu1 %vm8561_vm2, %v14372_v24  ;;  %v15209_v24 = vld [vmem:[#allocation2 + $0x82] sm:$0xff] }
 0xafc   :  { %21286 = vmatprep.mubr.msk.f32.mxu1 %vm8561_vm2, %v14373_v9  ;;  %v15210_v9 = vld [vmem:[#allocation2 + $0x8a] sm:$0xff] }
 0xaff   :  { %21287 = vmatmul.mubr.msk.f32.gmra.mrb[152].mxu1 %vm8561_vm2, %v14374_v53  ;;  %v15211_v53 = vld [vmem:[#allocation2 + $0x92] sm:$0xff] }
 0xb00   :  { %21289 = vmatprep.mubr.msk.f32.mxu1 %vm8561_vm2, %v14375_v14  ;;  %v15212_v14 = vld [vmem:[#allocation2 + $0x9a] sm:$0xff] }
 0xb03   :  { %21290 = vmatmul.mubr.msk.f32.gmra.mrb[154].mxu1 %vm8561_vm2, %v14376_v45  ;;  %v15213_v45 = vld [vmem:[#allocation2 + $0xa2] sm:$0xff] }
 0xb04   :  { %21292 = vmatprep.mubr.msk.f32.mxu1 %vm8561_vm2, %v14377_v6  ;;  %v15214_v6 = vld [vmem:[#allocation2 + $0xaa] sm:$0xff] }
 0xb07   :  { %21293 = vmatmul.mubr.msk.f32.gmra.mrb[156].mxu1 %vm8561_vm2, %v14378_v54  ;;  %v15215_v54 = vld [vmem:[#allocation2 + $0xb2] sm:$0xff] }
 0xb08   :  { %21295 = vmatprep.mubr.msk.f32.mxu1 %vm8561_vm2, %v14379_v58  ;;  %v15216_v58 = vld [vmem:[#allocation2 + $0xba] sm:$0xff] }
 0xb0b   :  { %21296 = vmatmul.mubr.msk.f32.gmra.mrb[158].mxu1 %vm8561_vm2, %v14380_v23  ;;  %v15217_v23 = vld [vmem:[#allocation2 + $0xc2] sm:$0xff] }
 0xb0c   :  { %21298 = vmatprep.mubr.msk.f32.mxu1 %vm8561_vm2, %v14381_v29  ;;  %v15218_v29 = vld [vmem:[#allocation2 + $0xca] sm:$0xff] }
 0xb0f   :  { %21299 = vmatmul.mubr.msk.f32.gmra.mrb[160].mxu1 %vm8561_vm2, %v14382_v35  ;;  %v15219_v35 = vld [vmem:[#allocation2 + $0xd2] sm:$0xff] }
 0xb10   :  { %21301 = vmatprep.mubr.msk.f32.mxu1 %vm8561_vm2, %v14383_v28  ;;  %v15220_v28 = vld [vmem:[#allocation2 + $0xda] sm:$0xff] }
 0xb13   :  { %21302 = vmatmul.mubr.msk.f32.gmra.mrb[162].mxu1 %vm8561_vm2, %v14384_v41  ;;  %v15221_v41 = vld [vmem:[#allocation2 + $0xe2] sm:$0xff] }
 0xb14   :  { %21304 = vmatprep.mubr.msk.f32.mxu1 %vm8561_vm2, %v14385_v43  ;;  %v15222_v43 = vld [vmem:[#allocation2 + $0xea] sm:$0xff] }
 0xb17   :  { %21305 = vmatmul.mubr.msk.f32.gmra.mrb[164].mxu1 %vm8561_vm2, %v14386_v62  ;;  %v15223_v62 = vld [vmem:[#allocation2 + $0xf2] sm:$0xff] }
 0xb18   :  { %21307 = vmatprep.mubr.msk.f32.mxu1 %vm8561_vm2, %v14387_v1  ;;  %v15224_v1 = vld [vmem:[#allocation2 + $0xfa] sm:$0xff] }
 0xb1b   :  { %21308 = vmatmul.mubr.msk.f32.gmra.mrb[166].mxu1 %vm8561_vm2, %v14388_v3  ;;  %v15225_v3 = vld [vmem:[#allocation2 + $0x102] sm:$0xff] }
 0xb1c   :  { %21310 = vmatprep.mubr.msk.f32.mxu1 %vm8561_vm2, %v14389_v5  ;;  %v15226_v5 = vld [vmem:[#allocation2 + $0x10a] sm:$0xff] }
 0xb1f   :  { %21311 = vmatmul.mubr.msk.f32.gmra.mrb[168].mxu1 %vm8561_vm2, %v14390_v7  ;;  %v15227_v7 = vld [vmem:[#allocation2 + $0x112] sm:$0xff] }
 0xb20   :  { %21313 = vmatprep.mubr.msk.f32.mxu1 %vm8561_vm2, %v14391_v44  ;;  %v15228_v44 = vld [vmem:[#allocation2 + $0x11a] sm:$0xff] }
 0xb23   :  { %21314 = vmatmul.mubr.msk.f32.gmra.mrb[170].mxu1 %vm8561_vm2, %v14392_v47  ;;  %v15229_v47 = vld [vmem:[#allocation2 + $0x122] sm:$0xff] }
 0xb24   :  { %21316 = vmatprep.mubr.msk.f32.mxu1 %vm8561_vm2, %v14393_v49  ;;  %v15230_v49 = vld [vmem:[#allocation2 + $0x12a] sm:$0xff] }
 0xb27   :  { %21317 = vmatmul.mubr.msk.f32.gmra.mrb[172].mxu1 %vm8561_vm2, %v14394_v51  ;;  %v15231_v51 = vld [vmem:[#allocation2 + $0x132] sm:$0xff] }
 0xb28   :  { %21319 = vmatprep.mubr.msk.f32.mxu1 %vm8561_vm2, %v14395_v11  ;;  %v15232_v11 = vld [vmem:[#allocation2 + $0x13a] sm:$0xff] }
 0xb2b   :  { %21320 = vmatmul.mubr.msk.f32.gmra.mrb[174].mxu1 %vm8561_vm2, %v14396_v12  ;;  %v15233_v12 = vld [vmem:[#allocation2 + $0x142] sm:$0xff] }
 0xb2c   :  { %21322 = vmatprep.mubr.msk.f32.mxu1 %vm8561_vm2, %v14397_v18  ;;  %v15234_v18 = vld [vmem:[#allocation2 + $0x14a] sm:$0xff] }
 0xb2f   :  { %21323 = vmatmul.mubr.msk.f32.gmra.mrb[176].mxu1 %vm8561_vm2, %v14398_v20  ;;  %v15235_v20 = vld [vmem:[#allocation2 + $0x152] sm:$0xff] }
 0xb30   :  { %21325 = vmatprep.mubr.msk.f32.mxu1 %vm8561_vm2, %v14399_v22  ;;  %v15236_v22 = vld [vmem:[#allocation2 + $0x15a] sm:$0xff] }
 0xb33   :  { %21326 = vmatmul.mubr.msk.f32.gmra.mrb[178].mxu1 %vm8561_vm2, %v14400_v42  ;;  %v15237_v42 = vld [vmem:[#allocation2 + $0x162] sm:$0xff] }
 0xb34   :  { %21328 = vmatprep.mubr.msk.f32.mxu1 %vm8561_vm2, %v14401_v61  ;;  %v15238_v61 = vld [vmem:[#allocation2 + $0x16a] sm:$0xff] }
 0xb37   :  { %21329 = vmatmul.mubr.msk.f32.gmra.mrb[180].mxu1 %vm8561_vm2, %v14402_v63  ;;  %v15239_v63 = vld [vmem:[#allocation2 + $0x172] sm:$0xff] }
 0xb38   :  { %21331 = vmatprep.mubr.msk.f32.mxu1 %vm8561_vm2, %v14403_v4  ;;  %v15240_v4 = vld [vmem:[#allocation2 + $0x17a] sm:$0xff] }
 0xb3b   :  { %21332 = vmatmul.mubr.msk.f32.gmra.mrb[182].mxu1 %vm8561_vm2, %v14404_v8  ;;  %v15241_v8 = vld [vmem:[#allocation2 + $0x182] sm:$0xff] }
 0xb3c   :  { %21334 = vmatprep.mubr.msk.f32.mxu1 %vm8561_vm2, %v14405_v10  ;;  %v15242_v10 = vld [vmem:[#allocation2 + $0x18a] sm:$0xff] }
 0xb3f   :  { %21335 = vmatmul.mubr.msk.f32.gmra.mrb[184].mxu1 %vm8561_vm2, %v14406_v48  ;;  %v15243_v48 = vld [vmem:[#allocation2 + $0x192] sm:$0xff] }
 0xb40   :  { %21337 = vmatprep.mubr.msk.f32.mxu1 %vm8561_vm2, %v14407_v50  ;;  %v15244_v50 = vld [vmem:[#allocation2 + $0x19a] sm:$0xff] }
 0xb43   :  { %21338 = vmatmul.mubr.msk.f32.gmra.mrb[186].mxu1 %vm8561_vm2, %v14408_v36  ;;  %v15245_v36 = vld [vmem:[#allocation2 + $0x1a2] sm:$0xff] }
 0xb44   :  { %21340 = vmatprep.mubr.msk.f32.mxu1 %vm8561_vm2, %v14409_v40  ;;  %v15246_v40 = vld [vmem:[#allocation2 + $0x1aa] sm:$0xff] }
 0xb47   :  { %21341 = vmatmul.mubr.msk.f32.gmra.mrb[188].mxu1 %vm8561_vm2, %v14410_v60  ;;  %v15247_v60 = vld [vmem:[#allocation2 + $0x1b2] sm:$0xff] }
 0xb48   :  { %21343 = vmatprep.mubr.msk.f32.mxu1 %vm8561_vm2, %v14411_v46  ;;  %v15248_v46 = vld [vmem:[#allocation2 + $0x1ba] sm:$0xff] }
 0xb4b   :  { %21344 = vmatmul.mubr.msk.f32.gmra.mrb[190].mxu1 %vm8561_vm2, %v14412_v17  ;;  %v15249_v17 = vld [vmem:[#allocation2 + $0x1c2] sm:$0xff] }
 0xb4c   :  { %21346 = vmatprep.mubr.msk.f32.mxu1 %vm8561_vm2, %v14413_v52  ;;  %v15250_v52 = vld [vmem:[#allocation2 + $0x1ca] sm:$0xff] }
 0xb4f   :  { %21347 = vmatmul.mubr.msk.f32.gmra.mrb[192].mxu1 %vm8561_vm2, %v14414_v59  ;;  %v15251_v59 = vld [vmem:[#allocation2 + $0x1d2] sm:$0xff] }
 0xb50   :  { %21349 = vmatprep.mubr.msk.f32.mxu1 %vm8561_vm2, %v14415_v13  ;;  %v15252_v13 = vld [vmem:[#allocation2 + $0x1da] sm:$0xff] }
 0xb53   :  { %21350 = vmatmul.mubr.msk.f32.gmra.mrb[194].mxu1 %vm8561_vm2, %v14416_v39  ;;  %v15253_v39 = vld [vmem:[#allocation2 + $0x1e2] sm:$0xff] }
 0xb54   :  { %21352 = vmatprep.mubr.msk.f32.mxu1 %vm8561_vm2, %v14417_v19  ;;  %v15254_v19 = vld [vmem:[#allocation2 + $0x1ea] sm:$0xff] }
 0xb57   :  { %21353 = vmatmul.mubr.msk.f32.gmra.mrb[196].mxu1 %vm8561_vm2, %v14418_v21  ;;  %v15255_v21 = vld [vmem:[#allocation2 + $0x1f2] sm:$0xff] }
 0xb58   :  { %21355 = vmatprep.mubr.msk.f32.mxu1 %vm8561_vm2, %v28660_v55  ;;  %v15198_v55 = vld [vmem:[#allocation2 + $0x2a] sm:$0xff] }
 0xb5b   :  { %21356 = vmatmul.mubr.msk.f32.gmra.mrb[198].mxu1 %vm8561_vm2, %v28664_v57  ;;  %v15199_v57 = vld [vmem:[#allocation2 + $0x32] sm:$0xff] }
 0xb5c   :  { %21358 = vmatprep.mubr.msk.f32.mxu1 %vm8561_vm2, %v14421_v26  ;;  %v15256_v26 = vld [vmem:[#allocation2 + $0x1fa] sm:$0xff] }
 0xb5f   :  { %21359 = vmatmul.mubr.msk.f32.gmra.mrb[200].mxu1 %vm8561_vm2, %v14422_v34  ;;  %v15259_v34 = vld [vmem:[#allocation2 + $0x212] sm:$0xff] }
 0xb60   :  { %21369 = vmatprep.mubr.msk.f32.mxu1 %vm8561_vm2, %v15197_v27  ;;  %v15260_v27 = vld [vmem:[#allocation2 + $0x21a] sm:$0xff] }
 0xb63   :  { %21370 = vmatmul.mubr.msk.f32.vlgmr.msra.gmra.mrb[138].mxu1 %vm8561_vm2, %v15198_v55 }
 0xb64   :  { %21372 = vmatprep.mubr.msk.f32.mxu1 %vm8561_vm2, %v15199_v57 }
 0xb67   :  { %21373 = vmatmul.mubr.msk.f32.gmra.mrb[140].mxu1 %vm8561_vm2, %v15200_v15 }
 0xb68   :  { %21375 = vmatprep.mubr.msk.f32.mxu1 %vm8561_vm2, %v15201_v2 }
 0xb6b   :  { %21376 = vmatmul.mubr.msk.f32.gmra.mrb[142].mxu1 %vm8561_vm2, %v15202_v31 }
 0xb6c   :  { %21378 = vmatprep.mubr.msk.f32.mxu1 %vm8561_vm2, %v15203_v33 }
 0xb6f   :  { %21379 = vmatmul.mubr.msk.f32.gmra.mrb[144].mxu1 %vm8561_vm2, %v15204_v37 }
 0xb70   :  { %21381 = vmatprep.mubr.msk.f32.mxu1 %vm8561_vm2, %v15205_v25 }
 0xb73   :  { %21382 = vmatmul.mubr.msk.f32.gmra.mrb[146].mxu1 %vm8561_vm2, %v15206_v32 }
 0xb74   :  { %21384 = vmatprep.mubr.msk.f32.mxu1 %vm8561_vm2, %v15207_v30 }
 0xb77   :  { %21385 = vmatmul.mubr.msk.f32.gmra.mrb[148].mxu1 %vm8561_vm2, %v15208_v38 }
 0xb78   :  { %21387 = vmatprep.mubr.msk.f32.mxu1 %vm8561_vm2, %v15209_v24 }
 0xb7b   :  { %21388 = vmatmul.mubr.msk.f32.gmra.mrb[150].mxu1 %vm8561_vm2, %v15210_v9 }
 0xb7c   :  { %21390 = vmatprep.mubr.msk.f32.mxu1 %vm8561_vm2, %v15211_v53 }
 0xb7f   :  { %21391 = vmatmul.mubr.msk.f32.gmra.mrb[152].mxu1 %vm8561_vm2, %v15212_v14 }
 0xb80   :  { %21393 = vmatprep.mubr.msk.f32.mxu1 %vm8561_vm2, %v15213_v45 }
 0xb83   :  { %21394 = vmatmul.mubr.msk.f32.gmra.mrb[154].mxu1 %vm8561_vm2, %v15214_v6 }
 0xb84   :  { %21396 = vmatprep.mubr.msk.f32.mxu1 %vm8561_vm2, %v15215_v54 }
 0xb87   :  { %21397 = vmatmul.mubr.msk.f32.gmra.mrb[156].mxu1 %vm8561_vm2, %v15216_v58 }
 0xb88   :  { %21399 = vmatprep.mubr.msk.f32.mxu1 %vm8561_vm2, %v15217_v23 }
 0xb8b   :  { %21400 = vmatmul.mubr.msk.f32.gmra.mrb[158].mxu1 %vm8561_vm2, %v15218_v29 }
 0xb8c   :  { %21402 = vmatprep.mubr.msk.f32.mxu1 %vm8561_vm2, %v15219_v35 }
 0xb8f   :  { %21403 = vmatmul.mubr.msk.f32.gmra.mrb[160].mxu1 %vm8561_vm2, %v15220_v28 }
 0xb90   :  { %21405 = vmatprep.mubr.msk.f32.mxu1 %vm8561_vm2, %v15221_v41 }
 0xb93   :  { %21406 = vmatmul.mubr.msk.f32.gmra.mrb[162].mxu1 %vm8561_vm2, %v15222_v43 }
 0xb94   :  { %21408 = vmatprep.mubr.msk.f32.mxu1 %vm8561_vm2, %v15223_v62 }
 0xb97   :  { %21409 = vmatmul.mubr.msk.f32.gmra.mrb[164].mxu1 %vm8561_vm2, %v15224_v1 }
 0xb98   :  { %21411 = vmatprep.mubr.msk.f32.mxu1 %vm8561_vm2, %v15225_v3 }
 0xb9b   :  { %21412 = vmatmul.mubr.msk.f32.gmra.mrb[166].mxu1 %vm8561_vm2, %v15226_v5 }
 0xb9c   :  { %21414 = vmatprep.mubr.msk.f32.mxu1 %vm8561_vm2, %v15227_v7 }
 0xb9f   :  { %21415 = vmatmul.mubr.msk.f32.gmra.mrb[168].mxu1 %vm8561_vm2, %v15228_v44 }
 0xba0   :  { %21417 = vmatprep.mubr.msk.f32.mxu1 %vm8561_vm2, %v15229_v47 }
 0xba3   :  { %21418 = vmatmul.mubr.msk.f32.gmra.mrb[170].mxu1 %vm8561_vm2, %v15230_v49 }
 0xba4   :  { %21420 = vmatprep.mubr.msk.f32.mxu1 %vm8561_vm2, %v15231_v51 }
 0xba7   :  { %21421 = vmatmul.mubr.msk.f32.gmra.mrb[172].mxu1 %vm8561_vm2, %v15232_v11 }
 0xba8   :  { %21423 = vmatprep.mubr.msk.f32.mxu1 %vm8561_vm2, %v15233_v12 }
 0xbab   :  { %21424 = vmatmul.mubr.msk.f32.gmra.mrb[174].mxu1 %vm8561_vm2, %v15234_v18 }
 0xbac   :  { %21426 = vmatprep.mubr.msk.f32.mxu1 %vm8561_vm2, %v15235_v20 }
 0xbaf   :  { %21427 = vmatmul.mubr.msk.f32.gmra.mrb[176].mxu1 %vm8561_vm2, %v15236_v22 }
 0xbb0   :  { %21429 = vmatprep.mubr.msk.f32.mxu1 %vm8561_vm2, %v15237_v42 }
 0xbb3   :  { %21430 = vmatmul.mubr.msk.f32.gmra.mrb[178].mxu1 %vm8561_vm2, %v15238_v61 }
 0xbb4   :  { %21432 = vmatprep.mubr.msk.f32.mxu1 %vm8561_vm2, %v15239_v63 }
 0xbb7   :  { %21433 = vmatmul.mubr.msk.f32.gmra.mrb[180].mxu1 %vm8561_vm2, %v15240_v4 }
 0xbb8   :  { %21435 = vmatprep.mubr.msk.f32.mxu1 %vm8561_vm2, %v15241_v8 }
 0xbbb   :  { %21436 = vmatmul.mubr.msk.f32.gmra.mrb[182].mxu1 %vm8561_vm2, %v15242_v10 }
 0xbbc   :  { %21438 = vmatprep.mubr.msk.f32.mxu1 %vm8561_vm2, %v15243_v48 }
 0xbbf   :  { %21439 = vmatmul.mubr.msk.f32.gmra.mrb[184].mxu1 %vm8561_vm2, %v15244_v50 }
 0xbc0   :  { %21441 = vmatprep.mubr.msk.f32.mxu1 %vm8561_vm2, %v15245_v36 }
 0xbc3   :  { %21442 = vmatmul.mubr.msk.f32.gmra.mrb[186].mxu1 %vm8561_vm2, %v15246_v40 }
 0xbc4   :  { %21444 = vmatprep.mubr.msk.f32.mxu1 %vm8561_vm2, %v15247_v60 }
 0xbc7   :  { %21445 = vmatmul.mubr.msk.f32.gmra.mrb[188].mxu1 %vm8561_vm2, %v15248_v46 }
 0xbc8   :  { %21447 = vmatprep.mubr.msk.f32.mxu1 %vm8561_vm2, %v15249_v17 }
 0xbcb   :  { %21448 = vmatmul.mubr.msk.f32.gmra.mrb[190].mxu1 %vm8561_vm2, %v15250_v52 }
 0xbcc   :  { %21450 = vmatprep.mubr.msk.f32.mxu1 %vm8561_vm2, %v15251_v59 }
 0xbcf   :  { %21451 = vmatmul.mubr.msk.f32.gmra.mrb[192].mxu1 %vm8561_vm2, %v15252_v13 }
 0xbd0   :  { %21453 = vmatprep.mubr.msk.f32.mxu1 %vm8561_vm2, %v15253_v39 }
 0xbd3   :  { %21454 = vmatmul.mubr.msk.f32.gmra.mrb[194].mxu1 %vm8561_vm2, %v15254_v19 }
 0xbd4   :  { %21456 = vmatprep.mubr.msk.f32.mxu1 %vm8561_vm2, %v15255_v21 }
 0xbd7   :  { %21457 = vmatmul.mubr.msk.f32.gmra.mrb[196].mxu1 %vm8561_vm2, %v15256_v26 }
 0xbd8   :  { %21459 = vmatprep.mubr.msk.f32.mxu1 %vm8561_vm2, %v28808_v0 }
 0xbdb   :  { %21460 = vmatmul.mubr.msk.f32.gmra.mrb[198].mxu1 %vm8561_vm2, %v28812_v56 }
 0xbdc   :  { %21462 = vmatprep.mubr.msk.f32.mxu1 %vm8561_vm2, %v15259_v34 }
 0xbdf   :  { %21463 = vmatmul.mubr.msk.f32.gmra.mrb[200].mxu1 %vm8561_vm2, %v15260_v27 }
 0xc36   :  { %v21371_v55 = vpop.f32.mrb[138].mxu1 }
 0xc37   :  { %v21955_v57 = vadd.f32 %v21371_v55, %v29026_v16  ;;  %v15524_v15 = vpop.f32.mrb[139].mxu1 }
 0xc38   :  { %v21958_v2 = vadd.f32 %v29026_v16, %v15524_v15 }
 0xc39   :  { %v16036_v31 = vmax.f32 %v21955_v57, 0.0 }
 0xc3a   :  { %v16035_v33 = vmax.f32 %v21958_v2, 0.0  ;;  %v21374_v37 = vpop.f32.mrb[140].mxu1 }
 0xc3b   :  { %16100 = vst [vmem:[%s29390_s5 + $0x8] sm:$0xff] %v16036_v31  ;;  %v21961_v0 = vadd.f32 %v21374_v37, %v29026_v16  ;;  %v15534_v56 = vpop.f32.mrb[141].mxu1 }
 0xc3c   :  { %16099 = vst [vmem:[%s29390_s5] sm:$0xff] %v16035_v33  ;;  %v21964_v25 = vadd.f32 %v29026_v16, %v15534_v56 }
 0xc3d   :  { %v16038_v32 = vmax.f32 %v21961_v0, 0.0 }
 0xc3e   :  { %v16037_v30 = vmax.f32 %v21964_v25, 0.0  ;;  %v21377_v38 = vpop.f32.mrb[142].mxu1 }
 0xc3f   :  { %16102 = vst [vmem:[%s29390_s5 + $0x18] sm:$0xff] %v16038_v32  ;;  %v21967_v24 = vadd.f32 %v21377_v38, %v29026_v16  ;;  %v15544_v9 = vpop.f32.mrb[143].mxu1 }
 0xc40   :  { %16101 = vst [vmem:[%s29390_s5 + $0x10] sm:$0xff] %v16037_v30  ;;  %v21970_v53 = vadd.f32 %v29026_v16, %v15544_v9 }
 0xc41   :  { %v16040_v14 = vmax.f32 %v21967_v24, 0.0 }
 0xc42   :  { %v16039_v45 = vmax.f32 %v21970_v53, 0.0  ;;  %v21380_v6 = vpop.f32.mrb[144].mxu1 }
 0xc43   :  { %16104 = vst [vmem:[%s29390_s5 + $0x28] sm:$0xff] %v16040_v14  ;;  %v21973_v54 = vadd.f32 %v21380_v6, %v29026_v16  ;;  %v15554_v58 = vpop.f32.mrb[145].mxu1 }
 0xc44   :  { %16103 = vst [vmem:[%s29390_s5 + $0x20] sm:$0xff] %v16039_v45  ;;  %v21976_v23 = vadd.f32 %v29026_v16, %v15554_v58 }
 0xc45   :  { %v16042_v29 = vmax.f32 %v21973_v54, 0.0 }
 0xc46   :  { %v16041_v35 = vmax.f32 %v21976_v23, 0.0  ;;  %v21383_v28 = vpop.f32.mrb[146].mxu1 }
 0xc47   :  { %16106 = vst [vmem:[%s29390_s5 + $0x38] sm:$0xff] %v16042_v29  ;;  %v21979_v41 = vadd.f32 %v21383_v28, %v29026_v16  ;;  %v15564_v43 = vpop.f32.mrb[147].mxu1 }
 0xc48   :  { %16105 = vst [vmem:[%s29390_s5 + $0x30] sm:$0xff] %v16041_v35  ;;  %v21982_v62 = vadd.f32 %v29026_v16, %v15564_v43 }
 0xc49   :  { %v16044_v1 = vmax.f32 %v21979_v41, 0.0 }
 0xc4a   :  { %v16043_v3 = vmax.f32 %v21982_v62, 0.0  ;;  %v21386_v5 = vpop.f32.mrb[148].mxu1 }
 0xc4b   :  { %16108 = vst [vmem:[%s29390_s5 + $0x48] sm:$0xff] %v16044_v1  ;;  %v21985_v7 = vadd.f32 %v21386_v5, %v29026_v16  ;;  %v15574_v44 = vpop.f32.mrb[149].mxu1 }
 0xc4c   :  { %16107 = vst [vmem:[%s29390_s5 + $0x40] sm:$0xff] %v16043_v3  ;;  %v21988_v47 = vadd.f32 %v29026_v16, %v15574_v44 }
 0xc4d   :  { %v16046_v49 = vmax.f32 %v21985_v7, 0.0 }
 0xc4e   :  { %v16045_v51 = vmax.f32 %v21988_v47, 0.0  ;;  %v21389_v11 = vpop.f32.mrb[150].mxu1 }
 0xc4f   :  { %16110 = vst [vmem:[%s29390_s5 + $0x58] sm:$0xff] %v16046_v49  ;;  %v21991_v12 = vadd.f32 %v21389_v11, %v29026_v16  ;;  %v15584_v18 = vpop.f32.mrb[151].mxu1 }
 0xc50   :  { %16109 = vst [vmem:[%s29390_s5 + $0x50] sm:$0xff] %v16045_v51  ;;  %v21994_v20 = vadd.f32 %v29026_v16, %v15584_v18 }
 0xc51   :  { %v16048_v22 = vmax.f32 %v21991_v12, 0.0 }
 0xc52   :  { %v16047_v42 = vmax.f32 %v21994_v20, 0.0  ;;  %v21392_v61 = vpop.f32.mrb[152].mxu1 }
 0xc53   :  { %16112 = vst [vmem:[%s29390_s5 + $0x68] sm:$0xff] %v16048_v22  ;;  %v21997_v63 = vadd.f32 %v21392_v61, %v29026_v16  ;;  %v15594_v4 = vpop.f32.mrb[153].mxu1 }
 0xc54   :  { %16111 = vst [vmem:[%s29390_s5 + $0x60] sm:$0xff] %v16047_v42  ;;  %v22000_v8 = vadd.f32 %v29026_v16, %v15594_v4 }
 0xc55   :  { %v16050_v10 = vmax.f32 %v21997_v63, 0.0 }
 0xc56   :  { %v16049_v48 = vmax.f32 %v22000_v8, 0.0  ;;  %v21395_v50 = vpop.f32.mrb[154].mxu1 }
 0xc57   :  { %16114 = vst [vmem:[%s29390_s5 + $0x78] sm:$0xff] %v16050_v10  ;;  %v22003_v36 = vadd.f32 %v21395_v50, %v29026_v16  ;;  %v15604_v40 = vpop.f32.mrb[155].mxu1 }
 0xc58   :  { %16113 = vst [vmem:[%s29390_s5 + $0x70] sm:$0xff] %v16049_v48  ;;  %v22006_v60 = vadd.f32 %v29026_v16, %v15604_v40 }
 0xc59   :  { %v16052_v46 = vmax.f32 %v22003_v36, 0.0 }
 0xc5a   :  { %v16051_v17 = vmax.f32 %v22006_v60, 0.0  ;;  %v21398_v52 = vpop.f32.mrb[156].mxu1 }
 0xc5b   :  { %16116 = vst [vmem:[%s29390_s5 + $0x88] sm:$0xff] %v16052_v46  ;;  %v22009_v59 = vadd.f32 %v21398_v52, %v29026_v16  ;;  %v15614_v13 = vpop.f32.mrb[157].mxu1 }
 0xc5c   :  { %16115 = vst [vmem:[%s29390_s5 + $0x80] sm:$0xff] %v16051_v17  ;;  %v22012_v39 = vadd.f32 %v29026_v16, %v15614_v13 }
 0xc5d   :  { %v16054_v19 = vmax.f32 %v22009_v59, 0.0 }
 0xc5e   :  { %v16053_v21 = vmax.f32 %v22012_v39, 0.0  ;;  %v21401_v26 = vpop.f32.mrb[158].mxu1 }
 0xc5f   :  { %16118 = vst [vmem:[%s29390_s5 + $0x98] sm:$0xff] %v16054_v19  ;;  %v22015_v34 = vadd.f32 %v21401_v26, %v29026_v16  ;;  %v15624_v27 = vpop.f32.mrb[159].mxu1 }
 0xc60   :  { %16117 = vst [vmem:[%s29390_s5 + $0x90] sm:$0xff] %v16053_v21  ;;  %v22018_v55 = vadd.f32 %v29026_v16, %v15624_v27 }
 0xc61   :  { %v16056_v57 = vmax.f32 %v22015_v34, 0.0 }
 0xc62   :  { %v16055_v15 = vmax.f32 %v22018_v55, 0.0  ;;  %v21404_v2 = vpop.f32.mrb[160].mxu1 }
 0xc63   :  { %16120 = vst [vmem:[%s29390_s5 + $0xa8] sm:$0xff] %v16056_v57  ;;  %v22021_v31 = vadd.f32 %v21404_v2, %v29026_v16  ;;  %v15634_v33 = vpop.f32.mrb[161].mxu1 }
 0xc64   :  { %16119 = vst [vmem:[%s29390_s5 + $0xa0] sm:$0xff] %v16055_v15  ;;  %v22024_v37 = vadd.f32 %v29026_v16, %v15634_v33 }
 0xc65   :  { %v16058_v0 = vmax.f32 %v22021_v31, 0.0 }
 0xc66   :  { %v16057_v56 = vmax.f32 %v22024_v37, 0.0  ;;  %v21407_v25 = vpop.f32.mrb[162].mxu1 }
 0xc67   :  { %16122 = vst [vmem:[%s29390_s5 + $0xb8] sm:$0xff] %v16058_v0  ;;  %v22027_v32 = vadd.f32 %v21407_v25, %v29026_v16  ;;  %v15644_v30 = vpop.f32.mrb[163].mxu1 }
 0xc68   :  { %16121 = vst [vmem:[%s29390_s5 + $0xb0] sm:$0xff] %v16057_v56  ;;  %v22030_v38 = vadd.f32 %v29026_v16, %v15644_v30 }
 0xc69   :  { %v16060_v24 = vmax.f32 %v22027_v32, 0.0 }
 0xc6a   :  { %v16059_v9 = vmax.f32 %v22030_v38, 0.0  ;;  %v21410_v53 = vpop.f32.mrb[164].mxu1 }
 0xc6b   :  { %16124 = vst [vmem:[%s29390_s5 + $0xc8] sm:$0xff] %v16060_v24  ;;  %v22033_v14 = vadd.f32 %v21410_v53, %v29026_v16  ;;  %v15654_v45 = vpop.f32.mrb[165].mxu1 }
 0xc6c   :  { %16123 = vst [vmem:[%s29390_s5 + $0xc0] sm:$0xff] %v16059_v9  ;;  %v22036_v6 = vadd.f32 %v29026_v16, %v15654_v45 }
 0xc6d   :  { %v16062_v54 = vmax.f32 %v22033_v14, 0.0 }
 0xc6e   :  { %v16061_v58 = vmax.f32 %v22036_v6, 0.0  ;;  %v21413_v23 = vpop.f32.mrb[166].mxu1 }
 0xc6f   :  { %16126 = vst [vmem:[%s29390_s5 + $0xd8] sm:$0xff] %v16062_v54  ;;  %v22039_v29 = vadd.f32 %v21413_v23, %v29026_v16  ;;  %v15664_v35 = vpop.f32.mrb[167].mxu1 }
 0xc70   :  { %16125 = vst [vmem:[%s29390_s5 + $0xd0] sm:$0xff] %v16061_v58  ;;  %v22042_v28 = vadd.f32 %v29026_v16, %v15664_v35 }
 0xc71   :  { %v16064_v41 = vmax.f32 %v22039_v29, 0.0 }
 0xc72   :  { %v16063_v43 = vmax.f32 %v22042_v28, 0.0  ;;  %v21416_v62 = vpop.f32.mrb[168].mxu1 }
 0xc73   :  { %16128 = vst [vmem:[%s29390_s5 + $0xe8] sm:$0xff] %v16064_v41  ;;  %v22045_v1 = vadd.f32 %v21416_v62, %v29026_v16  ;;  %v15674_v3 = vpop.f32.mrb[169].mxu1 }
 0xc74   :  { %16127 = vst [vmem:[%s29390_s5 + $0xe0] sm:$0xff] %v16063_v43  ;;  %v22048_v5 = vadd.f32 %v29026_v16, %v15674_v3 }
 0xc75   :  { %v16066_v7 = vmax.f32 %v22045_v1, 0.0 }
 0xc76   :  { %v16065_v44 = vmax.f32 %v22048_v5, 0.0  ;;  %v21419_v47 = vpop.f32.mrb[170].mxu1 }
 0xc77   :  { %16130 = vst [vmem:[%s29390_s5 + $0xf8] sm:$0xff] %v16066_v7  ;;  %v22051_v49 = vadd.f32 %v21419_v47, %v29026_v16  ;;  %v15684_v51 = vpop.f32.mrb[171].mxu1 }
 0xc78   :  { %16129 = vst [vmem:[%s29390_s5 + $0xf0] sm:$0xff] %v16065_v44  ;;  %v22054_v11 = vadd.f32 %v29026_v16, %v15684_v51 }
 0xc79   :  { %v16068_v12 = vmax.f32 %v22051_v49, 0.0 }
 0xc7a   :  { %v16067_v18 = vmax.f32 %v22054_v11, 0.0  ;;  %v21422_v20 = vpop.f32.mrb[172].mxu1 }
 0xc7b   :  { %16132 = vst [vmem:[%s29390_s5 + $0x108] sm:$0xff] %v16068_v12  ;;  %v22057_v22 = vadd.f32 %v21422_v20, %v29026_v16  ;;  %v15694_v42 = vpop.f32.mrb[173].mxu1 }
 0xc7c   :  { %16131 = vst [vmem:[%s29390_s5 + $0x100] sm:$0xff] %v16067_v18  ;;  %v22060_v61 = vadd.f32 %v29026_v16, %v15694_v42 }
 0xc7d   :  { %v16070_v63 = vmax.f32 %v22057_v22, 0.0 }
 0xc7e   :  { %v16069_v4 = vmax.f32 %v22060_v61, 0.0  ;;  %v21425_v8 = vpop.f32.mrb[174].mxu1 }
 0xc7f   :  { %16134 = vst [vmem:[%s29390_s5 + $0x118] sm:$0xff] %v16070_v63  ;;  %v22063_v10 = vadd.f32 %v21425_v8, %v29026_v16  ;;  %v15704_v48 = vpop.f32.mrb[175].mxu1 }
 0xc80   :  { %16133 = vst [vmem:[%s29390_s5 + $0x110] sm:$0xff] %v16069_v4  ;;  %v22066_v50 = vadd.f32 %v29026_v16, %v15704_v48 }
 0xc81   :  { %v16072_v36 = vmax.f32 %v22063_v10, 0.0  ;;  %v8488_v10 = vld [vmem:[%s29390_s5 + $0x1d8] sm:$0xff] }
 0xc82   :  { %v16071_v40 = vmax.f32 %v22066_v50, 0.0  ;;  %v21428_v60 = vpop.f32.mrb[176].mxu1  ;;  %v8487_v50 = vld [vmem:[%s29390_s5 + $0x1d0] sm:$0xff] }
 0xc83   :  { %16136 = vst [vmem:[%s29390_s5 + $0x128] sm:$0xff] %v16072_v36  ;;  %v22069_v46 = vadd.f32 %v21428_v60, %v29026_v16  ;;  %v15714_v17 = vpop.f32.mrb[177].mxu1 }
 0xc84   :  { %16135 = vst [vmem:[%s29390_s5 + $0x120] sm:$0xff] %v16071_v40  ;;  %v22072_v52 = vadd.f32 %v29026_v16, %v15714_v17  ;;  %v8490_v17 = vld [vmem:[%s29390_s5 + $0x1e8] sm:$0xff] }
 0xc85   :  { %v16074_v59 = vmax.f32 %v22069_v46, 0.0 }
 0xc86   :  { %v16073_v13 = vmax.f32 %v22072_v52, 0.0  ;;  %v21431_v39 = vpop.f32.mrb[178].mxu1 }
 0xc87   :  { %16138 = vst [vmem:[%s29390_s5 + $0x138] sm:$0xff] %v16074_v59  ;;  %v22075_v19 = vadd.f32 %v21431_v39, %v29026_v16  ;;  %v15724_v21 = vpop.f32.mrb[179].mxu1  ;;  %v8489_v59 = vld [vmem:[%s29390_s5 + $0x1e0] sm:$0xff] }
 0xc88   :  { %16137 = vst [vmem:[%s29390_s5 + $0x130] sm:$0xff] %v16073_v13  ;;  %v22078_v26 = vadd.f32 %v29026_v16, %v15724_v21 }
 0xc89   :  { %v16076_v34 = vmax.f32 %v22075_v19, 0.0 }
 0xc8a   :  { %v16075_v27 = vmax.f32 %v22078_v26, 0.0  ;;  %v21434_v55 = vpop.f32.mrb[180].mxu1 }
 0xc8b   :  { %16140 = vst [vmem:[%s29390_s5 + $0x148] sm:$0xff] %v16076_v34  ;;  %v22081_v57 = vadd.f32 %v21434_v55, %v29026_v16  ;;  %v15734_v15 = vpop.f32.mrb[181].mxu1  ;;  %v8492_v34 = vld [vmem:[%s29390_s5 + $0x1f8] sm:$0xff]  ;;  %v8491_v55 = vld [vmem:[%s29390_s5 + $0x1f0] sm:$0xff] }
 0xc8c   :  { %16139 = vst [vmem:[%s29390_s5 + $0x140] sm:$0xff] %v16075_v27  ;;  %v22084_v2 = vadd.f32 %v29026_v16, %v15734_v15 }
 0xc8d   :  { %v16078_v31 = vmax.f32 %v22081_v57, 0.0 }
 0xc8e   :  { %v16077_v33 = vmax.f32 %v22084_v2, 0.0  ;;  %v21437_v37 = vpop.f32.mrb[182].mxu1 }
 0xc8f   :  { %16142 = vst [vmem:[%s29390_s5 + $0x158] sm:$0xff] %v16078_v31  ;;  %v22087_v0 = vadd.f32 %v21437_v37, %v29026_v16  ;;  %v15744_v56 = vpop.f32.mrb[183].mxu1 }
 0xc90   :  { %16141 = vst [vmem:[%s29390_s5 + $0x150] sm:$0xff] %v16077_v33  ;;  %v22090_v25 = vadd.f32 %v29026_v16, %v15744_v56 }
 0xc91   :  { %v16080_v32 = vmax.f32 %v22087_v0, 0.0 }
 0xc92   :  { %v16079_v30 = vmax.f32 %v22090_v25, 0.0  ;;  %v21440_v38 = vpop.f32.mrb[184].mxu1 }
 0xc93   :  { %16144 = vst [vmem:[%s29390_s5 + $0x168] sm:$0xff] %v16080_v32  ;;  %v22093_v24 = vadd.f32 %v21440_v38, %v29026_v16  ;;  %v15754_v9 = vpop.f32.mrb[185].mxu1 }
 0xc94   :  { %16143 = vst [vmem:[%s29390_s5 + $0x160] sm:$0xff] %v16079_v30  ;;  %v22096_v53 = vadd.f32 %v29026_v16, %v15754_v9 }
 0xc95   :  { %v16082_v14 = vmax.f32 %v22093_v24, 0.0 }
 0xc96   :  { %v16081_v45 = vmax.f32 %v22096_v53, 0.0  ;;  %v21443_v6 = vpop.f32.mrb[186].mxu1 }
 0xc97   :  { %16146 = vst [vmem:[%s29390_s5 + $0x178] sm:$0xff] %v16082_v14  ;;  %v22099_v54 = vadd.f32 %v21443_v6, %v29026_v16  ;;  %v15764_v58 = vpop.f32.mrb[187].mxu1 }
 0xc98   :  { %16145 = vst [vmem:[%s29390_s5 + $0x170] sm:$0xff] %v16081_v45  ;;  %v22102_v23 = vadd.f32 %v29026_v16, %v15764_v58 }
 0xc99   :  { %v16084_v29 = vmax.f32 %v22099_v54, 0.0 }
 0xc9a   :  { %v16083_v35 = vmax.f32 %v22102_v23, 0.0  ;;  %v21446_v28 = vpop.f32.mrb[188].mxu1 }
 0xc9b   :  { %16148 = vst [vmem:[%s29390_s5 + $0x188] sm:$0xff] %v16084_v29  ;;  %v22105_v41 = vadd.f32 %v21446_v28, %v29026_v16  ;;  %v15774_v43 = vpop.f32.mrb[189].mxu1 }
 0xc9c   :  { %16147 = vst [vmem:[%s29390_s5 + $0x180] sm:$0xff] %v16083_v35  ;;  %v22108_v62 = vadd.f32 %v29026_v16, %v15774_v43 }
 0xc9d   :  { %v16086_v1 = vmax.f32 %v22105_v41, 0.0 }
 0xc9e   :  { %v16085_v3 = vmax.f32 %v22108_v62, 0.0  ;;  %v21449_v5 = vpop.f32.mrb[190].mxu1 }
 0xc9f   :  { %16150 = vst [vmem:[%s29390_s5 + $0x198] sm:$0xff] %v16086_v1  ;;  %v22111_v7 = vadd.f32 %v21449_v5, %v29026_v16  ;;  %v15784_v44 = vpop.f32.mrb[191].mxu1 }
 0xca0   :  { %16149 = vst [vmem:[%s29390_s5 + $0x190] sm:$0xff] %v16085_v3  ;;  %v22114_v47 = vadd.f32 %v29026_v16, %v15784_v44 }
 0xca1   :  { %v16088_v49 = vmax.f32 %v22111_v7, 0.0 }
 0xca2   :  { %v16087_v51 = vmax.f32 %v22114_v47, 0.0  ;;  %v21452_v11 = vpop.f32.mrb[192].mxu1 }
 0xca3   :  { %16152 = vst [vmem:[%s29390_s5 + $0x1a8] sm:$0xff] %v16088_v49  ;;  %v22117_v12 = vadd.f32 %v21452_v11, %v29026_v16  ;;  %v15794_v18 = vpop.f32.mrb[193].mxu1 }
 0xca4   :  { %16151 = vst [vmem:[%s29390_s5 + $0x1a0] sm:$0xff] %v16087_v51  ;;  %v22120_v20 = vadd.f32 %v29026_v16, %v15794_v18 }
 0xca5   :  { %v16090_v22 = vmax.f32 %v22117_v12, 0.0 }
 0xca6   :  { %v16089_v42 = vmax.f32 %v22120_v20, 0.0  ;;  %v21455_v61 = vpop.f32.mrb[194].mxu1 }
 0xca7   :  { %16154 = vst [vmem:[%s29390_s5 + $0x1b8] sm:$0xff] %v16090_v22  ;;  %v22123_v63 = vadd.f32 %v21455_v61, %v29026_v16  ;;  %v15804_v4 = vpop.f32.mrb[195].mxu1 }
 0xca8   :  { %16153 = vst [vmem:[%s29390_s5 + $0x1b0] sm:$0xff] %v16089_v42  ;;  %v22126_v8 = vadd.f32 %v29026_v16, %v15804_v4 }
 0xca9   :  { %v16092_v48 = vmax.f32 %v22123_v63, 0.0 }
 0xcaa   :  { %v16091_v36 = vmax.f32 %v22126_v8, 0.0  ;;  %v21458_v40 = vpop.f32.mrb[196].mxu1 }
 0xcab   :  { %16156 = vst [vmem:[%s29390_s5 + $0x1c8] sm:$0xff] %v16092_v48  ;;  %v22129_v60 = vadd.f32 %v21458_v40, %v8488_v10  ;;  %v15814_v46 = vpop.f32.mrb[197].mxu1 }
 0xcac   :  { %16155 = vst [vmem:[%s29390_s5 + $0x1c0] sm:$0xff] %v16091_v36  ;;  %v22132_v16 = vadd.f32 %v15814_v46, %v8487_v50 }
 0xcad   :  { %v16094_v52 = vmax.f32 %v22129_v60, 0.0 }
 0xcae   :  { %v16093_v13 = vmax.f32 %v22132_v16, 0.0  ;;  %v21461_v39 = vpop.f32.mrb[198].mxu1 }
 0xcaf   :  { %16158 = vst [vmem:[%s29390_s5 + $0x1d8] sm:$0xff] %v16094_v52  ;;  %v22135_v19 = vadd.f32 %v21461_v39, %v8490_v17  ;;  %v15824_v21 = vpop.f32.mrb[199].mxu1 }
 0xcb0   :  { %16157 = vst [vmem:[%s29390_s5 + $0x1d0] sm:$0xff] %v16093_v13  ;;  %v22138_v26 = vadd.f32 %v15824_v21, %v8489_v59 }
 0xcb1   :  { %v16096_v27 = vmax.f32 %v22135_v19, 0.0 }
 0xcb2   :  { %v16095_v57 = vmax.f32 %v22138_v26, 0.0  ;;  %v21464_v15 = vpop.f32.mrb[200].mxu1 }
 0xcb3   :  { %16160 = vst [vmem:[%s29390_s5 + $0x1e8] sm:$0xff] %v16096_v27  ;;  %v22141_v2 = vadd.f32 %v21464_v15, %v8492_v34  ;;  %v15834_v31 = vpop.f32.mrb[201].mxu1 }
 0xcb4   :  { %16159 = vst [vmem:[%s29390_s5 + $0x1e0] sm:$0xff] %v16095_v57  ;;  %v22144_v33 = vadd.f32 %v15834_v31, %v8491_v55 }
 0xcb5   :  { %v16098_v37 = vmax.f32 %v22141_v2, 0.0 }
 0xcb6   :  { %v16097_v0 = vmax.f32 %v22144_v33, 0.0 }
 0xcb7   :  { %16162 = vst [vmem:[%s29390_s5 + $0x1f8] sm:$0xff] %v16098_v37 }
 0xcb8   :  { %16161 = vst [vmem:[%s29390_s5 + $0x1f0] sm:$0xff] %v16097_v0 }

</bundles_post_ra>
